<compile_context>
chip_gen: v5e
topology: v5e:2x2
jax: 0.10.0
libtpu: 0.0.40
codegen_flags: <defaults>
</compile_context>

<pallas_src>
import math

import jax
import jax.numpy as jnp
from jax import lax
from jax.experimental import pallas as pl
from jax.experimental.pallas import tpu as pltpu


def _round_up(x, m):
    return ((x + m - 1) // m) * m


def _make_fused_kernel(k0, k1, stride, wide, cout):
    """Builds the fused conv+mul+conv+add+relu kernel (wide-flat spatial layout)."""

    def kernel(w0_ref, b0_ref, x1_ref, x3_ref, x2_ref, w1_ref, b1_ref, out_ref):
        # ---- conv0: 1->1, k0 x k0, VALID.  169 scalar-FMA taps on the VPU. ----
        # v1[j] = sum_{kh,kw} w0[kh,kw] * x1flat[kh*S + kw + j]
        v1 = jnp.zeros((1, wide), jnp.float32)
        for kh in range(k0):
            for kw in range(k0):
                base = kh * stride + kw
                v1 = v1 + w0_ref[kh * k0 + kw] * x1_ref[:, base:base + wide]
        # v2 = x3 * (conv0 + b0)   (elementwise, VPU)
        v2 = x3_ref[...] * (v1 + b0_ref[0])                      # (1, wide)

        # ---- conv1: cin->cout, k1 x k1, SAME.  49 MXU tap-GEMMs, f32 accum. ----
        # acc[co, j] += w1[:,:,kh,kw] @ x2flat[:, kh*S + kw + j]
        acc = jnp.zeros((cout, wide), jnp.float32)
        for kh in range(k1):
            for kw in range(k1):
                base = kh * stride + kw
                acc = acc + jnp.dot(w1_ref[kh * k1 + kw],              # (cout, cin) bf16
                                    x2_ref[:, base:base + wide],       # (cin, wide) bf16
                                    preferred_element_type=jnp.float32)
        v3 = acc + b1_ref[...]                                    # (cout, 1) broadcast

        # v5 = relu(v2 + v3)   (v2 broadcast over output channels)
        out_ref[...] = jnp.maximum(v2 + v3, 0.0)

    return kernel


def model_forward(x1, x2, x3, w0, b0, w1, b1):
    # x1: (1, 1, H1, W1), x2: (1, Cin, H, W), x3 broadcastable to (1, 1, H, W)
    _, _, h1, w1sp = x1.shape
    _, cin, h, w = x2.shape
    cout, _, k1, _ = w1.shape
    k0 = w0.shape[-1]
    ho, wo = h1 - k0 + 1, w1sp - k0 + 1
    assert (ho, wo) == (h, w), "conv(x1) output must match conv1(x2) output spatially"

    pad = (k1 - 1) // 2
    assert w1sp >= w + 2 * pad, "wide-row layout requires k0 >= k1"

    stride = w1sp              # common wide row stride (= x1 width = wo + k0 - 1)
    wide = ho * stride         # wide (garbage-padded) flat output width

    # conv0 activation: x1 flattened at row stride `stride`, zero-padded so every
    # tap's length-`wide` lane slice stays in bounds.
    x1_need = (k0 - 1) * (stride + 1) + wide
    x1_len = _round_up(x1_need, 128)
    x1flat = jnp.pad(x1[0, 0].astype(jnp.float32).reshape(1, h1 * w1sp),
                     ((0, 0), (0, x1_len - h1 * w1sp)))

    # conv1 activation: spatial zero-pad to (cin, h+2p, stride), flatten, pad, bf16.
    x2p = jnp.pad(x2[0], ((0, 0), (pad, pad), (pad, stride - w - pad)))
    hp = h + 2 * pad
    x2_need = (k1 - 1) * (stride + 1) + wide
    x2_len = _round_up(x2_need, 128)
    x2flat = jnp.pad(x2p.reshape(cin, hp * stride),
                     ((0, 0), (0, x2_len - hp * stride))).astype(jnp.bfloat16)

    # weights: conv0 taps as SMEM scalars; conv1 taps as (k1*k1, cout, cin) bf16.
    w0f = w0.astype(jnp.float32).reshape(k0 * k0)
    w1taps = jnp.transpose(w1, (2, 3, 0, 1)).reshape(k1 * k1, cout, cin).astype(jnp.bfloat16)
    b0f = b0.astype(jnp.float32).reshape(1)
    b1c = b1.astype(jnp.float32).reshape(cout, 1)

    # x3 in the wide layout (garbage columns ow >= wo are dropped at the end).
    x3w = jnp.pad(jnp.broadcast_to(x3, (1, 1, ho, wo))[0, 0].astype(jnp.float32),
                  ((0, 0), (0, stride - wo))).reshape(1, wide)

    kernel = _make_fused_kernel(k0, k1, stride, wide, cout)

    out_wide = pl.pallas_call(
        kernel,
        out_shape=jax.ShapeDtypeStruct((cout, wide), jnp.float32),
        in_specs=[
            pl.BlockSpec(memory_space=pltpu.MemorySpace.SMEM),   # w0 taps (scalars)
            pl.BlockSpec(memory_space=pltpu.MemorySpace.SMEM),   # b0 (scalar)
            pl.BlockSpec(memory_space=pltpu.MemorySpace.VMEM),   # x1 flat
            pl.BlockSpec(memory_space=pltpu.MemorySpace.VMEM),   # x3 wide
            pl.BlockSpec(memory_space=pltpu.MemorySpace.VMEM),   # x2 flat (bf16)
            pl.BlockSpec(memory_space=pltpu.MemorySpace.VMEM),   # w1 taps (bf16)
            pl.BlockSpec(memory_space=pltpu.MemorySpace.VMEM),   # b1
        ],
        out_specs=pl.BlockSpec(memory_space=pltpu.MemorySpace.VMEM),
    )(w0f, b0f, x1flat, x3w, x2flat, w1taps, b1c)

    # drop the wide-layout garbage columns and restore NCHW
    out = out_wide.reshape(cout, ho, stride)[:, :, :wo]
    return out.reshape(1, cout, ho, wo)


def ref_forward(x1, x2, x3, w0, b0, w1, b1):
    dn = ("NCHW", "OIHW", "NCHW")
    v1 = lax.conv_general_dilated(x1, w0, (1, 1), "VALID", dimension_numbers=dn,
                                  precision=lax.Precision.HIGHEST) + b0.reshape(1, -1, 1, 1)
    v2 = x3 * v1
    v3 = lax.conv_general_dilated(x2, w1, (1, 1), [(3, 3), (3, 3)], dimension_numbers=dn,
                                  precision=lax.Precision.HIGHEST) + b1.reshape(1, -1, 1, 1)
    return jnp.maximum(v2 + v3, 0.0)


if __name__ == "__main__":
    key = jax.random.PRNGKey(0)
    ks = jax.random.split(key, 7)
    H = 16                       # output spatial size
    K0, K1, CIN, COUT = 13, 7, 16, 16

    # inputs (small shapes consistent with the module's forward)
    x1 = jax.random.normal(ks[0], (1, 1, H + K0 - 1, H + K0 - 1), jnp.float32)  # (1,1,28,28)
    x2 = jax.random.normal(ks[1], (1, CIN, H, H), jnp.float32)                  # (1,16,16,16)
    x3 = jax.random.normal(ks[2], (1, 1, H, H), jnp.float32)                    # (1,1,16,16)

    # deterministic parameter init (Conv2d-style uniform bounds)
    bound0 = 1.0 / math.sqrt(1 * K0 * K0)
    w0 = jax.random.uniform(ks[3], (1, 1, K0, K0), jnp.float32, -bound0, bound0)
    b0 = jax.random.uniform(ks[4], (1,), jnp.float32, -bound0, bound0)
    bound1 = 1.0 / math.sqrt(CIN * K1 * K1)
    w1 = jax.random.uniform(ks[5], (COUT, CIN, K1, K1), jnp.float32, -bound1, bound1)
    b1 = jax.random.uniform(ks[6], (COUT,), jnp.float32, -bound1, bound1)

    out = jax.jit(model_forward)(x1, x2, x3, w0, b0, w1, b1)
    out = jax.block_until_ready(out)

    ref = ref_forward(x1, x2, x3, w0, b0, w1, b1)
    assert out.shape == (1, COUT, H, H), out.shape
    err = float(jnp.max(jnp.abs(out - ref)))
    assert jnp.allclose(out, ref, rtol=1e-2, atol=1e-2), f"max abs err = {err}"

    print("KERNEL_OK")
</pallas_src>

<mosaic_0001>
module attributes {stable_mosaic.version = 11 : i64} {
  func.func @kernel(%arg0: memref<169xf32, #tpu.memory_space<smem>>, %arg1: memref<1xf32, #tpu.memory_space<smem>>, %arg2: memref<1x896xf32, #tpu.memory_space<vmem>>, %arg3: memref<1x448xf32, #tpu.memory_space<vmem>>, %arg4: memref<16x640xbf16, #tpu.memory_space<vmem>>, %arg5: memref<49x16x16xbf16, #tpu.memory_space<vmem>>, %arg6: memref<16x1xf32, #tpu.memory_space<vmem>>, %arg7: memref<16x448xf32, #tpu.memory_space<vmem>>) attributes {dimension_semantics = [], scalar_prefetch = 0 : i64, scratch_operands = 0 : i64, tpu.core_type = #tpu.core_type<tc>} {
    %cst = arith.constant 0.000000e+00 : f32
    %0 = vector.broadcast %cst : f32 to vector<1x448xf32>
    %c0 = arith.constant 0 : index
    %1 = memref.load %arg0[%c0] : memref<169xf32, #tpu.memory_space<smem>>
    %c0_0 = arith.constant 0 : index
    %c0_1 = arith.constant 0 : index
    %2 = vector.load %arg2[%c0_0, %c0_1] : memref<1x896xf32, #tpu.memory_space<vmem>>, vector<1x448xf32>
    %3 = vector.broadcast %1 : f32 to vector<1x448xf32>
    %4 = arith.mulf %3, %2 : vector<1x448xf32>
    %5 = arith.addf %0, %4 : vector<1x448xf32>
    %c1 = arith.constant 1 : index
    %6 = memref.load %arg0[%c1] : memref<169xf32, #tpu.memory_space<smem>>
    %c0_2 = arith.constant 0 : index
    %c1_3 = arith.constant 1 : index
    %7 = vector.load %arg2[%c0_2, %c1_3] : memref<1x896xf32, #tpu.memory_space<vmem>>, vector<1x448xf32>
    %8 = vector.broadcast %6 : f32 to vector<1x448xf32>
    %9 = arith.mulf %8, %7 : vector<1x448xf32>
    %10 = arith.addf %5, %9 : vector<1x448xf32>
    %c2 = arith.constant 2 : index
    %11 = memref.load %arg0[%c2] : memref<169xf32, #tpu.memory_space<smem>>
    %c0_4 = arith.constant 0 : index
    %c2_5 = arith.constant 2 : index
    %12 = vector.load %arg2[%c0_4, %c2_5] : memref<1x896xf32, #tpu.memory_space<vmem>>, vector<1x448xf32>
    %13 = vector.broadcast %11 : f32 to vector<1x448xf32>
    %14 = arith.mulf %13, %12 : vector<1x448xf32>
    %15 = arith.addf %10, %14 : vector<1x448xf32>
    %c3 = arith.constant 3 : index
    %16 = memref.load %arg0[%c3] : memref<169xf32, #tpu.memory_space<smem>>
    %c0_6 = arith.constant 0 : index
    %c3_7 = arith.constant 3 : index
    %17 = vector.load %arg2[%c0_6, %c3_7] : memref<1x896xf32, #tpu.memory_space<vmem>>, vector<1x448xf32>
    %18 = vector.broadcast %16 : f32 to vector<1x448xf32>
    %19 = arith.mulf %18, %17 : vector<1x448xf32>
    %20 = arith.addf %15, %19 : vector<1x448xf32>
    %c4 = arith.constant 4 : index
    %21 = memref.load %arg0[%c4] : memref<169xf32, #tpu.memory_space<smem>>
    %c0_8 = arith.constant 0 : index
    %c4_9 = arith.constant 4 : index
    %22 = vector.load %arg2[%c0_8, %c4_9] : memref<1x896xf32, #tpu.memory_space<vmem>>, vector<1x448xf32>
    %23 = vector.broadcast %21 : f32 to vector<1x448xf32>
    %24 = arith.mulf %23, %22 : vector<1x448xf32>
    %25 = arith.addf %20, %24 : vector<1x448xf32>
    %c5 = arith.constant 5 : index
    %26 = memref.load %arg0[%c5] : memref<169xf32, #tpu.memory_space<smem>>
    %c0_10 = arith.constant 0 : index
    %c5_11 = arith.constant 5 : index
    %27 = vector.load %arg2[%c0_10, %c5_11] : memref<1x896xf32, #tpu.memory_space<vmem>>, vector<1x448xf32>
    %28 = vector.broadcast %26 : f32 to vector<1x448xf32>
    %29 = arith.mulf %28, %27 : vector<1x448xf32>
    %30 = arith.addf %25, %29 : vector<1x448xf32>
    %c6 = arith.constant 6 : index
    %31 = memref.load %arg0[%c6] : memref<169xf32, #tpu.memory_space<smem>>
    %c0_12 = arith.constant 0 : index
    %c6_13 = arith.constant 6 : index
    %32 = vector.load %arg2[%c0_12, %c6_13] : memref<1x896xf32, #tpu.memory_space<vmem>>, vector<1x448xf32>
    %33 = vector.broadcast %31 : f32 to vector<1x448xf32>
    %34 = arith.mulf %33, %32 : vector<1x448xf32>
    %35 = arith.addf %30, %34 : vector<1x448xf32>
    %c7 = arith.constant 7 : index
    %36 = memref.load %arg0[%c7] : memref<169xf32, #tpu.memory_space<smem>>
    %c0_14 = arith.constant 0 : index
    %c7_15 = arith.constant 7 : index
    %37 = vector.load %arg2[%c0_14, %c7_15] : memref<1x896xf32, #tpu.memory_space<vmem>>, vector<1x448xf32>
    %38 = vector.broadcast %36 : f32 to vector<1x448xf32>
    %39 = arith.mulf %38, %37 : vector<1x448xf32>
    %40 = arith.addf %35, %39 : vector<1x448xf32>
    %c8 = arith.constant 8 : index
    %41 = memref.load %arg0[%c8] : memref<169xf32, #tpu.memory_space<smem>>
    %c0_16 = arith.constant 0 : index
    %c8_17 = arith.constant 8 : index
    %42 = vector.load %arg2[%c0_16, %c8_17] : memref<1x896xf32, #tpu.memory_space<vmem>>, vector<1x448xf32>
    %43 = vector.broadcast %41 : f32 to vector<1x448xf32>
    %44 = arith.mulf %43, %42 : vector<1x448xf32>
    %45 = arith.addf %40, %44 : vector<1x448xf32>
    %c9 = arith.constant 9 : index
    %46 = memref.load %arg0[%c9] : memref<169xf32, #tpu.memory_space<smem>>
    %c0_18 = arith.constant 0 : index
    %c9_19 = arith.constant 9 : index
    %47 = vector.load %arg2[%c0_18, %c9_19] : memref<1x896xf32, #tpu.memory_space<vmem>>, vector<1x448xf32>
    %48 = vector.broadcast %46 : f32 to vector<1x448xf32>
    %49 = arith.mulf %48, %47 : vector<1x448xf32>
    %50 = arith.addf %45, %49 : vector<1x448xf32>
    %c10 = arith.constant 10 : index
    %51 = memref.load %arg0[%c10] : memref<169xf32, #tpu.memory_space<smem>>
    %c0_20 = arith.constant 0 : index
    %c10_21 = arith.constant 10 : index
    %52 = vector.load %arg2[%c0_20, %c10_21] : memref<1x896xf32, #tpu.memory_space<vmem>>, vector<1x448xf32>
    %53 = vector.broadcast %51 : f32 to vector<1x448xf32>
    %54 = arith.mulf %53, %52 : vector<1x448xf32>
    %55 = arith.addf %50, %54 : vector<1x448xf32>
    %c11 = arith.constant 11 : index
    %56 = memref.load %arg0[%c11] : memref<169xf32, #tpu.memory_space<smem>>
    %c0_22 = arith.constant 0 : index
    %c11_23 = arith.constant 11 : index
    %57 = vector.load %arg2[%c0_22, %c11_23] : memref<1x896xf32, #tpu.memory_space<vmem>>, vector<1x448xf32>
    %58 = vector.broadcast %56 : f32 to vector<1x448xf32>
    %59 = arith.mulf %58, %57 : vector<1x448xf32>
    %60 = arith.addf %55, %59 : vector<1x448xf32>
    %c12 = arith.constant 12 : index
    %61 = memref.load %arg0[%c12] : memref<169xf32, #tpu.memory_space<smem>>
    %c0_24 = arith.constant 0 : index
    %c12_25 = arith.constant 12 : index
    %62 = vector.load %arg2[%c0_24, %c12_25] : memref<1x896xf32, #tpu.memory_space<vmem>>, vector<1x448xf32>
    %63 = vector.broadcast %61 : f32 to vector<1x448xf32>
    %64 = arith.mulf %63, %62 : vector<1x448xf32>
    %65 = arith.addf %60, %64 : vector<1x448xf32>
    %c13 = arith.constant 13 : index
    %66 = memref.load %arg0[%c13] : memref<169xf32, #tpu.memory_space<smem>>
    %c0_26 = arith.constant 0 : index
    %c28 = arith.constant 28 : index
    %67 = vector.load %arg2[%c0_26, %c28] : memref<1x896xf32, #tpu.memory_space<vmem>>, vector<1x448xf32>
    %68 = vector.broadcast %66 : f32 to vector<1x448xf32>
    %69 = arith.mulf %68, %67 : vector<1x448xf32>
    %70 = arith.addf %65, %69 : vector<1x448xf32>
    %c14 = arith.constant 14 : index
    %71 = memref.load %arg0[%c14] : memref<169xf32, #tpu.memory_space<smem>>
    %c0_27 = arith.constant 0 : index
    %c29 = arith.constant 29 : index
    %72 = vector.load %arg2[%c0_27, %c29] : memref<1x896xf32, #tpu.memory_space<vmem>>, vector<1x448xf32>
    %73 = vector.broadcast %71 : f32 to vector<1x448xf32>
    %74 = arith.mulf %73, %72 : vector<1x448xf32>
    %75 = arith.addf %70, %74 : vector<1x448xf32>
    %c15 = arith.constant 15 : index
    %76 = memref.load %arg0[%c15] : memref<169xf32, #tpu.memory_space<smem>>
    %c0_28 = arith.constant 0 : index
    %c30 = arith.constant 30 : index
    %77 = vector.load %arg2[%c0_28, %c30] : memref<1x896xf32, #tpu.memory_space<vmem>>, vector<1x448xf32>
    %78 = vector.broadcast %76 : f32 to vector<1x448xf32>
    %79 = arith.mulf %78, %77 : vector<1x448xf32>
    %80 = arith.addf %75, %79 : vector<1x448xf32>
    %c16 = arith.constant 16 : index
    %81 = memref.load %arg0[%c16] : memref<169xf32, #tpu.memory_space<smem>>
    %c0_29 = arith.constant 0 : index
    %c31 = arith.constant 31 : index
    %82 = vector.load %arg2[%c0_29, %c31] : memref<1x896xf32, #tpu.memory_space<vmem>>, vector<1x448xf32>
    %83 = vector.broadcast %81 : f32 to vector<1x448xf32>
    %84 = arith.mulf %83, %82 : vector<1x448xf32>
    %85 = arith.addf %80, %84 : vector<1x448xf32>
    %c17 = arith.constant 17 : index
    %86 = memref.load %arg0[%c17] : memref<169xf32, #tpu.memory_space<smem>>
    %c0_30 = arith.constant 0 : index
    %c32 = arith.constant 32 : index
    %87 = vector.load %arg2[%c0_30, %c32] : memref<1x896xf32, #tpu.memory_space<vmem>>, vector<1x448xf32>
    %88 = vector.broadcast %86 : f32 to vector<1x448xf32>
    %89 = arith.mulf %88, %87 : vector<1x448xf32>
    %90 = arith.addf %85, %89 : vector<1x448xf32>
    %c18 = arith.constant 18 : index
    %91 = memref.load %arg0[%c18] : memref<169xf32, #tpu.memory_space<smem>>
    %c0_31 = arith.constant 0 : index
    %c33 = arith.constant 33 : index
    %92 = vector.load %arg2[%c0_31, %c33] : memref<1x896xf32, #tpu.memory_space<vmem>>, vector<1x448xf32>
    %93 = vector.broadcast %91 : f32 to vector<1x448xf32>
    %94 = arith.mulf %93, %92 : vector<1x448xf32>
    %95 = arith.addf %90, %94 : vector<1x448xf32>
    %c19 = arith.constant 19 : index
    %96 = memref.load %arg0[%c19] : memref<169xf32, #tpu.memory_space<smem>>
    %c0_32 = arith.constant 0 : index
    %c34 = arith.constant 34 : index
    %97 = vector.load %arg2[%c0_32, %c34] : memref<1x896xf32, #tpu.memory_space<vmem>>, vector<1x448xf32>
    %98 = vector.broadcast %96 : f32 to vector<1x448xf32>
    %99 = arith.mulf %98, %97 : vector<1x448xf32>
    %100 = arith.addf %95, %99 : vector<1x448xf32>
    %c20 = arith.constant 20 : index
    %101 = memref.load %arg0[%c20] : memref<169xf32, #tpu.memory_space<smem>>
    %c0_33 = arith.constant 0 : index
    %c35 = arith.constant 35 : index
    %102 = vector.load %arg2[%c0_33, %c35] : memref<1x896xf32, #tpu.memory_space<vmem>>, vector<1x448xf32>
    %103 = vector.broadcast %101 : f32 to vector<1x448xf32>
    %104 = arith.mulf %103, %102 : vector<1x448xf32>
    %105 = arith.addf %100, %104 : vector<1x448xf32>
    %c21 = arith.constant 21 : index
    %106 = memref.load %arg0[%c21] : memref<169xf32, #tpu.memory_space<smem>>
    %c0_34 = arith.constant 0 : index
    %c36 = arith.constant 36 : index
    %107 = vector.load %arg2[%c0_34, %c36] : memref<1x896xf32, #tpu.memory_space<vmem>>, vector<1x448xf32>
    %108 = vector.broadcast %106 : f32 to vector<1x448xf32>
    %109 = arith.mulf %108, %107 : vector<1x448xf32>
    %110 = arith.addf %105, %109 : vector<1x448xf32>
    %c22 = arith.constant 22 : index
    %111 = memref.load %arg0[%c22] : memref<169xf32, #tpu.memory_space<smem>>
    %c0_35 = arith.constant 0 : index
    %c37 = arith.constant 37 : index
    %112 = vector.load %arg2[%c0_35, %c37] : memref<1x896xf32, #tpu.memory_space<vmem>>, vector<1x448xf32>
    %113 = vector.broadcast %111 : f32 to vector<1x448xf32>
    %114 = arith.mulf %113, %112 : vector<1x448xf32>
    %115 = arith.addf %110, %114 : vector<1x448xf32>
    %c23 = arith.constant 23 : index
    %116 = memref.load %arg0[%c23] : memref<169xf32, #tpu.memory_space<smem>>
    %c0_36 = arith.constant 0 : index
    %c38 = arith.constant 38 : index
    %117 = vector.load %arg2[%c0_36, %c38] : memref<1x896xf32, #tpu.memory_space<vmem>>, vector<1x448xf32>
    %118 = vector.broadcast %116 : f32 to vector<1x448xf32>
    %119 = arith.mulf %118, %117 : vector<1x448xf32>
    %120 = arith.addf %115, %119 : vector<1x448xf32>
    %c24 = arith.constant 24 : index
    %121 = memref.load %arg0[%c24] : memref<169xf32, #tpu.memory_space<smem>>
    %c0_37 = arith.constant 0 : index
    %c39 = arith.constant 39 : index
    %122 = vector.load %arg2[%c0_37, %c39] : memref<1x896xf32, #tpu.memory_space<vmem>>, vector<1x448xf32>
    %123 = vector.broadcast %121 : f32 to vector<1x448xf32>
    %124 = arith.mulf %123, %122 : vector<1x448xf32>
    %125 = arith.addf %120, %124 : vector<1x448xf32>
    %c25 = arith.constant 25 : index
    %126 = memref.load %arg0[%c25] : memref<169xf32, #tpu.memory_space<smem>>
    %c0_38 = arith.constant 0 : index
    %c40 = arith.constant 40 : index
    %127 = vector.load %arg2[%c0_38, %c40] : memref<1x896xf32, #tpu.memory_space<vmem>>, vector<1x448xf32>
    %128 = vector.broadcast %126 : f32 to vector<1x448xf32>
    %129 = arith.mulf %128, %127 : vector<1x448xf32>
    %130 = arith.addf %125, %129 : vector<1x448xf32>
    %c26 = arith.constant 26 : index
    %131 = memref.load %arg0[%c26] : memref<169xf32, #tpu.memory_space<smem>>
    %c0_39 = arith.constant 0 : index
    %c56 = arith.constant 56 : index
    %132 = vector.load %arg2[%c0_39, %c56] : memref<1x896xf32, #tpu.memory_space<vmem>>, vector<1x448xf32>
    %133 = vector.broadcast %131 : f32 to vector<1x448xf32>
    %134 = arith.mulf %133, %132 : vector<1x448xf32>
    %135 = arith.addf %130, %134 : vector<1x448xf32>
    %c27 = arith.constant 27 : index
    %136 = memref.load %arg0[%c27] : memref<169xf32, #tpu.memory_space<smem>>
    %c0_40 = arith.constant 0 : index
    %c57 = arith.constant 57 : index
    %137 = vector.load %arg2[%c0_40, %c57] : memref<1x896xf32, #tpu.memory_space<vmem>>, vector<1x448xf32>
    %138 = vector.broadcast %136 : f32 to vector<1x448xf32>
    %139 = arith.mulf %138, %137 : vector<1x448xf32>
    %140 = arith.addf %135, %139 : vector<1x448xf32>
    %c28_41 = arith.constant 28 : index
    %141 = memref.load %arg0[%c28_41] : memref<169xf32, #tpu.memory_space<smem>>
    %c0_42 = arith.constant 0 : index
    %c58 = arith.constant 58 : index
    %142 = vector.load %arg2[%c0_42, %c58] : memref<1x896xf32, #tpu.memory_space<vmem>>, vector<1x448xf32>
    %143 = vector.broadcast %141 : f32 to vector<1x448xf32>
    %144 = arith.mulf %143, %142 : vector<1x448xf32>
    %145 = arith.addf %140, %144 : vector<1x448xf32>
    %c29_43 = arith.constant 29 : index
    %146 = memref.load %arg0[%c29_43] : memref<169xf32, #tpu.memory_space<smem>>
    %c0_44 = arith.constant 0 : index
    %c59 = arith.constant 59 : index
    %147 = vector.load %arg2[%c0_44, %c59] : memref<1x896xf32, #tpu.memory_space<vmem>>, vector<1x448xf32>
    %148 = vector.broadcast %146 : f32 to vector<1x448xf32>
    %149 = arith.mulf %148, %147 : vector<1x448xf32>
    %150 = arith.addf %145, %149 : vector<1x448xf32>
    %c30_45 = arith.constant 30 : index
    %151 = memref.load %arg0[%c30_45] : memref<169xf32, #tpu.memory_space<smem>>
    %c0_46 = arith.constant 0 : index
    %c60 = arith.constant 60 : index
    %152 = vector.load %arg2[%c0_46, %c60] : memref<1x896xf32, #tpu.memory_space<vmem>>, vector<1x448xf32>
    %153 = vector.broadcast %151 : f32 to vector<1x448xf32>
    %154 = arith.mulf %153, %152 : vector<1x448xf32>
    %155 = arith.addf %150, %154 : vector<1x448xf32>
    %c31_47 = arith.constant 31 : index
    %156 = memref.load %arg0[%c31_47] : memref<169xf32, #tpu.memory_space<smem>>
    %c0_48 = arith.constant 0 : index
    %c61 = arith.constant 61 : index
    %157 = vector.load %arg2[%c0_48, %c61] : memref<1x896xf32, #tpu.memory_space<vmem>>, vector<1x448xf32>
    %158 = vector.broadcast %156 : f32 to vector<1x448xf32>
    %159 = arith.mulf %158, %157 : vector<1x448xf32>
    %160 = arith.addf %155, %159 : vector<1x448xf32>
    %c32_49 = arith.constant 32 : index
    %161 = memref.load %arg0[%c32_49] : memref<169xf32, #tpu.memory_space<smem>>
    %c0_50 = arith.constant 0 : index
    %c62 = arith.constant 62 : index
    %162 = vector.load %arg2[%c0_50, %c62] : memref<1x896xf32, #tpu.memory_space<vmem>>, vector<1x448xf32>
    %163 = vector.broadcast %161 : f32 to vector<1x448xf32>
    %164 = arith.mulf %163, %162 : vector<1x448xf32>
    %165 = arith.addf %160, %164 : vector<1x448xf32>
    %c33_51 = arith.constant 33 : index
    %166 = memref.load %arg0[%c33_51] : memref<169xf32, #tpu.memory_space<smem>>
    %c0_52 = arith.constant 0 : index
    %c63 = arith.constant 63 : index
    %167 = vector.load %arg2[%c0_52, %c63] : memref<1x896xf32, #tpu.memory_space<vmem>>, vector<1x448xf32>
    %168 = vector.broadcast %166 : f32 to vector<1x448xf32>
    %169 = arith.mulf %168, %167 : vector<1x448xf32>
    %170 = arith.addf %165, %169 : vector<1x448xf32>
    %c34_53 = arith.constant 34 : index
    %171 = memref.load %arg0[%c34_53] : memref<169xf32, #tpu.memory_space<smem>>
    %c0_54 = arith.constant 0 : index
    %c64 = arith.constant 64 : index
    %172 = vector.load %arg2[%c0_54, %c64] : memref<1x896xf32, #tpu.memory_space<vmem>>, vector<1x448xf32>
    %173 = vector.broadcast %171 : f32 to vector<1x448xf32>
    %174 = arith.mulf %173, %172 : vector<1x448xf32>
    %175 = arith.addf %170, %174 : vector<1x448xf32>
    %c35_55 = arith.constant 35 : index
    %176 = memref.load %arg0[%c35_55] : memref<169xf32, #tpu.memory_space<smem>>
    %c0_56 = arith.constant 0 : index
    %c65 = arith.constant 65 : index
    %177 = vector.load %arg2[%c0_56, %c65] : memref<1x896xf32, #tpu.memory_space<vmem>>, vector<1x448xf32>
    %178 = vector.broadcast %176 : f32 to vector<1x448xf32>
    %179 = arith.mulf %178, %177 : vector<1x448xf32>
    %180 = arith.addf %175, %179 : vector<1x448xf32>
    %c36_57 = arith.constant 36 : index
    %181 = memref.load %arg0[%c36_57] : memref<169xf32, #tpu.memory_space<smem>>
    %c0_58 = arith.constant 0 : index
    %c66 = arith.constant 66 : index
    %182 = vector.load %arg2[%c0_58, %c66] : memref<1x896xf32, #tpu.memory_space<vmem>>, vector<1x448xf32>
    %183 = vector.broadcast %181 : f32 to vector<1x448xf32>
    %184 = arith.mulf %183, %182 : vector<1x448xf32>
    %185 = arith.addf %180, %184 : vector<1x448xf32>
    %c37_59 = arith.constant 37 : index
    %186 = memref.load %arg0[%c37_59] : memref<169xf32, #tpu.memory_space<smem>>
    %c0_60 = arith.constant 0 : index
    %c67 = arith.constant 67 : index
    %187 = vector.load %arg2[%c0_60, %c67] : memref<1x896xf32, #tpu.memory_space<vmem>>, vector<1x448xf32>
    %188 = vector.broadcast %186 : f32 to vector<1x448xf32>
    %189 = arith.mulf %188, %187 : vector<1x448xf32>
    %190 = arith.addf %185, %189 : vector<1x448xf32>
    %c38_61 = arith.constant 38 : index
    %191 = memref.load %arg0[%c38_61] : memref<169xf32, #tpu.memory_space<smem>>
    %c0_62 = arith.constant 0 : index
    %c68 = arith.constant 68 : index
    %192 = vector.load %arg2[%c0_62, %c68] : memref<1x896xf32, #tpu.memory_space<vmem>>, vector<1x448xf32>
    %193 = vector.broadcast %191 : f32 to vector<1x448xf32>
    %194 = arith.mulf %193, %192 : vector<1x448xf32>
    %195 = arith.addf %190, %194 : vector<1x448xf32>
    %c39_63 = arith.constant 39 : index
    %196 = memref.load %arg0[%c39_63] : memref<169xf32, #tpu.memory_space<smem>>
    %c0_64 = arith.constant 0 : index
    %c84 = arith.constant 84 : index
    %197 = vector.load %arg2[%c0_64, %c84] : memref<1x896xf32, #tpu.memory_space<vmem>>, vector<1x448xf32>
    %198 = vector.broadcast %196 : f32 to vector<1x448xf32>
    %199 = arith.mulf %198, %197 : vector<1x448xf32>
    %200 = arith.addf %195, %199 : vector<1x448xf32>
    %c40_65 = arith.constant 40 : index
    %201 = memref.load %arg0[%c40_65] : memref<169xf32, #tpu.memory_space<smem>>
    %c0_66 = arith.constant 0 : index
    %c85 = arith.constant 85 : index
    %202 = vector.load %arg2[%c0_66, %c85] : memref<1x896xf32, #tpu.memory_space<vmem>>, vector<1x448xf32>
    %203 = vector.broadcast %201 : f32 to vector<1x448xf32>
    %204 = arith.mulf %203, %202 : vector<1x448xf32>
    %205 = arith.addf %200, %204 : vector<1x448xf32>
    %c41 = arith.constant 41 : index
    %206 = memref.load %arg0[%c41] : memref<169xf32, #tpu.memory_space<smem>>
    %c0_67 = arith.constant 0 : index
    %c86 = arith.constant 86 : index
    %207 = vector.load %arg2[%c0_67, %c86] : memref<1x896xf32, #tpu.memory_space<vmem>>, vector<1x448xf32>
    %208 = vector.broadcast %206 : f32 to vector<1x448xf32>
    %209 = arith.mulf %208, %207 : vector<1x448xf32>
    %210 = arith.addf %205, %209 : vector<1x448xf32>
    %c42 = arith.constant 42 : index
    %211 = memref.load %arg0[%c42] : memref<169xf32, #tpu.memory_space<smem>>
    %c0_68 = arith.constant 0 : index
    %c87 = arith.constant 87 : index
    %212 = vector.load %arg2[%c0_68, %c87] : memref<1x896xf32, #tpu.memory_space<vmem>>, vector<1x448xf32>
    %213 = vector.broadcast %211 : f32 to vector<1x448xf32>
    %214 = arith.mulf %213, %212 : vector<1x448xf32>
    %215 = arith.addf %210, %214 : vector<1x448xf32>
    %c43 = arith.constant 43 : index
    %216 = memref.load %arg0[%c43] : memref<169xf32, #tpu.memory_space<smem>>
    %c0_69 = arith.constant 0 : index
    %c88 = arith.constant 88 : index
    %217 = vector.load %arg2[%c0_69, %c88] : memref<1x896xf32, #tpu.memory_space<vmem>>, vector<1x448xf32>
    %218 = vector.broadcast %216 : f32 to vector<1x448xf32>
    %219 = arith.mulf %218, %217 : vector<1x448xf32>
    %220 = arith.addf %215, %219 : vector<1x448xf32>
    %c44 = arith.constant 44 : index
    %221 = memref.load %arg0[%c44] : memref<169xf32, #tpu.memory_space<smem>>
    %c0_70 = arith.constant 0 : index
    %c89 = arith.constant 89 : index
    %222 = vector.load %arg2[%c0_70, %c89] : memref<1x896xf32, #tpu.memory_space<vmem>>, vector<1x448xf32>
    %223 = vector.broadcast %221 : f32 to vector<1x448xf32>
    %224 = arith.mulf %223, %222 : vector<1x448xf32>
    %225 = arith.addf %220, %224 : vector<1x448xf32>
    %c45 = arith.constant 45 : index
    %226 = memref.load %arg0[%c45] : memref<169xf32, #tpu.memory_space<smem>>
    %c0_71 = arith.constant 0 : index
    %c90 = arith.constant 90 : index
    %227 = vector.load %arg2[%c0_71, %c90] : memref<1x896xf32, #tpu.memory_space<vmem>>, vector<1x448xf32>
    %228 = vector.broadcast %226 : f32 to vector<1x448xf32>
    %229 = arith.mulf %228, %227 : vector<1x448xf32>
    %230 = arith.addf %225, %229 : vector<1x448xf32>
    %c46 = arith.constant 46 : index
    %231 = memref.load %arg0[%c46] : memref<169xf32, #tpu.memory_space<smem>>
    %c0_72 = arith.constant 0 : index
    %c91 = arith.constant 91 : index
    %232 = vector.load %arg2[%c0_72, %c91] : memref<1x896xf32, #tpu.memory_space<vmem>>, vector<1x448xf32>
    %233 = vector.broadcast %231 : f32 to vector<1x448xf32>
    %234 = arith.mulf %233, %232 : vector<1x448xf32>
    %235 = arith.addf %230, %234 : vector<1x448xf32>
    %c47 = arith.constant 47 : index
    %236 = memref.load %arg0[%c47] : memref<169xf32, #tpu.memory_space<smem>>
    %c0_73 = arith.constant 0 : index
    %c92 = arith.constant 92 : index
    %237 = vector.load %arg2[%c0_73, %c92] : memref<1x896xf32, #tpu.memory_space<vmem>>, vector<1x448xf32>
    %238 = vector.broadcast %236 : f32 to vector<1x448xf32>
    %239 = arith.mulf %238, %237 : vector<1x448xf32>
    %240 = arith.addf %235, %239 : vector<1x448xf32>
    %c48 = arith.constant 48 : index
    %241 = memref.load %arg0[%c48] : memref<169xf32, #tpu.memory_space<smem>>
    %c0_74 = arith.constant 0 : index
    %c93 = arith.constant 93 : index
    %242 = vector.load %arg2[%c0_74, %c93] : memref<1x896xf32, #tpu.memory_space<vmem>>, vector<1x448xf32>
    %243 = vector.broadcast %241 : f32 to vector<1x448xf32>
    %244 = arith.mulf %243, %242 : vector<1x448xf32>
    %245 = arith.addf %240, %244 : vector<1x448xf32>
    %c49 = arith.constant 49 : index
    %246 = memref.load %arg0[%c49] : memref<169xf32, #tpu.memory_space<smem>>
    %c0_75 = arith.constant 0 : index
    %c94 = arith.constant 94 : index
    %247 = vector.load %arg2[%c0_75, %c94] : memref<1x896xf32, #tpu.memory_space<vmem>>, vector<1x448xf32>
    %248 = vector.broadcast %246 : f32 to vector<1x448xf32>
    %249 = arith.mulf %248, %247 : vector<1x448xf32>
    %250 = arith.addf %245, %249 : vector<1x448xf32>
    %c50 = arith.constant 50 : index
    %251 = memref.load %arg0[%c50] : memref<169xf32, #tpu.memory_space<smem>>
    %c0_76 = arith.constant 0 : index
    %c95 = arith.constant 95 : index
    %252 = vector.load %arg2[%c0_76, %c95] : memref<1x896xf32, #tpu.memory_space<vmem>>, vector<1x448xf32>
    %253 = vector.broadcast %251 : f32 to vector<1x448xf32>
    %254 = arith.mulf %253, %252 : vector<1x448xf32>
    %255 = arith.addf %250, %254 : vector<1x448xf32>
    %c51 = arith.constant 51 : index
    %256 = memref.load %arg0[%c51] : memref<169xf32, #tpu.memory_space<smem>>
    %c0_77 = arith.constant 0 : index
    %c96 = arith.constant 96 : index
    %257 = vector.load %arg2[%c0_77, %c96] : memref<1x896xf32, #tpu.memory_space<vmem>>, vector<1x448xf32>
    %258 = vector.broadcast %256 : f32 to vector<1x448xf32>
    %259 = arith.mulf %258, %257 : vector<1x448xf32>
    %260 = arith.addf %255, %259 : vector<1x448xf32>
    %c52 = arith.constant 52 : index
    %261 = memref.load %arg0[%c52] : memref<169xf32, #tpu.memory_space<smem>>
    %c0_78 = arith.constant 0 : index
    %c112 = arith.constant 112 : index
    %262 = vector.load %arg2[%c0_78, %c112] : memref<1x896xf32, #tpu.memory_space<vmem>>, vector<1x448xf32>
    %263 = vector.broadcast %261 : f32 to vector<1x448xf32>
    %264 = arith.mulf %263, %262 : vector<1x448xf32>
    %265 = arith.addf %260, %264 : vector<1x448xf32>
    %c53 = arith.constant 53 : index
    %266 = memref.load %arg0[%c53] : memref<169xf32, #tpu.memory_space<smem>>
    %c0_79 = arith.constant 0 : index
    %c113 = arith.constant 113 : index
    %267 = vector.load %arg2[%c0_79, %c113] : memref<1x896xf32, #tpu.memory_space<vmem>>, vector<1x448xf32>
    %268 = vector.broadcast %266 : f32 to vector<1x448xf32>
    %269 = arith.mulf %268, %267 : vector<1x448xf32>
    %270 = arith.addf %265, %269 : vector<1x448xf32>
    %c54 = arith.constant 54 : index
    %271 = memref.load %arg0[%c54] : memref<169xf32, #tpu.memory_space<smem>>
    %c0_80 = arith.constant 0 : index
    %c114 = arith.constant 114 : index
    %272 = vector.load %arg2[%c0_80, %c114] : memref<1x896xf32, #tpu.memory_space<vmem>>, vector<1x448xf32>
    %273 = vector.broadcast %271 : f32 to vector<1x448xf32>
    %274 = arith.mulf %273, %272 : vector<1x448xf32>
    %275 = arith.addf %270, %274 : vector<1x448xf32>
    %c55 = arith.constant 55 : index
    %276 = memref.load %arg0[%c55] : memref<169xf32, #tpu.memory_space<smem>>
    %c0_81 = arith.constant 0 : index
    %c115 = arith.constant 115 : index
    %277 = vector.load %arg2[%c0_81, %c115] : memref<1x896xf32, #tpu.memory_space<vmem>>, vector<1x448xf32>
    %278 = vector.broadcast %276 : f32 to vector<1x448xf32>
    %279 = arith.mulf %278, %277 : vector<1x448xf32>
    %280 = arith.addf %275, %279 : vector<1x448xf32>
    %c56_82 = arith.constant 56 : index
    %281 = memref.load %arg0[%c56_82] : memref<169xf32, #tpu.memory_space<smem>>
    %c0_83 = arith.constant 0 : index
    %c116 = arith.constant 116 : index
    %282 = vector.load %arg2[%c0_83, %c116] : memref<1x896xf32, #tpu.memory_space<vmem>>, vector<1x448xf32>
    %283 = vector.broadcast %281 : f32 to vector<1x448xf32>
    %284 = arith.mulf %283, %282 : vector<1x448xf32>
    %285 = arith.addf %280, %284 : vector<1x448xf32>
    %c57_84 = arith.constant 57 : index
    %286 = memref.load %arg0[%c57_84] : memref<169xf32, #tpu.memory_space<smem>>
    %c0_85 = arith.constant 0 : index
    %c117 = arith.constant 117 : index
    %287 = vector.load %arg2[%c0_85, %c117] : memref<1x896xf32, #tpu.memory_space<vmem>>, vector<1x448xf32>
    %288 = vector.broadcast %286 : f32 to vector<1x448xf32>
    %289 = arith.mulf %288, %287 : vector<1x448xf32>
    %290 = arith.addf %285, %289 : vector<1x448xf32>
    %c58_86 = arith.constant 58 : index
    %291 = memref.load %arg0[%c58_86] : memref<169xf32, #tpu.memory_space<smem>>
    %c0_87 = arith.constant 0 : index
    %c118 = arith.constant 118 : index
    %292 = vector.load %arg2[%c0_87, %c118] : memref<1x896xf32, #tpu.memory_space<vmem>>, vector<1x448xf32>
    %293 = vector.broadcast %291 : f32 to vector<1x448xf32>
    %294 = arith.mulf %293, %292 : vector<1x448xf32>
    %295 = arith.addf %290, %294 : vector<1x448xf32>
    %c59_88 = arith.constant 59 : index
    %296 = memref.load %arg0[%c59_88] : memref<169xf32, #tpu.memory_space<smem>>
    %c0_89 = arith.constant 0 : index
    %c119 = arith.constant 119 : index
    %297 = vector.load %arg2[%c0_89, %c119] : memref<1x896xf32, #tpu.memory_space<vmem>>, vector<1x448xf32>
    %298 = vector.broadcast %296 : f32 to vector<1x448xf32>
    %299 = arith.mulf %298, %297 : vector<1x448xf32>
    %300 = arith.addf %295, %299 : vector<1x448xf32>
    %c60_90 = arith.constant 60 : index
    %301 = memref.load %arg0[%c60_90] : memref<169xf32, #tpu.memory_space<smem>>
    %c0_91 = arith.constant 0 : index
    %c120 = arith.constant 120 : index
    %302 = vector.load %arg2[%c0_91, %c120] : memref<1x896xf32, #tpu.memory_space<vmem>>, vector<1x448xf32>
    %303 = vector.broadcast %301 : f32 to vector<1x448xf32>
    %304 = arith.mulf %303, %302 : vector<1x448xf32>
    %305 = arith.addf %300, %304 : vector<1x448xf32>
    %c61_92 = arith.constant 61 : index
    %306 = memref.load %arg0[%c61_92] : memref<169xf32, #tpu.memory_space<smem>>
    %c0_93 = arith.constant 0 : index
    %c121 = arith.constant 121 : index
    %307 = vector.load %arg2[%c0_93, %c121] : memref<1x896xf32, #tpu.memory_space<vmem>>, vector<1x448xf32>
    %308 = vector.broadcast %306 : f32 to vector<1x448xf32>
    %309 = arith.mulf %308, %307 : vector<1x448xf32>
    %310 = arith.addf %305, %309 : vector<1x448xf32>
    %c62_94 = arith.constant 62 : index
    %311 = memref.load %arg0[%c62_94] : memref<169xf32, #tpu.memory_space<smem>>
    %c0_95 = arith.constant 0 : index
    %c122 = arith.constant 122 : index
    %312 = vector.load %arg2[%c0_95, %c122] : memref<1x896xf32, #tpu.memory_space<vmem>>, vector<1x448xf32>
    %313 = vector.broadcast %311 : f32 to vector<1x448xf32>
    %314 = arith.mulf %313, %312 : vector<1x448xf32>
    %315 = arith.addf %310, %314 : vector<1x448xf32>
    %c63_96 = arith.constant 63 : index
    %316 = memref.load %arg0[%c63_96] : memref<169xf32, #tpu.memory_space<smem>>
    %c0_97 = arith.constant 0 : index
    %c123 = arith.constant 123 : index
    %317 = vector.load %arg2[%c0_97, %c123] : memref<1x896xf32, #tpu.memory_space<vmem>>, vector<1x448xf32>
    %318 = vector.broadcast %316 : f32 to vector<1x448xf32>
    %319 = arith.mulf %318, %317 : vector<1x448xf32>
    %320 = arith.addf %315, %319 : vector<1x448xf32>
    %c64_98 = arith.constant 64 : index
    %321 = memref.load %arg0[%c64_98] : memref<169xf32, #tpu.memory_space<smem>>
    %c0_99 = arith.constant 0 : index
    %c124 = arith.constant 124 : index
    %322 = vector.load %arg2[%c0_99, %c124] : memref<1x896xf32, #tpu.memory_space<vmem>>, vector<1x448xf32>
    %323 = vector.broadcast %321 : f32 to vector<1x448xf32>
    %324 = arith.mulf %323, %322 : vector<1x448xf32>
    %325 = arith.addf %320, %324 : vector<1x448xf32>
    %c65_100 = arith.constant 65 : index
    %326 = memref.load %arg0[%c65_100] : memref<169xf32, #tpu.memory_space<smem>>
    %c0_101 = arith.constant 0 : index
    %c140 = arith.constant 140 : index
    %327 = vector.load %arg2[%c0_101, %c140] : memref<1x896xf32, #tpu.memory_space<vmem>>, vector<1x448xf32>
    %328 = vector.broadcast %326 : f32 to vector<1x448xf32>
    %329 = arith.mulf %328, %327 : vector<1x448xf32>
    %330 = arith.addf %325, %329 : vector<1x448xf32>
    %c66_102 = arith.constant 66 : index
    %331 = memref.load %arg0[%c66_102] : memref<169xf32, #tpu.memory_space<smem>>
    %c0_103 = arith.constant 0 : index
    %c141 = arith.constant 141 : index
    %332 = vector.load %arg2[%c0_103, %c141] : memref<1x896xf32, #tpu.memory_space<vmem>>, vector<1x448xf32>
    %333 = vector.broadcast %331 : f32 to vector<1x448xf32>
    %334 = arith.mulf %333, %332 : vector<1x448xf32>
    %335 = arith.addf %330, %334 : vector<1x448xf32>
    %c67_104 = arith.constant 67 : index
    %336 = memref.load %arg0[%c67_104] : memref<169xf32, #tpu.memory_space<smem>>
    %c0_105 = arith.constant 0 : index
    %c142 = arith.constant 142 : index
    %337 = vector.load %arg2[%c0_105, %c142] : memref<1x896xf32, #tpu.memory_space<vmem>>, vector<1x448xf32>
    %338 = vector.broadcast %336 : f32 to vector<1x448xf32>
    %339 = arith.mulf %338, %337 : vector<1x448xf32>
    %340 = arith.addf %335, %339 : vector<1x448xf32>
    %c68_106 = arith.constant 68 : index
    %341 = memref.load %arg0[%c68_106] : memref<169xf32, #tpu.memory_space<smem>>
    %c0_107 = arith.constant 0 : index
    %c143 = arith.constant 143 : index
    %342 = vector.load %arg2[%c0_107, %c143] : memref<1x896xf32, #tpu.memory_space<vmem>>, vector<1x448xf32>
    %343 = vector.broadcast %341 : f32 to vector<1x448xf32>
    %344 = arith.mulf %343, %342 : vector<1x448xf32>
    %345 = arith.addf %340, %344 : vector<1x448xf32>
    %c69 = arith.constant 69 : index
    %346 = memref.load %arg0[%c69] : memref<169xf32, #tpu.memory_space<smem>>
    %c0_108 = arith.constant 0 : index
    %c144 = arith.constant 144 : index
    %347 = vector.load %arg2[%c0_108, %c144] : memref<1x896xf32, #tpu.memory_space<vmem>>, vector<1x448xf32>
    %348 = vector.broadcast %346 : f32 to vector<1x448xf32>
    %349 = arith.mulf %348, %347 : vector<1x448xf32>
    %350 = arith.addf %345, %349 : vector<1x448xf32>
    %c70 = arith.constant 70 : index
    %351 = memref.load %arg0[%c70] : memref<169xf32, #tpu.memory_space<smem>>
    %c0_109 = arith.constant 0 : index
    %c145 = arith.constant 145 : index
    %352 = vector.load %arg2[%c0_109, %c145] : memref<1x896xf32, #tpu.memory_space<vmem>>, vector<1x448xf32>
    %353 = vector.broadcast %351 : f32 to vector<1x448xf32>
    %354 = arith.mulf %353, %352 : vector<1x448xf32>
    %355 = arith.addf %350, %354 : vector<1x448xf32>
    %c71 = arith.constant 71 : index
    %356 = memref.load %arg0[%c71] : memref<169xf32, #tpu.memory_space<smem>>
    %c0_110 = arith.constant 0 : index
    %c146 = arith.constant 146 : index
    %357 = vector.load %arg2[%c0_110, %c146] : memref<1x896xf32, #tpu.memory_space<vmem>>, vector<1x448xf32>
    %358 = vector.broadcast %356 : f32 to vector<1x448xf32>
    %359 = arith.mulf %358, %357 : vector<1x448xf32>
    %360 = arith.addf %355, %359 : vector<1x448xf32>
    %c72 = arith.constant 72 : index
    %361 = memref.load %arg0[%c72] : memref<169xf32, #tpu.memory_space<smem>>
    %c0_111 = arith.constant 0 : index
    %c147 = arith.constant 147 : index
    %362 = vector.load %arg2[%c0_111, %c147] : memref<1x896xf32, #tpu.memory_space<vmem>>, vector<1x448xf32>
    %363 = vector.broadcast %361 : f32 to vector<1x448xf32>
    %364 = arith.mulf %363, %362 : vector<1x448xf32>
    %365 = arith.addf %360, %364 : vector<1x448xf32>
    %c73 = arith.constant 73 : index
    %366 = memref.load %arg0[%c73] : memref<169xf32, #tpu.memory_space<smem>>
    %c0_112 = arith.constant 0 : index
    %c148 = arith.constant 148 : index
    %367 = vector.load %arg2[%c0_112, %c148] : memref<1x896xf32, #tpu.memory_space<vmem>>, vector<1x448xf32>
    %368 = vector.broadcast %366 : f32 to vector<1x448xf32>
    %369 = arith.mulf %368, %367 : vector<1x448xf32>
    %370 = arith.addf %365, %369 : vector<1x448xf32>
    %c74 = arith.constant 74 : index
    %371 = memref.load %arg0[%c74] : memref<169xf32, #tpu.memory_space<smem>>
    %c0_113 = arith.constant 0 : index
    %c149 = arith.constant 149 : index
    %372 = vector.load %arg2[%c0_113, %c149] : memref<1x896xf32, #tpu.memory_space<vmem>>, vector<1x448xf32>
    %373 = vector.broadcast %371 : f32 to vector<1x448xf32>
    %374 = arith.mulf %373, %372 : vector<1x448xf32>
    %375 = arith.addf %370, %374 : vector<1x448xf32>
    %c75 = arith.constant 75 : index
    %376 = memref.load %arg0[%c75] : memref<169xf32, #tpu.memory_space<smem>>
    %c0_114 = arith.constant 0 : index
    %c150 = arith.constant 150 : index
    %377 = vector.load %arg2[%c0_114, %c150] : memref<1x896xf32, #tpu.memory_space<vmem>>, vector<1x448xf32>
    %378 = vector.broadcast %376 : f32 to vector<1x448xf32>
    %379 = arith.mulf %378, %377 : vector<1x448xf32>
    %380 = arith.addf %375, %379 : vector<1x448xf32>
    %c76 = arith.constant 76 : index
    %381 = memref.load %arg0[%c76] : memref<169xf32, #tpu.memory_space<smem>>
    %c0_115 = arith.constant 0 : index
    %c151 = arith.constant 151 : index
    %382 = vector.load %arg2[%c0_115, %c151] : memref<1x896xf32, #tpu.memory_space<vmem>>, vector<1x448xf32>
    %383 = vector.broadcast %381 : f32 to vector<1x448xf32>
    %384 = arith.mulf %383, %382 : vector<1x448xf32>
    %385 = arith.addf %380, %384 : vector<1x448xf32>
    %c77 = arith.constant 77 : index
    %386 = memref.load %arg0[%c77] : memref<169xf32, #tpu.memory_space<smem>>
    %c0_116 = arith.constant 0 : index
    %c152 = arith.constant 152 : index
    %387 = vector.load %arg2[%c0_116, %c152] : memref<1x896xf32, #tpu.memory_space<vmem>>, vector<1x448xf32>
    %388 = vector.broadcast %386 : f32 to vector<1x448xf32>
    %389 = arith.mulf %388, %387 : vector<1x448xf32>
    %390 = arith.addf %385, %389 : vector<1x448xf32>
    %c78 = arith.constant 78 : index
    %391 = memref.load %arg0[%c78] : memref<169xf32, #tpu.memory_space<smem>>
    %c0_117 = arith.constant 0 : index
    %c168 = arith.constant 168 : index
    %392 = vector.load %arg2[%c0_117, %c168] : memref<1x896xf32, #tpu.memory_space<vmem>>, vector<1x448xf32>
    %393 = vector.broadcast %391 : f32 to vector<1x448xf32>
    %394 = arith.mulf %393, %392 : vector<1x448xf32>
    %395 = arith.addf %390, %394 : vector<1x448xf32>
    %c79 = arith.constant 79 : index
    %396 = memref.load %arg0[%c79] : memref<169xf32, #tpu.memory_space<smem>>
    %c0_118 = arith.constant 0 : index
    %c169 = arith.constant 169 : index
    %397 = vector.load %arg2[%c0_118, %c169] : memref<1x896xf32, #tpu.memory_space<vmem>>, vector<1x448xf32>
    %398 = vector.broadcast %396 : f32 to vector<1x448xf32>
    %399 = arith.mulf %398, %397 : vector<1x448xf32>
    %400 = arith.addf %395, %399 : vector<1x448xf32>
    %c80 = arith.constant 80 : index
    %401 = memref.load %arg0[%c80] : memref<169xf32, #tpu.memory_space<smem>>
    %c0_119 = arith.constant 0 : index
    %c170 = arith.constant 170 : index
    %402 = vector.load %arg2[%c0_119, %c170] : memref<1x896xf32, #tpu.memory_space<vmem>>, vector<1x448xf32>
    %403 = vector.broadcast %401 : f32 to vector<1x448xf32>
    %404 = arith.mulf %403, %402 : vector<1x448xf32>
    %405 = arith.addf %400, %404 : vector<1x448xf32>
    %c81 = arith.constant 81 : index
    %406 = memref.load %arg0[%c81] : memref<169xf32, #tpu.memory_space<smem>>
    %c0_120 = arith.constant 0 : index
    %c171 = arith.constant 171 : index
    %407 = vector.load %arg2[%c0_120, %c171] : memref<1x896xf32, #tpu.memory_space<vmem>>, vector<1x448xf32>
    %408 = vector.broadcast %406 : f32 to vector<1x448xf32>
    %409 = arith.mulf %408, %407 : vector<1x448xf32>
    %410 = arith.addf %405, %409 : vector<1x448xf32>
    %c82 = arith.constant 82 : index
    %411 = memref.load %arg0[%c82] : memref<169xf32, #tpu.memory_space<smem>>
    %c0_121 = arith.constant 0 : index
    %c172 = arith.constant 172 : index
    %412 = vector.load %arg2[%c0_121, %c172] : memref<1x896xf32, #tpu.memory_space<vmem>>, vector<1x448xf32>
    %413 = vector.broadcast %411 : f32 to vector<1x448xf32>
    %414 = arith.mulf %413, %412 : vector<1x448xf32>
    %415 = arith.addf %410, %414 : vector<1x448xf32>
    %c83 = arith.constant 83 : index
    %416 = memref.load %arg0[%c83] : memref<169xf32, #tpu.memory_space<smem>>
    %c0_122 = arith.constant 0 : index
    %c173 = arith.constant 173 : index
    %417 = vector.load %arg2[%c0_122, %c173] : memref<1x896xf32, #tpu.memory_space<vmem>>, vector<1x448xf32>
    %418 = vector.broadcast %416 : f32 to vector<1x448xf32>
    %419 = arith.mulf %418, %417 : vector<1x448xf32>
    %420 = arith.addf %415, %419 : vector<1x448xf32>
    %c84_123 = arith.constant 84 : index
    %421 = memref.load %arg0[%c84_123] : memref<169xf32, #tpu.memory_space<smem>>
    %c0_124 = arith.constant 0 : index
    %c174 = arith.constant 174 : index
    %422 = vector.load %arg2[%c0_124, %c174] : memref<1x896xf32, #tpu.memory_space<vmem>>, vector<1x448xf32>
    %423 = vector.broadcast %421 : f32 to vector<1x448xf32>
    %424 = arith.mulf %423, %422 : vector<1x448xf32>
    %425 = arith.addf %420, %424 : vector<1x448xf32>
    %c85_125 = arith.constant 85 : index
    %426 = memref.load %arg0[%c85_125] : memref<169xf32, #tpu.memory_space<smem>>
    %c0_126 = arith.constant 0 : index
    %c175 = arith.constant 175 : index
    %427 = vector.load %arg2[%c0_126, %c175] : memref<1x896xf32, #tpu.memory_space<vmem>>, vector<1x448xf32>
    %428 = vector.broadcast %426 : f32 to vector<1x448xf32>
    %429 = arith.mulf %428, %427 : vector<1x448xf32>
    %430 = arith.addf %425, %429 : vector<1x448xf32>
    %c86_127 = arith.constant 86 : index
    %431 = memref.load %arg0[%c86_127] : memref<169xf32, #tpu.memory_space<smem>>
    %c0_128 = arith.constant 0 : index
    %c176 = arith.constant 176 : index
    %432 = vector.load %arg2[%c0_128, %c176] : memref<1x896xf32, #tpu.memory_space<vmem>>, vector<1x448xf32>
    %433 = vector.broadcast %431 : f32 to vector<1x448xf32>
    %434 = arith.mulf %433, %432 : vector<1x448xf32>
    %435 = arith.addf %430, %434 : vector<1x448xf32>
    %c87_129 = arith.constant 87 : index
    %436 = memref.load %arg0[%c87_129] : memref<169xf32, #tpu.memory_space<smem>>
    %c0_130 = arith.constant 0 : index
    %c177 = arith.constant 177 : index
    %437 = vector.load %arg2[%c0_130, %c177] : memref<1x896xf32, #tpu.memory_space<vmem>>, vector<1x448xf32>
    %438 = vector.broadcast %436 : f32 to vector<1x448xf32>
    %439 = arith.mulf %438, %437 : vector<1x448xf32>
    %440 = arith.addf %435, %439 : vector<1x448xf32>
    %c88_131 = arith.constant 88 : index
    %441 = memref.load %arg0[%c88_131] : memref<169xf32, #tpu.memory_space<smem>>
    %c0_132 = arith.constant 0 : index
    %c178 = arith.constant 178 : index
    %442 = vector.load %arg2[%c0_132, %c178] : memref<1x896xf32, #tpu.memory_space<vmem>>, vector<1x448xf32>
    %443 = vector.broadcast %441 : f32 to vector<1x448xf32>
    %444 = arith.mulf %443, %442 : vector<1x448xf32>
    %445 = arith.addf %440, %444 : vector<1x448xf32>
    %c89_133 = arith.constant 89 : index
    %446 = memref.load %arg0[%c89_133] : memref<169xf32, #tpu.memory_space<smem>>
    %c0_134 = arith.constant 0 : index
    %c179 = arith.constant 179 : index
    %447 = vector.load %arg2[%c0_134, %c179] : memref<1x896xf32, #tpu.memory_space<vmem>>, vector<1x448xf32>
    %448 = vector.broadcast %446 : f32 to vector<1x448xf32>
    %449 = arith.mulf %448, %447 : vector<1x448xf32>
    %450 = arith.addf %445, %449 : vector<1x448xf32>
    %c90_135 = arith.constant 90 : index
    %451 = memref.load %arg0[%c90_135] : memref<169xf32, #tpu.memory_space<smem>>
    %c0_136 = arith.constant 0 : index
    %c180 = arith.constant 180 : index
    %452 = vector.load %arg2[%c0_136, %c180] : memref<1x896xf32, #tpu.memory_space<vmem>>, vector<1x448xf32>
    %453 = vector.broadcast %451 : f32 to vector<1x448xf32>
    %454 = arith.mulf %453, %452 : vector<1x448xf32>
    %455 = arith.addf %450, %454 : vector<1x448xf32>
    %c91_137 = arith.constant 91 : index
    %456 = memref.load %arg0[%c91_137] : memref<169xf32, #tpu.memory_space<smem>>
    %c0_138 = arith.constant 0 : index
    %c196 = arith.constant 196 : index
    %457 = vector.load %arg2[%c0_138, %c196] : memref<1x896xf32, #tpu.memory_space<vmem>>, vector<1x448xf32>
    %458 = vector.broadcast %456 : f32 to vector<1x448xf32>
    %459 = arith.mulf %458, %457 : vector<1x448xf32>
    %460 = arith.addf %455, %459 : vector<1x448xf32>
    %c92_139 = arith.constant 92 : index
    %461 = memref.load %arg0[%c92_139] : memref<169xf32, #tpu.memory_space<smem>>
    %c0_140 = arith.constant 0 : index
    %c197 = arith.constant 197 : index
    %462 = vector.load %arg2[%c0_140, %c197] : memref<1x896xf32, #tpu.memory_space<vmem>>, vector<1x448xf32>
    %463 = vector.broadcast %461 : f32 to vector<1x448xf32>
    %464 = arith.mulf %463, %462 : vector<1x448xf32>
    %465 = arith.addf %460, %464 : vector<1x448xf32>
    %c93_141 = arith.constant 93 : index
    %466 = memref.load %arg0[%c93_141] : memref<169xf32, #tpu.memory_space<smem>>
    %c0_142 = arith.constant 0 : index
    %c198 = arith.constant 198 : index
    %467 = vector.load %arg2[%c0_142, %c198] : memref<1x896xf32, #tpu.memory_space<vmem>>, vector<1x448xf32>
    %468 = vector.broadcast %466 : f32 to vector<1x448xf32>
    %469 = arith.mulf %468, %467 : vector<1x448xf32>
    %470 = arith.addf %465, %469 : vector<1x448xf32>
    %c94_143 = arith.constant 94 : index
    %471 = memref.load %arg0[%c94_143] : memref<169xf32, #tpu.memory_space<smem>>
    %c0_144 = arith.constant 0 : index
    %c199 = arith.constant 199 : index
    %472 = vector.load %arg2[%c0_144, %c199] : memref<1x896xf32, #tpu.memory_space<vmem>>, vector<1x448xf32>
    %473 = vector.broadcast %471 : f32 to vector<1x448xf32>
    %474 = arith.mulf %473, %472 : vector<1x448xf32>
    %475 = arith.addf %470, %474 : vector<1x448xf32>
    %c95_145 = arith.constant 95 : index
    %476 = memref.load %arg0[%c95_145] : memref<169xf32, #tpu.memory_space<smem>>
    %c0_146 = arith.constant 0 : index
    %c200 = arith.constant 200 : index
    %477 = vector.load %arg2[%c0_146, %c200] : memref<1x896xf32, #tpu.memory_space<vmem>>, vector<1x448xf32>
    %478 = vector.broadcast %476 : f32 to vector<1x448xf32>
    %479 = arith.mulf %478, %477 : vector<1x448xf32>
    %480 = arith.addf %475, %479 : vector<1x448xf32>
    %c96_147 = arith.constant 96 : index
    %481 = memref.load %arg0[%c96_147] : memref<169xf32, #tpu.memory_space<smem>>
    %c0_148 = arith.constant 0 : index
    %c201 = arith.constant 201 : index
    %482 = vector.load %arg2[%c0_148, %c201] : memref<1x896xf32, #tpu.memory_space<vmem>>, vector<1x448xf32>
    %483 = vector.broadcast %481 : f32 to vector<1x448xf32>
    %484 = arith.mulf %483, %482 : vector<1x448xf32>
    %485 = arith.addf %480, %484 : vector<1x448xf32>
    %c97 = arith.constant 97 : index
    %486 = memref.load %arg0[%c97] : memref<169xf32, #tpu.memory_space<smem>>
    %c0_149 = arith.constant 0 : index
    %c202 = arith.constant 202 : index
    %487 = vector.load %arg2[%c0_149, %c202] : memref<1x896xf32, #tpu.memory_space<vmem>>, vector<1x448xf32>
    %488 = vector.broadcast %486 : f32 to vector<1x448xf32>
    %489 = arith.mulf %488, %487 : vector<1x448xf32>
    %490 = arith.addf %485, %489 : vector<1x448xf32>
    %c98 = arith.constant 98 : index
    %491 = memref.load %arg0[%c98] : memref<169xf32, #tpu.memory_space<smem>>
    %c0_150 = arith.constant 0 : index
    %c203 = arith.constant 203 : index
    %492 = vector.load %arg2[%c0_150, %c203] : memref<1x896xf32, #tpu.memory_space<vmem>>, vector<1x448xf32>
    %493 = vector.broadcast %491 : f32 to vector<1x448xf32>
    %494 = arith.mulf %493, %492 : vector<1x448xf32>
    %495 = arith.addf %490, %494 : vector<1x448xf32>
    %c99 = arith.constant 99 : index
    %496 = memref.load %arg0[%c99] : memref<169xf32, #tpu.memory_space<smem>>
    %c0_151 = arith.constant 0 : index
    %c204 = arith.constant 204 : index
    %497 = vector.load %arg2[%c0_151, %c204] : memref<1x896xf32, #tpu.memory_space<vmem>>, vector<1x448xf32>
    %498 = vector.broadcast %496 : f32 to vector<1x448xf32>
    %499 = arith.mulf %498, %497 : vector<1x448xf32>
    %500 = arith.addf %495, %499 : vector<1x448xf32>
    %c100 = arith.constant 100 : index
    %501 = memref.load %arg0[%c100] : memref<169xf32, #tpu.memory_space<smem>>
    %c0_152 = arith.constant 0 : index
    %c205 = arith.constant 205 : index
    %502 = vector.load %arg2[%c0_152, %c205] : memref<1x896xf32, #tpu.memory_space<vmem>>, vector<1x448xf32>
    %503 = vector.broadcast %501 : f32 to vector<1x448xf32>
    %504 = arith.mulf %503, %502 : vector<1x448xf32>
    %505 = arith.addf %500, %504 : vector<1x448xf32>
    %c101 = arith.constant 101 : index
    %506 = memref.load %arg0[%c101] : memref<169xf32, #tpu.memory_space<smem>>
    %c0_153 = arith.constant 0 : index
    %c206 = arith.constant 206 : index
    %507 = vector.load %arg2[%c0_153, %c206] : memref<1x896xf32, #tpu.memory_space<vmem>>, vector<1x448xf32>
    %508 = vector.broadcast %506 : f32 to vector<1x448xf32>
    %509 = arith.mulf %508, %507 : vector<1x448xf32>
    %510 = arith.addf %505, %509 : vector<1x448xf32>
    %c102 = arith.constant 102 : index
    %511 = memref.load %arg0[%c102] : memref<169xf32, #tpu.memory_space<smem>>
    %c0_154 = arith.constant 0 : index
    %c207 = arith.constant 207 : index
    %512 = vector.load %arg2[%c0_154, %c207] : memref<1x896xf32, #tpu.memory_space<vmem>>, vector<1x448xf32>
    %513 = vector.broadcast %511 : f32 to vector<1x448xf32>
    %514 = arith.mulf %513, %512 : vector<1x448xf32>
    %515 = arith.addf %510, %514 : vector<1x448xf32>
    %c103 = arith.constant 103 : index
    %516 = memref.load %arg0[%c103] : memref<169xf32, #tpu.memory_space<smem>>
    %c0_155 = arith.constant 0 : index
    %c208 = arith.constant 208 : index
    %517 = vector.load %arg2[%c0_155, %c208] : memref<1x896xf32, #tpu.memory_space<vmem>>, vector<1x448xf32>
    %518 = vector.broadcast %516 : f32 to vector<1x448xf32>
    %519 = arith.mulf %518, %517 : vector<1x448xf32>
    %520 = arith.addf %515, %519 : vector<1x448xf32>
    %c104 = arith.constant 104 : index
    %521 = memref.load %arg0[%c104] : memref<169xf32, #tpu.memory_space<smem>>
    %c0_156 = arith.constant 0 : index
    %c224 = arith.constant 224 : index
    %522 = vector.load %arg2[%c0_156, %c224] : memref<1x896xf32, #tpu.memory_space<vmem>>, vector<1x448xf32>
    %523 = vector.broadcast %521 : f32 to vector<1x448xf32>
    %524 = arith.mulf %523, %522 : vector<1x448xf32>
    %525 = arith.addf %520, %524 : vector<1x448xf32>
    %c105 = arith.constant 105 : index
    %526 = memref.load %arg0[%c105] : memref<169xf32, #tpu.memory_space<smem>>
    %c0_157 = arith.constant 0 : index
    %c225 = arith.constant 225 : index
    %527 = vector.load %arg2[%c0_157, %c225] : memref<1x896xf32, #tpu.memory_space<vmem>>, vector<1x448xf32>
    %528 = vector.broadcast %526 : f32 to vector<1x448xf32>
    %529 = arith.mulf %528, %527 : vector<1x448xf32>
    %530 = arith.addf %525, %529 : vector<1x448xf32>
    %c106 = arith.constant 106 : index
    %531 = memref.load %arg0[%c106] : memref<169xf32, #tpu.memory_space<smem>>
    %c0_158 = arith.constant 0 : index
    %c226 = arith.constant 226 : index
    %532 = vector.load %arg2[%c0_158, %c226] : memref<1x896xf32, #tpu.memory_space<vmem>>, vector<1x448xf32>
    %533 = vector.broadcast %531 : f32 to vector<1x448xf32>
    %534 = arith.mulf %533, %532 : vector<1x448xf32>
    %535 = arith.addf %530, %534 : vector<1x448xf32>
    %c107 = arith.constant 107 : index
    %536 = memref.load %arg0[%c107] : memref<169xf32, #tpu.memory_space<smem>>
    %c0_159 = arith.constant 0 : index
    %c227 = arith.constant 227 : index
    %537 = vector.load %arg2[%c0_159, %c227] : memref<1x896xf32, #tpu.memory_space<vmem>>, vector<1x448xf32>
    %538 = vector.broadcast %536 : f32 to vector<1x448xf32>
    %539 = arith.mulf %538, %537 : vector<1x448xf32>
    %540 = arith.addf %535, %539 : vector<1x448xf32>
    %c108 = arith.constant 108 : index
    %541 = memref.load %arg0[%c108] : memref<169xf32, #tpu.memory_space<smem>>
    %c0_160 = arith.constant 0 : index
    %c228 = arith.constant 228 : index
    %542 = vector.load %arg2[%c0_160, %c228] : memref<1x896xf32, #tpu.memory_space<vmem>>, vector<1x448xf32>
    %543 = vector.broadcast %541 : f32 to vector<1x448xf32>
    %544 = arith.mulf %543, %542 : vector<1x448xf32>
    %545 = arith.addf %540, %544 : vector<1x448xf32>
    %c109 = arith.constant 109 : index
    %546 = memref.load %arg0[%c109] : memref<169xf32, #tpu.memory_space<smem>>
    %c0_161 = arith.constant 0 : index
    %c229 = arith.constant 229 : index
    %547 = vector.load %arg2[%c0_161, %c229] : memref<1x896xf32, #tpu.memory_space<vmem>>, vector<1x448xf32>
    %548 = vector.broadcast %546 : f32 to vector<1x448xf32>
    %549 = arith.mulf %548, %547 : vector<1x448xf32>
    %550 = arith.addf %545, %549 : vector<1x448xf32>
    %c110 = arith.constant 110 : index
    %551 = memref.load %arg0[%c110] : memref<169xf32, #tpu.memory_space<smem>>
    %c0_162 = arith.constant 0 : index
    %c230 = arith.constant 230 : index
    %552 = vector.load %arg2[%c0_162, %c230] : memref<1x896xf32, #tpu.memory_space<vmem>>, vector<1x448xf32>
    %553 = vector.broadcast %551 : f32 to vector<1x448xf32>
    %554 = arith.mulf %553, %552 : vector<1x448xf32>
    %555 = arith.addf %550, %554 : vector<1x448xf32>
    %c111 = arith.constant 111 : index
    %556 = memref.load %arg0[%c111] : memref<169xf32, #tpu.memory_space<smem>>
    %c0_163 = arith.constant 0 : index
    %c231 = arith.constant 231 : index
    %557 = vector.load %arg2[%c0_163, %c231] : memref<1x896xf32, #tpu.memory_space<vmem>>, vector<1x448xf32>
    %558 = vector.broadcast %556 : f32 to vector<1x448xf32>
    %559 = arith.mulf %558, %557 : vector<1x448xf32>
    %560 = arith.addf %555, %559 : vector<1x448xf32>
    %c112_164 = arith.constant 112 : index
    %561 = memref.load %arg0[%c112_164] : memref<169xf32, #tpu.memory_space<smem>>
    %c0_165 = arith.constant 0 : index
    %c232 = arith.constant 232 : index
    %562 = vector.load %arg2[%c0_165, %c232] : memref<1x896xf32, #tpu.memory_space<vmem>>, vector<1x448xf32>
    %563 = vector.broadcast %561 : f32 to vector<1x448xf32>
    %564 = arith.mulf %563, %562 : vector<1x448xf32>
    %565 = arith.addf %560, %564 : vector<1x448xf32>
    %c113_166 = arith.constant 113 : index
    %566 = memref.load %arg0[%c113_166] : memref<169xf32, #tpu.memory_space<smem>>
    %c0_167 = arith.constant 0 : index
    %c233 = arith.constant 233 : index
    %567 = vector.load %arg2[%c0_167, %c233] : memref<1x896xf32, #tpu.memory_space<vmem>>, vector<1x448xf32>
    %568 = vector.broadcast %566 : f32 to vector<1x448xf32>
    %569 = arith.mulf %568, %567 : vector<1x448xf32>
    %570 = arith.addf %565, %569 : vector<1x448xf32>
    %c114_168 = arith.constant 114 : index
    %571 = memref.load %arg0[%c114_168] : memref<169xf32, #tpu.memory_space<smem>>
    %c0_169 = arith.constant 0 : index
    %c234 = arith.constant 234 : index
    %572 = vector.load %arg2[%c0_169, %c234] : memref<1x896xf32, #tpu.memory_space<vmem>>, vector<1x448xf32>
    %573 = vector.broadcast %571 : f32 to vector<1x448xf32>
    %574 = arith.mulf %573, %572 : vector<1x448xf32>
    %575 = arith.addf %570, %574 : vector<1x448xf32>
    %c115_170 = arith.constant 115 : index
    %576 = memref.load %arg0[%c115_170] : memref<169xf32, #tpu.memory_space<smem>>
    %c0_171 = arith.constant 0 : index
    %c235 = arith.constant 235 : index
    %577 = vector.load %arg2[%c0_171, %c235] : memref<1x896xf32, #tpu.memory_space<vmem>>, vector<1x448xf32>
    %578 = vector.broadcast %576 : f32 to vector<1x448xf32>
    %579 = arith.mulf %578, %577 : vector<1x448xf32>
    %580 = arith.addf %575, %579 : vector<1x448xf32>
    %c116_172 = arith.constant 116 : index
    %581 = memref.load %arg0[%c116_172] : memref<169xf32, #tpu.memory_space<smem>>
    %c0_173 = arith.constant 0 : index
    %c236 = arith.constant 236 : index
    %582 = vector.load %arg2[%c0_173, %c236] : memref<1x896xf32, #tpu.memory_space<vmem>>, vector<1x448xf32>
    %583 = vector.broadcast %581 : f32 to vector<1x448xf32>
    %584 = arith.mulf %583, %582 : vector<1x448xf32>
    %585 = arith.addf %580, %584 : vector<1x448xf32>
    %c117_174 = arith.constant 117 : index
    %586 = memref.load %arg0[%c117_174] : memref<169xf32, #tpu.memory_space<smem>>
    %c0_175 = arith.constant 0 : index
    %c252 = arith.constant 252 : index
    %587 = vector.load %arg2[%c0_175, %c252] : memref<1x896xf32, #tpu.memory_space<vmem>>, vector<1x448xf32>
    %588 = vector.broadcast %586 : f32 to vector<1x448xf32>
    %589 = arith.mulf %588, %587 : vector<1x448xf32>
    %590 = arith.addf %585, %589 : vector<1x448xf32>
    %c118_176 = arith.constant 118 : index
    %591 = memref.load %arg0[%c118_176] : memref<169xf32, #tpu.memory_space<smem>>
    %c0_177 = arith.constant 0 : index
    %c253 = arith.constant 253 : index
    %592 = vector.load %arg2[%c0_177, %c253] : memref<1x896xf32, #tpu.memory_space<vmem>>, vector<1x448xf32>
    %593 = vector.broadcast %591 : f32 to vector<1x448xf32>
    %594 = arith.mulf %593, %592 : vector<1x448xf32>
    %595 = arith.addf %590, %594 : vector<1x448xf32>
    %c119_178 = arith.constant 119 : index
    %596 = memref.load %arg0[%c119_178] : memref<169xf32, #tpu.memory_space<smem>>
    %c0_179 = arith.constant 0 : index
    %c254 = arith.constant 254 : index
    %597 = vector.load %arg2[%c0_179, %c254] : memref<1x896xf32, #tpu.memory_space<vmem>>, vector<1x448xf32>
    %598 = vector.broadcast %596 : f32 to vector<1x448xf32>
    %599 = arith.mulf %598, %597 : vector<1x448xf32>
    %600 = arith.addf %595, %599 : vector<1x448xf32>
    %c120_180 = arith.constant 120 : index
    %601 = memref.load %arg0[%c120_180] : memref<169xf32, #tpu.memory_space<smem>>
    %c0_181 = arith.constant 0 : index
    %c255 = arith.constant 255 : index
    %602 = vector.load %arg2[%c0_181, %c255] : memref<1x896xf32, #tpu.memory_space<vmem>>, vector<1x448xf32>
    %603 = vector.broadcast %601 : f32 to vector<1x448xf32>
    %604 = arith.mulf %603, %602 : vector<1x448xf32>
    %605 = arith.addf %600, %604 : vector<1x448xf32>
    %c121_182 = arith.constant 121 : index
    %606 = memref.load %arg0[%c121_182] : memref<169xf32, #tpu.memory_space<smem>>
    %c0_183 = arith.constant 0 : index
    %c256 = arith.constant 256 : index
    %607 = vector.load %arg2[%c0_183, %c256] : memref<1x896xf32, #tpu.memory_space<vmem>>, vector<1x448xf32>
    %608 = vector.broadcast %606 : f32 to vector<1x448xf32>
    %609 = arith.mulf %608, %607 : vector<1x448xf32>
    %610 = arith.addf %605, %609 : vector<1x448xf32>
    %c122_184 = arith.constant 122 : index
    %611 = memref.load %arg0[%c122_184] : memref<169xf32, #tpu.memory_space<smem>>
    %c0_185 = arith.constant 0 : index
    %c257 = arith.constant 257 : index
    %612 = vector.load %arg2[%c0_185, %c257] : memref<1x896xf32, #tpu.memory_space<vmem>>, vector<1x448xf32>
    %613 = vector.broadcast %611 : f32 to vector<1x448xf32>
    %614 = arith.mulf %613, %612 : vector<1x448xf32>
    %615 = arith.addf %610, %614 : vector<1x448xf32>
    %c123_186 = arith.constant 123 : index
    %616 = memref.load %arg0[%c123_186] : memref<169xf32, #tpu.memory_space<smem>>
    %c0_187 = arith.constant 0 : index
    %c258 = arith.constant 258 : index
    %617 = vector.load %arg2[%c0_187, %c258] : memref<1x896xf32, #tpu.memory_space<vmem>>, vector<1x448xf32>
    %618 = vector.broadcast %616 : f32 to vector<1x448xf32>
    %619 = arith.mulf %618, %617 : vector<1x448xf32>
    %620 = arith.addf %615, %619 : vector<1x448xf32>
    %c124_188 = arith.constant 124 : index
    %621 = memref.load %arg0[%c124_188] : memref<169xf32, #tpu.memory_space<smem>>
    %c0_189 = arith.constant 0 : index
    %c259 = arith.constant 259 : index
    %622 = vector.load %arg2[%c0_189, %c259] : memref<1x896xf32, #tpu.memory_space<vmem>>, vector<1x448xf32>
    %623 = vector.broadcast %621 : f32 to vector<1x448xf32>
    %624 = arith.mulf %623, %622 : vector<1x448xf32>
    %625 = arith.addf %620, %624 : vector<1x448xf32>
    %c125 = arith.constant 125 : index
    %626 = memref.load %arg0[%c125] : memref<169xf32, #tpu.memory_space<smem>>
    %c0_190 = arith.constant 0 : index
    %c260 = arith.constant 260 : index
    %627 = vector.load %arg2[%c0_190, %c260] : memref<1x896xf32, #tpu.memory_space<vmem>>, vector<1x448xf32>
    %628 = vector.broadcast %626 : f32 to vector<1x448xf32>
    %629 = arith.mulf %628, %627 : vector<1x448xf32>
    %630 = arith.addf %625, %629 : vector<1x448xf32>
    %c126 = arith.constant 126 : index
    %631 = memref.load %arg0[%c126] : memref<169xf32, #tpu.memory_space<smem>>
    %c0_191 = arith.constant 0 : index
    %c261 = arith.constant 261 : index
    %632 = vector.load %arg2[%c0_191, %c261] : memref<1x896xf32, #tpu.memory_space<vmem>>, vector<1x448xf32>
    %633 = vector.broadcast %631 : f32 to vector<1x448xf32>
    %634 = arith.mulf %633, %632 : vector<1x448xf32>
    %635 = arith.addf %630, %634 : vector<1x448xf32>
    %c127 = arith.constant 127 : index
    %636 = memref.load %arg0[%c127] : memref<169xf32, #tpu.memory_space<smem>>
    %c0_192 = arith.constant 0 : index
    %c262 = arith.constant 262 : index
    %637 = vector.load %arg2[%c0_192, %c262] : memref<1x896xf32, #tpu.memory_space<vmem>>, vector<1x448xf32>
    %638 = vector.broadcast %636 : f32 to vector<1x448xf32>
    %639 = arith.mulf %638, %637 : vector<1x448xf32>
    %640 = arith.addf %635, %639 : vector<1x448xf32>
    %c128 = arith.constant 128 : index
    %641 = memref.load %arg0[%c128] : memref<169xf32, #tpu.memory_space<smem>>
    %c0_193 = arith.constant 0 : index
    %c263 = arith.constant 263 : index
    %642 = vector.load %arg2[%c0_193, %c263] : memref<1x896xf32, #tpu.memory_space<vmem>>, vector<1x448xf32>
    %643 = vector.broadcast %641 : f32 to vector<1x448xf32>
    %644 = arith.mulf %643, %642 : vector<1x448xf32>
    %645 = arith.addf %640, %644 : vector<1x448xf32>
    %c129 = arith.constant 129 : index
    %646 = memref.load %arg0[%c129] : memref<169xf32, #tpu.memory_space<smem>>
    %c0_194 = arith.constant 0 : index
    %c264 = arith.constant 264 : index
    %647 = vector.load %arg2[%c0_194, %c264] : memref<1x896xf32, #tpu.memory_space<vmem>>, vector<1x448xf32>
    %648 = vector.broadcast %646 : f32 to vector<1x448xf32>
    %649 = arith.mulf %648, %647 : vector<1x448xf32>
    %650 = arith.addf %645, %649 : vector<1x448xf32>
    %c130 = arith.constant 130 : index
    %651 = memref.load %arg0[%c130] : memref<169xf32, #tpu.memory_space<smem>>
    %c0_195 = arith.constant 0 : index
    %c280 = arith.constant 280 : index
    %652 = vector.load %arg2[%c0_195, %c280] : memref<1x896xf32, #tpu.memory_space<vmem>>, vector<1x448xf32>
    %653 = vector.broadcast %651 : f32 to vector<1x448xf32>
    %654 = arith.mulf %653, %652 : vector<1x448xf32>
    %655 = arith.addf %650, %654 : vector<1x448xf32>
    %c131 = arith.constant 131 : index
    %656 = memref.load %arg0[%c131] : memref<169xf32, #tpu.memory_space<smem>>
    %c0_196 = arith.constant 0 : index
    %c281 = arith.constant 281 : index
    %657 = vector.load %arg2[%c0_196, %c281] : memref<1x896xf32, #tpu.memory_space<vmem>>, vector<1x448xf32>
    %658 = vector.broadcast %656 : f32 to vector<1x448xf32>
    %659 = arith.mulf %658, %657 : vector<1x448xf32>
    %660 = arith.addf %655, %659 : vector<1x448xf32>
    %c132 = arith.constant 132 : index
    %661 = memref.load %arg0[%c132] : memref<169xf32, #tpu.memory_space<smem>>
    %c0_197 = arith.constant 0 : index
    %c282 = arith.constant 282 : index
    %662 = vector.load %arg2[%c0_197, %c282] : memref<1x896xf32, #tpu.memory_space<vmem>>, vector<1x448xf32>
    %663 = vector.broadcast %661 : f32 to vector<1x448xf32>
    %664 = arith.mulf %663, %662 : vector<1x448xf32>
    %665 = arith.addf %660, %664 : vector<1x448xf32>
    %c133 = arith.constant 133 : index
    %666 = memref.load %arg0[%c133] : memref<169xf32, #tpu.memory_space<smem>>
    %c0_198 = arith.constant 0 : index
    %c283 = arith.constant 283 : index
    %667 = vector.load %arg2[%c0_198, %c283] : memref<1x896xf32, #tpu.memory_space<vmem>>, vector<1x448xf32>
    %668 = vector.broadcast %666 : f32 to vector<1x448xf32>
    %669 = arith.mulf %668, %667 : vector<1x448xf32>
    %670 = arith.addf %665, %669 : vector<1x448xf32>
    %c134 = arith.constant 134 : index
    %671 = memref.load %arg0[%c134] : memref<169xf32, #tpu.memory_space<smem>>
    %c0_199 = arith.constant 0 : index
    %c284 = arith.constant 284 : index
    %672 = vector.load %arg2[%c0_199, %c284] : memref<1x896xf32, #tpu.memory_space<vmem>>, vector<1x448xf32>
    %673 = vector.broadcast %671 : f32 to vector<1x448xf32>
    %674 = arith.mulf %673, %672 : vector<1x448xf32>
    %675 = arith.addf %670, %674 : vector<1x448xf32>
    %c135 = arith.constant 135 : index
    %676 = memref.load %arg0[%c135] : memref<169xf32, #tpu.memory_space<smem>>
    %c0_200 = arith.constant 0 : index
    %c285 = arith.constant 285 : index
    %677 = vector.load %arg2[%c0_200, %c285] : memref<1x896xf32, #tpu.memory_space<vmem>>, vector<1x448xf32>
    %678 = vector.broadcast %676 : f32 to vector<1x448xf32>
    %679 = arith.mulf %678, %677 : vector<1x448xf32>
    %680 = arith.addf %675, %679 : vector<1x448xf32>
    %c136 = arith.constant 136 : index
    %681 = memref.load %arg0[%c136] : memref<169xf32, #tpu.memory_space<smem>>
    %c0_201 = arith.constant 0 : index
    %c286 = arith.constant 286 : index
    %682 = vector.load %arg2[%c0_201, %c286] : memref<1x896xf32, #tpu.memory_space<vmem>>, vector<1x448xf32>
    %683 = vector.broadcast %681 : f32 to vector<1x448xf32>
    %684 = arith.mulf %683, %682 : vector<1x448xf32>
    %685 = arith.addf %680, %684 : vector<1x448xf32>
    %c137 = arith.constant 137 : index
    %686 = memref.load %arg0[%c137] : memref<169xf32, #tpu.memory_space<smem>>
    %c0_202 = arith.constant 0 : index
    %c287 = arith.constant 287 : index
    %687 = vector.load %arg2[%c0_202, %c287] : memref<1x896xf32, #tpu.memory_space<vmem>>, vector<1x448xf32>
    %688 = vector.broadcast %686 : f32 to vector<1x448xf32>
    %689 = arith.mulf %688, %687 : vector<1x448xf32>
    %690 = arith.addf %685, %689 : vector<1x448xf32>
    %c138 = arith.constant 138 : index
    %691 = memref.load %arg0[%c138] : memref<169xf32, #tpu.memory_space<smem>>
    %c0_203 = arith.constant 0 : index
    %c288 = arith.constant 288 : index
    %692 = vector.load %arg2[%c0_203, %c288] : memref<1x896xf32, #tpu.memory_space<vmem>>, vector<1x448xf32>
    %693 = vector.broadcast %691 : f32 to vector<1x448xf32>
    %694 = arith.mulf %693, %692 : vector<1x448xf32>
    %695 = arith.addf %690, %694 : vector<1x448xf32>
    %c139 = arith.constant 139 : index
    %696 = memref.load %arg0[%c139] : memref<169xf32, #tpu.memory_space<smem>>
    %c0_204 = arith.constant 0 : index
    %c289 = arith.constant 289 : index
    %697 = vector.load %arg2[%c0_204, %c289] : memref<1x896xf32, #tpu.memory_space<vmem>>, vector<1x448xf32>
    %698 = vector.broadcast %696 : f32 to vector<1x448xf32>
    %699 = arith.mulf %698, %697 : vector<1x448xf32>
    %700 = arith.addf %695, %699 : vector<1x448xf32>
    %c140_205 = arith.constant 140 : index
    %701 = memref.load %arg0[%c140_205] : memref<169xf32, #tpu.memory_space<smem>>
    %c0_206 = arith.constant 0 : index
    %c290 = arith.constant 290 : index
    %702 = vector.load %arg2[%c0_206, %c290] : memref<1x896xf32, #tpu.memory_space<vmem>>, vector<1x448xf32>
    %703 = vector.broadcast %701 : f32 to vector<1x448xf32>
    %704 = arith.mulf %703, %702 : vector<1x448xf32>
    %705 = arith.addf %700, %704 : vector<1x448xf32>
    %c141_207 = arith.constant 141 : index
    %706 = memref.load %arg0[%c141_207] : memref<169xf32, #tpu.memory_space<smem>>
    %c0_208 = arith.constant 0 : index
    %c291 = arith.constant 291 : index
    %707 = vector.load %arg2[%c0_208, %c291] : memref<1x896xf32, #tpu.memory_space<vmem>>, vector<1x448xf32>
    %708 = vector.broadcast %706 : f32 to vector<1x448xf32>
    %709 = arith.mulf %708, %707 : vector<1x448xf32>
    %710 = arith.addf %705, %709 : vector<1x448xf32>
    %c142_209 = arith.constant 142 : index
    %711 = memref.load %arg0[%c142_209] : memref<169xf32, #tpu.memory_space<smem>>
    %c0_210 = arith.constant 0 : index
    %c292 = arith.constant 292 : index
    %712 = vector.load %arg2[%c0_210, %c292] : memref<1x896xf32, #tpu.memory_space<vmem>>, vector<1x448xf32>
    %713 = vector.broadcast %711 : f32 to vector<1x448xf32>
    %714 = arith.mulf %713, %712 : vector<1x448xf32>
    %715 = arith.addf %710, %714 : vector<1x448xf32>
    %c143_211 = arith.constant 143 : index
    %716 = memref.load %arg0[%c143_211] : memref<169xf32, #tpu.memory_space<smem>>
    %c0_212 = arith.constant 0 : index
    %c308 = arith.constant 308 : index
    %717 = vector.load %arg2[%c0_212, %c308] : memref<1x896xf32, #tpu.memory_space<vmem>>, vector<1x448xf32>
    %718 = vector.broadcast %716 : f32 to vector<1x448xf32>
    %719 = arith.mulf %718, %717 : vector<1x448xf32>
    %720 = arith.addf %715, %719 : vector<1x448xf32>
    %c144_213 = arith.constant 144 : index
    %721 = memref.load %arg0[%c144_213] : memref<169xf32, #tpu.memory_space<smem>>
    %c0_214 = arith.constant 0 : index
    %c309 = arith.constant 309 : index
    %722 = vector.load %arg2[%c0_214, %c309] : memref<1x896xf32, #tpu.memory_space<vmem>>, vector<1x448xf32>
    %723 = vector.broadcast %721 : f32 to vector<1x448xf32>
    %724 = arith.mulf %723, %722 : vector<1x448xf32>
    %725 = arith.addf %720, %724 : vector<1x448xf32>
    %c145_215 = arith.constant 145 : index
    %726 = memref.load %arg0[%c145_215] : memref<169xf32, #tpu.memory_space<smem>>
    %c0_216 = arith.constant 0 : index
    %c310 = arith.constant 310 : index
    %727 = vector.load %arg2[%c0_216, %c310] : memref<1x896xf32, #tpu.memory_space<vmem>>, vector<1x448xf32>
    %728 = vector.broadcast %726 : f32 to vector<1x448xf32>
    %729 = arith.mulf %728, %727 : vector<1x448xf32>
    %730 = arith.addf %725, %729 : vector<1x448xf32>
    %c146_217 = arith.constant 146 : index
    %731 = memref.load %arg0[%c146_217] : memref<169xf32, #tpu.memory_space<smem>>
    %c0_218 = arith.constant 0 : index
    %c311 = arith.constant 311 : index
    %732 = vector.load %arg2[%c0_218, %c311] : memref<1x896xf32, #tpu.memory_space<vmem>>, vector<1x448xf32>
    %733 = vector.broadcast %731 : f32 to vector<1x448xf32>
    %734 = arith.mulf %733, %732 : vector<1x448xf32>
    %735 = arith.addf %730, %734 : vector<1x448xf32>
    %c147_219 = arith.constant 147 : index
    %736 = memref.load %arg0[%c147_219] : memref<169xf32, #tpu.memory_space<smem>>
    %c0_220 = arith.constant 0 : index
    %c312 = arith.constant 312 : index
    %737 = vector.load %arg2[%c0_220, %c312] : memref<1x896xf32, #tpu.memory_space<vmem>>, vector<1x448xf32>
    %738 = vector.broadcast %736 : f32 to vector<1x448xf32>
    %739 = arith.mulf %738, %737 : vector<1x448xf32>
    %740 = arith.addf %735, %739 : vector<1x448xf32>
    %c148_221 = arith.constant 148 : index
    %741 = memref.load %arg0[%c148_221] : memref<169xf32, #tpu.memory_space<smem>>
    %c0_222 = arith.constant 0 : index
    %c313 = arith.constant 313 : index
    %742 = vector.load %arg2[%c0_222, %c313] : memref<1x896xf32, #tpu.memory_space<vmem>>, vector<1x448xf32>
    %743 = vector.broadcast %741 : f32 to vector<1x448xf32>
    %744 = arith.mulf %743, %742 : vector<1x448xf32>
    %745 = arith.addf %740, %744 : vector<1x448xf32>
    %c149_223 = arith.constant 149 : index
    %746 = memref.load %arg0[%c149_223] : memref<169xf32, #tpu.memory_space<smem>>
    %c0_224 = arith.constant 0 : index
    %c314 = arith.constant 314 : index
    %747 = vector.load %arg2[%c0_224, %c314] : memref<1x896xf32, #tpu.memory_space<vmem>>, vector<1x448xf32>
    %748 = vector.broadcast %746 : f32 to vector<1x448xf32>
    %749 = arith.mulf %748, %747 : vector<1x448xf32>
    %750 = arith.addf %745, %749 : vector<1x448xf32>
    %c150_225 = arith.constant 150 : index
    %751 = memref.load %arg0[%c150_225] : memref<169xf32, #tpu.memory_space<smem>>
    %c0_226 = arith.constant 0 : index
    %c315 = arith.constant 315 : index
    %752 = vector.load %arg2[%c0_226, %c315] : memref<1x896xf32, #tpu.memory_space<vmem>>, vector<1x448xf32>
    %753 = vector.broadcast %751 : f32 to vector<1x448xf32>
    %754 = arith.mulf %753, %752 : vector<1x448xf32>
    %755 = arith.addf %750, %754 : vector<1x448xf32>
    %c151_227 = arith.constant 151 : index
    %756 = memref.load %arg0[%c151_227] : memref<169xf32, #tpu.memory_space<smem>>
    %c0_228 = arith.constant 0 : index
    %c316 = arith.constant 316 : index
    %757 = vector.load %arg2[%c0_228, %c316] : memref<1x896xf32, #tpu.memory_space<vmem>>, vector<1x448xf32>
    %758 = vector.broadcast %756 : f32 to vector<1x448xf32>
    %759 = arith.mulf %758, %757 : vector<1x448xf32>
    %760 = arith.addf %755, %759 : vector<1x448xf32>
    %c152_229 = arith.constant 152 : index
    %761 = memref.load %arg0[%c152_229] : memref<169xf32, #tpu.memory_space<smem>>
    %c0_230 = arith.constant 0 : index
    %c317 = arith.constant 317 : index
    %762 = vector.load %arg2[%c0_230, %c317] : memref<1x896xf32, #tpu.memory_space<vmem>>, vector<1x448xf32>
    %763 = vector.broadcast %761 : f32 to vector<1x448xf32>
    %764 = arith.mulf %763, %762 : vector<1x448xf32>
    %765 = arith.addf %760, %764 : vector<1x448xf32>
    %c153 = arith.constant 153 : index
    %766 = memref.load %arg0[%c153] : memref<169xf32, #tpu.memory_space<smem>>
    %c0_231 = arith.constant 0 : index
    %c318 = arith.constant 318 : index
    %767 = vector.load %arg2[%c0_231, %c318] : memref<1x896xf32, #tpu.memory_space<vmem>>, vector<1x448xf32>
    %768 = vector.broadcast %766 : f32 to vector<1x448xf32>
    %769 = arith.mulf %768, %767 : vector<1x448xf32>
    %770 = arith.addf %765, %769 : vector<1x448xf32>
    %c154 = arith.constant 154 : index
    %771 = memref.load %arg0[%c154] : memref<169xf32, #tpu.memory_space<smem>>
    %c0_232 = arith.constant 0 : index
    %c319 = arith.constant 319 : index
    %772 = vector.load %arg2[%c0_232, %c319] : memref<1x896xf32, #tpu.memory_space<vmem>>, vector<1x448xf32>
    %773 = vector.broadcast %771 : f32 to vector<1x448xf32>
    %774 = arith.mulf %773, %772 : vector<1x448xf32>
    %775 = arith.addf %770, %774 : vector<1x448xf32>
    %c155 = arith.constant 155 : index
    %776 = memref.load %arg0[%c155] : memref<169xf32, #tpu.memory_space<smem>>
    %c0_233 = arith.constant 0 : index
    %c320 = arith.constant 320 : index
    %777 = vector.load %arg2[%c0_233, %c320] : memref<1x896xf32, #tpu.memory_space<vmem>>, vector<1x448xf32>
    %778 = vector.broadcast %776 : f32 to vector<1x448xf32>
    %779 = arith.mulf %778, %777 : vector<1x448xf32>
    %780 = arith.addf %775, %779 : vector<1x448xf32>
    %c156 = arith.constant 156 : index
    %781 = memref.load %arg0[%c156] : memref<169xf32, #tpu.memory_space<smem>>
    %c0_234 = arith.constant 0 : index
    %c336 = arith.constant 336 : index
    %782 = vector.load %arg2[%c0_234, %c336] : memref<1x896xf32, #tpu.memory_space<vmem>>, vector<1x448xf32>
    %783 = vector.broadcast %781 : f32 to vector<1x448xf32>
    %784 = arith.mulf %783, %782 : vector<1x448xf32>
    %785 = arith.addf %780, %784 : vector<1x448xf32>
    %c157 = arith.constant 157 : index
    %786 = memref.load %arg0[%c157] : memref<169xf32, #tpu.memory_space<smem>>
    %c0_235 = arith.constant 0 : index
    %c337 = arith.constant 337 : index
    %787 = vector.load %arg2[%c0_235, %c337] : memref<1x896xf32, #tpu.memory_space<vmem>>, vector<1x448xf32>
    %788 = vector.broadcast %786 : f32 to vector<1x448xf32>
    %789 = arith.mulf %788, %787 : vector<1x448xf32>
    %790 = arith.addf %785, %789 : vector<1x448xf32>
    %c158 = arith.constant 158 : index
    %791 = memref.load %arg0[%c158] : memref<169xf32, #tpu.memory_space<smem>>
    %c0_236 = arith.constant 0 : index
    %c338 = arith.constant 338 : index
    %792 = vector.load %arg2[%c0_236, %c338] : memref<1x896xf32, #tpu.memory_space<vmem>>, vector<1x448xf32>
    %793 = vector.broadcast %791 : f32 to vector<1x448xf32>
    %794 = arith.mulf %793, %792 : vector<1x448xf32>
    %795 = arith.addf %790, %794 : vector<1x448xf32>
    %c159 = arith.constant 159 : index
    %796 = memref.load %arg0[%c159] : memref<169xf32, #tpu.memory_space<smem>>
    %c0_237 = arith.constant 0 : index
    %c339 = arith.constant 339 : index
    %797 = vector.load %arg2[%c0_237, %c339] : memref<1x896xf32, #tpu.memory_space<vmem>>, vector<1x448xf32>
    %798 = vector.broadcast %796 : f32 to vector<1x448xf32>
    %799 = arith.mulf %798, %797 : vector<1x448xf32>
    %800 = arith.addf %795, %799 : vector<1x448xf32>
    %c160 = arith.constant 160 : index
    %801 = memref.load %arg0[%c160] : memref<169xf32, #tpu.memory_space<smem>>
    %c0_238 = arith.constant 0 : index
    %c340 = arith.constant 340 : index
    %802 = vector.load %arg2[%c0_238, %c340] : memref<1x896xf32, #tpu.memory_space<vmem>>, vector<1x448xf32>
    %803 = vector.broadcast %801 : f32 to vector<1x448xf32>
    %804 = arith.mulf %803, %802 : vector<1x448xf32>
    %805 = arith.addf %800, %804 : vector<1x448xf32>
    %c161 = arith.constant 161 : index
    %806 = memref.load %arg0[%c161] : memref<169xf32, #tpu.memory_space<smem>>
    %c0_239 = arith.constant 0 : index
    %c341 = arith.constant 341 : index
    %807 = vector.load %arg2[%c0_239, %c341] : memref<1x896xf32, #tpu.memory_space<vmem>>, vector<1x448xf32>
    %808 = vector.broadcast %806 : f32 to vector<1x448xf32>
    %809 = arith.mulf %808, %807 : vector<1x448xf32>
    %810 = arith.addf %805, %809 : vector<1x448xf32>
    %c162 = arith.constant 162 : index
    %811 = memref.load %arg0[%c162] : memref<169xf32, #tpu.memory_space<smem>>
    %c0_240 = arith.constant 0 : index
    %c342 = arith.constant 342 : index
    %812 = vector.load %arg2[%c0_240, %c342] : memref<1x896xf32, #tpu.memory_space<vmem>>, vector<1x448xf32>
    %813 = vector.broadcast %811 : f32 to vector<1x448xf32>
    %814 = arith.mulf %813, %812 : vector<1x448xf32>
    %815 = arith.addf %810, %814 : vector<1x448xf32>
    %c163 = arith.constant 163 : index
    %816 = memref.load %arg0[%c163] : memref<169xf32, #tpu.memory_space<smem>>
    %c0_241 = arith.constant 0 : index
    %c343 = arith.constant 343 : index
    %817 = vector.load %arg2[%c0_241, %c343] : memref<1x896xf32, #tpu.memory_space<vmem>>, vector<1x448xf32>
    %818 = vector.broadcast %816 : f32 to vector<1x448xf32>
    %819 = arith.mulf %818, %817 : vector<1x448xf32>
    %820 = arith.addf %815, %819 : vector<1x448xf32>
    %c164 = arith.constant 164 : index
    %821 = memref.load %arg0[%c164] : memref<169xf32, #tpu.memory_space<smem>>
    %c0_242 = arith.constant 0 : index
    %c344 = arith.constant 344 : index
    %822 = vector.load %arg2[%c0_242, %c344] : memref<1x896xf32, #tpu.memory_space<vmem>>, vector<1x448xf32>
    %823 = vector.broadcast %821 : f32 to vector<1x448xf32>
    %824 = arith.mulf %823, %822 : vector<1x448xf32>
    %825 = arith.addf %820, %824 : vector<1x448xf32>
    %c165 = arith.constant 165 : index
    %826 = memref.load %arg0[%c165] : memref<169xf32, #tpu.memory_space<smem>>
    %c0_243 = arith.constant 0 : index
    %c345 = arith.constant 345 : index
    %827 = vector.load %arg2[%c0_243, %c345] : memref<1x896xf32, #tpu.memory_space<vmem>>, vector<1x448xf32>
    %828 = vector.broadcast %826 : f32 to vector<1x448xf32>
    %829 = arith.mulf %828, %827 : vector<1x448xf32>
    %830 = arith.addf %825, %829 : vector<1x448xf32>
    %c166 = arith.constant 166 : index
    %831 = memref.load %arg0[%c166] : memref<169xf32, #tpu.memory_space<smem>>
    %c0_244 = arith.constant 0 : index
    %c346 = arith.constant 346 : index
    %832 = vector.load %arg2[%c0_244, %c346] : memref<1x896xf32, #tpu.memory_space<vmem>>, vector<1x448xf32>
    %833 = vector.broadcast %831 : f32 to vector<1x448xf32>
    %834 = arith.mulf %833, %832 : vector<1x448xf32>
    %835 = arith.addf %830, %834 : vector<1x448xf32>
    %c167 = arith.constant 167 : index
    %836 = memref.load %arg0[%c167] : memref<169xf32, #tpu.memory_space<smem>>
    %c0_245 = arith.constant 0 : index
    %c347 = arith.constant 347 : index
    %837 = vector.load %arg2[%c0_245, %c347] : memref<1x896xf32, #tpu.memory_space<vmem>>, vector<1x448xf32>
    %838 = vector.broadcast %836 : f32 to vector<1x448xf32>
    %839 = arith.mulf %838, %837 : vector<1x448xf32>
    %840 = arith.addf %835, %839 : vector<1x448xf32>
    %c168_246 = arith.constant 168 : index
    %841 = memref.load %arg0[%c168_246] : memref<169xf32, #tpu.memory_space<smem>>
    %c0_247 = arith.constant 0 : index
    %c348 = arith.constant 348 : index
    %842 = vector.load %arg2[%c0_247, %c348] : memref<1x896xf32, #tpu.memory_space<vmem>>, vector<1x448xf32>
    %843 = vector.broadcast %841 : f32 to vector<1x448xf32>
    %844 = arith.mulf %843, %842 : vector<1x448xf32>
    %845 = arith.addf %840, %844 : vector<1x448xf32>
    %c0_248 = arith.constant 0 : index
    %c0_249 = arith.constant 0 : index
    %846 = vector.load %arg3[%c0_248, %c0_249] : memref<1x448xf32, #tpu.memory_space<vmem>>, vector<1x448xf32>
    %c0_250 = arith.constant 0 : index
    %847 = memref.load %arg1[%c0_250] : memref<1xf32, #tpu.memory_space<smem>>
    %848 = vector.broadcast %847 : f32 to vector<1x448xf32>
    %849 = arith.addf %845, %848 : vector<1x448xf32>
    %850 = arith.mulf %846, %849 : vector<1x448xf32>
    %cst_251 = arith.constant 0.000000e+00 : f32
    %851 = vector.broadcast %cst_251 : f32 to vector<16x448xf32>
    %c0_252 = arith.constant 0 : index
    %c0_253 = arith.constant 0 : index
    %c0_254 = arith.constant 0 : index
    %852 = vector.load %arg5[%c0_252, %c0_253, %c0_254] : memref<49x16x16xbf16, #tpu.memory_space<vmem>>, vector<1x16x16xbf16>
    %853 = vector.shape_cast %852 : vector<1x16x16xbf16> to vector<16x16xbf16>
    %c0_255 = arith.constant 0 : index
    %c0_256 = arith.constant 0 : index
    %854 = vector.load %arg4[%c0_255, %c0_256] : memref<16x640xbf16, #tpu.memory_space<vmem>>, vector<16x448xbf16>
    %cst_257 = arith.constant dense<0.000000e+00> : vector<16x448xf32>
    %855 = tpu.matmul %853, %854, %cst_257 {dimension_numbers = #tpu.dot_dimension_numbers<[1], [0], [0], [1], [0, 0, 1, 1], [], []>} : vector<16x16xbf16>, vector<16x448xbf16>, vector<16x448xf32> -> vector<16x448xf32>
    %856 = arith.addf %851, %855 : vector<16x448xf32>
    %c1_258 = arith.constant 1 : index
    %c0_259 = arith.constant 0 : index
    %c0_260 = arith.constant 0 : index
    %857 = vector.load %arg5[%c1_258, %c0_259, %c0_260] : memref<49x16x16xbf16, #tpu.memory_space<vmem>>, vector<1x16x16xbf16>
    %858 = vector.shape_cast %857 : vector<1x16x16xbf16> to vector<16x16xbf16>
    %c0_261 = arith.constant 0 : index
    %c1_262 = arith.constant 1 : index
    %859 = vector.load %arg4[%c0_261, %c1_262] : memref<16x640xbf16, #tpu.memory_space<vmem>>, vector<16x448xbf16>
    %cst_263 = arith.constant dense<0.000000e+00> : vector<16x448xf32>
    %860 = tpu.matmul %858, %859, %cst_263 {dimension_numbers = #tpu.dot_dimension_numbers<[1], [0], [0], [1], [0, 0, 1, 1], [], []>} : vector<16x16xbf16>, vector<16x448xbf16>, vector<16x448xf32> -> vector<16x448xf32>
    %861 = arith.addf %856, %860 : vector<16x448xf32>
    %c2_264 = arith.constant 2 : index
    %c0_265 = arith.constant 0 : index
    %c0_266 = arith.constant 0 : index
    %862 = vector.load %arg5[%c2_264, %c0_265, %c0_266] : memref<49x16x16xbf16, #tpu.memory_space<vmem>>, vector<1x16x16xbf16>
    %863 = vector.shape_cast %862 : vector<1x16x16xbf16> to vector<16x16xbf16>
    %c0_267 = arith.constant 0 : index
    %c2_268 = arith.constant 2 : index
    %864 = vector.load %arg4[%c0_267, %c2_268] : memref<16x640xbf16, #tpu.memory_space<vmem>>, vector<16x448xbf16>
    %cst_269 = arith.constant dense<0.000000e+00> : vector<16x448xf32>
    %865 = tpu.matmul %863, %864, %cst_269 {dimension_numbers = #tpu.dot_dimension_numbers<[1], [0], [0], [1], [0, 0, 1, 1], [], []>} : vector<16x16xbf16>, vector<16x448xbf16>, vector<16x448xf32> -> vector<16x448xf32>
    %866 = arith.addf %861, %865 : vector<16x448xf32>
    %c3_270 = arith.constant 3 : index
    %c0_271 = arith.constant 0 : index
    %c0_272 = arith.constant 0 : index
    %867 = vector.load %arg5[%c3_270, %c0_271, %c0_272] : memref<49x16x16xbf16, #tpu.memory_space<vmem>>, vector<1x16x16xbf16>
    %868 = vector.shape_cast %867 : vector<1x16x16xbf16> to vector<16x16xbf16>
    %c0_273 = arith.constant 0 : index
    %c3_274 = arith.constant 3 : index
    %869 = vector.load %arg4[%c0_273, %c3_274] : memref<16x640xbf16, #tpu.memory_space<vmem>>, vector<16x448xbf16>
    %cst_275 = arith.constant dense<0.000000e+00> : vector<16x448xf32>
    %870 = tpu.matmul %868, %869, %cst_275 {dimension_numbers = #tpu.dot_dimension_numbers<[1], [0], [0], [1], [0, 0, 1, 1], [], []>} : vector<16x16xbf16>, vector<16x448xbf16>, vector<16x448xf32> -> vector<16x448xf32>
    %871 = arith.addf %866, %870 : vector<16x448xf32>
    %c4_276 = arith.constant 4 : index
    %c0_277 = arith.constant 0 : index
    %c0_278 = arith.constant 0 : index
    %872 = vector.load %arg5[%c4_276, %c0_277, %c0_278] : memref<49x16x16xbf16, #tpu.memory_space<vmem>>, vector<1x16x16xbf16>
    %873 = vector.shape_cast %872 : vector<1x16x16xbf16> to vector<16x16xbf16>
    %c0_279 = arith.constant 0 : index
    %c4_280 = arith.constant 4 : index
    %874 = vector.load %arg4[%c0_279, %c4_280] : memref<16x640xbf16, #tpu.memory_space<vmem>>, vector<16x448xbf16>
    %cst_281 = arith.constant dense<0.000000e+00> : vector<16x448xf32>
    %875 = tpu.matmul %873, %874, %cst_281 {dimension_numbers = #tpu.dot_dimension_numbers<[1], [0], [0], [1], [0, 0, 1, 1], [], []>} : vector<16x16xbf16>, vector<16x448xbf16>, vector<16x448xf32> -> vector<16x448xf32>
    %876 = arith.addf %871, %875 : vector<16x448xf32>
    %c5_282 = arith.constant 5 : index
    %c0_283 = arith.constant 0 : index
    %c0_284 = arith.constant 0 : index
    %877 = vector.load %arg5[%c5_282, %c0_283, %c0_284] : memref<49x16x16xbf16, #tpu.memory_space<vmem>>, vector<1x16x16xbf16>
    %878 = vector.shape_cast %877 : vector<1x16x16xbf16> to vector<16x16xbf16>
    %c0_285 = arith.constant 0 : index
    %c5_286 = arith.constant 5 : index
    %879 = vector.load %arg4[%c0_285, %c5_286] : memref<16x640xbf16, #tpu.memory_space<vmem>>, vector<16x448xbf16>
    %cst_287 = arith.constant dense<0.000000e+00> : vector<16x448xf32>
    %880 = tpu.matmul %878, %879, %cst_287 {dimension_numbers = #tpu.dot_dimension_numbers<[1], [0], [0], [1], [0, 0, 1, 1], [], []>} : vector<16x16xbf16>, vector<16x448xbf16>, vector<16x448xf32> -> vector<16x448xf32>
    %881 = arith.addf %876, %880 : vector<16x448xf32>
    %c6_288 = arith.constant 6 : index
    %c0_289 = arith.constant 0 : index
    %c0_290 = arith.constant 0 : index
    %882 = vector.load %arg5[%c6_288, %c0_289, %c0_290] : memref<49x16x16xbf16, #tpu.memory_space<vmem>>, vector<1x16x16xbf16>
    %883 = vector.shape_cast %882 : vector<1x16x16xbf16> to vector<16x16xbf16>
    %c0_291 = arith.constant 0 : index
    %c6_292 = arith.constant 6 : index
    %884 = vector.load %arg4[%c0_291, %c6_292] : memref<16x640xbf16, #tpu.memory_space<vmem>>, vector<16x448xbf16>
    %cst_293 = arith.constant dense<0.000000e+00> : vector<16x448xf32>
    %885 = tpu.matmul %883, %884, %cst_293 {dimension_numbers = #tpu.dot_dimension_numbers<[1], [0], [0], [1], [0, 0, 1, 1], [], []>} : vector<16x16xbf16>, vector<16x448xbf16>, vector<16x448xf32> -> vector<16x448xf32>
    %886 = arith.addf %881, %885 : vector<16x448xf32>
    %c7_294 = arith.constant 7 : index
    %c0_295 = arith.constant 0 : index
    %c0_296 = arith.constant 0 : index
    %887 = vector.load %arg5[%c7_294, %c0_295, %c0_296] : memref<49x16x16xbf16, #tpu.memory_space<vmem>>, vector<1x16x16xbf16>
    %888 = vector.shape_cast %887 : vector<1x16x16xbf16> to vector<16x16xbf16>
    %c0_297 = arith.constant 0 : index
    %c28_298 = arith.constant 28 : index
    %889 = vector.load %arg4[%c0_297, %c28_298] : memref<16x640xbf16, #tpu.memory_space<vmem>>, vector<16x448xbf16>
    %cst_299 = arith.constant dense<0.000000e+00> : vector<16x448xf32>
    %890 = tpu.matmul %888, %889, %cst_299 {dimension_numbers = #tpu.dot_dimension_numbers<[1], [0], [0], [1], [0, 0, 1, 1], [], []>} : vector<16x16xbf16>, vector<16x448xbf16>, vector<16x448xf32> -> vector<16x448xf32>
    %891 = arith.addf %886, %890 : vector<16x448xf32>
    %c8_300 = arith.constant 8 : index
    %c0_301 = arith.constant 0 : index
    %c0_302 = arith.constant 0 : index
    %892 = vector.load %arg5[%c8_300, %c0_301, %c0_302] : memref<49x16x16xbf16, #tpu.memory_space<vmem>>, vector<1x16x16xbf16>
    %893 = vector.shape_cast %892 : vector<1x16x16xbf16> to vector<16x16xbf16>
    %c0_303 = arith.constant 0 : index
    %c29_304 = arith.constant 29 : index
    %894 = vector.load %arg4[%c0_303, %c29_304] : memref<16x640xbf16, #tpu.memory_space<vmem>>, vector<16x448xbf16>
    %cst_305 = arith.constant dense<0.000000e+00> : vector<16x448xf32>
    %895 = tpu.matmul %893, %894, %cst_305 {dimension_numbers = #tpu.dot_dimension_numbers<[1], [0], [0], [1], [0, 0, 1, 1], [], []>} : vector<16x16xbf16>, vector<16x448xbf16>, vector<16x448xf32> -> vector<16x448xf32>
    %896 = arith.addf %891, %895 : vector<16x448xf32>
    %c9_306 = arith.constant 9 : index
    %c0_307 = arith.constant 0 : index
    %c0_308 = arith.constant 0 : index
    %897 = vector.load %arg5[%c9_306, %c0_307, %c0_308] : memref<49x16x16xbf16, #tpu.memory_space<vmem>>, vector<1x16x16xbf16>
    %898 = vector.shape_cast %897 : vector<1x16x16xbf16> to vector<16x16xbf16>
    %c0_309 = arith.constant 0 : index
    %c30_310 = arith.constant 30 : index
    %899 = vector.load %arg4[%c0_309, %c30_310] : memref<16x640xbf16, #tpu.memory_space<vmem>>, vector<16x448xbf16>
    %cst_311 = arith.constant dense<0.000000e+00> : vector<16x448xf32>
    %900 = tpu.matmul %898, %899, %cst_311 {dimension_numbers = #tpu.dot_dimension_numbers<[1], [0], [0], [1], [0, 0, 1, 1], [], []>} : vector<16x16xbf16>, vector<16x448xbf16>, vector<16x448xf32> -> vector<16x448xf32>
    %901 = arith.addf %896, %900 : vector<16x448xf32>
    %c10_312 = arith.constant 10 : index
    %c0_313 = arith.constant 0 : index
    %c0_314 = arith.constant 0 : index
    %902 = vector.load %arg5[%c10_312, %c0_313, %c0_314] : memref<49x16x16xbf16, #tpu.memory_space<vmem>>, vector<1x16x16xbf16>
    %903 = vector.shape_cast %902 : vector<1x16x16xbf16> to vector<16x16xbf16>
    %c0_315 = arith.constant 0 : index
    %c31_316 = arith.constant 31 : index
    %904 = vector.load %arg4[%c0_315, %c31_316] : memref<16x640xbf16, #tpu.memory_space<vmem>>, vector<16x448xbf16>
    %cst_317 = arith.constant dense<0.000000e+00> : vector<16x448xf32>
    %905 = tpu.matmul %903, %904, %cst_317 {dimension_numbers = #tpu.dot_dimension_numbers<[1], [0], [0], [1], [0, 0, 1, 1], [], []>} : vector<16x16xbf16>, vector<16x448xbf16>, vector<16x448xf32> -> vector<16x448xf32>
    %906 = arith.addf %901, %905 : vector<16x448xf32>
    %c11_318 = arith.constant 11 : index
    %c0_319 = arith.constant 0 : index
    %c0_320 = arith.constant 0 : index
    %907 = vector.load %arg5[%c11_318, %c0_319, %c0_320] : memref<49x16x16xbf16, #tpu.memory_space<vmem>>, vector<1x16x16xbf16>
    %908 = vector.shape_cast %907 : vector<1x16x16xbf16> to vector<16x16xbf16>
    %c0_321 = arith.constant 0 : index
    %c32_322 = arith.constant 32 : index
    %909 = vector.load %arg4[%c0_321, %c32_322] : memref<16x640xbf16, #tpu.memory_space<vmem>>, vector<16x448xbf16>
    %cst_323 = arith.constant dense<0.000000e+00> : vector<16x448xf32>
    %910 = tpu.matmul %908, %909, %cst_323 {dimension_numbers = #tpu.dot_dimension_numbers<[1], [0], [0], [1], [0, 0, 1, 1], [], []>} : vector<16x16xbf16>, vector<16x448xbf16>, vector<16x448xf32> -> vector<16x448xf32>
    %911 = arith.addf %906, %910 : vector<16x448xf32>
    %c12_324 = arith.constant 12 : index
    %c0_325 = arith.constant 0 : index
    %c0_326 = arith.constant 0 : index
    %912 = vector.load %arg5[%c12_324, %c0_325, %c0_326] : memref<49x16x16xbf16, #tpu.memory_space<vmem>>, vector<1x16x16xbf16>
    %913 = vector.shape_cast %912 : vector<1x16x16xbf16> to vector<16x16xbf16>
    %c0_327 = arith.constant 0 : index
    %c33_328 = arith.constant 33 : index
    %914 = vector.load %arg4[%c0_327, %c33_328] : memref<16x640xbf16, #tpu.memory_space<vmem>>, vector<16x448xbf16>
    %cst_329 = arith.constant dense<0.000000e+00> : vector<16x448xf32>
    %915 = tpu.matmul %913, %914, %cst_329 {dimension_numbers = #tpu.dot_dimension_numbers<[1], [0], [0], [1], [0, 0, 1, 1], [], []>} : vector<16x16xbf16>, vector<16x448xbf16>, vector<16x448xf32> -> vector<16x448xf32>
    %916 = arith.addf %911, %915 : vector<16x448xf32>
    %c13_330 = arith.constant 13 : index
    %c0_331 = arith.constant 0 : index
    %c0_332 = arith.constant 0 : index
    %917 = vector.load %arg5[%c13_330, %c0_331, %c0_332] : memref<49x16x16xbf16, #tpu.memory_space<vmem>>, vector<1x16x16xbf16>
    %918 = vector.shape_cast %917 : vector<1x16x16xbf16> to vector<16x16xbf16>
    %c0_333 = arith.constant 0 : index
    %c34_334 = arith.constant 34 : index
    %919 = vector.load %arg4[%c0_333, %c34_334] : memref<16x640xbf16, #tpu.memory_space<vmem>>, vector<16x448xbf16>
    %cst_335 = arith.constant dense<0.000000e+00> : vector<16x448xf32>
    %920 = tpu.matmul %918, %919, %cst_335 {dimension_numbers = #tpu.dot_dimension_numbers<[1], [0], [0], [1], [0, 0, 1, 1], [], []>} : vector<16x16xbf16>, vector<16x448xbf16>, vector<16x448xf32> -> vector<16x448xf32>
    %921 = arith.addf %916, %920 : vector<16x448xf32>
    %c14_336 = arith.constant 14 : index
    %c0_337 = arith.constant 0 : index
    %c0_338 = arith.constant 0 : index
    %922 = vector.load %arg5[%c14_336, %c0_337, %c0_338] : memref<49x16x16xbf16, #tpu.memory_space<vmem>>, vector<1x16x16xbf16>
    %923 = vector.shape_cast %922 : vector<1x16x16xbf16> to vector<16x16xbf16>
    %c0_339 = arith.constant 0 : index
    %c56_340 = arith.constant 56 : index
    %924 = vector.load %arg4[%c0_339, %c56_340] : memref<16x640xbf16, #tpu.memory_space<vmem>>, vector<16x448xbf16>
    %cst_341 = arith.constant dense<0.000000e+00> : vector<16x448xf32>
    %925 = tpu.matmul %923, %924, %cst_341 {dimension_numbers = #tpu.dot_dimension_numbers<[1], [0], [0], [1], [0, 0, 1, 1], [], []>} : vector<16x16xbf16>, vector<16x448xbf16>, vector<16x448xf32> -> vector<16x448xf32>
    %926 = arith.addf %921, %925 : vector<16x448xf32>
    %c15_342 = arith.constant 15 : index
    %c0_343 = arith.constant 0 : index
    %c0_344 = arith.constant 0 : index
    %927 = vector.load %arg5[%c15_342, %c0_343, %c0_344] : memref<49x16x16xbf16, #tpu.memory_space<vmem>>, vector<1x16x16xbf16>
    %928 = vector.shape_cast %927 : vector<1x16x16xbf16> to vector<16x16xbf16>
    %c0_345 = arith.constant 0 : index
    %c57_346 = arith.constant 57 : index
    %929 = vector.load %arg4[%c0_345, %c57_346] : memref<16x640xbf16, #tpu.memory_space<vmem>>, vector<16x448xbf16>
    %cst_347 = arith.constant dense<0.000000e+00> : vector<16x448xf32>
    %930 = tpu.matmul %928, %929, %cst_347 {dimension_numbers = #tpu.dot_dimension_numbers<[1], [0], [0], [1], [0, 0, 1, 1], [], []>} : vector<16x16xbf16>, vector<16x448xbf16>, vector<16x448xf32> -> vector<16x448xf32>
    %931 = arith.addf %926, %930 : vector<16x448xf32>
    %c16_348 = arith.constant 16 : index
    %c0_349 = arith.constant 0 : index
    %c0_350 = arith.constant 0 : index
    %932 = vector.load %arg5[%c16_348, %c0_349, %c0_350] : memref<49x16x16xbf16, #tpu.memory_space<vmem>>, vector<1x16x16xbf16>
    %933 = vector.shape_cast %932 : vector<1x16x16xbf16> to vector<16x16xbf16>
    %c0_351 = arith.constant 0 : index
    %c58_352 = arith.constant 58 : index
    %934 = vector.load %arg4[%c0_351, %c58_352] : memref<16x640xbf16, #tpu.memory_space<vmem>>, vector<16x448xbf16>
    %cst_353 = arith.constant dense<0.000000e+00> : vector<16x448xf32>
    %935 = tpu.matmul %933, %934, %cst_353 {dimension_numbers = #tpu.dot_dimension_numbers<[1], [0], [0], [1], [0, 0, 1, 1], [], []>} : vector<16x16xbf16>, vector<16x448xbf16>, vector<16x448xf32> -> vector<16x448xf32>
    %936 = arith.addf %931, %935 : vector<16x448xf32>
    %c17_354 = arith.constant 17 : index
    %c0_355 = arith.constant 0 : index
    %c0_356 = arith.constant 0 : index
    %937 = vector.load %arg5[%c17_354, %c0_355, %c0_356] : memref<49x16x16xbf16, #tpu.memory_space<vmem>>, vector<1x16x16xbf16>
    %938 = vector.shape_cast %937 : vector<1x16x16xbf16> to vector<16x16xbf16>
    %c0_357 = arith.constant 0 : index
    %c59_358 = arith.constant 59 : index
    %939 = vector.load %arg4[%c0_357, %c59_358] : memref<16x640xbf16, #tpu.memory_space<vmem>>, vector<16x448xbf16>
    %cst_359 = arith.constant dense<0.000000e+00> : vector<16x448xf32>
    %940 = tpu.matmul %938, %939, %cst_359 {dimension_numbers = #tpu.dot_dimension_numbers<[1], [0], [0], [1], [0, 0, 1, 1], [], []>} : vector<16x16xbf16>, vector<16x448xbf16>, vector<16x448xf32> -> vector<16x448xf32>
    %941 = arith.addf %936, %940 : vector<16x448xf32>
    %c18_360 = arith.constant 18 : index
    %c0_361 = arith.constant 0 : index
    %c0_362 = arith.constant 0 : index
    %942 = vector.load %arg5[%c18_360, %c0_361, %c0_362] : memref<49x16x16xbf16, #tpu.memory_space<vmem>>, vector<1x16x16xbf16>
    %943 = vector.shape_cast %942 : vector<1x16x16xbf16> to vector<16x16xbf16>
    %c0_363 = arith.constant 0 : index
    %c60_364 = arith.constant 60 : index
    %944 = vector.load %arg4[%c0_363, %c60_364] : memref<16x640xbf16, #tpu.memory_space<vmem>>, vector<16x448xbf16>
    %cst_365 = arith.constant dense<0.000000e+00> : vector<16x448xf32>
    %945 = tpu.matmul %943, %944, %cst_365 {dimension_numbers = #tpu.dot_dimension_numbers<[1], [0], [0], [1], [0, 0, 1, 1], [], []>} : vector<16x16xbf16>, vector<16x448xbf16>, vector<16x448xf32> -> vector<16x448xf32>
    %946 = arith.addf %941, %945 : vector<16x448xf32>
    %c19_366 = arith.constant 19 : index
    %c0_367 = arith.constant 0 : index
    %c0_368 = arith.constant 0 : index
    %947 = vector.load %arg5[%c19_366, %c0_367, %c0_368] : memref<49x16x16xbf16, #tpu.memory_space<vmem>>, vector<1x16x16xbf16>
    %948 = vector.shape_cast %947 : vector<1x16x16xbf16> to vector<16x16xbf16>
    %c0_369 = arith.constant 0 : index
    %c61_370 = arith.constant 61 : index
    %949 = vector.load %arg4[%c0_369, %c61_370] : memref<16x640xbf16, #tpu.memory_space<vmem>>, vector<16x448xbf16>
    %cst_371 = arith.constant dense<0.000000e+00> : vector<16x448xf32>
    %950 = tpu.matmul %948, %949, %cst_371 {dimension_numbers = #tpu.dot_dimension_numbers<[1], [0], [0], [1], [0, 0, 1, 1], [], []>} : vector<16x16xbf16>, vector<16x448xbf16>, vector<16x448xf32> -> vector<16x448xf32>
    %951 = arith.addf %946, %950 : vector<16x448xf32>
    %c20_372 = arith.constant 20 : index
    %c0_373 = arith.constant 0 : index
    %c0_374 = arith.constant 0 : index
    %952 = vector.load %arg5[%c20_372, %c0_373, %c0_374] : memref<49x16x16xbf16, #tpu.memory_space<vmem>>, vector<1x16x16xbf16>
    %953 = vector.shape_cast %952 : vector<1x16x16xbf16> to vector<16x16xbf16>
    %c0_375 = arith.constant 0 : index
    %c62_376 = arith.constant 62 : index
    %954 = vector.load %arg4[%c0_375, %c62_376] : memref<16x640xbf16, #tpu.memory_space<vmem>>, vector<16x448xbf16>
    %cst_377 = arith.constant dense<0.000000e+00> : vector<16x448xf32>
    %955 = tpu.matmul %953, %954, %cst_377 {dimension_numbers = #tpu.dot_dimension_numbers<[1], [0], [0], [1], [0, 0, 1, 1], [], []>} : vector<16x16xbf16>, vector<16x448xbf16>, vector<16x448xf32> -> vector<16x448xf32>
    %956 = arith.addf %951, %955 : vector<16x448xf32>
    %c21_378 = arith.constant 21 : index
    %c0_379 = arith.constant 0 : index
    %c0_380 = arith.constant 0 : index
    %957 = vector.load %arg5[%c21_378, %c0_379, %c0_380] : memref<49x16x16xbf16, #tpu.memory_space<vmem>>, vector<1x16x16xbf16>
    %958 = vector.shape_cast %957 : vector<1x16x16xbf16> to vector<16x16xbf16>
    %c0_381 = arith.constant 0 : index
    %c84_382 = arith.constant 84 : index
    %959 = vector.load %arg4[%c0_381, %c84_382] : memref<16x640xbf16, #tpu.memory_space<vmem>>, vector<16x448xbf16>
    %cst_383 = arith.constant dense<0.000000e+00> : vector<16x448xf32>
    %960 = tpu.matmul %958, %959, %cst_383 {dimension_numbers = #tpu.dot_dimension_numbers<[1], [0], [0], [1], [0, 0, 1, 1], [], []>} : vector<16x16xbf16>, vector<16x448xbf16>, vector<16x448xf32> -> vector<16x448xf32>
    %961 = arith.addf %956, %960 : vector<16x448xf32>
    %c22_384 = arith.constant 22 : index
    %c0_385 = arith.constant 0 : index
    %c0_386 = arith.constant 0 : index
    %962 = vector.load %arg5[%c22_384, %c0_385, %c0_386] : memref<49x16x16xbf16, #tpu.memory_space<vmem>>, vector<1x16x16xbf16>
    %963 = vector.shape_cast %962 : vector<1x16x16xbf16> to vector<16x16xbf16>
    %c0_387 = arith.constant 0 : index
    %c85_388 = arith.constant 85 : index
    %964 = vector.load %arg4[%c0_387, %c85_388] : memref<16x640xbf16, #tpu.memory_space<vmem>>, vector<16x448xbf16>
    %cst_389 = arith.constant dense<0.000000e+00> : vector<16x448xf32>
    %965 = tpu.matmul %963, %964, %cst_389 {dimension_numbers = #tpu.dot_dimension_numbers<[1], [0], [0], [1], [0, 0, 1, 1], [], []>} : vector<16x16xbf16>, vector<16x448xbf16>, vector<16x448xf32> -> vector<16x448xf32>
    %966 = arith.addf %961, %965 : vector<16x448xf32>
    %c23_390 = arith.constant 23 : index
    %c0_391 = arith.constant 0 : index
    %c0_392 = arith.constant 0 : index
    %967 = vector.load %arg5[%c23_390, %c0_391, %c0_392] : memref<49x16x16xbf16, #tpu.memory_space<vmem>>, vector<1x16x16xbf16>
    %968 = vector.shape_cast %967 : vector<1x16x16xbf16> to vector<16x16xbf16>
    %c0_393 = arith.constant 0 : index
    %c86_394 = arith.constant 86 : index
    %969 = vector.load %arg4[%c0_393, %c86_394] : memref<16x640xbf16, #tpu.memory_space<vmem>>, vector<16x448xbf16>
    %cst_395 = arith.constant dense<0.000000e+00> : vector<16x448xf32>
    %970 = tpu.matmul %968, %969, %cst_395 {dimension_numbers = #tpu.dot_dimension_numbers<[1], [0], [0], [1], [0, 0, 1, 1], [], []>} : vector<16x16xbf16>, vector<16x448xbf16>, vector<16x448xf32> -> vector<16x448xf32>
    %971 = arith.addf %966, %970 : vector<16x448xf32>
    %c24_396 = arith.constant 24 : index
    %c0_397 = arith.constant 0 : index
    %c0_398 = arith.constant 0 : index
    %972 = vector.load %arg5[%c24_396, %c0_397, %c0_398] : memref<49x16x16xbf16, #tpu.memory_space<vmem>>, vector<1x16x16xbf16>
    %973 = vector.shape_cast %972 : vector<1x16x16xbf16> to vector<16x16xbf16>
    %c0_399 = arith.constant 0 : index
    %c87_400 = arith.constant 87 : index
    %974 = vector.load %arg4[%c0_399, %c87_400] : memref<16x640xbf16, #tpu.memory_space<vmem>>, vector<16x448xbf16>
    %cst_401 = arith.constant dense<0.000000e+00> : vector<16x448xf32>
    %975 = tpu.matmul %973, %974, %cst_401 {dimension_numbers = #tpu.dot_dimension_numbers<[1], [0], [0], [1], [0, 0, 1, 1], [], []>} : vector<16x16xbf16>, vector<16x448xbf16>, vector<16x448xf32> -> vector<16x448xf32>
    %976 = arith.addf %971, %975 : vector<16x448xf32>
    %c25_402 = arith.constant 25 : index
    %c0_403 = arith.constant 0 : index
    %c0_404 = arith.constant 0 : index
    %977 = vector.load %arg5[%c25_402, %c0_403, %c0_404] : memref<49x16x16xbf16, #tpu.memory_space<vmem>>, vector<1x16x16xbf16>
    %978 = vector.shape_cast %977 : vector<1x16x16xbf16> to vector<16x16xbf16>
    %c0_405 = arith.constant 0 : index
    %c88_406 = arith.constant 88 : index
    %979 = vector.load %arg4[%c0_405, %c88_406] : memref<16x640xbf16, #tpu.memory_space<vmem>>, vector<16x448xbf16>
    %cst_407 = arith.constant dense<0.000000e+00> : vector<16x448xf32>
    %980 = tpu.matmul %978, %979, %cst_407 {dimension_numbers = #tpu.dot_dimension_numbers<[1], [0], [0], [1], [0, 0, 1, 1], [], []>} : vector<16x16xbf16>, vector<16x448xbf16>, vector<16x448xf32> -> vector<16x448xf32>
    %981 = arith.addf %976, %980 : vector<16x448xf32>
    %c26_408 = arith.constant 26 : index
    %c0_409 = arith.constant 0 : index
    %c0_410 = arith.constant 0 : index
    %982 = vector.load %arg5[%c26_408, %c0_409, %c0_410] : memref<49x16x16xbf16, #tpu.memory_space<vmem>>, vector<1x16x16xbf16>
    %983 = vector.shape_cast %982 : vector<1x16x16xbf16> to vector<16x16xbf16>
    %c0_411 = arith.constant 0 : index
    %c89_412 = arith.constant 89 : index
    %984 = vector.load %arg4[%c0_411, %c89_412] : memref<16x640xbf16, #tpu.memory_space<vmem>>, vector<16x448xbf16>
    %cst_413 = arith.constant dense<0.000000e+00> : vector<16x448xf32>
    %985 = tpu.matmul %983, %984, %cst_413 {dimension_numbers = #tpu.dot_dimension_numbers<[1], [0], [0], [1], [0, 0, 1, 1], [], []>} : vector<16x16xbf16>, vector<16x448xbf16>, vector<16x448xf32> -> vector<16x448xf32>
    %986 = arith.addf %981, %985 : vector<16x448xf32>
    %c27_414 = arith.constant 27 : index
    %c0_415 = arith.constant 0 : index
    %c0_416 = arith.constant 0 : index
    %987 = vector.load %arg5[%c27_414, %c0_415, %c0_416] : memref<49x16x16xbf16, #tpu.memory_space<vmem>>, vector<1x16x16xbf16>
    %988 = vector.shape_cast %987 : vector<1x16x16xbf16> to vector<16x16xbf16>
    %c0_417 = arith.constant 0 : index
    %c90_418 = arith.constant 90 : index
    %989 = vector.load %arg4[%c0_417, %c90_418] : memref<16x640xbf16, #tpu.memory_space<vmem>>, vector<16x448xbf16>
    %cst_419 = arith.constant dense<0.000000e+00> : vector<16x448xf32>
    %990 = tpu.matmul %988, %989, %cst_419 {dimension_numbers = #tpu.dot_dimension_numbers<[1], [0], [0], [1], [0, 0, 1, 1], [], []>} : vector<16x16xbf16>, vector<16x448xbf16>, vector<16x448xf32> -> vector<16x448xf32>
    %991 = arith.addf %986, %990 : vector<16x448xf32>
    %c28_420 = arith.constant 28 : index
    %c0_421 = arith.constant 0 : index
    %c0_422 = arith.constant 0 : index
    %992 = vector.load %arg5[%c28_420, %c0_421, %c0_422] : memref<49x16x16xbf16, #tpu.memory_space<vmem>>, vector<1x16x16xbf16>
    %993 = vector.shape_cast %992 : vector<1x16x16xbf16> to vector<16x16xbf16>
    %c0_423 = arith.constant 0 : index
    %c112_424 = arith.constant 112 : index
    %994 = vector.load %arg4[%c0_423, %c112_424] : memref<16x640xbf16, #tpu.memory_space<vmem>>, vector<16x448xbf16>
    %cst_425 = arith.constant dense<0.000000e+00> : vector<16x448xf32>
    %995 = tpu.matmul %993, %994, %cst_425 {dimension_numbers = #tpu.dot_dimension_numbers<[1], [0], [0], [1], [0, 0, 1, 1], [], []>} : vector<16x16xbf16>, vector<16x448xbf16>, vector<16x448xf32> -> vector<16x448xf32>
    %996 = arith.addf %991, %995 : vector<16x448xf32>
    %c29_426 = arith.constant 29 : index
    %c0_427 = arith.constant 0 : index
    %c0_428 = arith.constant 0 : index
    %997 = vector.load %arg5[%c29_426, %c0_427, %c0_428] : memref<49x16x16xbf16, #tpu.memory_space<vmem>>, vector<1x16x16xbf16>
    %998 = vector.shape_cast %997 : vector<1x16x16xbf16> to vector<16x16xbf16>
    %c0_429 = arith.constant 0 : index
    %c113_430 = arith.constant 113 : index
    %999 = vector.load %arg4[%c0_429, %c113_430] : memref<16x640xbf16, #tpu.memory_space<vmem>>, vector<16x448xbf16>
    %cst_431 = arith.constant dense<0.000000e+00> : vector<16x448xf32>
    %1000 = tpu.matmul %998, %999, %cst_431 {dimension_numbers = #tpu.dot_dimension_numbers<[1], [0], [0], [1], [0, 0, 1, 1], [], []>} : vector<16x16xbf16>, vector<16x448xbf16>, vector<16x448xf32> -> vector<16x448xf32>
    %1001 = arith.addf %996, %1000 : vector<16x448xf32>
    %c30_432 = arith.constant 30 : index
    %c0_433 = arith.constant 0 : index
    %c0_434 = arith.constant 0 : index
    %1002 = vector.load %arg5[%c30_432, %c0_433, %c0_434] : memref<49x16x16xbf16, #tpu.memory_space<vmem>>, vector<1x16x16xbf16>
    %1003 = vector.shape_cast %1002 : vector<1x16x16xbf16> to vector<16x16xbf16>
    %c0_435 = arith.constant 0 : index
    %c114_436 = arith.constant 114 : index
    %1004 = vector.load %arg4[%c0_435, %c114_436] : memref<16x640xbf16, #tpu.memory_space<vmem>>, vector<16x448xbf16>
    %cst_437 = arith.constant dense<0.000000e+00> : vector<16x448xf32>
    %1005 = tpu.matmul %1003, %1004, %cst_437 {dimension_numbers = #tpu.dot_dimension_numbers<[1], [0], [0], [1], [0, 0, 1, 1], [], []>} : vector<16x16xbf16>, vector<16x448xbf16>, vector<16x448xf32> -> vector<16x448xf32>
    %1006 = arith.addf %1001, %1005 : vector<16x448xf32>
    %c31_438 = arith.constant 31 : index
    %c0_439 = arith.constant 0 : index
    %c0_440 = arith.constant 0 : index
    %1007 = vector.load %arg5[%c31_438, %c0_439, %c0_440] : memref<49x16x16xbf16, #tpu.memory_space<vmem>>, vector<1x16x16xbf16>
    %1008 = vector.shape_cast %1007 : vector<1x16x16xbf16> to vector<16x16xbf16>
    %c0_441 = arith.constant 0 : index
    %c115_442 = arith.constant 115 : index
    %1009 = vector.load %arg4[%c0_441, %c115_442] : memref<16x640xbf16, #tpu.memory_space<vmem>>, vector<16x448xbf16>
    %cst_443 = arith.constant dense<0.000000e+00> : vector<16x448xf32>
    %1010 = tpu.matmul %1008, %1009, %cst_443 {dimension_numbers = #tpu.dot_dimension_numbers<[1], [0], [0], [1], [0, 0, 1, 1], [], []>} : vector<16x16xbf16>, vector<16x448xbf16>, vector<16x448xf32> -> vector<16x448xf32>
    %1011 = arith.addf %1006, %1010 : vector<16x448xf32>
    %c32_444 = arith.constant 32 : index
    %c0_445 = arith.constant 0 : index
    %c0_446 = arith.constant 0 : index
    %1012 = vector.load %arg5[%c32_444, %c0_445, %c0_446] : memref<49x16x16xbf16, #tpu.memory_space<vmem>>, vector<1x16x16xbf16>
    %1013 = vector.shape_cast %1012 : vector<1x16x16xbf16> to vector<16x16xbf16>
    %c0_447 = arith.constant 0 : index
    %c116_448 = arith.constant 116 : index
    %1014 = vector.load %arg4[%c0_447, %c116_448] : memref<16x640xbf16, #tpu.memory_space<vmem>>, vector<16x448xbf16>
    %cst_449 = arith.constant dense<0.000000e+00> : vector<16x448xf32>
    %1015 = tpu.matmul %1013, %1014, %cst_449 {dimension_numbers = #tpu.dot_dimension_numbers<[1], [0], [0], [1], [0, 0, 1, 1], [], []>} : vector<16x16xbf16>, vector<16x448xbf16>, vector<16x448xf32> -> vector<16x448xf32>
    %1016 = arith.addf %1011, %1015 : vector<16x448xf32>
    %c33_450 = arith.constant 33 : index
    %c0_451 = arith.constant 0 : index
    %c0_452 = arith.constant 0 : index
    %1017 = vector.load %arg5[%c33_450, %c0_451, %c0_452] : memref<49x16x16xbf16, #tpu.memory_space<vmem>>, vector<1x16x16xbf16>
    %1018 = vector.shape_cast %1017 : vector<1x16x16xbf16> to vector<16x16xbf16>
    %c0_453 = arith.constant 0 : index
    %c117_454 = arith.constant 117 : index
    %1019 = vector.load %arg4[%c0_453, %c117_454] : memref<16x640xbf16, #tpu.memory_space<vmem>>, vector<16x448xbf16>
    %cst_455 = arith.constant dense<0.000000e+00> : vector<16x448xf32>
    %1020 = tpu.matmul %1018, %1019, %cst_455 {dimension_numbers = #tpu.dot_dimension_numbers<[1], [0], [0], [1], [0, 0, 1, 1], [], []>} : vector<16x16xbf16>, vector<16x448xbf16>, vector<16x448xf32> -> vector<16x448xf32>
    %1021 = arith.addf %1016, %1020 : vector<16x448xf32>
    %c34_456 = arith.constant 34 : index
    %c0_457 = arith.constant 0 : index
    %c0_458 = arith.constant 0 : index
    %1022 = vector.load %arg5[%c34_456, %c0_457, %c0_458] : memref<49x16x16xbf16, #tpu.memory_space<vmem>>, vector<1x16x16xbf16>
    %1023 = vector.shape_cast %1022 : vector<1x16x16xbf16> to vector<16x16xbf16>
    %c0_459 = arith.constant 0 : index
    %c118_460 = arith.constant 118 : index
    %1024 = vector.load %arg4[%c0_459, %c118_460] : memref<16x640xbf16, #tpu.memory_space<vmem>>, vector<16x448xbf16>
    %cst_461 = arith.constant dense<0.000000e+00> : vector<16x448xf32>
    %1025 = tpu.matmul %1023, %1024, %cst_461 {dimension_numbers = #tpu.dot_dimension_numbers<[1], [0], [0], [1], [0, 0, 1, 1], [], []>} : vector<16x16xbf16>, vector<16x448xbf16>, vector<16x448xf32> -> vector<16x448xf32>
    %1026 = arith.addf %1021, %1025 : vector<16x448xf32>
    %c35_462 = arith.constant 35 : index
    %c0_463 = arith.constant 0 : index
    %c0_464 = arith.constant 0 : index
    %1027 = vector.load %arg5[%c35_462, %c0_463, %c0_464] : memref<49x16x16xbf16, #tpu.memory_space<vmem>>, vector<1x16x16xbf16>
    %1028 = vector.shape_cast %1027 : vector<1x16x16xbf16> to vector<16x16xbf16>
    %c0_465 = arith.constant 0 : index
    %c140_466 = arith.constant 140 : index
    %1029 = vector.load %arg4[%c0_465, %c140_466] : memref<16x640xbf16, #tpu.memory_space<vmem>>, vector<16x448xbf16>
    %cst_467 = arith.constant dense<0.000000e+00> : vector<16x448xf32>
    %1030 = tpu.matmul %1028, %1029, %cst_467 {dimension_numbers = #tpu.dot_dimension_numbers<[1], [0], [0], [1], [0, 0, 1, 1], [], []>} : vector<16x16xbf16>, vector<16x448xbf16>, vector<16x448xf32> -> vector<16x448xf32>
    %1031 = arith.addf %1026, %1030 : vector<16x448xf32>
    %c36_468 = arith.constant 36 : index
    %c0_469 = arith.constant 0 : index
    %c0_470 = arith.constant 0 : index
    %1032 = vector.load %arg5[%c36_468, %c0_469, %c0_470] : memref<49x16x16xbf16, #tpu.memory_space<vmem>>, vector<1x16x16xbf16>
    %1033 = vector.shape_cast %1032 : vector<1x16x16xbf16> to vector<16x16xbf16>
    %c0_471 = arith.constant 0 : index
    %c141_472 = arith.constant 141 : index
    %1034 = vector.load %arg4[%c0_471, %c141_472] : memref<16x640xbf16, #tpu.memory_space<vmem>>, vector<16x448xbf16>
    %cst_473 = arith.constant dense<0.000000e+00> : vector<16x448xf32>
    %1035 = tpu.matmul %1033, %1034, %cst_473 {dimension_numbers = #tpu.dot_dimension_numbers<[1], [0], [0], [1], [0, 0, 1, 1], [], []>} : vector<16x16xbf16>, vector<16x448xbf16>, vector<16x448xf32> -> vector<16x448xf32>
    %1036 = arith.addf %1031, %1035 : vector<16x448xf32>
    %c37_474 = arith.constant 37 : index
    %c0_475 = arith.constant 0 : index
    %c0_476 = arith.constant 0 : index
    %1037 = vector.load %arg5[%c37_474, %c0_475, %c0_476] : memref<49x16x16xbf16, #tpu.memory_space<vmem>>, vector<1x16x16xbf16>
    %1038 = vector.shape_cast %1037 : vector<1x16x16xbf16> to vector<16x16xbf16>
    %c0_477 = arith.constant 0 : index
    %c142_478 = arith.constant 142 : index
    %1039 = vector.load %arg4[%c0_477, %c142_478] : memref<16x640xbf16, #tpu.memory_space<vmem>>, vector<16x448xbf16>
    %cst_479 = arith.constant dense<0.000000e+00> : vector<16x448xf32>
    %1040 = tpu.matmul %1038, %1039, %cst_479 {dimension_numbers = #tpu.dot_dimension_numbers<[1], [0], [0], [1], [0, 0, 1, 1], [], []>} : vector<16x16xbf16>, vector<16x448xbf16>, vector<16x448xf32> -> vector<16x448xf32>
    %1041 = arith.addf %1036, %1040 : vector<16x448xf32>
    %c38_480 = arith.constant 38 : index
    %c0_481 = arith.constant 0 : index
    %c0_482 = arith.constant 0 : index
    %1042 = vector.load %arg5[%c38_480, %c0_481, %c0_482] : memref<49x16x16xbf16, #tpu.memory_space<vmem>>, vector<1x16x16xbf16>
    %1043 = vector.shape_cast %1042 : vector<1x16x16xbf16> to vector<16x16xbf16>
    %c0_483 = arith.constant 0 : index
    %c143_484 = arith.constant 143 : index
    %1044 = vector.load %arg4[%c0_483, %c143_484] : memref<16x640xbf16, #tpu.memory_space<vmem>>, vector<16x448xbf16>
    %cst_485 = arith.constant dense<0.000000e+00> : vector<16x448xf32>
    %1045 = tpu.matmul %1043, %1044, %cst_485 {dimension_numbers = #tpu.dot_dimension_numbers<[1], [0], [0], [1], [0, 0, 1, 1], [], []>} : vector<16x16xbf16>, vector<16x448xbf16>, vector<16x448xf32> -> vector<16x448xf32>
    %1046 = arith.addf %1041, %1045 : vector<16x448xf32>
    %c39_486 = arith.constant 39 : index
    %c0_487 = arith.constant 0 : index
    %c0_488 = arith.constant 0 : index
    %1047 = vector.load %arg5[%c39_486, %c0_487, %c0_488] : memref<49x16x16xbf16, #tpu.memory_space<vmem>>, vector<1x16x16xbf16>
    %1048 = vector.shape_cast %1047 : vector<1x16x16xbf16> to vector<16x16xbf16>
    %c0_489 = arith.constant 0 : index
    %c144_490 = arith.constant 144 : index
    %1049 = vector.load %arg4[%c0_489, %c144_490] : memref<16x640xbf16, #tpu.memory_space<vmem>>, vector<16x448xbf16>
    %cst_491 = arith.constant dense<0.000000e+00> : vector<16x448xf32>
    %1050 = tpu.matmul %1048, %1049, %cst_491 {dimension_numbers = #tpu.dot_dimension_numbers<[1], [0], [0], [1], [0, 0, 1, 1], [], []>} : vector<16x16xbf16>, vector<16x448xbf16>, vector<16x448xf32> -> vector<16x448xf32>
    %1051 = arith.addf %1046, %1050 : vector<16x448xf32>
    %c40_492 = arith.constant 40 : index
    %c0_493 = arith.constant 0 : index
    %c0_494 = arith.constant 0 : index
    %1052 = vector.load %arg5[%c40_492, %c0_493, %c0_494] : memref<49x16x16xbf16, #tpu.memory_space<vmem>>, vector<1x16x16xbf16>
    %1053 = vector.shape_cast %1052 : vector<1x16x16xbf16> to vector<16x16xbf16>
    %c0_495 = arith.constant 0 : index
    %c145_496 = arith.constant 145 : index
    %1054 = vector.load %arg4[%c0_495, %c145_496] : memref<16x640xbf16, #tpu.memory_space<vmem>>, vector<16x448xbf16>
    %cst_497 = arith.constant dense<0.000000e+00> : vector<16x448xf32>
    %1055 = tpu.matmul %1053, %1054, %cst_497 {dimension_numbers = #tpu.dot_dimension_numbers<[1], [0], [0], [1], [0, 0, 1, 1], [], []>} : vector<16x16xbf16>, vector<16x448xbf16>, vector<16x448xf32> -> vector<16x448xf32>
    %1056 = arith.addf %1051, %1055 : vector<16x448xf32>
    %c41_498 = arith.constant 41 : index
    %c0_499 = arith.constant 0 : index
    %c0_500 = arith.constant 0 : index
    %1057 = vector.load %arg5[%c41_498, %c0_499, %c0_500] : memref<49x16x16xbf16, #tpu.memory_space<vmem>>, vector<1x16x16xbf16>
    %1058 = vector.shape_cast %1057 : vector<1x16x16xbf16> to vector<16x16xbf16>
    %c0_501 = arith.constant 0 : index
    %c146_502 = arith.constant 146 : index
    %1059 = vector.load %arg4[%c0_501, %c146_502] : memref<16x640xbf16, #tpu.memory_space<vmem>>, vector<16x448xbf16>
    %cst_503 = arith.constant dense<0.000000e+00> : vector<16x448xf32>
    %1060 = tpu.matmul %1058, %1059, %cst_503 {dimension_numbers = #tpu.dot_dimension_numbers<[1], [0], [0], [1], [0, 0, 1, 1], [], []>} : vector<16x16xbf16>, vector<16x448xbf16>, vector<16x448xf32> -> vector<16x448xf32>
    %1061 = arith.addf %1056, %1060 : vector<16x448xf32>
    %c42_504 = arith.constant 42 : index
    %c0_505 = arith.constant 0 : index
    %c0_506 = arith.constant 0 : index
    %1062 = vector.load %arg5[%c42_504, %c0_505, %c0_506] : memref<49x16x16xbf16, #tpu.memory_space<vmem>>, vector<1x16x16xbf16>
    %1063 = vector.shape_cast %1062 : vector<1x16x16xbf16> to vector<16x16xbf16>
    %c0_507 = arith.constant 0 : index
    %c168_508 = arith.constant 168 : index
    %1064 = vector.load %arg4[%c0_507, %c168_508] : memref<16x640xbf16, #tpu.memory_space<vmem>>, vector<16x448xbf16>
    %cst_509 = arith.constant dense<0.000000e+00> : vector<16x448xf32>
    %1065 = tpu.matmul %1063, %1064, %cst_509 {dimension_numbers = #tpu.dot_dimension_numbers<[1], [0], [0], [1], [0, 0, 1, 1], [], []>} : vector<16x16xbf16>, vector<16x448xbf16>, vector<16x448xf32> -> vector<16x448xf32>
    %1066 = arith.addf %1061, %1065 : vector<16x448xf32>
    %c43_510 = arith.constant 43 : index
    %c0_511 = arith.constant 0 : index
    %c0_512 = arith.constant 0 : index
    %1067 = vector.load %arg5[%c43_510, %c0_511, %c0_512] : memref<49x16x16xbf16, #tpu.memory_space<vmem>>, vector<1x16x16xbf16>
    %1068 = vector.shape_cast %1067 : vector<1x16x16xbf16> to vector<16x16xbf16>
    %c0_513 = arith.constant 0 : index
    %c169_514 = arith.constant 169 : index
    %1069 = vector.load %arg4[%c0_513, %c169_514] : memref<16x640xbf16, #tpu.memory_space<vmem>>, vector<16x448xbf16>
    %cst_515 = arith.constant dense<0.000000e+00> : vector<16x448xf32>
    %1070 = tpu.matmul %1068, %1069, %cst_515 {dimension_numbers = #tpu.dot_dimension_numbers<[1], [0], [0], [1], [0, 0, 1, 1], [], []>} : vector<16x16xbf16>, vector<16x448xbf16>, vector<16x448xf32> -> vector<16x448xf32>
    %1071 = arith.addf %1066, %1070 : vector<16x448xf32>
    %c44_516 = arith.constant 44 : index
    %c0_517 = arith.constant 0 : index
    %c0_518 = arith.constant 0 : index
    %1072 = vector.load %arg5[%c44_516, %c0_517, %c0_518] : memref<49x16x16xbf16, #tpu.memory_space<vmem>>, vector<1x16x16xbf16>
    %1073 = vector.shape_cast %1072 : vector<1x16x16xbf16> to vector<16x16xbf16>
    %c0_519 = arith.constant 0 : index
    %c170_520 = arith.constant 170 : index
    %1074 = vector.load %arg4[%c0_519, %c170_520] : memref<16x640xbf16, #tpu.memory_space<vmem>>, vector<16x448xbf16>
    %cst_521 = arith.constant dense<0.000000e+00> : vector<16x448xf32>
    %1075 = tpu.matmul %1073, %1074, %cst_521 {dimension_numbers = #tpu.dot_dimension_numbers<[1], [0], [0], [1], [0, 0, 1, 1], [], []>} : vector<16x16xbf16>, vector<16x448xbf16>, vector<16x448xf32> -> vector<16x448xf32>
    %1076 = arith.addf %1071, %1075 : vector<16x448xf32>
    %c45_522 = arith.constant 45 : index
    %c0_523 = arith.constant 0 : index
    %c0_524 = arith.constant 0 : index
    %1077 = vector.load %arg5[%c45_522, %c0_523, %c0_524] : memref<49x16x16xbf16, #tpu.memory_space<vmem>>, vector<1x16x16xbf16>
    %1078 = vector.shape_cast %1077 : vector<1x16x16xbf16> to vector<16x16xbf16>
    %c0_525 = arith.constant 0 : index
    %c171_526 = arith.constant 171 : index
    %1079 = vector.load %arg4[%c0_525, %c171_526] : memref<16x640xbf16, #tpu.memory_space<vmem>>, vector<16x448xbf16>
    %cst_527 = arith.constant dense<0.000000e+00> : vector<16x448xf32>
    %1080 = tpu.matmul %1078, %1079, %cst_527 {dimension_numbers = #tpu.dot_dimension_numbers<[1], [0], [0], [1], [0, 0, 1, 1], [], []>} : vector<16x16xbf16>, vector<16x448xbf16>, vector<16x448xf32> -> vector<16x448xf32>
    %1081 = arith.addf %1076, %1080 : vector<16x448xf32>
    %c46_528 = arith.constant 46 : index
    %c0_529 = arith.constant 0 : index
    %c0_530 = arith.constant 0 : index
    %1082 = vector.load %arg5[%c46_528, %c0_529, %c0_530] : memref<49x16x16xbf16, #tpu.memory_space<vmem>>, vector<1x16x16xbf16>
    %1083 = vector.shape_cast %1082 : vector<1x16x16xbf16> to vector<16x16xbf16>
    %c0_531 = arith.constant 0 : index
    %c172_532 = arith.constant 172 : index
    %1084 = vector.load %arg4[%c0_531, %c172_532] : memref<16x640xbf16, #tpu.memory_space<vmem>>, vector<16x448xbf16>
    %cst_533 = arith.constant dense<0.000000e+00> : vector<16x448xf32>
    %1085 = tpu.matmul %1083, %1084, %cst_533 {dimension_numbers = #tpu.dot_dimension_numbers<[1], [0], [0], [1], [0, 0, 1, 1], [], []>} : vector<16x16xbf16>, vector<16x448xbf16>, vector<16x448xf32> -> vector<16x448xf32>
    %1086 = arith.addf %1081, %1085 : vector<16x448xf32>
    %c47_534 = arith.constant 47 : index
    %c0_535 = arith.constant 0 : index
    %c0_536 = arith.constant 0 : index
    %1087 = vector.load %arg5[%c47_534, %c0_535, %c0_536] : memref<49x16x16xbf16, #tpu.memory_space<vmem>>, vector<1x16x16xbf16>
    %1088 = vector.shape_cast %1087 : vector<1x16x16xbf16> to vector<16x16xbf16>
    %c0_537 = arith.constant 0 : index
    %c173_538 = arith.constant 173 : index
    %1089 = vector.load %arg4[%c0_537, %c173_538] : memref<16x640xbf16, #tpu.memory_space<vmem>>, vector<16x448xbf16>
    %cst_539 = arith.constant dense<0.000000e+00> : vector<16x448xf32>
    %1090 = tpu.matmul %1088, %1089, %cst_539 {dimension_numbers = #tpu.dot_dimension_numbers<[1], [0], [0], [1], [0, 0, 1, 1], [], []>} : vector<16x16xbf16>, vector<16x448xbf16>, vector<16x448xf32> -> vector<16x448xf32>
    %1091 = arith.addf %1086, %1090 : vector<16x448xf32>
    %c48_540 = arith.constant 48 : index
    %c0_541 = arith.constant 0 : index
    %c0_542 = arith.constant 0 : index
    %1092 = vector.load %arg5[%c48_540, %c0_541, %c0_542] : memref<49x16x16xbf16, #tpu.memory_space<vmem>>, vector<1x16x16xbf16>
    %1093 = vector.shape_cast %1092 : vector<1x16x16xbf16> to vector<16x16xbf16>
    %c0_543 = arith.constant 0 : index
    %c174_544 = arith.constant 174 : index
    %1094 = vector.load %arg4[%c0_543, %c174_544] : memref<16x640xbf16, #tpu.memory_space<vmem>>, vector<16x448xbf16>
    %cst_545 = arith.constant dense<0.000000e+00> : vector<16x448xf32>
    %1095 = tpu.matmul %1093, %1094, %cst_545 {dimension_numbers = #tpu.dot_dimension_numbers<[1], [0], [0], [1], [0, 0, 1, 1], [], []>} : vector<16x16xbf16>, vector<16x448xbf16>, vector<16x448xf32> -> vector<16x448xf32>
    %1096 = arith.addf %1091, %1095 : vector<16x448xf32>
    %c0_546 = arith.constant 0 : index
    %c0_547 = arith.constant 0 : index
    %1097 = vector.load %arg6[%c0_546, %c0_547] : memref<16x1xf32, #tpu.memory_space<vmem>>, vector<16x1xf32>
    %1098 = vector.broadcast %1097 : vector<16x1xf32> to vector<16x448xf32>
    %1099 = arith.addf %1096, %1098 : vector<16x448xf32>
    %1100 = vector.broadcast %850 : vector<1x448xf32> to vector<16x448xf32>
    %1101 = arith.addf %1100, %1099 : vector<16x448xf32>
    %cst_548 = arith.constant 0.000000e+00 : f32
    %1102 = vector.broadcast %cst_548 : f32 to vector<16x448xf32>
    %1103 = arith.maximumf %1101, %1102 : vector<16x448xf32>
    %c0_549 = arith.constant 0 : index
    %c0_550 = arith.constant 0 : index
    %1104 = vector.load %arg7[%c0_549, %c0_550] : memref<16x448xf32, #tpu.memory_space<vmem>>, vector<16x448xf32>
    tpu.vector_store %arg7[%c0_549, %c0_550], %1103 {strides = array<i32>} : memref<16x448xf32, #tpu.memory_space<vmem>>, vector<16x448xf32>,
    return
  }
}

</mosaic_0001>

<bundles_post_ra>
// kernel: squeeze.3
= control target key start
LH: loop header
LB: loop body
LE: loop exit
PB: predicated region body
PF: predicated region fallthrough
CT: control target
= control target key end

     0   :  { %vm37_vm0 = vcmask 97280   ;;  %vm9_vm1 = vcmask 31744   ;;  %s340_s14 = smov 116   ;;  %s341_s15 = smov 124   ;;  %vm41_vm2 = vcmask 130048   ;;  %vm23_vm3 = vcmask 64512   ;;  %s512_s0 = inlined_call_operand.vmem [shape: f32[28,28], index: 0, kind: input, shape index: {}]   ;;  %s513_s1 = inlined_call_operand.vmem [shape: f32[1,784], index: 1, kind: output, shape index: {}]  }
   0x1   :  { %v278_v0 = vld [vmem:[%s512_s0 + $0x1b] sm:$0x1]   ;;  %v274_v3 = vld [vmem:[%s512_s0 + $0x9] sm:$0x1]   ;;  %v280_v6 = vld [vmem:[%s512_s0 + $0x4] sm:$0x1]  }
   0x2   :  { %v279_v1 = vld [vmem:[%s512_s0 + $0x1b] sm:$0x1]   ;;  %v275_v4 = vld [vmem:[%s512_s0 + $0x9] sm:$0x1]   ;;  %v281_v7 = vld [vmem:[%s512_s0 + $0x4] sm:$0x1]  }
   0x3   :  { %v38_v2 = vsel %vm37_vm0, %v279_v1, %v278_v0  ;;  %v10_v5 = vsel %vm9_vm1, %v275_v4, %v274_v3  ;;  %v276_v8 = vld [vmem:[%s512_s0 + $0x12] sm:$0x1]   ;;  %vm27_vm4 = vcmask 162816   ;;  %v282_v10 = vld [vmem:[%s512_s0 + $0xd] sm:$0x1]   ;;  %v52_v12 = vsel %vm41_vm2, %v281_v7, %v280_v6  ;;  %s342_s28 = smov 108  }
   0x4   :  { %39 = vrot.lane.b32.xlu1 %v38_v2, %s340_s14  ;;  %11 = vrot.lane.b32.xlu0 %v10_v5, %s341_s15  ;;  %v277_v9 = vld [vmem:[%s512_s0 + $0x12] sm:$0x1]   ;;  %v283_v11 = vld [vmem:[%s512_s0 + $0xd] sm:$0x1]   ;;  %s343_s29 = smov 112   ;;  %vm13_vm5 = vcmask 195584  }
   0x5   :  { %v65_v13 = vsel %vm27_vm4, %v283_v11, %v282_v10  ;;  %v24_v14 = vsel %vm23_vm3, %v277_v9, %v276_v8  ;;  %v284_v15 = vld [vmem:[%s512_s0 + $0x16] sm:$0x1]   ;;  %s344_s5 = smov 120   ;;  %v287_v18 = vld [vmem:[%s512_s0 + $0x11] sm:$0x1]   ;;  %s345_s10 = smov 104  }
   0x6   :  { %66 = vrot.lane.b32.xlu2 %v65_v13, %s342_s28  ;;  %v285_v16 = vld [vmem:[%s512_s0 + $0x16] sm:$0x1]   ;;  %v286_v19 = vld [vmem:[%s512_s0 + $0x8] sm:$0x1]   ;;  %s346_s11 = smov 92   ;;  %s347_s12 = smov 96  }
   0x7   :  { %v79_v17 = vsel %vm13_vm5, %v285_v16, %v284_v15  ;;  %v288_v20 = vld [vmem:[%s512_s0 + $0x1a] sm:$0x1]   ;;  %v290_v21 = vld [vmem:[%s512_s0 + $0xc] sm:$0x1]   ;;  %v289_v22 = vld [vmem:[%s512_s0 + $0x3] sm:$0x1]  }
   0x8   :  { %s348_s19 = smov 88   ;;  %s349_s20 = smov 80   ;;  %v291_v23 = vld [vmem:[%s512_s0 + $0x15] sm:$0x1]   ;;  %v293_v24 = vld [vmem:[%s512_s0 + $0x10] sm:$0x1]  }
   0x9   :  { %s350_s21 = smov 84   ;;  %v292_v25 = vld [vmem:[%s512_s0 + $0x7] sm:$0x1]   ;;  %s351_s28 = smov 76   ;;  %v294_v26 = vld [vmem:[%s512_s0 + $0x19] sm:$0x1]  }
   0xa   :  { %s353_s30 = smov 68   ;;  %v296_v27 = vld [vmem:[%s512_s0 + $0xb] sm:$0x1]   ;;  %v295_v28 = vld [vmem:[%s512_s0 + $0x2] sm:$0x1]   ;;  %s354_s8 = smov 60  }
   0xb   :  { %s355_s9 = smov 52   ;;  %v297_v29 = vld [vmem:[%s512_s0 + $0x14] sm:$0x1]   ;;  %v299_v30 = vld [vmem:[%s512_s0 + $0xf] sm:$0x1]   ;;  %s357_s17 = smov 48  }
   0xc   :  { %53 = vrot.lane.b32.xlu1 %v52_v12, %s343_s29  ;;  %25 = vrot.lane.b32.xlu0 %v24_v14, %s344_s5  ;;  %s352_s29 = smov 64   ;;  %v298_v31 = vld [vmem:[%s512_s0 + $0x6] sm:$0x1]   ;;  %s358_s18 = smov 36   ;;  %v300_v32 = vld [vmem:[%s512_s0 + $0x18] sm:$0x1]  }
   0xd   :  { %v302_v33 = vld [vmem:[%s512_s0 + $0xa] sm:$0x1]   ;;  %v301_v34 = vld [vmem:[%s512_s0 + $0x1] sm:$0x1]   ;;  %s360_s26 = smov 32   ;;  %s361_s27 = smov 24  }
   0xe   :  { %80 = vrot.lane.b32.xlu2 %v79_v17, %s345_s10  ;;  %s356_s10 = smov 56   ;;  %v303_v35 = vld [vmem:[%s512_s0 + $0x13] sm:$0x1]   ;;  %v305_v36 = vld [vmem:[%s512_s0 + $0xe] sm:$0x1]   ;;  %s363_s6 = smov 20  }
   0xf   :  { %v304_v37 = vld [vmem:[%s512_s0 + $0x5] sm:$0x1]   ;;  %s364_s7 = smov 8   ;;  %v306_v38 = vld [vmem:[%s512_s0 + $0x17] sm:$0x1]   ;;  %vm3_vm6 = vcmask 228352  }
  0x10   :  { %v2_v39 = vld [vmem:[%s512_s0] sm:$0x1]   ;;  %vm44_vm7 = vcmask 1048480   ;;  %vm16_vm8 = vcmask 1048544   ;;  %vm71_vm9 = vcmask 1048416   ;;  %vm106_vm10 = vcmask 949952  }
  0x11   :  { %4 = vst.msk [vmem:[#allocation0] sm:$0x1] %vm3_vm6, %v2_v39   ;;  %vm58_vm11 = vcmask 1048448   ;;  %vm30_vm12 = vcmask 1048512   ;;  %vm85_vm13 = vcmask 1048384   ;;  %vm126_vm14 = vcmask 851552  }
  0x12   :  { %vm99_vm15 = vcmask 982752   ;;  %vm140_vm6 = vcmask 753152  }
  0x14   :  { %97 = vrot.lane.b32.xlu1 %v287_v18, %s346_s11  ;;  %90 = vrot.lane.b32.xlu0 %v286_v19, %s347_s12  ;;  %s366_s11 = smov 4  }
  0x16   :  { %104 = vrot.lane.b32.xlu2 %v288_v20, %s348_s19  ;;  %s359_s19 = smov 40  }
  0x1c   :  { %117 = vrot.lane.b32.xlu1 %v290_v21, %s349_s20  ;;  %111 = vrot.lane.b32.xlu0 %v289_v22, %s350_s21 }
  0x1e   :  { %124 = vrot.lane.b32.xlu2 %v291_v23, %s351_s28  ;;  %s362_s28 = smov 28  }
  0x24   :  { %138 = vrot.lane.b32.xlu1 %v293_v24, %s352_s29  ;;  %131 = vrot.lane.b32.xlu0 %v292_v25, %s353_s30 }
  0x26   :  { %145 = vrot.lane.b32.xlu2 %v294_v26, %s354_s8  ;;  %s365_s8 = smov 12  }
  0x2c   :  { %158 = vrot.lane.b32.xlu1 %v296_v27, %s355_s9  ;;  %152 = vrot.lane.b32.xlu0 %v295_v28, %s356_s10 }
  0x2e   :  { %165 = vrot.lane.b32.xlu2 %v297_v29, %s357_s17 }
  0x34   :  { %179 = vrot.lane.b32.xlu1 %v299_v30, %s358_s18  ;;  %172 = vrot.lane.b32.xlu0 %v298_v31, %s359_s19 }
  0x36   :  { %186 = vrot.lane.b32.xlu2 %v300_v32, %s360_s26 }
  0x3c   :  { %199 = vrot.lane.b32.xlu1 %v302_v33, %s361_s27  ;;  %193 = vrot.lane.b32.xlu0 %v301_v34, %s362_s28 }
  0x3e   :  { %206 = vrot.lane.b32.xlu2 %v303_v35, %s363_s6 }
  0x44   :  { %220 = vrot.lane.b32.xlu1 %v305_v36, %s364_s7  ;;  %213 = vrot.lane.b32.xlu0 %v304_v37, %s365_s8 }
  0x46   :  { %227 = vrot.lane.b32.xlu2 %v306_v38, %s366_s11 }
  0x60   :  { %v67_v40 = vpop.permute.xlu2 %66  }
  0x68   :  { %v81_v41 = vpop.permute.xlu2 %80  }
  0x70   :  { %v105_v42 = vpop.permute.xlu2 %104  }
  0x76   :  { %v40_v43 = vpop.permute.xlu1 %39   ;;  %v12_v44 = vpop.permute.xlu0 %11  }
  0x77   :  { %43 = vst.msk [vmem:[#allocation0 + $0x30] sm:$0x1] %vm41_vm2, %v40_v43   ;;  %vm167_vm2 = vcmask 621952  }
  0x78   :  { %46 = vst.msk [vmem:[#allocation0 + $0x28] sm:$0x1] %vm44_vm7, %v40_v43   ;;  %v125_v45 = vpop.permute.xlu2 %124   ;;  %vm133_vm7 = vcmask 785952  }
  0x79   :  { %15 = vst.msk [vmem:[#allocation0 + $0x10] sm:$0x1] %vm13_vm5, %v12_v44   ;;  %vm188_vm5 = vcmask 490752  }
  0x7a   :  { %18 = vst.msk [vmem:[#allocation0 + $0x8] sm:$0x1] %vm16_vm8, %v12_v44   ;;  %vm208_vm8 = vcmask 392352  }
  0x7b   :  { %73 = vst.msk [vmem:[#allocation0 + $0x10] sm:$0x1] %vm71_vm9, %v67_v40   ;;  %vm160_vm9 = vcmask 654752  }
  0x7c   :  { %84 = vst.msk [vmem:[#allocation0 + $0x28] sm:$0x1] %vm9_vm1, %v81_v41   ;;  %vm147_vm1 = vcmask 720352  }
  0x7d   :  { %108 = vst.msk [vmem:[#allocation0 + $0x28] sm:$0x1] %vm106_vm10, %v105_v42   ;;  %vm154_vm10 = vcmask 687552  }
  0x7e   :  { %v269_v46 = vld [vmem:[#allocation0 + $0x30] sm:$0x1]  ;;  %v54_v47 = vpop.permute.xlu1 %53   ;;  %v26_v48 = vpop.permute.xlu0 %25  }
  0x7f   :  { %312 = vst [vmem:[%s513_s1 + $0x6] sm:$0x1] %v269_v46 }
  0x80   :  { %57 = vst.msk [vmem:[#allocation0 + $0x8] sm:$0x1] %vm37_vm0, %v54_v47   ;;  %v146_v49 = vpop.permute.xlu2 %145   ;;  %vm92_vm0 = vcmask 1015552  }
  0x81   :  { %59 = vst.msk [vmem:[#allocation0] sm:$0x1] %vm58_vm11, %v54_v47   ;;  %vm229_vm11 = vcmask 261152  }
  0x82   :  { %29 = vst.msk [vmem:[#allocation0 + $0x20] sm:$0x1] %vm27_vm4, %v26_v48   ;;  %vm113_vm4 = vcmask 917152  }
  0x83   :  { %32 = vst.msk [vmem:[#allocation0 + $0x18] sm:$0x1] %vm30_vm12, %v26_v48   ;;  %vm181_vm12 = vcmask 523552  }
  0x84   :  { %70 = vst.msk [vmem:[#allocation0 + $0x18] sm:$0x1] %vm23_vm3, %v67_v40   ;;  %vm119_vm3 = vcmask 884352  }
  0x85   :  { %87 = vst.msk [vmem:[#allocation0 + $0x20] sm:$0x1] %vm85_vm13, %v81_v41   ;;  %vm174_vm13 = vcmask 556352  }
  0x86   :  { %v98_v50 = vpop.permute.xlu1 %97   ;;  %128 = vst.msk [vmem:[#allocation0 + $0x20] sm:$0x1] %vm126_vm14, %v125_v45   ;;  %v91_v51 = vpop.permute.xlu0 %90   ;;  %vm201_vm14 = vcmask 425152  }
  0x87   :  { %101 = vst.msk [vmem:[#allocation0 + $0x18] sm:$0x1] %vm99_vm15, %v98_v50   ;;  %vm195_vm15 = vcmask 457952  }
  0x88   :  { %94 = vst.msk [vmem:[#allocation0 + $0x8] sm:$0x1] %vm92_vm0, %v91_v51   ;;  %v166_v52 = vpop.permute.xlu2 %165   ;;  %vm222_vm0 = vcmask 293952  }
  0x89   :  { %149 = vst.msk [vmem:[#allocation0 + $0x28] sm:$0x1] %vm147_vm1, %v146_v49   ;;  %vm215_vm1 = vcmask 326752  }
  0x8a   :  { %169 = vst.msk [vmem:[#allocation0 + $0x20] sm:$0x1] %vm167_vm2, %v166_v52  }
  0x8e   :  { %v118_v53 = vpop.permute.xlu1 %117   ;;  %v112_v54 = vpop.permute.xlu0 %111  }
  0x8f   :  { %121 = vst.msk [vmem:[#allocation0 + $0x10] sm:$0x1] %vm119_vm3, %v118_v53  }
  0x90   :  { %114 = vst.msk [vmem:[#allocation0] sm:$0x1] %vm113_vm4, %v112_v54   ;;  %v187_v55 = vpop.permute.xlu2 %186  }
  0x91   :  { %190 = vst.msk [vmem:[#allocation0 + $0x28] sm:$0x1] %vm188_vm5, %v187_v55  }
  0x96   :  { %v139_v56 = vpop.permute.xlu1 %138   ;;  %v132_v57 = vpop.permute.xlu0 %131  }
  0x97   :  { %142 = vst.msk [vmem:[#allocation0 + $0x18] sm:$0x1] %vm140_vm6, %v139_v56  }
  0x98   :  { %135 = vst.msk [vmem:[#allocation0 + $0x8] sm:$0x1] %vm133_vm7, %v132_v57   ;;  %v207_v58 = vpop.permute.xlu2 %206  }
  0x99   :  { %210 = vst.msk [vmem:[#allocation0 + $0x20] sm:$0x1] %vm208_vm8, %v207_v58  }
  0x9e   :  { %v159_v59 = vpop.permute.xlu1 %158   ;;  %v153_v60 = vpop.permute.xlu0 %152  }
  0x9f   :  { %162 = vst.msk [vmem:[#allocation0 + $0x10] sm:$0x1] %vm160_vm9, %v159_v59  }
  0xa0   :  { %155 = vst.msk [vmem:[#allocation0] sm:$0x1] %vm154_vm10, %v153_v60   ;;  %v257_v61 = vld [vmem:[#allocation0 + $0x20] sm:$0x1]  ;;  %v228_v62 = vpop.permute.xlu2 %227  }
  0xa1   :  { %310 = vst [vmem:[%s513_s1 + $0x4] sm:$0x1] %v257_v61 }
  0xa2   :  { %231 = vst.msk [vmem:[#allocation0 + $0x28] sm:$0x1] %vm229_vm11, %v228_v62  }
  0xa6   :  { %v180_v63 = vpop.permute.xlu1 %179   ;;  %v173_v0 = vpop.permute.xlu0 %172  }
  0xa7   :  { %183 = vst.msk [vmem:[#allocation0 + $0x18] sm:$0x1] %vm181_vm12, %v180_v63  }
  0xa8   :  { %176 = vst.msk [vmem:[#allocation0 + $0x8] sm:$0x1] %vm174_vm13, %v173_v0  }
  0xa9   :  { %v263_v1 = vld [vmem:[#allocation0 + $0x28] sm:$0x1] }
  0xaa   :  { %311 = vst [vmem:[%s513_s1 + $0x5] sm:$0x1] %v263_v1 }
  0xae   :  { %v200_v2 = vpop.permute.xlu1 %199   ;;  %v194_v3 = vpop.permute.xlu0 %193  }
  0xaf   :  { %203 = vst.msk [vmem:[#allocation0 + $0x10] sm:$0x1] %vm201_vm14, %v200_v2  }
  0xb0   :  { %196 = vst.msk [vmem:[#allocation0] sm:$0x1] %vm195_vm15, %v194_v3  }
  0xb6   :  { %v245_v4 = vld [vmem:[#allocation0 + $0x10] sm:$0x1]  ;;  %v221_v5 = vpop.permute.xlu1 %220   ;;  %v214_v7 = vpop.permute.xlu0 %213  }
  0xb7   :  { %308 = vst [vmem:[%s513_s1 + $0x2] sm:$0x1] %v245_v4  ;;  %v234_v6 = vld [vmem:[#allocation0] sm:$0x1] }
  0xb8   :  { %237 = vst [vmem:[%s513_s1] sm:$0x1] %v234_v6 }
  0xb9   :  { %224 = vst.msk [vmem:[#allocation0 + $0x18] sm:$0x1] %vm222_vm0, %v221_v5  }
  0xba   :  { %217 = vst.msk [vmem:[#allocation0 + $0x8] sm:$0x1] %vm215_vm1, %v214_v7  }
  0xc0   :  { %v251_v8 = vld [vmem:[#allocation0 + $0x18] sm:$0x1] }
  0xc1   :  { %309 = vst [vmem:[%s513_s1 + $0x3] sm:$0x1] %v251_v8  ;;  %v239_v9 = vld [vmem:[#allocation0 + $0x8] sm:$0x1] }
  0xc2   :  { %307 = vst [vmem:[%s513_s1 + $0x1] sm:$0x1] %v239_v9 }

// kernel: model_forward.1
= control target key start
LH: loop header
LB: loop body
LE: loop exit
PB: predicated region body
PF: predicated region fallthrough
CT: control target
= control target key end

     0   :  { %s10654_s0 = inlined_call_operand.vmem [shape: f32[169], index: 0, kind: input, shape index: {}]   ;;  %s10655_s1 = inlined_call_operand.<no memory space> [shape: f32[1], index: 1, kind: input, shape index: {}]   ;;  %s10656_s2 = inlined_call_operand.vmem [shape: f32[1,896], index: 2, kind: input, shape index: {}]   ;;  %s10657_s3 = inlined_call_operand.vmem [shape: f32[1,448], index: 3, kind: input, shape index: {}]   ;;  %s10658_s4 = inlined_call_operand.vmem [shape: bf16[16,640], index: 4, kind: input, shape index: {}]   ;;  %s10659_s5 = inlined_call_operand.vmem [shape: bf16[49,16,16], index: 5, kind: input, shape index: {}]   ;;  %s10660_s6 = inlined_call_operand.vmem [shape: f32[16,1], index: 6, kind: input, shape index: {}]   ;;  %s10661_s7 = inlined_call_operand.vmem [shape: f32[16,448], index: 7, kind: output, shape index: {}]  }
   0x1   :  { %10856 = sst [smem:[#allocation56_spill]] %s10657_s3 }
   0x2   :  { %10857 = sst [smem:[#allocation57_spill]] %s10661_s7 }
   0x3   :  { %13 = vsyncpa [#allocation4], 0  ;;  %s19_s26 = sshll.u32 %s10654_s0, 4  ;;  %s7368_s27 = smov [#allocation3]   ;;  %s20_s26 = int_to_ptr.vmem [resolvable:$true] %s19_s26 }
   0x4   :  { %22 = dma.vmem_to_smem %s20_s26, 32, %s7368_s27, [#allocation4]  }
   0x5   :  { %7366 = dma.done.wait [#allocation4], 32  }
   0x6   :  { %7367 = vsyncadd [#allocation4], 4294967264 }
   0x7   :  { %39 = sfence }
   0x8   :  { %s6455_s28 = sld [smem:[#allocation3 + $0x5]]  ;;  %v7540_v0 = vld [vmem:[%s10656_s2] sm:$0xf]  ;;  %s10748_s0 = smov 123   ;;  %vm615_vm0 = vcmask 130048   ;;  %vm10841_vm1 = vcmask 1039360  }
   0x9   :  { %s6453_s29 = sld [smem:[#allocation3 + $0x3]]  ;;  %s10753_s13 = smov 125   ;;  %vm10840_vm2 = vcmask 1031168   ;;  %vm10830_vm3 = vcmask 1022976   ;;  %vm10829_vm4 = vcmask 1014784   ;;  %vm10802_vm5 = vcmask 1006592  }
   0xa   :  { %s6451_s30 = sld [smem:[#allocation3 + $0x1]]  ;;  %s10759_s15 = smov 127   ;;  %vm10800_vm6 = vcmask 998400   ;;  %vm10825_vm7 = vcmask 818176   ;;  %vm10822_vm8 = vcmask 809984   ;;  %vm10810_vm9 = vcmask 801792  }
   0xb   :  { %s6456_s8 = sld [smem:[#allocation3 + $0x6]]  ;;  %s10751_s18 = smov 122   ;;  %vm10804_vm10 = vcmask 793600   ;;  %vm10807_vm11 = vcmask 785408   ;;  %vm10805_vm12 = vcmask 777216   ;;  %vm10806_vm13 = vcmask 769024  }
   0xc   :  { %s6454_s11 = sld [smem:[#allocation3 + $0x4]]  ;;  %s10758_s19 = smov 124   ;;  %vm10821_vm14 = vcmask 588800   ;;  %vm10801_vm15 = vcmask 990208  }
   0xd   :  { %s6452_s12 = sld [smem:[#allocation3 + $0x2]]  ;;  %s10752_s21 = smov 126  }
   0xe   :  { %v91_v1 = vstv %s6455_s28  ;;  %s6459_s14 = sld [smem:[#allocation3 + $0x9]]  ;;  %s7375_s24 = smov 119  }
   0xf   :  { %v92_v2 = vmul.f32 %v91_v1, %v7540_v0  ;;  %v69_v3 = vstv %s6453_s29  ;;  %s6458_s16 = sld [smem:[#allocation3 + $0x8]]  ;;  %s10662_s25 = smov 120  }
  0x10   :  { %v70_v4 = vmul.f32 %v69_v3, %v7540_v0  ;;  %v47_v5 = vstv %s6451_s30  ;;  %s6457_s17 = sld [smem:[#allocation3 + $0x7]]  ;;  %s10665_s27 = smov 121  }
  0x11   :  { %94 = vrot.lane.b32.xlu2 %v92_v2, %s10748_s0  ;;  %v48_v6 = vmul.f32 %v47_v5, %v7540_v0  ;;  %v102_v7 = vstv %s6456_s8  ;;  %s6462_s20 = sld [smem:[#allocation3 + $0xc]]  ;;  %s10837_s30 = smov 116  }
  0x12   :  { %72 = vrot.lane.b32.xlu1 %v70_v4, %s10753_s13  ;;  %v80_v8 = vstv %s6454_s11  ;;  %v103_v10 = vmul.f32 %v102_v7, %v7540_v0  ;;  %s6461_s22 = sld [smem:[#allocation3 + $0xb]]  ;;  %s7379_s8 = smov 117   ;;  %v7604_v4 = vld [vmem:[%s10656_s2] sm:$0x1f] }
  0x13   :  { %50 = vrot.lane.b32.xlu0 %v48_v6, %s10759_s15  ;;  %v58_v9 = vstv %s6452_s12  ;;  %v81_v11 = vmul.f32 %v80_v8, %v7540_v0  ;;  %s6460_s23 = sld [smem:[#allocation3 + $0xa]]  ;;  %s7380_s10 = smov 118  }
  0x14   :  { %v59_v12 = vmul.f32 %v58_v9, %v7540_v0  ;;  %v135_v13 = vstv %s6459_s14  ;;  %s6465_s26 = sld [smem:[#allocation3 + $0xf]]  ;;  %s10742_s14 = smov 98  }
  0x15   :  { %v124_v14 = vstv %s6458_s16  ;;  %v136_v16 = vmul.f32 %v135_v13, %v7540_v0  ;;  %s6464_s28 = sld [smem:[#allocation3 + $0xe]]  ;;  %s10740_s16 = smov 99  }
  0x16   :  { %v113_v15 = vstv %s6457_s17  ;;  %v125_v17 = vmul.f32 %v124_v14, %v7540_v0  ;;  %s6463_s29 = sld [smem:[#allocation3 + $0xd]]  ;;  %s10962_s3 = smov 116  }
  0x17   :  { %v114_v18 = vmul.f32 %v113_v15, %v7540_v0  ;;  %v168_v19 = vstv %s6462_s20  ;;  %s6468_s9 = sld [smem:[#allocation3 + $0x12]]  ;;  %s10744_s20 = smov 100  }
  0x18   :  { %v157_v20 = vstv %s6461_s22  ;;  %v169_v22 = vmul.f32 %v168_v19, %v7540_v0  ;;  %s6467_s11 = sld [smem:[#allocation3 + $0x11]] }
  0x19   :  { %105 = vrot.lane.b32.xlu2 %v103_v10, %s10751_s18  ;;  %v146_v21 = vstv %s6460_s23  ;;  %v158_v23 = vmul.f32 %v157_v20, %v7540_v0  ;;  %s6466_s12 = sld [smem:[#allocation3 + $0x10]] }
  0x1a   :  { %83 = vrot.lane.b32.xlu1 %v81_v11, %s10758_s19  ;;  %v147_v24 = vmul.f32 %v146_v21, %v7540_v0  ;;  %v201_v25 = vstv %s6465_s26  ;;  %s6471_s17 = sld [smem:[#allocation3 + $0x15]]  ;;  %s10739_s26 = smov 96  }
  0x1b   :  { %61 = vrot.lane.b32.xlu0 %v59_v12, %s10752_s21  ;;  %v190_v26 = vstv %s6464_s28  ;;  %v202_v28 = vmul.f32 %v201_v25, %v7540_v0  ;;  %s6470_s22 = sld [smem:[#allocation3 + $0x14]] }
  0x1c   :  { %v179_v27 = vstv %s6463_s29  ;;  %v191_v29 = vmul.f32 %v190_v26, %v7540_v0  ;;  %s6469_s23 = sld [smem:[#allocation3 + $0x13]]  ;;  %s10743_s29 = smov 97  }
  0x1d   :  { %v180_v30 = vmul.f32 %v179_v27, %v7540_v0  ;;  %v234_v31 = vstv %s6468_s9  ;;  %s6474_s28 = sld [smem:[#allocation3 + $0x18]] }
  0x1e   :  { %v223_v32 = vstv %s6467_s11  ;;  %v235_v34 = vmul.f32 %v234_v31, %v7540_v0  ;;  %s6472_s9 = sld [smem:[#allocation3 + $0x16]]  ;;  %s10664_s11 = smov 93  }
  0x1f   :  { %v212_v33 = vstv %s6466_s12  ;;  %v224_v35 = vmul.f32 %v223_v32, %v7540_v0  ;;  %s6477_s12 = sld [smem:[#allocation3 + $0x1b]] }
  0x20   :  { %v213_v36 = vmul.f32 %v212_v33, %v7540_v0  ;;  %v267_v37 = vstv %s6471_s17  ;;  %s10670_s17 = smov 94   ;;  %s9121_s7 = sld [smem:[#allocation3 + $0x62]] }
  0x21   :  { %138 = vrot.lane.b32.xlu2 %v136_v16, %s7375_s24  ;;  %s10741_s24 = smov 95   ;;  %v256_v38 = vstv %s6470_s22  ;;  %v268_v40 = vmul.f32 %v267_v37, %v7540_v0  ;;  %s6476_s22 = sld [smem:[#allocation3 + $0x1a]] }
  0x22   :  { %127 = vrot.lane.b32.xlu1 %v125_v17, %s10662_s25  ;;  %v245_v39 = vstv %s6469_s23  ;;  %v257_v41 = vmul.f32 %v256_v38, %v7540_v0  ;;  %s6475_s23 = sld [smem:[#allocation3 + $0x19]]  ;;  %s7390_s25 = smov 89  }
  0x23   :  { %116 = vrot.lane.b32.xlu0 %v114_v18, %s10665_s27  ;;  %v246_v42 = vmul.f32 %v245_v39, %v7540_v0  ;;  %v300_v43 = vstv %s6474_s28  ;;  %s6480_s28 = sld [smem:[#allocation3 + $0x1e]] }
  0x24   :  { %v278_v45 = vstv %s6472_s9  ;;  %v301_v46 = vmul.f32 %v300_v43, %v7540_v0  ;;  %s6479_s27 = sld [smem:[#allocation3 + $0x1d]]  ;;  %s10666_s9 = smov 71  }
  0x25   :  { %v279_v48 = vmul.f32 %v278_v45, %v7540_v0  ;;  %v333_v49 = vstv %s6477_s12  ;;  %s10678_s12 = smov 88  }
  0x26   :  { %v334_v52 = vmul.f32 %v333_v49, %v7540_v0 }
  0x27   :  { %v322_v50 = vstv %s6476_s22  ;;  %s6481_s22 = sld [smem:[#allocation3 + $0x1f]] }
  0x28   :  { %v311_v51 = vstv %s6475_s23  ;;  %v323_v53 = vmul.f32 %v322_v50, %v7540_v0  ;;  %s10672_s23 = smov 68  }
  0x29   :  { %171 = vrot.lane.b32.xlu2 %v169_v22, %s10837_s30  ;;  %v312_v54 = vmul.f32 %v311_v51, %v7540_v0  ;;  %v366_v55 = vstv %s6480_s28  ;;  %s6486_s28 = sld [smem:[#allocation3 + $0x24]] }
  0x2a   :  { %160 = vrot.lane.b32.xlu1 %v158_v23, %s7379_s8  ;;  %s6473_s8 = sld [smem:[#allocation3 + $0x17]]  ;;  %v355_v56 = vstv %s6479_s27  ;;  %v367_v58 = vmul.f32 %v366_v55, %v7540_v0 }
  0x2b   :  { %149 = vrot.lane.b32.xlu0 %v147_v24, %s7380_s10  ;;  %s10663_s10 = smov 92   ;;  %v356_v59 = vmul.f32 %v355_v56, %v7540_v0  ;;  %s6485_s27 = sld [smem:[#allocation3 + $0x23]] }
  0x2d   :  { %v377_v63 = vstv %s6481_s22  ;;  %s10708_s22 = smov 67  }
  0x2e   :  { %v378_v3 = vmul.f32 %v377_v63, %v7540_v0 }
  0x2f   :  { %v433_v5 = vstv %s6486_s28  ;;  %s6492_s28 = sld [smem:[#allocation3 + $0x2a]] }
  0x30   :  { %v289_v44 = vstv %s6473_s8  ;;  %s6478_s8 = sld [smem:[#allocation3 + $0x1c]]  ;;  %v434_v8 = vmul.f32 %v433_v5, %v7604_v4  ;;  %v7161_v5 = vld [vmem:[%s10658_s4 + $0xc] sm:$0xf] }
  0x31   :  { %204 = vrot.lane.b32.xlu2 %v202_v28, %s10742_s14  ;;  %v290_v47 = vmul.f32 %v289_v44, %v7540_v0  ;;  %v422_v6 = vstv %s6485_s27  ;;  %s6491_s27 = sld [smem:[#allocation3 + $0x29]] }
  0x32   :  { %193 = vrot.lane.b32.xlu1 %v191_v29, %s10740_s16  ;;  %v423_v9 = vmul.f32 %v422_v6, %v7604_v4  ;;  %v6637_v6 = vld [vmem:[%s10658_s4 + $0x1c] sm:$0xf0] }
  0x33   :  { %182 = vrot.lane.b32.xlu0 %v180_v30, %s10744_s20 }
  0x35   :  { %v499_v17 = vstv %s6492_s28  ;;  %s6498_s28 = sld [smem:[#allocation3 + $0x30]] }
  0x36   :  { %v344_v57 = vstv %s6478_s8  ;;  %s6484_s8 = sld [smem:[#allocation3 + $0x22]]  ;;  %v500_v21 = vmul.f32 %v499_v17, %v7604_v4 }
  0x37   :  { %v345_v60 = vmul.f32 %v344_v57, %v7540_v0  ;;  %v488_v19 = vstv %s6491_s27  ;;  %s6497_s27 = sld [smem:[#allocation3 + $0x2f]] }
  0x38   :  { %v489_v22 = vmul.f32 %v488_v19, %v7604_v4  ;;  %v7160_v19 = vld [vmem:[%s10658_s4 + $0x4] sm:$0xf] }
  0x39   :  { %237 = vrot.lane.b32.xlu2 %v235_v34, %s10741_s24 }
  0x3a   :  { %226 = vrot.lane.b32.xlu1 %v224_v35, %s10739_s26 }
  0x3b   :  { %215 = vrot.lane.b32.xlu0 %v213_v36, %s10743_s29  ;;  %v565_v31 = vstv %s6498_s28  ;;  %s7414_s28 = smov 35  }
  0x3c   :  { %v410_v7 = vstv %s6484_s8  ;;  %s6490_s8 = sld [smem:[#allocation3 + $0x28]]  ;;  %v566_v37 = vmul.f32 %v565_v31, %v7604_v4 }
  0x3d   :  { %v411_v10 = vmul.f32 %v410_v7, %v7540_v0  ;;  %v554_v33 = vstv %s6497_s27  ;;  %s6504_s27 = sld [smem:[#allocation3 + $0x36]] }
  0x3e   :  { %v555_v38 = vmul.f32 %v554_v33, %v7604_v4 }
  0x41   :  { %270 = vrot.lane.b32.xlu2 %v268_v40, %s10663_s10  ;;  %s7391_s10 = smov 90  }
  0x42   :  { %259 = vrot.lane.b32.xlu1 %v257_v41, %s10664_s11  ;;  %s7392_s11 = smov 91   ;;  %v477_v20 = vstv %s6490_s8  ;;  %s6496_s8 = sld [smem:[#allocation3 + $0x2e]] }
  0x43   :  { %248 = vrot.lane.b32.xlu0 %v246_v42, %s10670_s17  ;;  %s10680_s17 = smov 65   ;;  %v478_v23 = vmul.f32 %v477_v20, %v7604_v4  ;;  %v631_v49 = vstv %s6504_s27  ;;  %s10700_s27 = smov 14   ;;  %v6629_v20 = vld [vmem:[%s10658_s4 + $0x14] sm:$0xf0] }
  0x44   :  { %v632_v55 = vmul.f32 %v631_v49, %v7604_v4 }
  0x48   :  { %v543_v35 = vstv %s6496_s8  ;;  %s6503_s8 = sld [smem:[#allocation3 + $0x35]] }
  0x49   :  { %303 = vrot.lane.b32.xlu2 %v301_v46, %s7390_s25  ;;  %s10668_s25 = smov 72   ;;  %v544_v39 = vmul.f32 %v543_v35, %v7604_v4 }
  0x4a   :  { %292 = vrot.lane.b32.xlu1 %v290_v47, %s7391_s10  ;;  %s6483_s10 = sld [smem:[#allocation3 + $0x21]] }
  0x4b   :  { %281 = vrot.lane.b32.xlu0 %v279_v48, %s7392_s11  ;;  %s6482_s11 = sld [smem:[#allocation3 + $0x20]] }
  0x4e   :  { %v620_v51 = vstv %s6503_s8  ;;  %s10704_s8 = smov 16  }
  0x4f   :  { %v621_v56 = vmul.f32 %v620_v51, %v7604_v4 }
  0x50   :  { %v399_v61 = vstv %s6483_s10  ;;  %s10681_s10 = smov 64  }
  0x51   :  { %336 = vrot.lane.b32.xlu2 %v334_v52, %s10666_s9  ;;  %s10674_s9 = smov 69   ;;  %v388_v62 = vstv %s6482_s11  ;;  %v400_v1 = vmul.f32 %v399_v61, %v7540_v0  ;;  %s6489_s11 = sld [smem:[#allocation3 + $0x27]] }
  0x52   :  { %325 = vrot.lane.b32.xlu1 %v323_v53, %s10668_s25  ;;  %s10676_s25 = smov 70   ;;  %v389_v2 = vmul.f32 %v388_v62, %v7540_v0 }
  0x53   :  { %314 = vrot.lane.b32.xlu0 %v312_v54, %s10678_s12  ;;  %s6487_s12 = sld [smem:[#allocation3 + $0x25]] }
  0x57   :  { %v466_v11 = vstv %s6489_s11  ;;  %s10684_s11 = smov 60  }
  0x58   :  { %v467_v15 = vmul.f32 %v466_v11, %v7604_v4 }
  0x59   :  { %369 = vrot.lane.b32.xlu2 %v367_v58, %s10672_s23  ;;  %s10706_s23 = smov 66   ;;  %v444_v14 = vstv %s6487_s12  ;;  %s6493_s12 = sld [smem:[#allocation3 + $0x2b]] }
  0x5a   :  { %358 = vrot.lane.b32.xlu1 %v356_v59, %s10674_s9  ;;  %s7403_s9 = smov 63   ;;  %v445_v0 = vmul.f32 %v444_v14, %v7604_v4  ;;  %v7697_v14 = vor.u32 %v7161_v5, %v6637_v6 }
  0x5b   :  { %347 = vrot.lane.b32.xlu0 %v345_v60, %s10676_s25  ;;  %s6488_s25 = sld [smem:[#allocation3 + $0x26]] }
  0x5f   :  { %v510_v27 = vstv %s6493_s12  ;;  %s6499_s12 = sld [smem:[#allocation3 + $0x31]] }
  0x60   :  { %v511_v30 = vmul.f32 %v510_v27, %v7604_v4  ;;  %v7726_v27 = vor.u32 %v7160_v19, %v6629_v20 }
  0x61   :  { %402 = vrot.lane.b32.xlu2 %v400_v1, %s10680_s17  ;;  %s7402_s17 = smov 62   ;;  %v455_v13 = vstv %s6488_s25  ;;  %s6494_s25 = sld [smem:[#allocation3 + $0x2c]] }
  0x62   :  { %391 = vrot.lane.b32.xlu1 %v389_v2, %s10706_s23  ;;  %v456_v16 = vmul.f32 %v455_v13, %v7604_v4  ;;  %s6512_s23 = sld [smem:[#allocation3 + $0x3e]] }
  0x63   :  { %380 = vrot.lane.b32.xlu0 %v378_v3, %s10708_s22  ;;  %s10716_s22 = smov 10  }
  0x65   :  { %v576_v44 = vstv %s6499_s12  ;;  %s6506_s12 = sld [smem:[#allocation3 + $0x38]] }
  0x66   :  { %v577_v48 = vmul.f32 %v576_v44, %v7604_v4 }
  0x67   :  { %v521_v26 = vstv %s6494_s25  ;;  %s6500_s25 = sld [smem:[#allocation3 + $0x32]] }
  0x68   :  { %v522_v29 = vmul.f32 %v521_v26, %v7604_v4 }
  0x69   :  { %436 = vrot.lane.b32.xlu2 %v434_v8, %s7402_s17  ;;  %s10682_s17 = smov 44   ;;  %v6635_v8 = vld [vmem:[%s10658_s4 + $0x8] sm:$0xf] }
  0x6a   :  { %425 = vrot.lane.b32.xlu1 %v423_v9, %s7403_s9  ;;  %s6495_s9 = sld [smem:[#allocation3 + $0x2d]]  ;;  %v7163_v9 = vld [vmem:[%s10658_s4 + $0x18] sm:$0xf0] }
  0x6b   :  { %413 = vrot.lane.b32.xlu0 %v411_v10, %s10681_s10  ;;  %v7611_v12 = vpop.permute.xlu2 %94  ;;  %s7407_s10 = smov 61   ;;  %v653_v60 = vstv %s6506_s12  ;;  %s6516_s12 = sld [smem:[#allocation3 + $0x42]] }
  0x6c   :  { %v654_v2 = vmul.f32 %v653_v60, %v7604_v4 }
  0x6d   :  { %v587_v42 = vstv %s6500_s25  ;;  %s6507_s25 = sld [smem:[#allocation3 + $0x39]] }
  0x6e   :  { %v588_v47 = vmul.f32 %v587_v42, %v7604_v4 }
  0x70   :  { %v532_v24 = vstv %s6495_s9  ;;  %s10693_s9 = smov 39  }
  0x71   :  { %469 = vrot.lane.b32.xlu2 %v467_v15, %s10682_s17  ;;  %s10685_s17 = smov 41   ;;  %v533_v28 = vmul.f32 %v532_v24, %v7604_v4  ;;  %v7699_v15 = vor.u32 %v7163_v9, %v6635_v8 }
  0x72   :  { %458 = vrot.lane.b32.xlu1 %v456_v16, %s10684_s11  ;;  %s10687_s11 = smov 42  }
  0x73   :  { %447 = vrot.lane.b32.xlu0 %v445_v0, %s7407_s10  ;;  %v7618_v18 = vpop.permute.xlu2 %105  ;;  %s10689_s10 = smov 43   ;;  %v664_v58 = vstv %s6507_s25  ;;  %s10712_s25 = smov 12  }
  0x74   :  { %v665_v1 = vmul.f32 %v664_v58, %v7604_v4  ;;  %v763_v58 = vstv %s6516_s12  ;;  %s6519_s12 = sld [smem:[#allocation3 + $0x45]] }
  0x79   :  { %502 = vrot.lane.b32.xlu2 %v500_v21, %s10685_s17  ;;  %s10691_s17 = smov 38  }
  0x7a   :  { %491 = vrot.lane.b32.xlu1 %v489_v22, %s10687_s11  ;;  %s6501_s11 = sld [smem:[#allocation3 + $0x33]]  ;;  %v6627_v22 = vld [vmem:[%s10658_s4] sm:$0xf] }
  0x7b   :  { %480 = vrot.lane.b32.xlu0 %v478_v23, %s10689_s10  ;;  %v7626_v25 = vpop.permute.xlu2 %138  ;;  %s10695_s10 = smov 40   ;;  %v7162_v23 = vld [vmem:[%s10658_s4 + $0x10] sm:$0xf0] }
  0x80   :  { %v598_v40 = vstv %s6501_s11  ;;  %s10699_s11 = smov 32  }
  0x81   :  { %535 = vrot.lane.b32.xlu2 %v533_v28, %s10691_s17  ;;  %s10697_s17 = smov 36   ;;  %v599_v46 = vmul.f32 %v598_v40, %v7604_v4  ;;  %v7728_v28 = vor.u32 %v7162_v23, %v6627_v22 }
  0x82   :  { %524 = vrot.lane.b32.xlu1 %v522_v29, %s10693_s9  ;;  %s10698_s9 = smov 37   ;;  %v719_v29 = vstv %s6512_s23  ;;  %s7428_s23 = smov 6  }
  0x83   :  { %513 = vrot.lane.b32.xlu0 %v511_v30, %s10695_s10  ;;  %v7634_v32 = vpop.permute.xlu2 %171  ;;  %s6502_s10 = sld [smem:[#allocation3 + $0x34]] }
  0x84   :  { %v7636_v34 = vpop.permute.xlu1 %72 }
  0x85   :  { %v7638_v36 = vpop.permute.xlu0 %50 }
  0x89   :  { %568 = vrot.lane.b32.xlu2 %v566_v37, %s7414_s28  ;;  %s7418_s28 = smov 33   ;;  %v609_v53 = vstv %s6502_s10  ;;  %s6508_s10 = sld [smem:[#allocation3 + $0x3a]] }
  0x8a   :  { %557 = vrot.lane.b32.xlu1 %v555_v38, %s10697_s17  ;;  %s7419_s17 = smov 34   ;;  %v610_v57 = vmul.f32 %v609_v53, %v7604_v4  ;;  %v720_v38 = vmul.f32 %v719_v29, %v7604_v4 }
  0x8b   :  { %546 = vrot.lane.b32.xlu0 %v544_v39, %s10698_s9  ;;  %v7645_v41 = vpop.permute.xlu2 %204  ;;  %s6505_s9 = sld [smem:[#allocation3 + $0x37]] }
  0x8c   :  { %v7647_v43 = vpop.permute.xlu1 %83 }
  0x8d   :  { %v7649_v45 = vpop.permute.xlu0 %61 }
  0x8f   :  { %v675_v11 = vstv %s6508_s10  ;;  %s7429_s10 = smov 7  }
  0x90   :  { %v676_v16 = vmul.f32 %v675_v11, %v7604_v4 }
  0x91   :  { %601 = vrot.lane.b32.xlu2 %v599_v46, %s10699_s11  ;;  %v642_v62 = vstv %s6505_s9  ;;  %s7427_s11 = smov 9   ;;  %s6515_s9 = sld [smem:[#allocation3 + $0x41]] }
  0x92   :  { %590 = vrot.lane.b32.xlu1 %v588_v47, %s7418_s28  ;;  %v643_v3 = vmul.f32 %v642_v62, %v7604_v4  ;;  %s10710_s28 = smov 11  }
  0x93   :  { %579 = vrot.lane.b32.xlu0 %v577_v48, %s7419_s17  ;;  %v7655_v50 = vpop.permute.xlu2 %237  ;;  %s10702_s17 = smov 15  }
  0x94   :  { %v7657_v52 = vpop.permute.xlu1 %127 }
  0x95   :  { %v7659_v54 = vpop.permute.xlu0 %116 }
  0x97   :  { %v753_v62 = vstv %s6515_s9  ;;  %s10793_s9 = smov 111  }
  0x99   :  { %634 = vrot.lane.b32.xlu2 %v632_v55, %s10700_s27  ;;  %s6513_s27 = sld [smem:[#allocation3 + $0x3f]] }
  0x9a   :  { %623 = vrot.lane.b32.xlu1 %v621_v56, %s10702_s17  ;;  %s6509_s17 = sld [smem:[#allocation3 + $0x3b]] }
  0x9b   :  { %612 = vrot.lane.b32.xlu0 %v610_v57, %s10704_s8  ;;  %v7667_v59 = vpop.permute.xlu2 %270  ;;  %s10714_s8 = smov 13   ;;  %v7771_v57 = vld [vmem:[%s10656_s2 + $0x1] sm:$0xf] }
  0x9c   :  { %v7669_v61 = vpop.permute.xlu1 %160 }
  0x9d   :  { %v7671_v63 = vpop.permute.xlu0 %149 }
  0x9f   :  { %v730_v47 = vstv %s6513_s27  ;;  %s6517_s27 = sld [smem:[#allocation3 + $0x43]] }
  0xa0   :  { %v686_v0 = vstv %s6509_s17  ;;  %v731_v51 = vmul.f32 %v730_v47, %v7604_v4  ;;  %s10795_s17 = smov 112  }
  0xa1   :  { %667 = vrot.lane.b32.xlu2 %v665_v1, %s10710_s28  ;;  %v687_v26 = vmul.f32 %v686_v0, %v7604_v4  ;;  %s7430_s28 = smov 8  }
  0xa2   :  { %656 = vrot.lane.b32.xlu1 %v654_v2, %s10712_s25  ;;  %s6511_s25 = sld [smem:[#allocation3 + $0x3d]]  ;;  %v764_v2 = vmul.f32 %v763_v58, %v7771_v57 }
  0xa3   :  { %645 = vrot.lane.b32.xlu0 %v643_v3, %s10714_s8  ;;  %v7685_v7 = vpop.permute.xlu2 %303  ;;  %s6514_s8 = sld [smem:[#allocation3 + $0x40]]  ;;  %v754_v3 = vmul.f32 %v753_v62, %v7771_v57 }
  0xa4   :  { %v7693_v10 = vpop.permute.xlu1 %193 }
  0xa5   :  { %v7695_v13 = vpop.permute.xlu0 %182 }
  0xa8   :  { %v708_v31 = vstv %s6511_s25  ;;  %s7432_s25 = smov 5  }
  0xa9   :  { %1890 = vrot.lane.b32.xlu2 %v7697_v14, %s10759_s15  ;;  %v709_v39 = vmul.f32 %v708_v31, %v7604_v4  ;;  %v741_v44 = vstv %s6514_s8  ;;  %s10835_s8 = smov 115  }
  0xaa   :  { %1888 = vrot.lane.b32.xlu1 %v7699_v15, %s10759_s15  ;;  %v742_v49 = vmul.f32 %v741_v44, %v7604_v4  ;;  %v796_v44 = vstv %s6519_s12  ;;  %s6522_s12 = sld [smem:[#allocation3 + $0x48]] }
  0xab   :  { %678 = vrot.lane.b32.xlu0 %v676_v16, %s10716_s22  ;;  %v7707_v17 = vpop.permute.xlu2 %336  ;;  %s6510_s22 = sld [smem:[#allocation3 + $0x3c]]  ;;  %v774_v16 = vstv %s6517_s27  ;;  %v797_v58 = vmul.f32 %v796_v44, %v7771_v57  ;;  %s7439_s27 = smov 109  }
  0xac   :  { %v7715_v21 = vpop.permute.xlu1 %226  ;;  %v775_v19 = vmul.f32 %v774_v16, %v7771_v57 }
  0xad   :  { %v7723_v24 = vpop.permute.xlu0 %215 }
  0xb1   :  { %689 = vrot.lane.b32.xlu2 %v687_v26, %s7427_s11  ;;  %v697_v35 = vstv %s6510_s22  ;;  %s10760_s22 = smov 4   ;;  %s6521_s11 = sld [smem:[#allocation3 + $0x47]] }
  0xb2   :  { %1886 = vrot.lane.b32.xlu1 %v7726_v27, %s10759_s15  ;;  %v698_v40 = vmul.f32 %v697_v35, %v7604_v4 }
  0xb3   :  { %1884 = vrot.lane.b32.xlu0 %v7728_v28, %s10759_s15  ;;  %v7734_v30 = vpop.permute.xlu2 %369  ;;  %s10909_s15 = smov 68  }
  0xb4   :  { %v7736_v33 = vpop.permute.xlu1 %259 }
  0xb5   :  { %v7738_v37 = vpop.permute.xlu0 %248 }
  0xb9   :  { %722 = vrot.lane.b32.xlu2 %v720_v38, %s7428_s23  ;;  %s6518_s23 = sld [smem:[#allocation3 + $0x44]] }
  0xba   :  { %711 = vrot.lane.b32.xlu1 %v709_v39, %s7429_s10  ;;  %s10833_s10 = smov 114  }
  0xbb   :  { %700 = vrot.lane.b32.xlu0 %v698_v40, %s7430_s28  ;;  %v7743_v42 = vpop.permute.xlu2 %402  ;;  %s10831_s28 = smov 113  }
  0xbc   :  { %10858 = vst [vmem:[#allocation6_spill] sm:$0xff] %v7743_v42  ;;  %v7745_v46 = vpop.permute.xlu1 %292 }
  0xbd   :  { %v7747_v48 = vpop.permute.xlu0 %281 }
  0xbf   :  { %v785_v20 = vstv %s6518_s23  ;;  %s7440_s23 = smov 108  }
  0xc0   :  { %v786_v29 = vmul.f32 %v785_v20, %v7771_v57  ;;  %v7164_v20 = vld [vmem:[%s10659_s5 + $0x8] sm:$0xff] }
  0xc1   :  { %2039 = vrot.lane.b32.xlu2 %v7699_v15, %s10752_s21 }
  0xc2   :  { %744 = vrot.lane.b32.xlu1 %v742_v49, %s10760_s22  ;;  %s6537_s22 = sld [smem:[#allocation3 + $0x57]] }
  0xc3   :  { %733 = vrot.lane.b32.xlu0 %v731_v51, %s7432_s25  ;;  %v7754_v53 = vpop.permute.xlu2 %436  ;;  %s6520_s25 = sld [smem:[#allocation3 + $0x46]] }
  0xc4   :  { %10859 = vst [vmem:[#allocation7_spill] sm:$0xff] %v7754_v53  ;;  %v7756_v55 = vpop.permute.xlu1 %325 }
  0xc5   :  { %v7758_v56 = vpop.permute.xlu0 %314 }
  0xc9   :  { %2037 = vrot.lane.b32.xlu2 %v7726_v27, %s10752_s21  ;;  %v807_v39 = vstv %s6520_s25  ;;  %s10791_s25 = smov 110  }
  0xca   :  { %2035 = vrot.lane.b32.xlu1 %v7728_v28, %s10752_s21  ;;  %v808_v51 = vmul.f32 %v807_v39, %v7771_v57 }
  0xcb   :  { %2041 = vrot.lane.b32.xlu0 %v7697_v14, %s10752_s21  ;;  %v7766_v4 = vpop.permute.xlu2 %469  ;;  %s10775_s21 = smov 82  }
  0xcc   :  { %10860 = vst [vmem:[#allocation8_spill] sm:$0xff] %v7766_v4  ;;  %v7773_v60 = vpop.permute.xlu1 %358 }
  0xcd   :  { %v7775_v1 = vpop.permute.xlu0 %347 }
  0xd1   :  { %2130 = vrot.lane.b32.xlu2 %v7699_v15, %s10753_s13 }
  0xd2   :  { %766 = vrot.lane.b32.xlu1 %v764_v2, %s10835_s8  ;;  %s9294_s8 = sld [smem:[#allocation3 + $0x65]] }
  0xd3   :  { %756 = vrot.lane.b32.xlu0 %v754_v3, %s10837_s30  ;;  %v7783_v5 = vpop.permute.xlu2 %502  ;;  %s10975_s30 = smov 114  }
  0xd4   :  { %10861 = vst [vmem:[#allocation9_spill] sm:$0xff] %v7783_v5  ;;  %v7785_v6 = vpop.permute.xlu1 %391 }
  0xd5   :  { %10862 = vst [vmem:[#allocation10_spill] sm:$0xff] %v7785_v6  ;;  %v7787_v8 = vpop.permute.xlu0 %380 }
  0xd6   :  { %10863 = vst [vmem:[#allocation11_spill] sm:$0xff] %v7787_v8 }
  0xd9   :  { %2128 = vrot.lane.b32.xlu2 %v7726_v27, %s10753_s13 }
  0xda   :  { %2126 = vrot.lane.b32.xlu1 %v7728_v28, %s10753_s13 }
  0xdb   :  { %2132 = vrot.lane.b32.xlu0 %v7697_v14, %s10753_s13  ;;  %v7795_v9 = vpop.permute.xlu2 %535  ;;  %s6535_s13 = sld [smem:[#allocation3 + $0x55]] }
  0xdc   :  { %10864 = vst [vmem:[#allocation12_spill] sm:$0xff] %v7795_v9  ;;  %v7797_v11 = vpop.permute.xlu1 %425 }
  0xdd   :  { %10865 = vst [vmem:[#allocation13_spill] sm:$0xff] %v7797_v11  ;;  %v7799_v0 = vpop.permute.xlu0 %413 }
  0xde   :  { %10866 = vst [vmem:[#allocation14_spill] sm:$0xff] %v7799_v0 }
  0xe1   :  { %2223 = vrot.lane.b32.xlu2 %v7697_v14, %s10758_s19 }
  0xe2   :  { %2221 = vrot.lane.b32.xlu1 %v7699_v15, %s10758_s19 }
  0xe3   :  { %777 = vrot.lane.b32.xlu0 %v775_v19, %s10833_s10  ;;  %v7807_v22 = vpop.permute.xlu2 %568  ;;  %v818_v19 = vstv %s6521_s11  ;;  %s6523_s11 = sld [smem:[#allocation3 + $0x49]] }
  0xe4   :  { %10867 = vst [vmem:[#allocation15_spill] sm:$0xff] %v7807_v22  ;;  %v7809_v23 = vpop.permute.xlu1 %458  ;;  %v819_v44 = vmul.f32 %v818_v19, %v7771_v57  ;;  %s8925_s10 = sld [smem:[#allocation3 + $0x5f]] }
  0xe5   :  { %10868 = vst [vmem:[#allocation16_spill] sm:$0xff] %v7809_v23  ;;  %v7811_v26 = vpop.permute.xlu0 %447 }
  0xe6   :  { %10869 = vst [vmem:[#allocation17_spill] sm:$0xff] %v7811_v26 }
  0xe9   :  { %788 = vrot.lane.b32.xlu2 %v786_v29, %s10831_s28  ;;  %s9328_s28 = sld [smem:[#allocation3 + $0x66]] }
  0xea   :  { %2219 = vrot.lane.b32.xlu1 %v7726_v27, %s10758_s19 }
  0xeb   :  { %2217 = vrot.lane.b32.xlu0 %v7728_v28, %s10758_s19  ;;  %v7819_v31 = vpop.permute.xlu2 %601  ;;  %s7452_s19 = smov 80  }
  0xec   :  { %10870 = vst [vmem:[#allocation18_spill] sm:$0xff] %v7819_v31  ;;  %v7821_v35 = vpop.permute.xlu1 %491 }
  0xed   :  { %10871 = vst [vmem:[#allocation19_spill] sm:$0xff] %v7821_v35  ;;  %v7823_v38 = vpop.permute.xlu0 %480 }
  0xee   :  { %10872 = vst [vmem:[#allocation20_spill] sm:$0xff] %v7823_v38 }
  0xf1   :  { %2308 = vrot.lane.b32.xlu2 %v7728_v28, %s10748_s0 }
  0xf2   :  { %2314 = vrot.lane.b32.xlu1 %v7697_v14, %s10748_s0 }
  0xf3   :  { %2312 = vrot.lane.b32.xlu0 %v7699_v15, %s10748_s0  ;;  %v7831_v40 = vpop.permute.xlu2 %634 }
  0xf4   :  { %10873 = vst [vmem:[#allocation21_spill] sm:$0xff] %v7831_v40  ;;  %v7833_v47 = vpop.permute.xlu1 %524  ;;  %v829_v40 = vstv %s6522_s12  ;;  %s6524_s12 = sld [smem:[#allocation3 + $0x4a]] }
  0xf5   :  { %10874 = vst [vmem:[#allocation22_spill] sm:$0xff] %v7833_v47  ;;  %v7835_v49 = vpop.permute.xlu0 %513 }
  0xf6   :  { %10875 = vst [vmem:[#allocation23_spill] sm:$0xff] %v7835_v49  ;;  %v993_v49 = vstv %s6537_s22  ;;  %s7453_s22 = smov 79  }
  0xf9   :  { %810 = vrot.lane.b32.xlu2 %v808_v51, %s10793_s9  ;;  %s10922_s9 = smov 40  }
  0xfa   :  { %799 = vrot.lane.b32.xlu1 %v797_v58, %s10795_s17  ;;  %s10919_s17 = smov 42  }
  0xfb   :  { %2310 = vrot.lane.b32.xlu0 %v7726_v27, %s10748_s0  ;;  %v7843_v62 = vpop.permute.xlu2 %667  ;;  %s10903_s0 = smov 71  }
  0xfc   :  { %10876 = vst [vmem:[#allocation24_spill] sm:$0xff] %v7843_v62  ;;  %v7845_v2 = vpop.permute.xlu1 %557 }
  0xfd   :  { %10877 = vst [vmem:[#allocation25_spill] sm:$0xff] %v7845_v2  ;;  %v7847_v3 = vpop.permute.xlu0 %546 }
  0xfe   :  { %10878 = vst [vmem:[#allocation26_spill] sm:$0xff] %v7847_v3 }
 0x101   :  { %2399 = vrot.lane.b32.xlu2 %v7728_v28, %s10751_s18 }
 0x102   :  { %2405 = vrot.lane.b32.xlu1 %v7697_v14, %s10751_s18 }
 0x103   :  { %2403 = vrot.lane.b32.xlu0 %v7699_v15, %s10751_s18  ;;  %v1891_v16 = vpop.permute.xlu2 %1890 }
 0x104   :  { %v7858_v29 = vpop.permute.xlu1 %590  ;;  %1952 = vmatpush.bf16.msra.mxu3 %v1891_v16 }
 0x105   :  { %10879 = vst [vmem:[#allocation27_spill] sm:$0xff] %v7858_v29  ;;  %v7860_v39 = vpop.permute.xlu0 %579 }
 0x106   :  { %10880 = vst [vmem:[#allocation28_spill] sm:$0xff] %v7860_v39  ;;  %v851_v39 = vstv %s6524_s12  ;;  %s7442_s12 = smov 106  }
 0x107   :  { %6644 = vmatmul.msk.bf16.vlgmr.msra.gmra.mxu3 %vm615_vm0, %v7164_v20 }
 0x108   :  { %2020 = vmatpush.bf16.msrb.mxu3 %v7697_v14 }
 0x109   :  { %2494 = vrot.lane.b32.xlu2 %v7699_v15, %s10744_s20 }
 0x10a   :  { %821 = vrot.lane.b32.xlu1 %v819_v44, %s10791_s25  ;;  %v7887_v44 = vld [vmem:[%s10659_s5] sm:$0xff]  ;;  %s8638_s25 = sld [smem:[#allocation3 + $0x5d]] }
 0x10b   :  { %2401 = vrot.lane.b32.xlu0 %v7726_v27, %s10751_s18  ;;  %v7870_v51 = vpop.permute.xlu2 %689  ;;  %s10907_s18 = smov 69  }
 0x10c   :  { %10881 = vst [vmem:[#allocation29_spill] sm:$0xff] %v7870_v51  ;;  %v7872_v58 = vpop.permute.xlu1 %623 }
 0x10d   :  { %10882 = vst [vmem:[#allocation30_spill] sm:$0xff] %v7872_v58  ;;  %v7874_v62 = vpop.permute.xlu0 %612 }
 0x10e   :  { %10883 = vst [vmem:[#allocation31_spill] sm:$0xff] %v7874_v62  ;;  %v830_v62 = vmul.f32 %v829_v40, %v7771_v57 }
 0x111   :  { %2492 = vrot.lane.b32.xlu2 %v7726_v27, %s10744_s20 }
 0x112   :  { %2490 = vrot.lane.b32.xlu1 %v7728_v28, %s10744_s20 }
 0x113   :  { %2496 = vrot.lane.b32.xlu0 %v7697_v14, %s10744_s20  ;;  %v7882_v19 = vpop.permute.xlu2 %722  ;;  %s10900_s20 = smov 72  }
 0x114   :  { %10884 = vst [vmem:[#allocation32_spill] sm:$0xff] %v7882_v19  ;;  %v7889_v51 = vpop.permute.xlu1 %656  ;;  %v840_v19 = vstv %s6523_s11  ;;  %s6525_s11 = sld [smem:[#allocation3 + $0x4b]] }
 0x115   :  { %10885 = vst [vmem:[#allocation33_spill] sm:$0xff] %v7889_v51  ;;  %v7891_v58 = vpop.permute.xlu0 %645  ;;  %v841_v29 = vmul.f32 %v840_v19, %v7771_v57 }
 0x116   :  { %10886 = vst [vmem:[#allocation34_spill] sm:$0xff] %v7891_v58 }
 0x117   :  { %6652 = vmatmul.msk.bf16.vlgmr.msrb.gmra.mxu3 %vm615_vm0, %v7887_v44 }
 0x119   :  { %2587 = vrot.lane.b32.xlu2 %v7697_v14, %s10740_s16 }
 0x11a   :  { %2585 = vrot.lane.b32.xlu1 %v7699_v15, %s10740_s16 }
 0x11b   :  { %832 = vrot.lane.b32.xlu0 %v830_v62, %s7439_s27  ;;  %v7900_v31 = vpop.permute.xlu2 %2039  ;;  %s7441_s27 = smov 107  }
 0x11c   :  { %v1889_v51 = vpop.permute.xlu1 %1888 }
 0x11d   :  { %v7902_v58 = vpop.permute.xlu0 %678  ;;  %v1895_v40 = vsel %vm10841_vm1, %v1889_v51, %v1891_v16 }
 0x11e   :  { %10887 = vst [vmem:[#allocation35_spill] sm:$0xff] %v7902_v58  ;;  %1938 = vmatpush.bf16.msra.mxu2 %v1895_v40 }
 0x121   :  { %6643 = vmatmul.msk.bf16.vlgmr.msra.gmra.mxu2 %vm615_vm0, %v7164_v20  ;;  %843 = vrot.lane.b32.xlu2 %v841_v29, %s7440_s23  ;;  %v852_v29 = vmul.f32 %v851_v39, %v7771_v57  ;;  %s6526_s23 = sld [smem:[#allocation3 + $0x4c]] }
 0x122   :  { %2006 = vmatpush.bf16.msrb.mxu2 %v7699_v15  ;;  %2583 = vrot.lane.b32.xlu1 %v7726_v27, %s10740_s16 }
 0x123   :  { %2581 = vrot.lane.b32.xlu0 %v7728_v28, %s10740_s16  ;;  %v2038_v62 = vpop.permute.xlu2 %2037  ;;  %s10783_s16 = smov 86  }
 0x124   :  { %v1887_v58 = vpop.permute.xlu1 %1886  ;;  %v2045_v22 = vsel %vm10840_vm2, %v2038_v62, %v7900_v31 }
 0x125   :  { %v1885_v16 = vpop.permute.xlu0 %1884  ;;  %v1894_v19 = vsel %vm10841_vm1, %v1887_v58, %v1889_v51  ;;  %v862_v51 = vstv %s6525_s11  ;;  %s6527_s11 = sld [smem:[#allocation3 + $0x4d]] }
 0x126   :  { %v1893_v40 = vsel %vm10841_vm1, %v1885_v16, %v1887_v58  ;;  %1924 = vmatpush.bf16.msra.mxu1 %v1894_v19  ;;  %v863_v19 = vmul.f32 %v862_v51, %v7771_v57 }
 0x127   :  { %1910 = vmatpush.bf16.msra.mxu0 %v1893_v40 }
 0x129   :  { %6642 = vmatmul.msk.bf16.vlgmr.msra.gmra.mxu1 %vm615_vm0, %v7164_v20  ;;  %2678 = vrot.lane.b32.xlu2 %v7697_v14, %s10742_s14 }
 0x12a   :  { %1992 = vmatpush.bf16.msrb.mxu1 %v7726_v27  ;;  %6641 = vmatmul.msk.bf16.vlgmr.msra.gmra.mxu0 %vm615_vm0, %v7164_v20 }
 0x12b   :  { %1978 = vmatpush.bf16.msrb.mxu0 %v7728_v28  ;;  %2676 = vrot.lane.b32.xlu1 %v7699_v15, %s10742_s14  ;;  %v2131_v39 = vpop.permute.xlu2 %2130 }
 0x12c   :  { %854 = vrot.lane.b32.xlu0 %v852_v29, %s7441_s27  ;;  %v7925_v58 = vpop.permute.xlu1 %711  ;;  %s6529_s27 = sld [smem:[#allocation3 + $0x4f]] }
 0x12d   :  { %10888 = vst [vmem:[#allocation36_spill] sm:$0xff] %v7925_v58  ;;  %v7927_v16 = vpop.permute.xlu0 %700 }
 0x12e   :  { %2075 = vmatpush.bf16.msra.mxu1 %v2045_v22  ;;  %10889 = vst [vmem:[#allocation37_spill] sm:$0xff] %v7927_v16  ;;  %v7165_v16 = vld [vmem:[%s10659_s5 + $0x10] sm:$0xff] }
 0x131   :  { %6651 = vmatmul.msk.bf16.vlgmr.msrb.gmra.mxu2 %vm615_vm0, %v7887_v44  ;;  %865 = vrot.lane.b32.xlu2 %v863_v19, %s7442_s12  ;;  %v873_v19 = vstv %s6526_s23  ;;  %s7443_s12 = smov 105   ;;  %s6528_s23 = sld [smem:[#allocation3 + $0x4e]] }
 0x132   :  { %v874_v2 = vmul.f32 %v873_v19, %v7771_v57 }
 0x133   :  { %2674 = vrot.lane.b32.xlu1 %v7726_v27, %s10742_s14  ;;  %v2129_v20 = vpop.permute.xlu2 %2128 }
 0x134   :  { %2672 = vrot.lane.b32.xlu0 %v7728_v28, %s10742_s14  ;;  %v7936_v22 = vpop.permute.xlu1 %744  ;;  %v2136_v29 = vsel %vm10830_vm3, %v2129_v20, %v2131_v39  ;;  %s10779_s14 = smov 84  }
 0x135   :  { %10890 = vst [vmem:[#allocation38_spill] sm:$0xff] %v7936_v22  ;;  %v7938_v40 = vpop.permute.xlu0 %733 }
 0x136   :  { %10891 = vst [vmem:[#allocation39_spill] sm:$0xff] %v7938_v40 }
 0x139   :  { %6650 = vmatmul.msk.bf16.vlgmr.msrb.gmra.mxu1 %vm615_vm0, %v7887_v44  ;;  %2763 = vrot.lane.b32.xlu2 %v7728_v28, %s10743_s29 }
 0x13a   :  { %6649 = vmatmul.msk.bf16.vlgmr.msrb.gmra.mxu0 %vm615_vm0, %v7887_v44  ;;  %2166 = vmatpush.bf16.msrb.mxu1 %v2136_v29  ;;  %v884_v29 = vstv %s6527_s11  ;;  %s10747_s11 = smov 104  }
 0x13b   :  { %2769 = vrot.lane.b32.xlu1 %v7697_v14, %s10743_s29  ;;  %v2224_v51 = vpop.permute.xlu2 %2223 }
 0x13c   :  { %2767 = vrot.lane.b32.xlu0 %v7699_v15, %s10743_s29  ;;  %v2036_v22 = vpop.permute.xlu1 %2035 }
 0x13d   :  { %v2044_v40 = vsel %vm10840_vm2, %v2036_v22, %v2038_v62  ;;  %v2042_v58 = vpop.permute.xlu0 %2041  ;;  %v895_v22 = vstv %s6528_s23  ;;  %s10895_s23 = smov 88  }
 0x13e   :  { %2103 = vmatpush.bf16.msra.mxu3 %v2042_v58  ;;  %v2046_v44 = vsel %vm10840_vm2, %v7900_v31, %v2042_v58  ;;  %2061 = vmatpush.bf16.msra.mxu0 %v2044_v40 }
 0x13f   :  { %2089 = vmatpush.bf16.msra.mxu2 %v2046_v44 }
 0x141   :  { %6662 = vmatmul.msk.bf16.vlgmr.msra.gmra.mxu3 %vm615_vm0, %v7165_v16  ;;  %2858 = vrot.lane.b32.xlu2 %v7699_v15, %s10739_s26 }
 0x142   :  { %6661 = vmatmul.msk.bf16.vlgmr.msra.gmra.mxu2 %vm615_vm0, %v7165_v16 }
 0x143   :  { %876 = vrot.lane.b32.xlu1 %v874_v2, %s7443_s12  ;;  %v7964_v62 = vpop.permute.xlu2 %788  ;;  %s6530_s12 = sld [smem:[#allocation3 + $0x50]] }
 0x144   :  { %2765 = vrot.lane.b32.xlu0 %v7726_v27, %s10743_s29  ;;  %10892 = vst [vmem:[#allocation40_spill] sm:$0xff] %v7964_v62  ;;  %v7966_v31 = vpop.permute.xlu1 %766  ;;  %v7166_v62 = vld [vmem:[%s10659_s5 + $0x18] sm:$0xff]  ;;  %s10781_s29 = smov 85  }
 0x145   :  { %10893 = vst [vmem:[#allocation41_spill] sm:$0xff] %v7966_v31  ;;  %v7968_v58 = vpop.permute.xlu0 %756  ;;  %v896_v31 = vmul.f32 %v895_v22, %v7771_v57 }
 0x146   :  { %10894 = vst [vmem:[#allocation42_spill] sm:$0xff] %v7968_v58  ;;  %v885_v58 = vmul.f32 %v884_v29, %v7771_v57  ;;  %v905_v29 = vstv %s6529_s27  ;;  %s10789_s27 = smov 87  }
 0x149   :  { %6660 = vmatmul.msk.bf16.vlgmr.msra.gmra.mxu1 %vm615_vm0, %v7165_v16  ;;  %2856 = vrot.lane.b32.xlu2 %v7726_v27, %s10739_s26 }
 0x14a   :  { %6659 = vmatmul.msk.bf16.vlgmr.msra.gmra.mxu0 %vm615_vm0, %v7165_v16 }
 0x14b   :  { %2854 = vrot.lane.b32.xlu1 %v7728_v28, %s10739_s26  ;;  %v7978_v2 = vpop.permute.xlu2 %2308 }
 0x14c   :  { %2860 = vrot.lane.b32.xlu0 %v7697_v14, %s10739_s26  ;;  %v2127_v40 = vpop.permute.xlu1 %2126  ;;  %s6532_s26 = sld [smem:[#allocation3 + $0x52]] }
 0x14d   :  { %v2135_v19 = vsel %vm10830_vm3, %v2127_v40, %v2129_v20  ;;  %v2133_v44 = vpop.permute.xlu0 %2132 }
 0x14e   :  { %2194 = vmatpush.bf16.msrb.mxu3 %v2133_v44  ;;  %v2137_v16 = vsel %vm10830_vm3, %v2131_v39, %v2133_v44  ;;  %2152 = vmatpush.bf16.msrb.mxu0 %v2135_v19  ;;  %v7167_v44 = vld [vmem:[%s10659_s5 + $0x20] sm:$0xff] }
 0x14f   :  { %2180 = vmatpush.bf16.msrb.mxu2 %v2137_v16  ;;  %v906_v16 = vmul.f32 %v905_v29, %v7771_v57 }
 0x151   :  { %6672 = vmatmul.msk.bf16.vlgmr.msrb.gmra.mxu3 %vm615_vm0, %v7166_v62  ;;  %2949 = vrot.lane.b32.xlu2 %v7699_v15, %s10741_s24 }
 0x152   :  { %2285 = vmatpush.bf16.msra.mxu3 %v2224_v51  ;;  %6671 = vmatmul.msk.bf16.vlgmr.msrb.gmra.mxu2 %vm615_vm0, %v7166_v62 }
 0x153   :  { %898 = vrot.lane.b32.xlu1 %v896_v31, %s10895_s23  ;;  %v7993_v39 = vpop.permute.xlu2 %810 }
 0x154   :  { %887 = vrot.lane.b32.xlu0 %v885_v58, %s10747_s11  ;;  %10896 = vst [vmem:[#allocation43_spill] sm:$0xff] %v7993_v39  ;;  %v2222_v20 = vpop.permute.xlu1 %2221  ;;  %s10904_s11 = smov 70  }
 0x155   :  { %v7995_v22 = vpop.permute.xlu0 %777  ;;  %v2228_v40 = vsel %vm10829_vm4, %v2222_v20, %v2224_v51 }
 0x156   :  { %10897 = vst [vmem:[#allocation44_spill] sm:$0xff] %v7995_v22  ;;  %2271 = vmatpush.bf16.msra.mxu2 %v2228_v40  ;;  %v971_v22 = vstv %s6535_s13  ;;  %s7451_s13 = smov 81  }
 0x159   :  { %6670 = vmatmul.msk.bf16.vlgmr.msrb.gmra.mxu1 %vm615_vm0, %v7166_v62  ;;  %2947 = vrot.lane.b32.xlu2 %v7726_v27, %s10741_s24 }
 0x15a   :  { %6669 = vmatmul.msk.bf16.vlgmr.msrb.gmra.mxu0 %vm615_vm0, %v7166_v62 }
 0x15b   :  { %2945 = vrot.lane.b32.xlu1 %v7728_v28, %s10741_s24  ;;  %v8006_v31 = vpop.permute.xlu2 %2399 }
 0x15c   :  { %2951 = vrot.lane.b32.xlu0 %v7697_v14, %s10741_s24  ;;  %v2220_v58 = vpop.permute.xlu1 %2219  ;;  %s10898_s24 = smov 94  }
 0x15d   :  { %v2218_v51 = vpop.permute.xlu0 %2217  ;;  %v2227_v19 = vsel %vm10829_vm4, %v2220_v58, %v2222_v20  ;;  %v916_v20 = vstv %s6530_s12  ;;  %s6531_s12 = sld [smem:[#allocation3 + $0x51]] }
 0x15e   :  { %v2226_v62 = vsel %vm10829_vm4, %v2218_v51, %v2220_v58  ;;  %2257 = vmatpush.bf16.msra.mxu1 %v2227_v19  ;;  %v917_v51 = vmul.f32 %v916_v20, %v7771_v57 }
 0x15f   :  { %2243 = vmatpush.bf16.msra.mxu0 %v2226_v62 }
 0x161   :  { %6682 = vmatmul.msk.bf16.vlgmr.msra.gmra.mxu3 %vm615_vm0, %v7167_v44  ;;  %3042 = vrot.lane.b32.xlu2 %v7697_v14, %s10898_s24 }
 0x162   :  { %6681 = vmatmul.msk.bf16.vlgmr.msra.gmra.mxu2 %vm615_vm0, %v7167_v44 }
 0x163   :  { %3040 = vrot.lane.b32.xlu1 %v7699_v15, %s10898_s24  ;;  %v8021_v40 = vpop.permute.xlu2 %2494  ;;  %v927_v39 = vstv %s6531_s12  ;;  %s6534_s12 = sld [smem:[#allocation3 + $0x54]] }
 0x164   :  { %908 = vrot.lane.b32.xlu0 %v906_v16, %s10789_s27  ;;  %v2315_v58 = vpop.permute.xlu1 %2314  ;;  %s10924_s27 = smov 38  }
 0x165   :  { %v2313_v29 = vpop.permute.xlu0 %2312  ;;  %2376 = vmatpush.bf16.msrb.mxu3 %v2315_v58 }
 0x166   :  { %v2319_v19 = vsel %vm10802_vm5, %v2313_v29, %v2315_v58  ;;  %v7168_v58 = vld [vmem:[%s10659_s5 + $0x28] sm:$0xff] }
 0x167   :  { %2362 = vmatpush.bf16.msrb.mxu2 %v2319_v19  ;;  %v938_v19 = vstv %s6532_s26  ;;  %s6533_s26 = sld [smem:[#allocation3 + $0x53]] }
 0x169   :  { %6680 = vmatmul.msk.bf16.vlgmr.msra.gmra.mxu1 %vm615_vm0, %v7167_v44  ;;  %919 = vrot.lane.b32.xlu2 %v917_v51, %s10783_s16  ;;  %s8371_s16 = sld [smem:[#allocation3 + $0x5b]] }
 0x16a   :  { %6679 = vmatmul.msk.bf16.vlgmr.msra.gmra.mxu0 %vm615_vm0, %v7167_v44 }
 0x16b   :  { %3038 = vrot.lane.b32.xlu1 %v7726_v27, %s10898_s24  ;;  %v2493_v62 = vpop.permute.xlu2 %2492 }
 0x16c   :  { %3036 = vrot.lane.b32.xlu0 %v7728_v28, %s10898_s24  ;;  %v8032_v16 = vpop.permute.xlu1 %799 }
 0x16d   :  { %10899 = vst [vmem:[#allocation45_spill] sm:$0xff] %v8032_v16  ;;  %v2311_v20 = vpop.permute.xlu0 %2310 }
 0x16e   :  { %v2318_v51 = vsel %vm10802_vm5, %v2311_v20, %v2313_v29  ;;  %v2317_v44 = vsel %vm10802_vm5, %v7978_v2, %v2311_v20  ;;  %v939_v20 = vmul.f32 %v938_v19, %v7771_v57 }
 0x16f   :  { %2348 = vmatpush.bf16.msrb.mxu1 %v2318_v51  ;;  %2334 = vmatpush.bf16.msrb.mxu0 %v2317_v44  ;;  %v928_v51 = vmul.f32 %v927_v39, %v7771_v57 }
 0x171   :  { %6692 = vmatmul.msk.bf16.vlgmr.msrb.gmra.mxu3 %vm615_vm0, %v7168_v58  ;;  %3127 = vrot.lane.b32.xlu2 %v7728_v28, %s10900_s20 }
 0x172   :  { %6691 = vmatmul.msk.bf16.vlgmr.msrb.gmra.mxu2 %vm615_vm0, %v7168_v58 }
 0x173   :  { %3133 = vrot.lane.b32.xlu1 %v7697_v14, %s10900_s20  ;;  %v2588_v29 = vpop.permute.xlu2 %2587 }
 0x174   :  { %3131 = vrot.lane.b32.xlu0 %v7699_v15, %s10900_s20  ;;  %v2406_v16 = vpop.permute.xlu1 %2405 }
 0x175   :  { %v2404_v2 = vpop.permute.xlu0 %2403  ;;  %2467 = vmatpush.bf16.msra.mxu3 %v2406_v16 }
 0x176   :  { %v2410_v44 = vsel %vm10800_vm6, %v2404_v2, %v2406_v16 }
 0x177   :  { %2453 = vmatpush.bf16.msra.mxu2 %v2410_v44  ;;  %v7169_v44 = vld [vmem:[%s10659_s5 + $0x30] sm:$0xff] }
 0x179   :  { %6690 = vmatmul.msk.bf16.vlgmr.msrb.gmra.mxu1 %vm615_vm0, %v7168_v58  ;;  %941 = vrot.lane.b32.xlu2 %v939_v20, %s10779_s14  ;;  %s10918_s14 = smov 43  }
 0x17a   :  { %6689 = vmatmul.msk.bf16.vlgmr.msrb.gmra.mxu0 %vm615_vm0, %v7168_v58  ;;  %v2500_v58 = vsel %vm10825_vm7, %v2493_v62, %v8021_v40 }
 0x17b   :  { %930 = vrot.lane.b32.xlu1 %v928_v51, %s10781_s29  ;;  %v8057_v19 = vpop.permute.xlu2 %843  ;;  %s10921_s29 = smov 41  }
 0x17c   :  { %3129 = vrot.lane.b32.xlu0 %v7726_v27, %s10900_s20  ;;  %10901 = vst [vmem:[#allocation46_spill] sm:$0xff] %v8057_v19  ;;  %v8059_v39 = vpop.permute.xlu1 %821  ;;  %v949_v19 = vstv %s6533_s26  ;;  %s10777_s26 = smov 83  }
 0x17d   :  { %10902 = vst [vmem:[#allocation47_spill] sm:$0xff] %v8059_v39  ;;  %v2402_v16 = vpop.permute.xlu0 %2401 }
 0x17e   :  { %v2409_v20 = vsel %vm10800_vm6, %v2402_v16, %v2404_v2  ;;  %v2408_v51 = vsel %vm10800_vm6, %v8006_v31, %v2402_v16 }
 0x17f   :  { %2439 = vmatpush.bf16.msra.mxu1 %v2409_v20  ;;  %2425 = vmatpush.bf16.msra.mxu0 %v2408_v51  ;;  %v7170_v51 = vld [vmem:[%s10659_s5 + $0x38] sm:$0xff] }
 0x181   :  { %6702 = vmatmul.msk.bf16.vlgmr.msra.gmra.mxu3 %vm615_vm0, %v7169_v44  ;;  %3218 = vrot.lane.b32.xlu2 %v7728_v28, %s10903_s0 }
 0x182   :  { %6701 = vmatmul.msk.bf16.vlgmr.msra.gmra.mxu2 %vm615_vm0, %v7169_v44 }
 0x183   :  { %2530 = vmatpush.bf16.msrb.mxu1 %v2500_v58  ;;  %3224 = vrot.lane.b32.xlu1 %v7697_v14, %s10903_s0  ;;  %v2679_v2 = vpop.permute.xlu2 %2678  ;;  %v950_v58 = vmul.f32 %v949_v19, %v7771_v57 }
 0x184   :  { %3222 = vrot.lane.b32.xlu0 %v7699_v15, %s10903_s0  ;;  %v2491_v39 = vpop.permute.xlu1 %2490 }
 0x185   :  { %v2499_v31 = vsel %vm10825_vm7, %v2491_v39, %v2493_v62  ;;  %v2497_v16 = vpop.permute.xlu0 %2496 }
 0x186   :  { %v2501_v20 = vsel %vm10825_vm7, %v8021_v40, %v2497_v16  ;;  %2558 = vmatpush.bf16.msrb.mxu3 %v2497_v16  ;;  %2516 = vmatpush.bf16.msrb.mxu0 %v2499_v31 }
 0x187   :  { %2544 = vmatpush.bf16.msrb.mxu2 %v2501_v20 }
 0x189   :  { %6700 = vmatmul.msk.bf16.vlgmr.msra.gmra.mxu1 %vm615_vm0, %v7169_v44  ;;  %3313 = vrot.lane.b32.xlu2 %v7699_v15, %s10904_s11 }
 0x18a   :  { %2649 = vmatpush.bf16.msra.mxu3 %v2588_v29  ;;  %6699 = vmatmul.msk.bf16.vlgmr.msra.gmra.mxu0 %vm615_vm0, %v7169_v44  ;;  %v1954_v62 = vpop.f32.mrf.mxu3 }
 0x18b   :  { %952 = vrot.lane.b32.xlu1 %v950_v58, %s10777_s26  ;;  %v8088_v19 = vpop.permute.xlu2 %865  ;;  %v960_v58 = vstv %s6534_s12  ;;  %s6536_s12 = sld [smem:[#allocation3 + $0x56]] }
 0x18c   :  { %3220 = vrot.lane.b32.xlu0 %v7726_v27, %s10903_s0  ;;  %10905 = vst [vmem:[#allocation48_spill] sm:$0xff] %v8088_v19  ;;  %v2586_v40 = vpop.permute.xlu1 %2585  ;;  %s8206_s26 = sld [smem:[#allocation3]] }
 0x18d   :  { %v8090_v39 = vpop.permute.xlu0 %832  ;;  %v2592_v44 = vsel %vm10822_vm8, %v2586_v40, %v2588_v29 }
 0x18e   :  { %10906 = vst [vmem:[#allocation49_spill] sm:$0xff] %v8090_v39  ;;  %2635 = vmatpush.bf16.msra.mxu2 %v2592_v44  ;;  %v961_v39 = vmul.f32 %v960_v58, %v7771_v57 }
 0x191   :  { %6712 = vmatmul.msk.bf16.vlgmr.msrb.gmra.mxu3 %vm615_vm0, %v7170_v51  ;;  %3311 = vrot.lane.b32.xlu2 %v7726_v27, %s10904_s11 }
 0x192   :  { %6711 = vmatmul.msk.bf16.vlgmr.msrb.gmra.mxu2 %vm615_vm0, %v7170_v51  ;;  %v8102_v31 = vpop.f32.mrf.mxu3  ;;  %2740 = vmatpush.bf16.msrb.mxu3 %v2679_v2 }
 0x193   :  { %3309 = vrot.lane.b32.xlu1 %v7728_v28, %s10904_s11  ;;  %v8106_v16 = vpop.permute.xlu2 %2763 }
 0x194   :  { %3315 = vrot.lane.b32.xlu0 %v7697_v14, %s10904_s11  ;;  %v2584_v29 = vpop.permute.xlu1 %2583 }
 0x195   :  { %v2582_v20 = vpop.permute.xlu0 %2581  ;;  %v2591_v44 = vsel %vm10822_vm8, %v2584_v29, %v2586_v40 }
 0x196   :  { %v2590_v19 = vsel %vm10822_vm8, %v2582_v20, %v2584_v29  ;;  %2621 = vmatpush.bf16.msra.mxu1 %v2591_v44  ;;  %v972_v20 = vmul.f32 %v971_v22, %v7771_v57 }
 0x197   :  { %2607 = vmatpush.bf16.msra.mxu0 %v2590_v19 }
 0x199   :  { %6710 = vmatmul.msk.bf16.vlgmr.msrb.gmra.mxu1 %vm615_vm0, %v7170_v51  ;;  %3406 = vrot.lane.b32.xlu2 %v7697_v14, %s10907_s18 }
 0x19a   :  { %6709 = vmatmul.msk.bf16.vlgmr.msrb.gmra.mxu0 %vm615_vm0, %v7170_v51  ;;  %v2022_v3 = vpop.f32.mrf.mxu3  ;;  %v7171_v51 = vld [vmem:[%s10659_s5 + $0x40] sm:$0xff] }
 0x19b   :  { %3404 = vrot.lane.b32.xlu1 %v7699_v15, %s10907_s18  ;;  %v8118_v40 = vpop.permute.xlu2 %2858  ;;  %v8120_v29 = vadd.f32 %v2022_v3, %v1954_v62 }
 0x19c   :  { %963 = vrot.lane.b32.xlu0 %v961_v39, %s10775_s21  ;;  %v982_v39 = vstv %s6536_s12  ;;  %s10911_s12 = smov 67   ;;  %s8204_s21 = sld [smem:[#allocation3 + $0x59]] }
 0x19d   :  { %v2677_v19 = vpop.permute.xlu1 %2676  ;;  %v983_v47 = vmul.f32 %v982_v39, %v7771_v57 }
 0x19e   :  { %v8122_v58 = vpop.permute.xlu0 %854  ;;  %v2683_v44 = vsel %vm10810_vm9, %v2677_v19, %v2679_v2 }
 0x19f   :  { %10908 = vst [vmem:[#allocation50_spill] sm:$0xff] %v8122_v58  ;;  %2726 = vmatpush.bf16.msrb.mxu2 %v2683_v44 }
 0x1a1   :  { %6722 = vmatmul.msk.bf16.vlgmr.msra.gmra.mxu3 %vm615_vm0, %v7171_v51  ;;  %974 = vrot.lane.b32.xlu2 %v972_v20, %s7451_s13  ;;  %s7454_s13 = smov 78  }
 0x1a2   :  { %6721 = vmatmul.msk.bf16.vlgmr.msra.gmra.mxu2 %vm615_vm0, %v7171_v51 }
 0x1a3   :  { %3402 = vrot.lane.b32.xlu1 %v7726_v27, %s10907_s18  ;;  %v8135_v3 = vpop.permute.xlu2 %2856 }
 0x1a4   :  { %3400 = vrot.lane.b32.xlu0 %v7728_v28, %s10907_s18  ;;  %v1940_v62 = vpop.f32.mrf.mxu2  ;;  %v2864_v0 = vsel %vm10807_vm11, %v8135_v3, %v8118_v40 }
 0x1a5   :  { %v2675_v22 = vpop.permute.xlu1 %2674 }
 0x1a6   :  { %v2673_v2 = vpop.permute.xlu0 %2672  ;;  %v2682_v44 = vsel %vm10810_vm9, %v2675_v22, %v2677_v19  ;;  %v1926_v20 = vpop.f32.mrf.mxu1 }
 0x1a7   :  { %v2681_v58 = vsel %vm10810_vm9, %v2673_v2, %v2675_v22  ;;  %2712 = vmatpush.bf16.msrb.mxu1 %v2682_v44  ;;  %v1912_v9 = vpop.f32.mrf.mxu0  ;;  %v994_v44 = vmul.f32 %v993_v49, %v7771_v57 }
 0x1a8   :  { %2698 = vmatpush.bf16.msrb.mxu0 %v2681_v58  ;;  %v7172_v58 = vld [vmem:[%s10659_s5 + $0x48] sm:$0xff] }
 0x1a9   :  { %6720 = vmatmul.msk.bf16.vlgmr.msra.gmra.mxu1 %vm615_vm0, %v7171_v51  ;;  %3497 = vrot.lane.b32.xlu2 %v7697_v14, %s10909_s15 }
 0x1aa   :  { %6719 = vmatmul.msk.bf16.vlgmr.msra.gmra.mxu0 %vm615_vm0, %v7171_v51 }
 0x1ab   :  { %3495 = vrot.lane.b32.xlu1 %v7699_v15, %s10909_s15  ;;  %v8146_v19 = vpop.permute.xlu2 %2949 }
 0x1ac   :  { %985 = vrot.lane.b32.xlu0 %v983_v47, %s7452_s19  ;;  %v1942_v22 = vpop.f32.mrf.mxu2  ;;  %s8161_s19 = sld [smem:[#allocation3 + $0x58]] }
 0x1ad   :  { %v2770_v2 = vpop.permute.xlu1 %2769 }
 0x1ae   :  { %v2768_v39 = vpop.permute.xlu0 %2767  ;;  %2831 = vmatpush.bf16.msra.mxu3 %v2770_v2  ;;  %v1928_v51 = vpop.f32.mrf.mxu1 }
 0x1af   :  { %v2774_v5 = vsel %vm10804_vm10, %v2768_v39, %v2770_v2  ;;  %v1914_v35 = vpop.f32.mrf.mxu0 }
 0x1b0   :  { %2817 = vmatpush.bf16.msra.mxu2 %v2774_v5 }
 0x1b1   :  { %6732 = vmatmul.msk.bf16.vlgmr.msrb.gmra.mxu3 %vm615_vm0, %v7172_v58  ;;  %996 = vrot.lane.b32.xlu2 %v994_v44, %s7453_s22  ;;  %s8200_s22 = sld [smem:[#allocation3 + $0x5a]] }
 0x1b2   :  { %6731 = vmatmul.msk.bf16.vlgmr.msrb.gmra.mxu2 %vm615_vm0, %v7172_v58 }
 0x1b3   :  { %3493 = vrot.lane.b32.xlu1 %v7726_v27, %s10909_s15  ;;  %v8159_v47 = vpop.permute.xlu2 %2947 }
 0x1b4   :  { %3491 = vrot.lane.b32.xlu0 %v7728_v28, %s10909_s15  ;;  %v2008_v49 = vpop.f32.mrf.mxu2 }
 0x1b5   :  { %v8163_v2 = vpop.permute.xlu1 %876  ;;  %v2009_v5 = vadd.f32 %v2008_v49, %v1940_v62 }
 0x1b6   :  { %10910 = vst [vmem:[#allocation51_spill] sm:$0xff] %v8163_v2  ;;  %v2766_v38 = vpop.permute.xlu0 %2765  ;;  %v1994_v4 = vpop.f32.mrf.mxu1 }
 0x1b7   :  { %v2773_v44 = vsel %vm10804_vm10, %v2766_v38, %v2768_v39  ;;  %v2772_v23 = vsel %vm10804_vm10, %v8106_v16, %v2766_v38  ;;  %v1980_v26 = vpop.f32.mrf.mxu0  ;;  %v1995_v53 = vadd.f32 %v1994_v4, %v1926_v20  ;;  %v8177_v38 = vpop.f32.mrf.mxu3  ;;  %v7173_v39 = vld [vmem:[%s10659_s5 + $0x50] sm:$0xff] }
 0x1b8   :  { %2803 = vmatpush.bf16.msra.mxu1 %v2773_v44  ;;  %2789 = vmatpush.bf16.msra.mxu0 %v2772_v23  ;;  %v1981_v11 = vadd.f32 %v1980_v26, %v1912_v9  ;;  %v1004_v9 = vstv %s8161_s19  ;;  %s10912_s19 = smov 66  }
 0x1b9   :  { %6730 = vmatmul.msk.bf16.vlgmr.msrb.gmra.mxu1 %vm615_vm0, %v7172_v58  ;;  %3582 = vrot.lane.b32.xlu2 %v7728_v28, %s10911_s12  ;;  %v1005_v49 = vmul.f32 %v1004_v9, %v7771_v57 }
 0x1ba   :  { %6729 = vmatmul.msk.bf16.vlgmr.msrb.gmra.mxu0 %vm615_vm0, %v7172_v58 }
 0x1bb   :  { %3588 = vrot.lane.b32.xlu1 %v7697_v14, %s10911_s12  ;;  %v8181_v4 = vpop.permute.xlu2 %3042 }
 0x1bc   :  { %3586 = vrot.lane.b32.xlu0 %v7699_v15, %s10911_s12  ;;  %2894 = vmatpush.bf16.msrb.mxu1 %v2864_v0  ;;  %v2010_v23 = vpop.f32.mrf.mxu2 }
 0x1bd   :  { %v2855_v26 = vpop.permute.xlu1 %2854  ;;  %v2011_v16 = vadd.f32 %v2010_v23, %v1942_v22 }
 0x1be   :  { %v2863_v62 = vsel %vm10807_vm11, %v2855_v26, %v8135_v3  ;;  %v2861_v20 = vpop.permute.xlu0 %2860  ;;  %v1996_v58 = vpop.f32.mrf.mxu1 }
 0x1bf   :  { %v2865_v44 = vsel %vm10807_vm11, %v8118_v40, %v2861_v20  ;;  %2922 = vmatpush.bf16.msrb.mxu3 %v2861_v20  ;;  %2880 = vmatpush.bf16.msrb.mxu0 %v2863_v62  ;;  %v1982_v0 = vpop.f32.mrf.mxu0  ;;  %v1997_v2 = vadd.f32 %v1996_v58, %v1928_v51 }
 0x1c0   :  { %2908 = vmatpush.bf16.msrb.mxu2 %v2865_v44  ;;  %v1983_v22 = vadd.f32 %v1982_v0, %v1914_v35  ;;  %v1015_v44 = vstv %s8204_s21  ;;  %s10916_s21 = smov 44  }
 0x1c1   :  { %6742 = vmatmul.msk.bf16.vlgmr.msra.gmra.mxu3 %vm615_vm0, %v7173_v39  ;;  %3677 = vrot.lane.b32.xlu2 %v7699_v15, %s10912_s19  ;;  %v1016_v42 = vmul.f32 %v1015_v44, %v7771_v57 }
 0x1c2   :  { %6741 = vmatmul.msk.bf16.vlgmr.msra.gmra.mxu2 %vm615_vm0, %v7173_v39 }
 0x1c3   :  { %1007 = vrot.lane.b32.xlu1 %v1005_v49, %s7454_s13  ;;  %v8198_v3 = vpop.permute.xlu2 %919  ;;  %v1026_v49 = vstv %s8200_s22  ;;  %s10816_s22 = smov 76   ;;  %s8523_s13 = sld [smem:[#allocation3 + $0x5c]] }
 0x1c4   :  { %3584 = vrot.lane.b32.xlu0 %v7726_v27, %s10911_s12  ;;  %10913 = vst [vmem:[#allocation52_spill] sm:$0xff] %v8198_v3  ;;  %v2105_v40 = vpop.f32.mrf.mxu3 }
 0x1c5   :  { %v8202_v51 = vpop.permute.xlu1 %898  ;;  %v8209_v15 = vadd.f32 %v2105_v40, %v8120_v29  ;;  %v2091_v35 = vpop.f32.mrf.mxu2  ;;  %v2955_v29 = vsel %vm10805_vm12, %v8159_v47, %v8146_v19 }
 0x1c6   :  { %10914 = vst [vmem:[#allocation53_spill] sm:$0xff] %v8202_v51  ;;  %v8211_v9 = vpop.permute.xlu0 %887  ;;  %v8213_v23 = vadd.f32 %v2091_v35, %v2009_v5  ;;  %v2077_v26 = vpop.f32.mrf.mxu1  ;;  %v1027_v51 = vmul.f32 %v1026_v49, %v7771_v57  ;;  %v6851_v57 = vld [vmem:[%s10658_s4] sm:$0xf] }
 0x1c7   :  { %10915 = vst [vmem:[#allocation54_spill] sm:$0xff] %v8211_v9  ;;  %v2063_v62 = vpop.f32.mrf.mxu0  ;;  %v8215_v20 = vadd.f32 %v2077_v26, %v1995_v53  ;;  %v6859_v53 = vld [vmem:[%s10658_s4 + $0x8] sm:$0xf]  ;;  %v7174_v26 = vld [vmem:[%s10659_s5 + $0x58] sm:$0xff] }
 0x1c8   :  { %v8217_v58 = vadd.f32 %v2063_v62, %v1981_v11  ;;  %v7188_v11 = vld [vmem:[%s10658_s4 + $0x18] sm:$0xf0] }
 0x1c9   :  { %6740 = vmatmul.msk.bf16.vlgmr.msra.gmra.mxu1 %vm615_vm0, %v7173_v39  ;;  %3675 = vrot.lane.b32.xlu2 %v7726_v27, %s10912_s19  ;;  %v8248_v62 = vor.u32 %v7188_v11, %v6859_v53  ;;  %v63_v53 = vrot.slane %v7649_v45, 1 }
 0x1ca   :  { %6739 = vmatmul.msk.bf16.vlgmr.msra.gmra.mxu0 %vm615_vm0, %v7173_v39  ;;  %2985 = vmatpush.bf16.msra.mxu1 %v2955_v29 }
 0x1cb   :  { %3673 = vrot.lane.b32.xlu1 %v7728_v28, %s10912_s19  ;;  %v8236_v5 = vpop.permute.xlu2 %3127  ;;  %v43_v28 = vstv %s8206_s26  ;;  %s7456_s26 = smov 77  }
 0x1cc   :  { %3679 = vrot.lane.b32.xlu0 %v7697_v14, %s10912_s19  ;;  %v8239_v27 = vpop.f32.mrf.mxu3  ;;  %v52_v14 = vrot.slane %v7638_v36, 1 }
 0x1cd   :  { %v2946_v39 = vpop.permute.xlu1 %2945  ;;  %v2093_v40 = vpop.f32.mrf.mxu2 }
 0x1ce   :  { %v2954_v0 = vsel %vm10805_vm12, %v2946_v39, %v8159_v47  ;;  %v2952_v35 = vpop.permute.xlu0 %2951  ;;  %v8251_v3 = vadd.f32 %v2093_v40, %v2011_v16  ;;  %v2079_v29 = vpop.f32.mrf.mxu1  ;;  %v7350_v16 = vld [vmem:[%s10656_s2] sm:$0xf] }
 0x1cf   :  { %v2956_v9 = vsel %vm10805_vm12, %v8146_v19, %v2952_v35  ;;  %3013 = vmatpush.bf16.msra.mxu3 %v2952_v35  ;;  %2971 = vmatpush.bf16.msra.mxu0 %v2954_v0  ;;  %v2065_v47 = vpop.f32.mrf.mxu0  ;;  %v8256_v39 = vadd.f32 %v2079_v29, %v1997_v2  ;;  %v44_v49 = vmul.f32 %v7350_v16, %v43_v28  ;;  %v7187_v2 = vld [vmem:[%s10658_s4 + $0x10] sm:$0xf0]  ;;  %v6861_v0 = vld [vmem:[%s10658_s4 + $0x1c] sm:$0xf0] }
 0x1d0   :  { %2999 = vmatpush.bf16.msra.mxu2 %v2956_v9  ;;  %v8260_v11 = vadd.f32 %v2065_v47, %v1983_v22  ;;  %v54_v19 = vsel %vm10841_vm1, %v7638_v36, %v52_v14  ;;  %v6867_v36 = vld [vmem:[%s10658_s4 + $0x10] sm:$0xf]  ;;  %v65_v9 = vsel %vm10840_vm2, %v7649_v45, %v63_v53  ;;  %v8298_v47 = vor.u32 %v7187_v2, %v6851_v57 }
 0x1d1   :  { %6752 = vmatmul.msk.bf16.vlgmr.msrb.gmra.mxu3 %vm615_vm0, %v7174_v26  ;;  %3795 = vrot.lane.b32.xlu2 %v8248_v62, %s10916_s21  ;;  %v56_v40 = vadd.f32 %v54_v19, %v44_v49  ;;  %v74_v53 = vrot.slane %v7636_v34, 1  ;;  %v2025_v2 = vadd.f32 %v8177_v38, %v8102_v31  ;;  %vm692_vm2 = vcmask 72704  }
 0x1d2   :  { %6751 = vmatmul.msk.bf16.vlgmr.msrb.gmra.mxu2 %vm615_vm0, %v7174_v26  ;;  %vm703_vm1 = vcmask 64512  }
 0x1d3   :  { %1029 = vrot.lane.b32.xlu1 %v1027_v51, %s10816_s22  ;;  %v8278_v22 = vpop.permute.xlu2 %941  ;;  %v7189_v51 = vld [vmem:[%s10658_s4 + $0x20] sm:$0xf0]  ;;  %3104 = vmatpush.bf16.msrb.mxu3 %v8181_v4  ;;  %v67_v8 = vadd.f32 %v65_v9, %v56_v40  ;;  %s10935_s22 = smov 14  }
 0x1d4   :  { %1018 = vrot.lane.b32.xlu0 %v1016_v42, %s7456_s26  ;;  %10917 = vst [vmem:[#allocation55_spill] sm:$0xff] %v8278_v22  ;;  %v2196_v44 = vpop.f32.mrf.mxu3  ;;  %v7186_v42 = vld [vmem:[%s10658_s4 + $0xc] sm:$0xf]  ;;  %v8304_v6 = vor.u32 %v7189_v51, %v6867_v36  ;;  %s10920_s26 = smov 60  }
 0x1d5   :  { %v3041_v28 = vpop.permute.xlu1 %3040  ;;  %v2204_v35 = vadd.f32 %v2196_v44, %v8209_v15  ;;  %v2182_v14 = vpop.f32.mrf.mxu2  ;;  %v8307_v19 = vor.u32 %v7186_v42, %v6861_v0  ;;  %v96_v44 = vrot.slane %v7611_v12, 1 }
 0x1d6   :  { %v8296_v29 = vpop.permute.xlu0 %908  ;;  %v3047_v45 = vsel %vm10806_vm13, %v3041_v28, %v8181_v4  ;;  %v2203_v16 = vadd.f32 %v2182_v14, %v8213_v23  ;;  %v2168_v22 = vpop.f32.mrf.mxu1  ;;  %v76_v4 = vsel %vm10830_vm3, %v7636_v34, %v74_v53  ;;  %v85_v23 = vrot.slane %v7647_v43, 1  ;;  %v7185_v34 = vld [vmem:[%s10658_s4 + $0x4] sm:$0xf] }
 0x1d7   :  { %3090 = vmatpush.bf16.msrb.mxu2 %v3047_v45  ;;  %v2154_v49 = vpop.f32.mrf.mxu0  ;;  %v2202_v15 = vadd.f32 %v2168_v22, %v8215_v20  ;;  %v78_v20 = vadd.f32 %v76_v4, %v67_v8  ;;  %vm681_vm3 = vcmask 80896  }
 0x1d8   :  { %v2201_v57 = vadd.f32 %v2154_v49, %v8217_v58  ;;  %v2117_v58 = vadd.f32 %v8239_v27, %v2025_v2  ;;  %v7175_v27 = vld [vmem:[%s10659_s5 + $0x60] sm:$0xff]  ;;  %v87_v42 = vsel %vm10829_vm4, %v7647_v43, %v85_v23  ;;  %v98_v43 = vsel %vm10802_vm5, %v7611_v12, %v96_v44 }
 0x1d9   :  { %6750 = vmatmul.msk.bf16.vlgmr.msrb.gmra.mxu1 %vm615_vm0, %v7174_v26  ;;  %3791 = vrot.lane.b32.xlu2 %v8298_v47, %s10916_s21  ;;  %v89_v45 = vadd.f32 %v87_v42, %v78_v20  ;;  %vm152_vm5 = vcmask 965632   ;;  %vm670_vm4 = vcmask 89088  }
 0x1da   :  { %6749 = vmatmul.msk.bf16.vlgmr.msrb.gmra.mxu0 %vm615_vm0, %v7174_v26  ;;  %v6853_v26 = vld [vmem:[%s10658_s4 + $0x14] sm:$0xf0] }
 0x1db   :  { %3799 = vrot.lane.b32.xlu1 %v8304_v6, %s10916_s21  ;;  %v8324_v31 = vpop.permute.xlu2 %3218  ;;  %v8342_v2 = vor.u32 %v7185_v34, %v6853_v26 }
 0x1dc   :  { %3797 = vrot.lane.b32.xlu0 %v8307_v19, %s10916_s21  ;;  %v2198_v38 = vpop.f32.mrf.mxu3 }
 0x1dd   :  { %v3039_v22 = vpop.permute.xlu1 %3038  ;;  %v2208_v36 = vadd.f32 %v2198_v38, %v2117_v58  ;;  %v2184_v51 = vpop.f32.mrf.mxu2 }
 0x1de   :  { %v3037_v8 = vpop.permute.xlu0 %3036  ;;  %v3046_v9 = vsel %vm10806_vm13, %v3039_v22, %v3041_v28  ;;  %v2207_v0 = vadd.f32 %v2184_v51, %v8251_v3  ;;  %v2170_v14 = vpop.f32.mrf.mxu1  ;;  %v107_v3 = vrot.slane %v7618_v18, 1 }
 0x1df   :  { %v3045_v40 = vsel %vm10806_vm13, %v3037_v8, %v3039_v22  ;;  %3076 = vmatpush.bf16.msrb.mxu1 %v3046_v9  ;;  %v2156_v53 = vpop.f32.mrf.mxu0  ;;  %v2206_v49 = vadd.f32 %v2170_v14, %v8256_v39  ;;  %v100_v39 = vadd.f32 %v98_v43, %v89_v45  ;;  %v118_v22 = vrot.slane %v7659_v54, 1 }
 0x1e0   :  { %3062 = vmatpush.bf16.msrb.mxu0 %v3045_v40  ;;  %v2205_v28 = vadd.f32 %v2156_v53, %v8260_v11  ;;  %v109_v12 = vsel %vm10800_vm6, %v7618_v18, %v107_v3  ;;  %vm10803_vm6 = vcmask 982016   ;;  %v140_v14 = vrot.slane %v7626_v25, 1  ;;  %v7176_v53 = vld [vmem:[%s10659_s5 + $0x68] sm:$0xff] }
 0x1e1   :  { %6762 = vmatmul.msk.bf16.vlgmr.msra.gmra.mxu3 %vm615_vm0, %v7175_v27  ;;  %3891 = vrot.lane.b32.xlu2 %v8307_v19, %s10918_s14  ;;  %v111_v8 = vadd.f32 %v109_v12, %v100_v39  ;;  %v120_v18 = vsel %vm10801_vm15, %v7659_v54, %v118_v22  ;;  %vm141_vm15 = vcmask 973824   ;;  %v151_v22 = vrot.slane %v7671_v63, 1 }
 0x1e2   :  { %6761 = vmatmul.msk.bf16.vlgmr.msra.gmra.mxu2 %vm615_vm0, %v7175_v27 }
 0x1e3   :  { %3889 = vrot.lane.b32.xlu1 %v8248_v62, %s10918_s14  ;;  %v8356_v11 = vpop.permute.xlu2 %3313 }
 0x1e4   :  { %3793 = vrot.lane.b32.xlu0 %v8342_v2, %s10916_s21  ;;  %v2287_v4 = vpop.f32.mrf.mxu3 }
 0x1e5   :  { %v3134_v23 = vpop.permute.xlu1 %3133  ;;  %v2295_v20 = vadd.f32 %v2287_v4, %v2204_v35  ;;  %v2273_v58 = vpop.f32.mrf.mxu2  ;;  %v129_v35 = vrot.slane %v7657_v52, 1 }
 0x1e6   :  { %v3132_v38 = vpop.permute.xlu0 %3131  ;;  %3195 = vmatpush.bf16.msra.mxu3 %v3134_v23  ;;  %v2294_v34 = vadd.f32 %v2273_v58, %v2203_v16  ;;  %v2259_v26 = vpop.f32.mrf.mxu1  ;;  %v122_v16 = vadd.f32 %v120_v18, %v111_v8 }
 0x1e7   :  { %v3138_v51 = vsel %vm10821_vm14, %v3132_v38, %v3134_v23  ;;  %v2245_v9 = vpop.f32.mrf.mxu0  ;;  %v2293_v44 = vadd.f32 %v2259_v26, %v2202_v15  ;;  %v131_v43 = vsel %vm10803_vm6, %v7657_v52, %v129_v35  ;;  %v142_v52 = vsel %vm141_vm15, %v7626_v25, %v140_v14 }
 0x1e8   :  { %3181 = vmatpush.bf16.msra.mxu2 %v3138_v51  ;;  %v2292_v42 = vadd.f32 %v2245_v9, %v2201_v57  ;;  %v133_v58 = vadd.f32 %v131_v43, %v122_v16  ;;  %vm10820_vm15 = vcmask 580608   ;;  %v162_v16 = vrot.slane %v7669_v61, 1 }
 0x1e9   :  { %6760 = vmatmul.msk.bf16.vlgmr.msra.gmra.mxu1 %vm615_vm0, %v7175_v27  ;;  %3887 = vrot.lane.b32.xlu2 %v8342_v2, %s10918_s14  ;;  %vm163_vm6 = vcmask 957440  }
 0x1ea   :  { %6759 = vmatmul.msk.bf16.vlgmr.msra.gmra.mxu0 %vm615_vm0, %v7175_v27 }
 0x1eb   :  { %3885 = vrot.lane.b32.xlu1 %v8298_v47, %s10918_s14  ;;  %v8375_v15 = vpop.permute.xlu2 %3311 }
 0x1ec   :  { %3893 = vrot.lane.b32.xlu0 %v8304_v6, %s10918_s14  ;;  %v2289_v57 = vpop.f32.mrf.mxu3 }
 0x1ed   :  { %v8377_v40 = vpop.permute.xlu1 %930  ;;  %v2299_v54 = vadd.f32 %v2289_v57, %v2208_v36  ;;  %v2275_v45 = vpop.f32.mrf.mxu2 }
 0x1ee   :  { %v3130_v27 = vpop.permute.xlu0 %3129  ;;  %v2298_v3 = vadd.f32 %v2275_v45, %v2207_v0  ;;  %v2261_v39 = vpop.f32.mrf.mxu1  ;;  %v1038_v0 = vstv %s8371_s16  ;;  %s10930_s16 = smov 15  }
 0x1ef   :  { %v3137_v4 = vsel %vm10821_vm14, %v3130_v27, %v3132_v38  ;;  %v3136_v23 = vsel %vm10821_vm14, %v8236_v5, %v3130_v27  ;;  %v2247_v36 = vpop.f32.mrf.mxu0  ;;  %v2297_v12 = vadd.f32 %v2261_v39, %v2206_v49  ;;  %v8399_v5 = vld [vmem:[%s10656_s2 + $0x1] sm:$0x1f]  ;;  %v144_v49 = vadd.f32 %v142_v52, %v133_v58 }
 0x1f0   :  { %3167 = vmatpush.bf16.msra.mxu1 %v3137_v4  ;;  %3153 = vmatpush.bf16.msra.mxu0 %v3136_v23  ;;  %v2296_v26 = vadd.f32 %v2247_v36, %v2205_v28  ;;  %v153_v38 = vsel %vm152_vm5, %v7671_v63, %v151_v22  ;;  %v1039_v18 = vmul.f32 %v1038_v0, %v8399_v5  ;;  %v173_v4 = vrot.slane %v7634_v32, 1 }
 0x1f1   :  { %6772 = vmatmul.msk.bf16.vlgmr.msrb.gmra.mxu3 %vm615_vm0, %v7176_v53  ;;  %3987 = vrot.lane.b32.xlu2 %v8304_v6, %s10919_s17  ;;  %v155_v27 = vadd.f32 %v153_v38, %v144_v49  ;;  %vm174_vm5 = vcmask 949248  }
 0x1f2   :  { %6771 = vmatmul.msk.bf16.vlgmr.msrb.gmra.mxu2 %vm615_vm0, %v7176_v53  ;;  %v175_v36 = vsel %vm174_vm5, %v7634_v32, %v173_v4 }
 0x1f3   :  { %3985 = vrot.lane.b32.xlu1 %v8307_v19, %s10919_s17  ;;  %v8404_v28 = vpop.permute.xlu2 %3406 }
 0x1f4   :  { %3983 = vrot.lane.b32.xlu0 %v8248_v62, %s10919_s17  ;;  %v2378_v25 = vpop.f32.mrf.mxu3 }
 0x1f5   :  { %v3225_v51 = vpop.permute.xlu1 %3224  ;;  %v2386_v8 = vadd.f32 %v2378_v25, %v2295_v20  ;;  %v2364_v9 = vpop.f32.mrf.mxu2  ;;  %v164_v20 = vsel %vm163_vm6, %v7669_v61, %v162_v16  ;;  %vm10819_vm6 = vcmask 572416  }
 0x1f6   :  { %v3223_v35 = vpop.permute.xlu0 %3222  ;;  %3286 = vmatpush.bf16.msrb.mxu3 %v3225_v51  ;;  %v2385_v57 = vadd.f32 %v2364_v9, %v2294_v34  ;;  %v2350_v14 = vpop.f32.mrf.mxu1  ;;  %v184_v34 = vrot.slane %v7695_v13, 1  ;;  %v166_v23 = vadd.f32 %v164_v20, %v155_v27 }
 0x1f7   :  { %v3229_v45 = vsel %vm10820_vm15, %v3223_v35, %v3225_v51  ;;  %v2336_v43 = vpop.f32.mrf.mxu0  ;;  %v2384_v39 = vadd.f32 %v2350_v14, %v2293_v44 }
 0x1f8   :  { %3272 = vmatpush.bf16.msrb.mxu2 %v3229_v45  ;;  %v2383_v63 = vadd.f32 %v2336_v43, %v2292_v42  ;;  %v186_v0 = vsel %vm10825_vm7, %v7695_v13, %v184_v34  ;;  %v177_v9 = vadd.f32 %v175_v36, %v166_v23  ;;  %vm582_vm7 = vcmask 277504  }
 0x1f9   :  { %6770 = vmatmul.msk.bf16.vlgmr.msrb.gmra.mxu1 %vm615_vm0, %v7176_v53  ;;  %1041 = vrot.lane.b32.xlu2 %v1039_v18, %s10920_s26  ;;  %s10923_s26 = smov 39  }
 0x1fa   :  { %6769 = vmatmul.msk.bf16.vlgmr.msrb.gmra.mxu0 %vm615_vm0, %v7176_v53  ;;  %v7177_v53 = vld [vmem:[%s10659_s5 + $0x70] sm:$0xff]  ;;  %v188_v14 = vadd.f32 %v186_v0, %v177_v9 }
 0x1fb   :  { %3981 = vrot.lane.b32.xlu1 %v8342_v2, %s10919_s17  ;;  %v8420_v44 = vpop.permute.xlu2 %974 }
 0x1fc   :  { %3979 = vrot.lane.b32.xlu0 %v8298_v47, %s10919_s17  ;;  %v2380_v42 = vpop.f32.mrf.mxu3 }
 0x1fd   :  { %v8422_v58 = vpop.permute.xlu1 %952  ;;  %v2390_v61 = vadd.f32 %v2380_v42, %v2299_v54  ;;  %v2366_v22 = vpop.f32.mrf.mxu2  ;;  %v195_v54 = vrot.slane %v7693_v10, 1 }
 0x1fe   :  { %v3221_v52 = vpop.permute.xlu0 %3220  ;;  %v2389_v49 = vadd.f32 %v2366_v22, %v2298_v3  ;;  %v2352_v38 = vpop.f32.mrf.mxu1 }
 0x1ff   :  { %v3228_v25 = vsel %vm10820_vm15, %v3221_v52, %v3223_v35  ;;  %v3227_v51 = vsel %vm10820_vm15, %v8324_v31, %v3221_v52  ;;  %v2338_v18 = vpop.f32.mrf.mxu0  ;;  %v2388_v32 = vadd.f32 %v2352_v38, %v2297_v12  ;;  %v206_v31 = vrot.slane %v7645_v41, 1 }
 0x200   :  { %3258 = vmatpush.bf16.msrb.mxu1 %v3228_v25  ;;  %3244 = vmatpush.bf16.msrb.mxu0 %v3227_v51  ;;  %v2387_v16 = vadd.f32 %v2338_v18, %v2296_v26  ;;  %v197_v3 = vsel %vm10822_vm8, %v7693_v10, %v195_v54  ;;  %v217_v12 = vrot.slane %v7723_v24, 1  ;;  %v239_v51 = vrot.slane %v7655_v50, 1 }
 0x201   :  { %6782 = vmatmul.msk.bf16.vlgmr.msra.gmra.mxu3 %vm615_vm0, %v7177_v53  ;;  %4081 = vrot.lane.b32.xlu2 %v8304_v6, %s10921_s29  ;;  %v199_v45 = vadd.f32 %v197_v3, %v188_v14  ;;  %v208_v10 = vsel %vm10810_vm9, %v7645_v41, %v206_v31  ;;  %v250_v18 = vrot.slane %v7738_v37, 1  ;;  %vm317_vm9 = vcmask 719872  }
 0x202   :  { %6781 = vmatmul.msk.bf16.vlgmr.msra.gmra.mxu2 %vm615_vm0, %v7177_v53  ;;  %v219_v22 = vsel %vm10804_vm10, %v7723_v24, %v217_v12  ;;  %vm10813_vm10 = vcmask 564224   ;;  %vm10823_vm8 = vcmask 302080  }
 0x203   :  { %4079 = vrot.lane.b32.xlu1 %v8307_v19, %s10921_s29  ;;  %v8443_v13 = vpop.permute.xlu2 %3497 }
 0x204   :  { %4077 = vrot.lane.b32.xlu0 %v8248_v62, %s10921_s29  ;;  %v2469_v26 = vpop.f32.mrf.mxu3 }
 0x205   :  { %v3310_v35 = vpop.permute.xlu1 %3309  ;;  %v2477_v27 = vadd.f32 %v2469_v26, %v2386_v8  ;;  %v2455_v43 = vpop.f32.mrf.mxu2  ;;  %v3319_v8 = vsel %vm10819_vm6, %v8375_v15, %v8356_v11 }
 0x206   :  { %v3316_v4 = vpop.permute.xlu0 %3315  ;;  %v2476_v20 = vadd.f32 %v2455_v43, %v2385_v57  ;;  %v2441_v34 = vpop.f32.mrf.mxu1  ;;  %v210_v57 = vadd.f32 %v208_v10, %v199_v45  ;;  %v3318_v0 = vsel %vm10819_vm6, %v3310_v35, %v8375_v15  ;;  %v261_v35 = vrot.slane %v7736_v33, 1 }
 0x207   :  { %v3320_v23 = vsel %vm10819_vm6, %v8356_v11, %v3316_v4  ;;  %3377 = vmatpush.bf16.msra.mxu3 %v3316_v4  ;;  %v2427_v42 = vpop.f32.mrf.mxu0  ;;  %v2475_v36 = vadd.f32 %v2441_v34, %v2384_v39  ;;  %v228_v39 = vrot.slane %v7715_v21, 1  ;;  %v272_v10 = vrot.slane %v7667_v59, 1 }
 0x208   :  { %3363 = vmatpush.bf16.msra.mxu2 %v3320_v23  ;;  %v2474_v52 = vadd.f32 %v2427_v42, %v2383_v63  ;;  %v221_v41 = vadd.f32 %v219_v22, %v210_v57 }
 0x209   :  { %6780 = vmatmul.msk.bf16.vlgmr.msra.gmra.mxu1 %vm615_vm0, %v7177_v53  ;;  %4171 = vrot.lane.b32.xlu2 %v8248_v62, %s10922_s9  ;;  %v230_v9 = vsel %vm10807_vm11, %v7715_v21, %v228_v39  ;;  %v241_v21 = vsel %vm10805_vm12, %v7655_v50, %v239_v51  ;;  %vm10809_vm12 = vcmask 760832   ;;  %vm284_vm11 = vcmask 744448  }
 0x20a   :  { %6779 = vmatmul.msk.bf16.vlgmr.msra.gmra.mxu0 %vm615_vm0, %v7177_v53  ;;  %3349 = vmatpush.bf16.msra.mxu1 %v3319_v8  ;;  %v7178_v53 = vld [vmem:[%s10659_s5 + $0x78] sm:$0xff]  ;;  %v232_v31 = vadd.f32 %v230_v9, %v221_v41  ;;  %v263_v57 = vsel %vm10809_vm12, %v7736_v33, %v261_v35  ;;  %v7179_v9 = vld [vmem:[%s10659_s5 + $0x80] sm:$0xff]  ;;  %vm306_vm12 = vcmask 728064  }
 0x20b   :  { %4075 = vrot.lane.b32.xlu1 %v8342_v2, %s10921_s29  ;;  %v8469_v24 = vpop.permute.xlu2 %996  ;;  %3335 = vmatpush.bf16.msra.mxu0 %v3318_v0  ;;  %v283_v0 = vrot.slane %v7747_v48, 1 }
 0x20c   :  { %4073 = vrot.lane.b32.xlu0 %v8298_v47, %s10921_s29  ;;  %v2471_v11 = vpop.f32.mrf.mxu3 }
 0x20d   :  { %v3405_v15 = vpop.permute.xlu1 %3404  ;;  %v2481_v63 = vadd.f32 %v2471_v11, %v2390_v61  ;;  %v2457_v38 = vpop.f32.mrf.mxu2 }
 0x20e   :  { %v8471_v25 = vpop.permute.xlu0 %963  ;;  %v2480_v54 = vadd.f32 %v2457_v38, %v2389_v49  ;;  %v2443_v14 = vpop.f32.mrf.mxu1  ;;  %v3411_v26 = vsel %vm10813_vm10, %v3405_v15, %v8404_v28  ;;  %v252_v49 = vsel %vm10806_vm13, %v7738_v37, %v250_v18  ;;  %vm10808_vm13 = vcmask 752640  }
 0x20f   :  { %v2429_v3 = vpop.f32.mrf.mxu0  ;;  %v2479_v61 = vadd.f32 %v2443_v14, %v2388_v32  ;;  %v243_v32 = vadd.f32 %v241_v21, %v232_v31  ;;  %v294_v18 = vrot.slane %v7745_v46, 1  ;;  %v305_v21 = vrot.slane %v7685_v7, 1 }
 0x210   :  { %v2478_v12 = vadd.f32 %v2429_v3, %v2387_v16 }
 0x211   :  { %6792 = vmatmul.msk.bf16.vlgmr.msrb.gmra.mxu3 %vm615_vm0, %v7178_v53  ;;  %4167 = vrot.lane.b32.xlu2 %v8298_v47, %s10922_s9  ;;  %v254_v50 = vadd.f32 %v252_v49, %v243_v32  ;;  %v316_v49 = vrot.slane %v7758_v56, 1 }
 0x212   :  { %6791 = vmatmul.msk.bf16.vlgmr.msrb.gmra.mxu2 %vm615_vm0, %v7178_v53  ;;  %3468 = vmatpush.bf16.msrb.mxu3 %v8404_v28 }
 0x213   :  { %4175 = vrot.lane.b32.xlu1 %v8304_v6, %s10922_s9  ;;  %v8494_v16 = vpop.permute.xlu2 %3582  ;;  %3454 = vmatpush.bf16.msrb.mxu2 %v3411_v26 }
 0x214   :  { %4173 = vrot.lane.b32.xlu0 %v8307_v19, %s10922_s9  ;;  %v2560_v45 = vpop.f32.mrf.mxu3 }
 0x215   :  { %v3403_v43 = vpop.permute.xlu1 %3402  ;;  %v2568_v37 = vadd.f32 %v2560_v45, %v2477_v27  ;;  %v2546_v4 = vpop.f32.mrf.mxu2  ;;  %v265_v27 = vadd.f32 %v263_v57, %v254_v50  ;;  %v1048_v45 = vstv %s8523_s13  ;;  %s7457_s13 = smov 59  }
 0x216   :  { %v3401_v34 = vpop.permute.xlu0 %3400  ;;  %v8498_v23 = vadd.f32 %v2546_v4, %v2476_v20  ;;  %v2532_v42 = vpop.f32.mrf.mxu1  ;;  %v3410_v28 = vsel %vm10813_vm10, %v3403_v43, %v3405_v15  ;;  %v307_v4 = vsel %vm306_vm12, %v7685_v7, %v305_v21  ;;  %vm10811_vm12 = vcmask 547840  }
 0x217   :  { %v2518_v22 = vpop.f32.mrf.mxu0  ;;  %v8501_v8 = vadd.f32 %v2532_v42, %v2475_v36  ;;  %v3409_v20 = vsel %vm10813_vm10, %v3401_v34, %v3403_v43  ;;  %v274_v36 = vsel %vm10808_vm13, %v7667_v59, %v272_v10  ;;  %vm10812_vm13 = vcmask 556032  }
 0x218   :  { %v8506_v39 = vadd.f32 %v2518_v22, %v2474_v52  ;;  %v285_v52 = vsel %vm284_vm11, %v7747_v48, %v283_v0  ;;  %v276_v15 = vadd.f32 %v274_v36, %v265_v27  ;;  %vm295_vm11 = vcmask 736256  }
 0x219   :  { %6790 = vmatmul.msk.bf16.vlgmr.msrb.gmra.mxu1 %vm615_vm0, %v7178_v53  ;;  %4267 = vrot.lane.b32.xlu2 %v8307_v19, %s10923_s26  ;;  %v318_v34 = vsel %vm317_vm9, %v7758_v56, %v316_v49  ;;  %v327_v27 = vrot.slane %v7756_v55, 1 }
 0x21a   :  { %6789 = vmatmul.msk.bf16.vlgmr.msrb.gmra.mxu0 %vm615_vm0, %v7178_v53  ;;  %3440 = vmatpush.bf16.msrb.mxu1 %v3410_v28  ;;  %v287_v48 = vadd.f32 %v285_v52, %v276_v15  ;;  %v1049_v28 = vmul.f32 %v1048_v45, %v8399_v5 }
 0x21b   :  { %4265 = vrot.lane.b32.xlu1 %v8248_v62, %s10923_s26  ;;  %v8518_v33 = vpop.permute.xlu2 %3677  ;;  %3426 = vmatpush.bf16.msrb.mxu0 %v3409_v20 }
 0x21c   :  { %4169 = vrot.lane.b32.xlu0 %v8342_v2, %s10922_s9  ;;  %v2562_v41 = vpop.f32.mrf.mxu3 }
 0x21d   :  { %v3496_v11 = vpop.permute.xlu1 %3495  ;;  %v2572_v38 = vadd.f32 %v2562_v41, %v2481_v63  ;;  %v2548_v53 = vpop.f32.mrf.mxu2 }
 0x21e   :  { %v8525_v51 = vpop.permute.xlu0 %985  ;;  %v2571_v14 = vadd.f32 %v2548_v53, %v2480_v54  ;;  %v2534_v59 = vpop.f32.mrf.mxu1  ;;  %v3502_v63 = vsel %vm10812_vm13, %v3496_v11, %v8443_v13  ;;  %v296_v54 = vsel %vm295_vm11, %v7745_v46, %v294_v18  ;;  %vm10817_vm11 = vcmask 539648  }
 0x21f   :  { %v2520_v31 = vpop.f32.mrf.mxu0  ;;  %v2570_v3 = vadd.f32 %v2534_v59, %v2479_v61  ;;  %v298_v61 = vadd.f32 %v296_v54, %v287_v48 }
 0x220   :  { %v2569_v26 = vadd.f32 %v2520_v31, %v2478_v12 }
 0x221   :  { %6802 = vmatmul.msk.bf16.vlgmr.msra.gmra.mxu3 %vm615_vm0, %v7179_v9  ;;  %4263 = vrot.lane.b32.xlu2 %v8342_v2, %s10923_s26  ;;  %v309_v22 = vadd.f32 %v307_v4, %v298_v61 }
 0x222   :  { %6801 = vmatmul.msk.bf16.vlgmr.msra.gmra.mxu2 %vm615_vm0, %v7179_v9  ;;  %3559 = vmatpush.bf16.msra.mxu3 %v8443_v13 }
 0x223   :  { %4261 = vrot.lane.b32.xlu1 %v8298_v47, %s10923_s26  ;;  %v8544_v12 = vpop.permute.xlu2 %3675  ;;  %3545 = vmatpush.bf16.msra.mxu2 %v3502_v63  ;;  %v320_v20 = vadd.f32 %v318_v34, %v309_v22 }
 0x224   :  { %4269 = vrot.lane.b32.xlu0 %v8304_v6, %s10923_s26  ;;  %v2651_v32 = vpop.f32.mrf.mxu3 }
 0x225   :  { %v3494_v35 = vpop.permute.xlu1 %3493  ;;  %v2659_v46 = vadd.f32 %v2651_v32, %v2568_v37  ;;  %v2637_v43 = vpop.f32.mrf.mxu2 }
 0x226   :  { %v3492_v50 = vpop.permute.xlu0 %3491  ;;  %v2658_v42 = vadd.f32 %v2637_v43, %v8498_v23  ;;  %v2623_v10 = vpop.f32.mrf.mxu1  ;;  %v3501_v37 = vsel %vm10812_vm13, %v3494_v35, %v3496_v11  ;;  %v338_v23 = vrot.slane %v7707_v17, 1  ;;  %v10925_v43 = vld [vmem:[#allocation11_spill] sm:$0xff] }
 0x227   :  { %v2609_v57 = vpop.f32.mrf.mxu0  ;;  %v2657_v0 = vadd.f32 %v2623_v10, %v8501_v8  ;;  %v3500_v7 = vsel %vm10812_vm13, %v3492_v50, %v3494_v35  ;;  %v329_v8 = vsel %vm10821_vm14, %v7756_v55, %v327_v27  ;;  %v371_v35 = vrot.slane %v7734_v30, 1 }
 0x228   :  { %v2656_v13 = vadd.f32 %v2609_v57, %v8506_v39  ;;  %v349_v39 = vrot.slane %v7775_v1, 1  ;;  %v331_v41 = vadd.f32 %v329_v8, %v320_v20  ;;  %v340_v55 = vsel %vm10820_vm15, %v7707_v17, %v338_v23 }
 0x229   :  { %6800 = vmatmul.msk.bf16.vlgmr.msra.gmra.mxu1 %vm615_vm0, %v7179_v9  ;;  %4361 = vrot.lane.b32.xlu2 %v8307_v19, %s10924_s27  ;;  %v382_v50 = vrot.slane %v10925_v43, 1  ;;  %vm10842_vm15 = vcmask 318464   ;;  %vm10848_vm14 = vcmask 310272  }
 0x22a   :  { %6799 = vmatmul.msk.bf16.vlgmr.msra.gmra.mxu0 %vm615_vm0, %v7179_v9  ;;  %3531 = vmatpush.bf16.msra.mxu1 %v3501_v37  ;;  %v7180_v9 = vld [vmem:[%s10659_s5 + $0x88] sm:$0xff]  ;;  %v351_v63 = vsel %vm10819_vm6, %v7775_v1, %v349_v39  ;;  %v342_v54 = vadd.f32 %v340_v55, %v331_v41  ;;  %v10927_v37 = vld [vmem:[#allocation10_spill] sm:$0xff]  ;;  %vm10843_vm6 = vcmask 326656  }
 0x22b   :  { %4359 = vrot.lane.b32.xlu1 %v8248_v62, %s10924_s27  ;;  %v8564_v56 = vpop.permute.xlu2 %3795  ;;  %3517 = vmatpush.bf16.msra.mxu0 %v3500_v7  ;;  %v10929_v55 = vld [vmem:[#allocation14_spill] sm:$0xff] }
 0x22c   :  { %1051 = vrot.lane.b32.xlu0 %v1049_v28, %s7457_s13  ;;  %v2653_v36 = vpop.f32.mrf.mxu3  ;;  %v353_v17 = vadd.f32 %v351_v63, %v342_v54  ;;  %s10926_s13 = smov 16   ;;  %v415_v63 = vrot.slane %v10929_v55, 1 }
 0x22d   :  { %v3589_v52 = vpop.permute.xlu1 %3588  ;;  %v2663_v11 = vadd.f32 %v2653_v36, %v2572_v38  ;;  %v2639_v15 = vpop.f32.mrf.mxu2  ;;  %v7181_v36 = vld [vmem:[%s10659_s5 + $0x90] sm:$0xff] }
 0x22e   :  { %v3587_v53 = vpop.permute.xlu0 %3586  ;;  %v2662_v18 = vadd.f32 %v2639_v15, %v2571_v14  ;;  %v2625_v59 = vpop.f32.mrf.mxu1  ;;  %v360_v14 = vrot.slane %v7773_v60, 1 }
 0x22f   :  { %v2611_v48 = vpop.f32.mrf.mxu0  ;;  %v2661_v31 = vadd.f32 %v2625_v59, %v2570_v3  ;;  %v3593_v38 = vsel %vm10811_vm12, %v3587_v53, %v3589_v52 }
 0x230   :  { %v2660_v21 = vadd.f32 %v2611_v48, %v2569_v26  ;;  %v362_v45 = vsel %vm10813_vm10, %v7773_v60, %v360_v14  ;;  %v373_v60 = vsel %vm10812_vm13, %v7734_v30, %v371_v35  ;;  %vm10814_vm13 = vcmask 523264  }
 0x231   :  { %6812 = vmatmul.msk.bf16.vlgmr.msrb.gmra.mxu3 %vm615_vm0, %v7180_v9  ;;  %4357 = vrot.lane.b32.xlu2 %v8342_v2, %s10924_s27  ;;  %v364_v10 = vadd.f32 %v362_v45, %v353_v17  ;;  %v417_v54 = vsel %vm10814_vm13, %v10929_v55, %v415_v63  ;;  %v10931_v45 = vld [vmem:[#allocation13_spill] sm:$0xff]  ;;  %vm428_vm10 = vcmask 515072   ;;  %vm439_vm13 = vcmask 506880   ;;  %v10934_v63 = vld [vmem:[#allocation16_spill] sm:$0xff] }
 0x232   :  { %6811 = vmatmul.msk.bf16.vlgmr.msrb.gmra.mxu2 %vm615_vm0, %v7180_v9  ;;  %3650 = vmatpush.bf16.msrb.mxu3 %v3589_v52 }
 0x233   :  { %4355 = vrot.lane.b32.xlu1 %v8298_v47, %s10924_s27  ;;  %v8587_v1 = vpop.permute.xlu2 %3791  ;;  %3636 = vmatpush.bf16.msrb.mxu2 %v3593_v38 }
 0x234   :  { %4363 = vrot.lane.b32.xlu0 %v8304_v6, %s10924_s27  ;;  %v2742_v3 = vpop.f32.mrf.mxu3 }
 0x235   :  { %v8589_v26 = vpop.permute.xlu1 %1007  ;;  %v2750_v49 = vadd.f32 %v2742_v3, %v2659_v46  ;;  %v2728_v61 = vpop.f32.mrf.mxu2 }
 0x236   :  { %v3585_v32 = vpop.permute.xlu0 %3584  ;;  %v2749_v4 = vadd.f32 %v2728_v61, %v2658_v42  ;;  %v2714_v34 = vpop.f32.mrf.mxu1  ;;  %v384_v42 = vsel %vm10811_vm12, %v10925_v43, %v382_v50  ;;  %v427_v43 = vrot.slane %v10931_v45, 1 }
 0x237   :  { %v2700_v22 = vpop.f32.mrf.mxu0  ;;  %v2748_v57 = vadd.f32 %v2714_v34, %v2657_v0  ;;  %v3592_v27 = vsel %vm10811_vm12, %v3585_v32, %v3587_v53  ;;  %v3591_v46 = vsel %vm10811_vm12, %v8494_v16, %v3585_v32  ;;  %v375_v0 = vadd.f32 %v373_v60, %v364_v10 }
 0x238   :  { %v2747_v28 = vadd.f32 %v2700_v22, %v2656_v13  ;;  %v393_v16 = vrot.slane %v10927_v37, 1  ;;  %vm10815_vm12 = vcmask 531456  }
 0x239   :  { %6810 = vmatmul.msk.bf16.vlgmr.msrb.gmra.mxu1 %vm615_vm0, %v7180_v9  ;;  %4457 = vrot.lane.b32.xlu2 %v8304_v6, %s10926_s13  ;;  %v386_v30 = vadd.f32 %v384_v42, %v375_v0  ;;  %v429_v0 = vsel %vm428_vm10, %v10931_v45, %v427_v43  ;;  %vm10818_vm10 = vcmask 359424  }
 0x23a   :  { %6809 = vmatmul.msk.bf16.vlgmr.msrb.gmra.mxu0 %vm615_vm0, %v7180_v9  ;;  %3622 = vmatpush.bf16.msrb.mxu1 %v3592_v27  ;;  %v10928_v9 = vld [vmem:[#allocation6_spill] sm:$0xff]  ;;  %v395_v48 = vsel %vm10817_vm11, %v10927_v37, %v393_v16 }
 0x23b   :  { %4455 = vrot.lane.b32.xlu1 %v8307_v19, %s10926_s13  ;;  %v8610_v13 = vpop.permute.xlu2 %3891  ;;  %3608 = vmatpush.bf16.msrb.mxu0 %v3591_v46  ;;  %v404_v59 = vrot.slane %v10928_v9, 1  ;;  %v397_v38 = vadd.f32 %v395_v48, %v386_v30 }
 0x23c   :  { %4453 = vrot.lane.b32.xlu0 %v8248_v62, %s10926_s13  ;;  %v2744_v20 = vpop.f32.mrf.mxu3 }
 0x23d   :  { %v3674_v7 = vpop.permute.xlu1 %3673  ;;  %v2754_v23 = vadd.f32 %v2744_v20, %v2663_v11  ;;  %v2730_v8 = vpop.f32.mrf.mxu2 }
 0x23e   :  { %v3680_v39 = vpop.permute.xlu0 %3679  ;;  %v8616_v52 = vadd.f32 %v2730_v8, %v2662_v18  ;;  %v2716_v41 = vpop.f32.mrf.mxu1  ;;  %v3682_v60 = vsel %vm10817_vm11, %v3674_v7, %v8544_v12 }
 0x23f   :  { %v2702_v15 = vpop.f32.mrf.mxu0  ;;  %v8618_v53 = vadd.f32 %v2716_v41, %v2661_v31  ;;  %v3684_v18 = vsel %vm10817_vm11, %v8518_v33, %v3680_v39 }
 0x240   :  { %v8624_v11 = vadd.f32 %v2702_v15, %v2660_v21  ;;  %v406_v21 = vsel %vm10815_vm12, %v10928_v9, %v404_v59  ;;  %vm450_vm12 = vcmask 498688  }
 0x241   :  { %6822 = vmatmul.msk.bf16.vlgmr.msra.gmra.mxu3 %vm615_vm0, %v7181_v36  ;;  %4547 = vrot.lane.b32.xlu2 %v8248_v62, %s10930_s16  ;;  %v408_v3 = vadd.f32 %v406_v21, %v397_v38  ;;  %v460_v38 = vrot.slane %v10934_v63, 1 }
 0x242   :  { %6821 = vmatmul.msk.bf16.vlgmr.msra.gmra.mxu2 %vm615_vm0, %v7181_v36  ;;  %3741 = vmatpush.bf16.msra.mxu3 %v3680_v39  ;;  %v7182_v39 = vld [vmem:[%s10659_s5 + $0x98] sm:$0xff] }
 0x243   :  { %4451 = vrot.lane.b32.xlu1 %v8342_v2, %s10926_s13  ;;  %v8636_v31 = vpop.permute.xlu2 %3887  ;;  %3727 = vmatpush.bf16.msra.mxu2 %v3684_v18  ;;  %v419_v10 = vadd.f32 %v417_v54, %v408_v3 }
 0x244   :  { %4449 = vrot.lane.b32.xlu0 %v8298_v47, %s10926_s13  ;;  %v2833_v14 = vpop.f32.mrf.mxu3  ;;  %s8993_s13 = sld [smem:[#allocation3 + $0x60]] }
 0x245   :  { %v8644_v17 = vpop.permute.xlu1 %1029  ;;  %v8646_v61 = vadd.f32 %v2833_v14, %v2750_v49  ;;  %v2819_v32 = vpop.f32.mrf.mxu2  ;;  %v3683_v49 = vsel %vm10817_vm11, %v8544_v12, %v8518_v33  ;;  %v431_v33 = vadd.f32 %v429_v0, %v419_v10  ;;  %vm10827_vm11 = vcmask 343040  }
 0x246   :  { %v8648_v35 = vpop.permute.xlu0 %1018  ;;  %v8651_v50 = vadd.f32 %v2819_v32, %v2749_v4  ;;  %v2805_v34 = vpop.f32.mrf.mxu1  ;;  %v10932_v4 = vld [vmem:[#allocation7_spill] sm:$0xff]  ;;  %v10937_v32 = vld [vmem:[#allocation20_spill] sm:$0xff] }
 0x247   :  { %v2791_v22 = vpop.f32.mrf.mxu0  ;;  %v2839_v27 = vadd.f32 %v2805_v34, %v2748_v57  ;;  %v438_v42 = vrot.slane %v10932_v4, 1  ;;  %v10933_v57 = vld [vmem:[#allocation17_spill] sm:$0xff]  ;;  %v482_v45 = vrot.slane %v10937_v32, 1 }
 0x248   :  { %v8653_v46 = vadd.f32 %v2791_v22, %v2747_v28  ;;  %v449_v37 = vrot.slane %v10933_v57, 1  ;;  %v1059_v28 = vstv %s8638_s25  ;;  %s7458_s25 = smov 58  }
 0x249   :  { %6820 = vmatmul.msk.bf16.vlgmr.msra.gmra.mxu1 %vm615_vm0, %v7181_v36  ;;  %4543 = vrot.lane.b32.xlu2 %v8298_v47, %s10930_s16  ;;  %v1060_v59 = vmul.f32 %v1059_v28, %v8399_v5 }
 0x24a   :  { %6819 = vmatmul.msk.bf16.vlgmr.msra.gmra.mxu0 %vm615_vm0, %v7181_v36  ;;  %3713 = vmatpush.bf16.msra.mxu1 %v3683_v49  ;;  %v440_v36 = vsel %vm439_vm13, %v10932_v4, %v438_v42  ;;  %v451_v41 = vsel %vm450_vm12, %v10933_v57, %v449_v37  ;;  %vm461_vm13 = vcmask 490496   ;;  %vm10824_vm12 = vcmask 351232  }
 0x24b   :  { %4551 = vrot.lane.b32.xlu1 %v8304_v6, %s10930_s16  ;;  %v8671_v12 = vpop.permute.xlu2 %3987  ;;  %3699 = vmatpush.bf16.msra.mxu0 %v3682_v60  ;;  %v442_v48 = vadd.f32 %v440_v36, %v431_v33  ;;  %v462_v3 = vsel %vm461_vm13, %v10934_v63, %v460_v38  ;;  %v484_v33 = vsel %vm10824_vm12, %v10937_v32, %v482_v45 }
 0x24c   :  { %4549 = vrot.lane.b32.xlu0 %v8307_v19, %s10930_s16  ;;  %v2835_v16 = vpop.f32.mrf.mxu3 }
 0x24d   :  { %v3800_v20 = vpop.permute.xlu1 %3799  ;;  %v2845_v7 = vadd.f32 %v2835_v16, %v2754_v23  ;;  %v2821_v30 = vpop.f32.mrf.mxu2  ;;  %v453_v54 = vadd.f32 %v451_v41, %v442_v48 }
 0x24e   :  { %v3798_v8 = vpop.permute.xlu0 %3797  ;;  %v2844_v15 = vadd.f32 %v2821_v30, %v8616_v52  ;;  %v2807_v9 = vpop.f32.mrf.mxu1 }
 0x24f   :  { %v2793_v55 = vpop.f32.mrf.mxu0  ;;  %v2843_v23 = vadd.f32 %v2807_v9, %v8618_v53  ;;  %v3804_v21 = vsel %vm10818_vm10, %v8564_v56, %v3798_v8  ;;  %v3805_v52 = vsel %vm10818_vm10, %v3798_v8, %v3800_v20  ;;  %v464_v10 = vadd.f32 %v462_v3, %v453_v54  ;;  %v10939_v9 = vld [vmem:[#allocation9_spill] sm:$0xff] }
 0x250   :  { %v2842_v18 = vadd.f32 %v2793_v55, %v8624_v11  ;;  %v10936_v11 = vld [vmem:[#allocation8_spill] sm:$0xff]  ;;  %v10940_v55 = vld [vmem:[#allocation23_spill] sm:$0xff] }
 0x251   :  { %6832 = vmatmul.msk.bf16.vlgmr.msrb.gmra.mxu3 %vm615_vm0, %v7182_v39  ;;  %4641 = vrot.lane.b32.xlu2 %v8248_v62, %s10935_s22  ;;  %v471_v14 = vrot.slane %v10936_v11, 1  ;;  %v515_v63 = vrot.slane %v10940_v55, 1 }
 0x252   :  { %6831 = vmatmul.msk.bf16.vlgmr.msrb.gmra.mxu2 %vm615_vm0, %v7182_v39  ;;  %3862 = vmatpush.bf16.msrb.mxu3 %v3805_v52 }
 0x253   :  { %1062 = vrot.lane.b32.xlu1 %v1060_v59, %s7458_s25  ;;  %v8693_v53 = vpop.permute.xlu2 %1041  ;;  %3848 = vmatpush.bf16.msrb.mxu2 %v3804_v21  ;;  %v473_v37 = vsel %vm10818_vm10, %v10936_v11, %v471_v14  ;;  %v504_v59 = vrot.slane %v10939_v9, 1  ;;  %s10941_s25 = smov 13   ;;  %v517_v32 = vsel %vm10843_vm6, %v10940_v55, %v515_v63  ;;  %v7184_v55 = vld [vmem:[%s10659_s5 + $0xa8] sm:$0xff]  ;;  %v10945_v63 = vld [vmem:[#allocation25_spill] sm:$0xff] }
 0x254   :  { %4545 = vrot.lane.b32.xlu0 %v8342_v2, %s10930_s16  ;;  %v2924_v43 = vpop.f32.mrf.mxu3  ;;  %v475_v20 = vadd.f32 %v473_v37, %v464_v10  ;;  %s7467_s16 = smov 49  }
 0x255   :  { %v8699_v34 = vpop.permute.xlu1 %3889  ;;  %v2932_v22 = vadd.f32 %v2924_v43, %v8646_v61  ;;  %v2910_v49 = vpop.f32.mrf.mxu2 }
 0x256   :  { %v3794_v60 = vpop.permute.xlu0 %3793  ;;  %v2931_v4 = vadd.f32 %v2910_v49, %v8651_v50  ;;  %v2896_v42 = vpop.f32.mrf.mxu1  ;;  %v10938_v50 = vld [vmem:[#allocation19_spill] sm:$0xff]  ;;  %v3898_v14 = vsel %vm10824_vm12, %v8699_v34, %v8610_v13 }
 0x257   :  { %v2882_v0 = vpop.f32.mrf.mxu0  ;;  %v2930_v57 = vadd.f32 %v2896_v42, %v2839_v27  ;;  %v3803_v16 = vsel %vm10818_vm10, %v3794_v60, %v8564_v56  ;;  %v3802_v61 = vsel %vm10818_vm10, %v8587_v1, %v3794_v60  ;;  %v493_v27 = vrot.slane %v10938_v50, 1 }
 0x258   :  { %v2929_v28 = vadd.f32 %v2882_v0, %v8653_v46  ;;  %v486_v46 = vadd.f32 %v484_v33, %v475_v20  ;;  %vm10828_vm10 = vcmask 334848  }
 0x259   :  { %6830 = vmatmul.msk.bf16.vlgmr.msrb.gmra.mxu1 %vm615_vm0, %v7182_v39  ;;  %4637 = vrot.lane.b32.xlu2 %v8298_v47, %s10935_s22  ;;  %v495_v48 = vsel %vm10827_vm11, %v10938_v50, %v493_v27 }
 0x25a   :  { %6829 = vmatmul.msk.bf16.vlgmr.msrb.gmra.mxu0 %vm615_vm0, %v7182_v39  ;;  %3834 = vmatpush.bf16.msrb.mxu1 %v3803_v16  ;;  %v7183_v39 = vld [vmem:[%s10659_s5 + $0xa0] sm:$0xff]  ;;  %v497_v54 = vadd.f32 %v495_v48, %v486_v46  ;;  %v10943_v16 = vld [vmem:[#allocation12_spill] sm:$0xff] }
 0x25b   :  { %4645 = vrot.lane.b32.xlu1 %v8304_v6, %s10935_s22  ;;  %v8721_v56 = vpop.permute.xlu2 %4081  ;;  %3820 = vmatpush.bf16.msrb.mxu0 %v3802_v61  ;;  %v537_v20 = vrot.slane %v10943_v16, 1  ;;  %v10944_v46 = vld [vmem:[#allocation26_spill] sm:$0xff] }
 0x25c   :  { %4643 = vrot.lane.b32.xlu0 %v8307_v19, %s10935_s22  ;;  %v2926_v30 = vpop.f32.mrf.mxu3 }
 0x25d   :  { %v3886_v8 = vpop.permute.xlu1 %3885  ;;  %v8723_v36 = vadd.f32 %v2926_v30, %v2845_v7  ;;  %v2912_v1 = vpop.f32.mrf.mxu2  ;;  %v548_v30 = vrot.slane %v10944_v46, 1 }
 0x25e   :  { %v3894_v41 = vpop.permute.xlu0 %3893  ;;  %v2935_v38 = vadd.f32 %v2912_v1, %v2844_v15  ;;  %v2898_v21 = vpop.f32.mrf.mxu1  ;;  %v506_v15 = vsel %vm10828_vm10, %v10939_v9, %v504_v59 }
 0x25f   :  { %v2884_v7 = vpop.f32.mrf.mxu0  ;;  %v2934_v52 = vadd.f32 %v2898_v21, %v2843_v23  ;;  %v3899_v3 = vsel %vm10824_vm12, %v8610_v13, %v3894_v41  ;;  %v508_v23 = vadd.f32 %v506_v15, %v497_v54  ;;  %v3896_v41 = vsel %vm10824_vm12, %v3886_v8, %v8636_v31 }
 0x260   :  { %v2933_v11 = vadd.f32 %v2884_v7, %v2842_v18  ;;  %v10942_v18 = vld [vmem:[#allocation22_spill] sm:$0xff]  ;;  %v559_v21 = vrot.slane %v10945_v63, 1 }
 0x261   :  { %6842 = vmatmul.msk.bf16.vlgmr.msra.gmra.mxu3 %vm615_vm0, %v7183_v39  ;;  %4737 = vrot.lane.b32.xlu2 %v8307_v19, %s10941_s25  ;;  %v526_v45 = vrot.slane %v10942_v18, 1  ;;  %v519_v49 = vadd.f32 %v517_v32, %v508_v23  ;;  %v10947_v23 = vld [vmem:[#allocation15_spill] sm:$0xff] }
 0x262   :  { %6841 = vmatmul.msk.bf16.vlgmr.msra.gmra.mxu2 %vm615_vm0, %v7183_v39  ;;  %3956 = vmatpush.bf16.msra.mxu3 %v3899_v3 }
 0x263   :  { %4735 = vrot.lane.b32.xlu1 %v8248_v62, %s10941_s25  ;;  %v8749_v13 = vpop.permute.xlu2 %4171  ;;  %3942 = vmatpush.bf16.msra.mxu2 %v3898_v14  ;;  %v528_v27 = vsel %vm10842_vm15, %v10942_v18, %v526_v45  ;;  %v570_v18 = vrot.slane %v10947_v23, 1 }
 0x264   :  { %4639 = vrot.lane.b32.xlu0 %v8342_v2, %s10935_s22  ;;  %v3015_v43 = vpop.f32.mrf.mxu3  ;;  %s8775_s22 = sld [smem:[#allocation3 + $0x5e]] }
 0x265   :  { %v3986_v10 = vpop.permute.xlu1 %3985  ;;  %v3023_v60 = vadd.f32 %v3015_v43, %v2932_v22  ;;  %v3001_v42 = vpop.f32.mrf.mxu2  ;;  %v3897_v22 = vsel %vm10824_vm12, %v8636_v31, %v8699_v34  ;;  %v539_v31 = vsel %vm10848_vm14, %v10943_v16, %v537_v20  ;;  %v10948_v43 = vld [vmem:[#allocation28_spill] sm:$0xff]  ;;  %vm571_vm12 = vcmask 285696  }
 0x266   :  { %v8752_v0 = vpop.permute.xlu0 %3983  ;;  %v8754_v37 = vadd.f32 %v3001_v42, %v2931_v4  ;;  %v2987_v33 = vpop.f32.mrf.mxu1  ;;  %v530_v4 = vadd.f32 %v528_v27, %v519_v49  ;;  %v572_v27 = vsel %vm571_vm12, %v10947_v23, %v570_v18  ;;  %vm637_vm12 = vcmask 113664  }
 0x267   :  { %v2973_v61 = vpop.f32.mrf.mxu0  ;;  %v8757_v50 = vadd.f32 %v2987_v33, %v2930_v57  ;;  %v550_v57 = vsel %vm10823_vm8, %v10944_v46, %v548_v30  ;;  %vm10826_vm8 = vcmask 293888  }
 0x268   :  { %v8762_v1 = vadd.f32 %v2973_v61, %v2929_v28  ;;  %v561_v45 = vsel %vm10826_vm8, %v10945_v63, %v559_v21  ;;  %vm593_vm8 = vcmask 269312  }
 0x269   :  { %6840 = vmatmul.msk.bf16.vlgmr.msra.gmra.mxu1 %vm615_vm0, %v7183_v39  ;;  %4733 = vrot.lane.b32.xlu2 %v8342_v2, %s10941_s25 }
 0x26a   :  { %6839 = vmatmul.msk.bf16.vlgmr.msra.gmra.mxu0 %vm615_vm0, %v7183_v39  ;;  %3928 = vmatpush.bf16.msra.mxu1 %v3897_v22  ;;  %v541_v39 = vadd.f32 %v539_v31, %v530_v4 }
 0x26b   :  { %4731 = vrot.lane.b32.xlu1 %v8298_v47, %s10941_s25  ;;  %v8779_v34 = vpop.permute.xlu2 %4167  ;;  %3914 = vmatpush.bf16.msra.mxu0 %v3896_v41 }
 0x26c   :  { %4739 = vrot.lane.b32.xlu0 %v8304_v6, %s10941_s25  ;;  %v3017_v28 = vpop.f32.mrf.mxu3  ;;  %v552_v14 = vadd.f32 %v550_v57, %v541_v39  ;;  %s10946_s25 = smov 12   ;;  %v10949_v57 = vld [vmem:[#allocation27_spill] sm:$0xff] }
 0x26d   :  { %v3982_v8 = vpop.permute.xlu1 %3981  ;;  %v8786_v9 = vadd.f32 %v3017_v28, %v8723_v36  ;;  %v3003_v59 = vpop.f32.mrf.mxu2  ;;  %v3992_v36 = vsel %vm10827_vm11, %v8752_v0, %v3986_v10  ;;  %v592_v28 = vrot.slane %v10949_v57, 1 }
 0x26e   :  { %v3980_v48 = vpop.permute.xlu0 %3979  ;;  %v8792_v54 = vadd.f32 %v3003_v59, %v2935_v38  ;;  %v2989_v7 = vpop.f32.mrf.mxu1  ;;  %v3993_v38 = vsel %vm10827_vm11, %v3986_v10, %v8671_v12  ;;  %v563_v49 = vadd.f32 %v561_v45, %v552_v14  ;;  %v3991_v39 = vsel %vm10827_vm11, %v3982_v8, %v8752_v0  ;;  %v10950_v0 = vld [vmem:[#allocation18_spill] sm:$0xff] }
 0x26f   :  { %v2975_v3 = vpop.f32.mrf.mxu0  ;;  %v3025_v15 = vadd.f32 %v2989_v7, %v2934_v52  ;;  %v581_v52 = vrot.slane %v10948_v43, 1  ;;  %v3990_v59 = vsel %vm10827_vm11, %v3980_v48, %v3982_v8  ;;  %v10951_v8 = vld [vmem:[#allocation31_spill] sm:$0xff]  ;;  %vm648_vm11 = vcmask 105472  }
 0x270   :  { %v8794_v32 = vadd.f32 %v2975_v3, %v2933_v11  ;;  %v1070_v11 = vstv %s8775_s22  ;;  %v574_v4 = vadd.f32 %v572_v27, %v563_v49  ;;  %s7459_s22 = smov 57   ;;  %v614_v48 = vrot.slane %v10951_v8, 1 }
 0x271   :  { %6872 = vmatmul.msk.bf16.vlgmr.msrb.gmra.mxu3 %vm615_vm0, %v7184_v55  ;;  %4833 = vrot.lane.b32.xlu2 %v8304_v6, %s10946_s25  ;;  %v1071_v61 = vmul.f32 %v1070_v11, %v8399_v5  ;;  %v583_v46 = vsel %vm582_vm7, %v10948_v43, %v581_v52  ;;  %vm10845_vm7 = vcmask 261120  }
 0x272   :  { %6871 = vmatmul.msk.bf16.vlgmr.msrb.gmra.mxu2 %vm615_vm0, %v7184_v55  ;;  %4050 = vmatpush.bf16.msrb.mxu3 %v3993_v38  ;;  %v585_v5 = vadd.f32 %v583_v46, %v574_v4  ;;  %v616_v52 = vsel %vm615_vm0, %v10951_v8, %v614_v48 }
 0x273   :  { %4831 = vrot.lane.b32.xlu1 %v8307_v19, %s10946_s25  ;;  %v8813_v12 = vpop.permute.xlu2 %4267  ;;  %4036 = vmatpush.bf16.msrb.mxu2 %v3992_v36  ;;  %v7190_v36 = vld [vmem:[%s10659_s5 + $0xb0] sm:$0xff] }
 0x274   :  { %4829 = vrot.lane.b32.xlu0 %v8248_v62, %s10946_s25  ;;  %v3106_v10 = vpop.f32.mrf.mxu3 }
 0x275   :  { %v4080_v42 = vpop.permute.xlu1 %4079  ;;  %v3114_v33 = vadd.f32 %v3106_v10, %v3023_v60  ;;  %v3092_v16 = vpop.f32.mrf.mxu2 }
 0x276   :  { %v8815_v20 = vpop.permute.xlu0 %4077  ;;  %v3113_v30 = vadd.f32 %v3092_v16, %v8754_v37  ;;  %v3078_v22 = vpop.f32.mrf.mxu1 }
 0x277   :  { %v3064_v41 = vpop.f32.mrf.mxu0  ;;  %v3112_v31 = vadd.f32 %v3078_v22, %v8757_v50  ;;  %v603_v50 = vrot.slane %v10950_v0, 1  ;;  %v10954_v22 = vld [vmem:[#allocation21_spill] sm:$0xff] }
 0x278   :  { %v3111_v60 = vadd.f32 %v3064_v41, %v8762_v1  ;;  %v594_v1 = vsel %vm593_vm8, %v10949_v57, %v592_v28  ;;  %vm626_vm8 = vcmask 121856   ;;  %v636_v4 = vrot.slane %v10954_v22, 1  ;;  %v10955_v57 = vld [vmem:[#allocation34_spill] sm:$0xff] }
 0x279   :  { %6870 = vmatmul.msk.bf16.vlgmr.msrb.gmra.mxu1 %vm615_vm0, %v7184_v55  ;;  %1073 = vrot.lane.b32.xlu2 %v1071_v61, %s7459_s22  ;;  %v605_v43 = vsel %vm10845_vm7, %v10950_v0, %v603_v50  ;;  %v647_v28 = vrot.slane %v10955_v57, 1  ;;  %s10956_s22 = smov 10   ;;  %vm813_vm7 = vcmask 908288  }
 0x27a   :  { %6869 = vmatmul.msk.bf16.vlgmr.msrb.gmra.mxu0 %vm615_vm0, %v7184_v55  ;;  %4022 = vmatpush.bf16.msrb.mxu1 %v3991_v39  ;;  %v596_v55 = vadd.f32 %v594_v1, %v585_v5 }
 0x27b   :  { %4827 = vrot.lane.b32.xlu1 %v8342_v2, %s10946_s25  ;;  %v8833_v37 = vpop.permute.xlu2 %4263  ;;  %4008 = vmatpush.bf16.msrb.mxu0 %v3990_v59  ;;  %v649_v48 = vsel %vm648_vm11, %v10955_v57, %v647_v28 }
 0x27c   :  { %4825 = vrot.lane.b32.xlu0 %v8298_v47, %s10946_s25  ;;  %v3108_v63 = vpop.f32.mrf.mxu3  ;;  %v607_v49 = vadd.f32 %v605_v43, %v596_v55  ;;  %s10952_s25 = smov 11  }
 0x27d   :  { %v4076_v21 = vpop.permute.xlu1 %4075  ;;  %v3118_v7 = vadd.f32 %v3108_v63, %v8786_v9  ;;  %v3094_v14 = vpop.f32.mrf.mxu2  ;;  %v4086_v9 = vsel %vm10828_vm10, %v8815_v20, %v4080_v42 }
 0x27e   :  { %v4074_v3 = vpop.permute.xlu0 %4073  ;;  %v3117_v38 = vadd.f32 %v3094_v14, %v8792_v54  ;;  %v3080_v23 = vpop.f32.mrf.mxu1  ;;  %v4087_v54 = vsel %vm10828_vm10, %v4080_v42, %v8721_v56  ;;  %v4085_v1 = vsel %vm10828_vm10, %v4076_v21, %v8815_v20 }
 0x27f   :  { %v3066_v18 = vpop.f32.mrf.mxu0  ;;  %v3116_v45 = vadd.f32 %v3080_v23, %v3025_v15  ;;  %v10953_v15 = vld [vmem:[#allocation30_spill] sm:$0xff]  ;;  %v4084_v8 = vsel %vm10828_vm10, %v4074_v3, %v4076_v21  ;;  %vm659_vm10 = vcmask 97280   ;;  %v7191_v23 = vld [vmem:[%s10659_s5 + $0xb8] sm:$0xff] }
 0x280   :  { %v3115_v11 = vadd.f32 %v3066_v18, %v8794_v32  ;;  %v625_v10 = vrot.slane %v10953_v15, 1  ;;  %v618_v32 = vadd.f32 %v616_v52, %v607_v49  ;;  %v10958_v52 = vld [vmem:[#allocation24_spill] sm:$0xff] }
 0x281   :  { %6882 = vmatmul.msk.bf16.vlgmr.msra.gmra.mxu3 %vm615_vm0, %v7190_v36  ;;  %4927 = vrot.lane.b32.xlu2 %v8304_v6, %s10952_s25 }
 0x282   :  { %6881 = vmatmul.msk.bf16.vlgmr.msra.gmra.mxu2 %vm615_vm0, %v7190_v36  ;;  %4144 = vmatpush.bf16.msra.mxu3 %v4087_v54  ;;  %v627_v41 = vsel %vm626_vm8, %v10953_v15, %v625_v10  ;;  %v10959_v10 = vld [vmem:[#allocation35_spill] sm:$0xff] }
 0x283   :  { %4925 = vrot.lane.b32.xlu1 %v8307_v19, %s10952_s25  ;;  %v8861_v16 = vpop.permute.xlu2 %4361  ;;  %4130 = vmatpush.bf16.msra.mxu2 %v4086_v9  ;;  %v629_v59 = vadd.f32 %v627_v41, %v618_v32  ;;  %v669_v9 = vrot.slane %v10958_v52, 1 }
 0x284   :  { %4923 = vrot.lane.b32.xlu0 %v8248_v62, %s10952_s25  ;;  %v3197_v61 = vpop.f32.mrf.mxu3 }
 0x285   :  { %v4176_v27 = vpop.permute.xlu1 %4175  ;;  %v8863_v46 = vadd.f32 %v3197_v61, %v3114_v33  ;;  %v3183_v56 = vpop.f32.mrf.mxu2 }
 0x286   :  { %v4174_v42 = vpop.permute.xlu0 %4173  ;;  %v8869_v39 = vadd.f32 %v3183_v56, %v3113_v30  ;;  %v3169_v5 = vpop.f32.mrf.mxu1  ;;  %v638_v30 = vsel %vm637_vm12, %v10954_v22, %v636_v4  ;;  %v10960_v22 = vld [vmem:[#allocation29_spill] sm:$0xff] }
 0x287   :  { %v3155_v0 = vpop.f32.mrf.mxu0  ;;  %v8871_v50 = vadd.f32 %v3169_v5, %v3112_v31  ;;  %v640_v31 = vadd.f32 %v638_v30, %v629_v59  ;;  %v4180_v61 = vsel %vm10843_vm6, %v8749_v13, %v4174_v42  ;;  %v691_v4 = vrot.slane %v10960_v22, 1 }
 0x288   :  { %v8873_v33 = vadd.f32 %v3155_v0, %v3111_v60  ;;  %v10957_v60 = vld [vmem:[#allocation33_spill] sm:$0xff] }
 0x289   :  { %6880 = vmatmul.msk.bf16.vlgmr.msra.gmra.mxu1 %vm615_vm0, %v7190_v36  ;;  %5017 = vrot.lane.b32.xlu2 %v8248_v62, %s10956_s22  ;;  %v658_v62 = vrot.slane %v10957_v60, 1  ;;  %v651_v55 = vadd.f32 %v649_v48, %v640_v31 }
 0x28a   :  { %6879 = vmatmul.msk.bf16.vlgmr.msra.gmra.mxu0 %vm615_vm0, %v7190_v36  ;;  %4116 = vmatpush.bf16.msra.mxu1 %v4085_v1 }
 0x28b   :  { %4921 = vrot.lane.b32.xlu1 %v8342_v2, %s10952_s25  ;;  %v8890_v20 = vpop.permute.xlu2 %4357  ;;  %4102 = vmatpush.bf16.msra.mxu0 %v4084_v8  ;;  %v660_v15 = vsel %vm659_vm10, %v10957_v60, %v658_v62  ;;  %v10961_v8 = vld [vmem:[#allocation37_spill] sm:$0xff] }
 0x28c   :  { %4919 = vrot.lane.b32.xlu0 %v8298_v47, %s10952_s25  ;;  %v3199_v63 = vpop.f32.mrf.mxu3  ;;  %v662_v56 = vadd.f32 %v660_v15, %v651_v55  ;;  %v702_v30 = vrot.slane %v10961_v8, 1  ;;  %s7461_s25 = smov 55  }
 0x28d   :  { %v8893_v21 = vpop.permute.xlu1 %4265  ;;  %v8895_v14 = vadd.f32 %v3199_v63, %v3118_v7  ;;  %v3185_v3 = vpop.f32.mrf.mxu2  ;;  %v680_v7 = vrot.slane %v10959_v10, 1 }
 0x28e   :  { %v4170_v36 = vpop.permute.xlu0 %4169  ;;  %v8900_v18 = vadd.f32 %v3185_v3, %v3117_v38  ;;  %v3171_v43 = vpop.f32.mrf.mxu1  ;;  %v4181_v38 = vsel %vm10843_vm6, %v4174_v42, %v4176_v27  ;;  %v7019_v27 = vld [vmem:[%s10658_s4 + $0xc] sm:$0xf]  ;;  %v671_v42 = vsel %vm670_vm4, %v10958_v52, %v669_v9  ;;  %v10963_v52 = vld [vmem:[#allocation36_spill] sm:$0xff] }
 0x28f   :  { %v3157_v49 = vpop.f32.mrf.mxu0  ;;  %v8903_v54 = vadd.f32 %v3171_v43, %v3116_v45  ;;  %v7205_v45 = vld [vmem:[%s10658_s4 + $0x10] sm:$0xf]  ;;  %v682_v41 = vsel %vm681_vm3, %v10959_v10, %v680_v7  ;;  %v673_v28 = vadd.f32 %v671_v42, %v662_v56  ;;  %v4179_v43 = vsel %vm10843_vm6, %v4170_v36, %v8749_v13  ;;  %v7011_v10 = vld [vmem:[%s10658_s4 + $0x4] sm:$0xf] }
 0x290   :  { %v8908_v32 = vadd.f32 %v3157_v49, %v3115_v11  ;;  %v7021_v11 = vld [vmem:[%s10658_s4 + $0x20] sm:$0xf0]  ;;  %v713_v9 = vrot.slane %v10963_v52, 1 }
 0x291   :  { %6892 = vmatmul.msk.bf16.vlgmr.msrb.gmra.mxu3 %vm615_vm0, %v7191_v23  ;;  %5013 = vrot.lane.b32.xlu2 %v8298_v47, %s10956_s22  ;;  %v8947_v1 = vor.u32 %v7205_v45, %v7021_v11  ;;  %v684_v62 = vadd.f32 %v682_v41, %v673_v28  ;;  %v7192_v45 = vld [vmem:[%s10659_s5 + $0xc0] sm:$0xff] }
 0x292   :  { %6891 = vmatmul.msk.bf16.vlgmr.msrb.gmra.mxu2 %vm615_vm0, %v7191_v23  ;;  %4238 = vmatpush.bf16.msrb.mxu3 %v4181_v38  ;;  %v9006_v11 = vld [vmem:[%s10656_s2 + $0x1] sm:$0x1f] }
 0x293   :  { %5021 = vrot.lane.b32.xlu1 %v8304_v6, %s10956_s22  ;;  %v8929_v47 = vpop.permute.xlu2 %4457  ;;  %v7207_v6 = vld [vmem:[%s10658_s4 + $0x1c] sm:$0xf0]  ;;  %4224 = vmatpush.bf16.msrb.mxu2 %v4180_v61 }
 0x294   :  { %5019 = vrot.lane.b32.xlu0 %v8307_v19, %s10956_s22  ;;  %v3288_v19 = vpop.f32.mrf.mxu3  ;;  %v8953_v60 = vor.u32 %v7207_v6, %v7019_v27  ;;  %v10964_v6 = vld [vmem:[#allocation32_spill] sm:$0xff] }
 0x295   :  { %v8942_v57 = vpop.permute.xlu1 %4261  ;;  %v8945_v5 = vadd.f32 %v3288_v19, %v8863_v46  ;;  %v3274_v59 = vpop.f32.mrf.mxu2  ;;  %v693_v46 = vsel %vm692_vm2, %v10960_v22, %v691_v4  ;;  %vm714_vm2 = vcmask 56320   ;;  %v724_v42 = vrot.slane %v10964_v6, 1 }
 0x296   :  { %v4270_v0 = vpop.permute.xlu0 %4269  ;;  %v8951_v48 = vadd.f32 %v3274_v59, %v8869_v39  ;;  %v3260_v31 = vpop.f32.mrf.mxu1  ;;  %v4178_v39 = vsel %vm10843_vm6, %v8779_v34, %v4170_v36  ;;  %v695_v49 = vadd.f32 %v693_v46, %v684_v62  ;;  %v7204_v34 = vld [vmem:[%s10658_s4 + $0x8] sm:$0xf]  ;;  %v7013_v36 = vld [vmem:[%s10658_s4 + $0x18] sm:$0xf0]  ;;  %vm10847_vm6 = vcmask 924672  }
 0x297   :  { %v3246_v63 = vpop.f32.mrf.mxu0  ;;  %v8956_v55 = vadd.f32 %v3260_v31, %v8871_v50  ;;  %v704_v50 = vsel %vm703_vm1, %v10961_v8, %v702_v30  ;;  %v9015_v41 = vor.u32 %v7204_v34, %v7013_v36  ;;  %vm725_vm1 = vcmask 48128   ;;  %v10965_v8 = vld [vmem:[#allocation39_spill] sm:$0xff]  ;;  %v10967_v34 = vld [vmem:[#allocation42_spill] sm:$0xff] }
 0x298   :  { %v8960_v3 = vadd.f32 %v3246_v63, %v8873_v33  ;;  %v1081_v33 = vstv %s8925_s10  ;;  %v706_v7 = vadd.f32 %v704_v50, %v695_v49  ;;  %v735_v30 = vrot.slane %v10965_v8, 1  ;;  %s9036_s10 = sld [smem:[#allocation3 + $0x61]] }
 0x299   :  { %6890 = vmatmul.msk.bf16.vlgmr.msrb.gmra.mxu1 %vm615_vm0, %v7191_v23  ;;  %5133 = vrot.lane.b32.xlu2 %v8947_v1, %s10962_s3  ;;  %v1082_v27 = vmul.f32 %v9006_v11, %v1081_v33  ;;  %v4275_v63 = vsel %vm10842_vm15, %v8813_v12, %v4270_v0  ;;  %v758_v36 = vrot.slane %v10967_v34, 1 }
 0x29a   :  { %6889 = vmatmul.msk.bf16.vlgmr.msrb.gmra.mxu0 %vm615_vm0, %v7191_v23  ;;  %4210 = vmatpush.bf16.msrb.mxu1 %v4179_v43 }
 0x29b   :  { %5131 = vrot.lane.b32.xlu1 %v8953_v60, %s10962_s3  ;;  %v8977_v13 = vpop.permute.xlu2 %4547  ;;  %4196 = vmatpush.bf16.msrb.mxu0 %v4178_v39 }
 0x29c   :  { %5015 = vrot.lane.b32.xlu0 %v8342_v2, %s10956_s22  ;;  %v3290_v23 = vpop.f32.mrf.mxu3  ;;  %v7206_v2 = vld [vmem:[%s10658_s4 + $0x14] sm:$0xf0]  ;;  %s7460_s4 = smov 56   ;;  %s9412_s22 = sld [smem:[#allocation3 + $0x68]] }
 0x29d   :  { %v8985_v15 = vpop.permute.xlu1 %4359  ;;  %v8996_v61 = vadd.f32 %v3290_v23, %v8895_v14  ;;  %v3276_v56 = vpop.f32.mrf.mxu2  ;;  %v715_v14 = vsel %vm714_vm2, %v10963_v52, %v713_v9  ;;  %v9020_v59 = vor.u32 %v7206_v2, %v7011_v10  ;;  %vm736_vm2 = vcmask 39936  }
 0x29e   :  { %v8998_v38 = vpop.permute.xlu0 %1051  ;;  %v9013_v22 = vadd.f32 %v3276_v56, %v8900_v18  ;;  %v3262_v4 = vpop.f32.mrf.mxu1  ;;  %v4274_v18 = vsel %vm10842_vm15, %v8893_v21, %v8813_v12  ;;  %v717_v62 = vadd.f32 %v715_v14, %v706_v7  ;;  %v10966_v12 = vld [vmem:[#allocation38_spill] sm:$0xff]  ;;  %v737_v46 = vsel %vm736_vm2, %v10965_v8, %v735_v30 }
 0x29f   :  { %v3248_v19 = vpop.f32.mrf.mxu0  ;;  %v9018_v28 = vadd.f32 %v3262_v4, %v8903_v54  ;;  %v726_v54 = vsel %vm725_vm1, %v10964_v6, %v724_v42  ;;  %v746_v0 = vrot.slane %v10966_v12, 1  ;;  %v1092_v52 = vstv %s8993_s13  ;;  %s7462_s13 = smov 54  }
 0x2a0   :  { %v9024_v31 = vadd.f32 %v3248_v19, %v8908_v32  ;;  %v728_v9 = vadd.f32 %v726_v54, %v717_v62  ;;  %vm10844_vm1 = vcmask 31744   ;;  %v4272_v42 = vsel %vm10842_vm15, %v8942_v57, %v8833_v37  ;;  %v10970_v57 = vld [vmem:[#allocation44_spill] sm:$0xff]  ;;  %v7193_v54 = vld [vmem:[%s10659_s5 + $0xc8] sm:$0xff] }
 0x2a1   :  { %6902 = vmatmul.msk.bf16.vlgmr.msra.gmra.mxu3 %vm615_vm0, %v7192_v45  ;;  %1084 = vrot.lane.b32.xlu2 %v1082_v27, %s7460_s4  ;;  %v1093_v27 = vmul.f32 %v9006_v11, %v1092_v52  ;;  %v759_v4 = vsel %vm174_vm5, %v10967_v34, %v758_v36  ;;  %vm769_vm2 = vcmask 941056   ;;  %v779_v19 = vrot.slane %v10970_v57, 1  ;;  %s10979_s4 = smov 113  }
 0x2a2   :  { %6901 = vmatmul.msk.bf16.vlgmr.msra.gmra.mxu2 %vm615_vm0, %v7192_v45  ;;  %4332 = vmatpush.bf16.msra.mxu3 %v4275_v63  ;;  %v739_v2 = vadd.f32 %v737_v46, %v728_v9  ;;  %v10971_v9 = vld [vmem:[#allocation40_spill] sm:$0xff] }
 0x2a3   :  { %5129 = vrot.lane.b32.xlu1 %v9015_v41, %s10962_s3  ;;  %v9040_v32 = vpop.permute.xlu2 %4543  ;;  %4318 = vmatpush.bf16.msra.mxu2 %v4274_v18 }
 0x2a4   :  { %5127 = vrot.lane.b32.xlu0 %v9020_v59, %s10962_s3  ;;  %v3379_v43 = vpop.f32.mrf.mxu3  ;;  %s10968_s3 = smov 115  }
 0x2a5   :  { %v9044_v39 = vpop.permute.xlu1 %4355  ;;  %v9048_v50 = vadd.f32 %v3379_v43, %v8945_v5  ;;  %v3365_v33 = vpop.f32.mrf.mxu2  ;;  %v748_v5 = vsel %vm10844_vm1, %v10966_v12, %v746_v0  ;;  %vm10846_vm1 = vcmask 916480  }
 0x2a6   :  { %v4364_v49 = vpop.permute.xlu0 %4363  ;;  %v9052_v23 = vadd.f32 %v3365_v33, %v8951_v48  ;;  %v3351_v10 = vpop.f32.mrf.mxu1  ;;  %v4273_v48 = vsel %vm10842_vm15, %v8833_v37, %v8893_v21  ;;  %v1103_v21 = vstv %s9036_s10  ;;  %vm780_vm15 = vcmask 932864   ;;  %s7463_s10 = smov 53  }
 0x2a7   :  { %v3337_v7 = vpop.f32.mrf.mxu0  ;;  %v9055_v56 = vadd.f32 %v3351_v10, %v8956_v55  ;;  %v10969_v55 = vld [vmem:[#allocation41_spill] sm:$0xff]  ;;  %v1104_v12 = vmul.f32 %v9006_v11, %v1103_v21  ;;  %v790_v33 = vrot.slane %v10971_v9, 1  ;;  %v781_v34 = vsel %vm780_vm15, %v10970_v57, %v779_v19 }
 0x2a8   :  { %v9061_v6 = vadd.f32 %v3337_v7, %v8960_v3  ;;  %v768_v14 = vrot.slane %v10969_v55, 1  ;;  %v750_v3 = vadd.f32 %v748_v5, %v739_v2  ;;  %v4368_v10 = vsel %vm10848_vm14, %v8985_v15, %v8861_v16 }
 0x2a9   :  { %6900 = vmatmul.msk.bf16.vlgmr.msra.gmra.mxu1 %vm615_vm0, %v7192_v45  ;;  %5224 = vrot.lane.b32.xlu2 %v8947_v1, %s10968_s3  ;;  %v4369_v2 = vsel %vm10848_vm14, %v8861_v16, %v4364_v49  ;;  %v792_v16 = vsel %vm10847_vm6, %v10971_v9, %v790_v33  ;;  %vm835_vm6 = vcmask 891904  }
 0x2aa   :  { %6899 = vmatmul.msk.bf16.vlgmr.msra.gmra.mxu0 %vm615_vm0, %v7192_v45  ;;  %4304 = vmatpush.bf16.msra.mxu1 %v4273_v48  ;;  %v761_v18 = vadd.f32 %v759_v4, %v750_v3  ;;  %v770_v0 = vsel %vm769_vm2, %v10969_v55, %v768_v14  ;;  %v10973_v14 = vld [vmem:[#allocation43_spill] sm:$0xff] }
 0x2ab   :  { %5222 = vrot.lane.b32.xlu1 %v8953_v60, %s10968_s3  ;;  %v9079_v37 = vpop.permute.xlu2 %4641  ;;  %4290 = vmatpush.bf16.msra.mxu0 %v4272_v42  ;;  %v812_v4 = vrot.slane %v10973_v14, 1 }
 0x2ac   :  { %1095 = vrot.lane.b32.xlu0 %v1093_v27, %s7461_s25  ;;  %v3381_v8 = vpop.f32.mrf.mxu3  ;;  %s9211_s25 = sld [smem:[#allocation3 + $0x63]] }
 0x2ad   :  { %v9082_v30 = vpop.permute.xlu1 %4455  ;;  %v9085_v45 = vadd.f32 %v3381_v8, %v8996_v61  ;;  %v3367_v62 = vpop.f32.mrf.mxu2 }
 0x2ae   :  { %v9087_v63 = vpop.permute.xlu0 %4453  ;;  %v9096_v46 = vadd.f32 %v3367_v62, %v9013_v22  ;;  %v3353_v43 = vpop.f32.mrf.mxu1  ;;  %v772_v22 = vadd.f32 %v770_v0, %v761_v18  ;;  %v4367_v0 = vsel %vm10848_vm14, %v8890_v20, %v8985_v15  ;;  %v1114_v15 = vstv %s9121_s7  ;;  %s7464_s7 = smov 51  }
 0x2af   :  { %v3339_v52 = vpop.f32.mrf.mxu0  ;;  %v9099_v61 = vadd.f32 %v3353_v43, %v9018_v28  ;;  %v10972_v28 = vld [vmem:[#allocation45_spill] sm:$0xff] }
 0x2b0   :  { %v9105_v36 = vadd.f32 %v3339_v52, %v9024_v31  ;;  %v801_v7 = vrot.slane %v10972_v28, 1  ;;  %v783_v31 = vadd.f32 %v781_v34, %v772_v22 }
 0x2b1   :  { %6912 = vmatmul.msk.bf16.vlgmr.msrb.gmra.mxu3 %vm615_vm0, %v7193_v54  ;;  %1106 = vrot.lane.b32.xlu2 %v1104_v12, %s7462_s13  ;;  %s10984_s13 = smov 112  }
 0x2b2   :  { %6911 = vmatmul.msk.bf16.vlgmr.msrb.gmra.mxu2 %vm615_vm0, %v7193_v54  ;;  %4426 = vmatpush.bf16.msrb.mxu3 %v4369_v2  ;;  %v803_v21 = vsel %vm10846_vm1, %v10972_v28, %v801_v7  ;;  %v794_v19 = vadd.f32 %v792_v16, %v783_v31  ;;  %vm10849_vm1 = vcmask 900096   ;;  %v7194_v2 = vld [vmem:[%s10659_s5 + $0xd0] sm:$0xff]  ;;  %v10977_v28 = vld [vmem:[#allocation46_spill] sm:$0xff] }
 0x2b3   :  { %5220 = vrot.lane.b32.xlu1 %v9015_v41, %s10968_s3  ;;  %v9119_v27 = vpop.permute.xlu2 %4637  ;;  %4412 = vmatpush.bf16.msrb.mxu2 %v4368_v10  ;;  %v845_v7 = vrot.slane %v10977_v28, 1 }
 0x2b4   :  { %5218 = vrot.lane.b32.xlu0 %v9020_v59, %s10968_s3  ;;  %v3470_v49 = vpop.f32.mrf.mxu3  ;;  %v805_v43 = vadd.f32 %v803_v21, %v794_v19  ;;  %v10978_v21 = vld [vmem:[#allocation50_spill] sm:$0xff]  ;;  %s9205_s3 = sld [smem:[#allocation3 + $0x64]] }
 0x2b5   :  { %v9125_v5 = vpop.permute.xlu1 %4451  ;;  %v9128_v48 = vadd.f32 %v3470_v49, %v9048_v50  ;;  %v3456_v42 = vpop.f32.mrf.mxu2  ;;  %v10974_v50 = vld [vmem:[#allocation47_spill] sm:$0xff] }
 0x2b6   :  { %v9130_v55 = vpop.permute.xlu0 %4449  ;;  %v9136_v3 = vadd.f32 %v3456_v42, %v9052_v23  ;;  %v3442_v57 = vpop.f32.mrf.mxu1  ;;  %v823_v62 = vrot.slane %v10974_v50, 1  ;;  %v4366_v23 = vsel %vm10848_vm14, %v9044_v39, %v8890_v20  ;;  %v1115_v42 = vmul.f32 %v9006_v11, %v1114_v15  ;;  %v10981_v15 = vld [vmem:[#allocation51_spill] sm:$0xff] }
 0x2b7   :  { %v3428_v8 = vpop.f32.mrf.mxu0  ;;  %v9139_v18 = vadd.f32 %v3442_v57, %v9055_v56  ;;  %v814_v56 = vsel %vm813_vm7, %v10973_v14, %v812_v4  ;;  %vm846_vm14 = vcmask 883712   ;;  %v856_v57 = vrot.slane %v10978_v21, 1 }
 0x2b8   :  { %v9143_v12 = vadd.f32 %v3428_v8, %v9061_v6  ;;  %v10976_v6 = vld [vmem:[#allocation49_spill] sm:$0xff]  ;;  %v825_v39 = vsel %vm10849_vm1, %v10974_v50, %v823_v62  ;;  %v816_v34 = vadd.f32 %v814_v56, %v805_v43  ;;  %v4462_v8 = vsel %vm615_vm0, %v9087_v63, %v9082_v30  ;;  %v10980_v62 = vld [vmem:[#allocation48_spill] sm:$0xff] }
 0x2b9   :  { %6910 = vmatmul.msk.bf16.vlgmr.msrb.gmra.mxu1 %vm615_vm0, %v7193_v54  ;;  %5309 = vrot.lane.b32.xlu2 %v9020_v59, %s10975_s30  ;;  %v834_v52 = vrot.slane %v10976_v6, 1  ;;  %v847_v50 = vsel %vm846_vm14, %v10977_v28, %v845_v7  ;;  %vm868_vm14 = vcmask 867328   ;;  %vm10850_vm1 = vcmask 850944  }
 0x2ba   :  { %6909 = vmatmul.msk.bf16.vlgmr.msrb.gmra.mxu0 %vm615_vm0, %v7193_v54  ;;  %4398 = vmatpush.bf16.msrb.mxu1 %v4367_v0  ;;  %v867_v0 = vrot.slane %v10980_v62, 1 }
 0x2bb   :  { %5315 = vrot.lane.b32.xlu1 %v8947_v1, %s10975_s30  ;;  %v9162_v20 = vpop.permute.xlu2 %4737  ;;  %4384 = vmatpush.bf16.msrb.mxu0 %v4366_v23  ;;  %v836_v31 = vsel %vm835_vm6, %v10976_v6, %v834_v52  ;;  %vm857_vm6 = vcmask 875520  }
 0x2bc   :  { %5313 = vrot.lane.b32.xlu0 %v8953_v60, %s10975_s30  ;;  %v3472_v9 = vpop.f32.mrf.mxu3  ;;  %v858_v43 = vsel %vm857_vm6, %v10978_v21, %v856_v57  ;;  %vm879_vm6 = vcmask 859136  }
 0x2bd   :  { %v9167_v33 = vpop.permute.xlu1 %4551  ;;  %v9170_v54 = vadd.f32 %v3472_v9, %v9085_v45  ;;  %v3458_v10 = vpop.f32.mrf.mxu2  ;;  %v827_v45 = vadd.f32 %v825_v39, %v816_v34  ;;  %v878_v39 = vrot.slane %v10981_v15, 1 }
 0x2be   :  { %v9172_v22 = vpop.permute.xlu0 %4549  ;;  %v9180_v16 = vadd.f32 %v3458_v10, %v9096_v46  ;;  %v3444_v49 = vpop.f32.mrf.mxu1 }
 0x2bf   :  { %v3430_v14 = vpop.f32.mrf.mxu0  ;;  %v9184_v4 = vadd.f32 %v3444_v49, %v9099_v61  ;;  %v838_v46 = vadd.f32 %v836_v31, %v827_v45  ;;  %v4463_v61 = vsel %vm615_vm0, %v9082_v30, %v8929_v47  ;;  %v869_v31 = vsel %vm868_vm14, %v10980_v62, %v867_v0  ;;  %v7195_v0 = vld [vmem:[%s10659_s5 + $0xd8] sm:$0xff] }
 0x2c0   :  { %v9188_v19 = vadd.f32 %v3430_v14, %v9105_v36  ;;  %v4460_v45 = vsel %vm615_vm0, %v9130_v55, %v9125_v5  ;;  %v1136_v14 = vstv %s9205_s3  ;;  %vm911_vm14 = vcmask 711680   ;;  %s10987_s3 = smov 111  }
 0x2c1   :  { %6922 = vmatmul.msk.bf16.vlgmr.msra.gmra.mxu3 %vm615_vm0, %v7194_v2  ;;  %5404 = vrot.lane.b32.xlu2 %v8953_v60, %s10979_s4  ;;  %v849_v30 = vadd.f32 %v847_v50, %v838_v46 }
 0x2c2   :  { %6921 = vmatmul.msk.bf16.vlgmr.msra.gmra.mxu2 %vm615_vm0, %v7194_v2  ;;  %4520 = vmatpush.bf16.msra.mxu3 %v4463_v61 }
 0x2c3   :  { %1117 = vrot.lane.b32.xlu1 %v1115_v42, %s7463_s10  ;;  %v9203_v36 = vpop.permute.xlu2 %4733  ;;  %4506 = vmatpush.bf16.msra.mxu2 %v4462_v8  ;;  %v860_v10 = vadd.f32 %v858_v43, %v849_v30  ;;  %v910_v43 = vrot.slane %v8296_v29, 1  ;;  %s9494_s10 = sld [smem:[#allocation3 + $0x69]] }
 0x2c4   :  { %5311 = vrot.lane.b32.xlu0 %v9015_v41, %s10975_s30  ;;  %v3561_v23 = vpop.f32.mrf.mxu3  ;;  %s7465_s30 = smov 52  }
 0x2c5   :  { %v9209_v47 = vpop.permute.xlu1 %1062  ;;  %v9214_v56 = vadd.f32 %v3561_v23, %v9128_v48  ;;  %v3547_v6 = vpop.f32.mrf.mxu2  ;;  %v10982_v48 = vld [vmem:[#allocation54_spill] sm:$0xff] }
 0x2c6   :  { %v9216_v52 = vpop.permute.xlu0 %4545  ;;  %v9220_v9 = vadd.f32 %v3547_v6, %v9136_v3  ;;  %v3533_v34 = vpop.f32.mrf.mxu1  ;;  %v889_v49 = vrot.slane %v10982_v48, 1  ;;  %v4461_v3 = vsel %vm615_vm0, %v9125_v5, %v9087_v63  ;;  %v10983_v5 = vld [vmem:[#allocation53_spill] sm:$0xff]  ;;  %v1137_v6 = vmul.f32 %v9006_v11, %v1136_v14 }
 0x2c7   :  { %v3519_v28 = vpop.f32.mrf.mxu0  ;;  %v9223_v7 = vadd.f32 %v3533_v34, %v9139_v18  ;;  %v880_v18 = vsel %vm879_vm6, %v10981_v15, %v878_v39  ;;  %v900_v55 = vrot.slane %v10983_v5, 1  ;;  %vm10851_vm6 = vcmask 703488  }
 0x2c8   :  { %v9228_v42 = vadd.f32 %v3519_v28, %v9143_v12  ;;  %v871_v12 = vadd.f32 %v869_v31, %v860_v10  ;;  %v891_v21 = vsel %vm10850_vm1, %v10982_v48, %v889_v49  ;;  %v10985_v31 = vld [vmem:[#allocation52_spill] sm:$0xff]  ;;  %v912_v49 = vsel %vm911_vm14, %v8296_v29, %v910_v43 }
 0x2c9   :  { %6920 = vmatmul.msk.bf16.vlgmr.msra.gmra.mxu1 %vm615_vm0, %v7194_v2  ;;  %5402 = vrot.lane.b32.xlu2 %v9015_v41, %s10979_s4  ;;  %v901_v10 = vsel %vm317_vm9, %v10983_v5, %v900_v55  ;;  %v921_v48 = vrot.slane %v10985_v31, 1  ;;  %vm10852_vm1 = vcmask 695296  }
 0x2ca   :  { %6919 = vmatmul.msk.bf16.vlgmr.msra.gmra.mxu0 %vm615_vm0, %v7194_v2  ;;  %4492 = vmatpush.bf16.msra.mxu1 %v4461_v3  ;;  %v1125_v2 = vstv %s9211_s25  ;;  %v882_v46 = vadd.f32 %v880_v18, %v871_v12  ;;  %s7466_s25 = smov 50  }
 0x2cb   :  { %5400 = vrot.lane.b32.xlu1 %v9020_v59, %s10979_s4  ;;  %v9245_v63 = vpop.permute.xlu2 %4833  ;;  %4478 = vmatpush.bf16.msra.mxu0 %v4460_v45  ;;  %v1126_v34 = vmul.f32 %v9006_v11, %v1125_v2  ;;  %v932_v45 = vrot.slane %v8377_v40, 1  ;;  %v923_v5 = vsel %vm10851_vm6, %v10985_v31, %v921_v48  ;;  %vm10855_vm6 = vcmask 687104  }
 0x2cc   :  { %5406 = vrot.lane.b32.xlu0 %v8947_v1, %s10979_s4  ;;  %v3563_v57 = vpop.f32.mrf.mxu3  ;;  %v893_v15 = vadd.f32 %v891_v21, %v882_v46  ;;  %v10986_v46 = vld [vmem:[#allocation55_spill] sm:$0xff]  ;;  %s7468_s4 = smov 48  }
 0x2cd   :  { %v9251_v8 = vpop.permute.xlu1 %4645  ;;  %v9255_v61 = vadd.f32 %v3563_v57, %v9170_v54  ;;  %v3549_v50 = vpop.f32.mrf.mxu2 }
 0x2ce   :  { %v9257_v62 = vpop.permute.xlu0 %4643  ;;  %v9264_v23 = vadd.f32 %v3549_v50, %v9180_v16  ;;  %v3535_v30 = vpop.f32.mrf.mxu1  ;;  %v4556_v16 = vsel %vm626_vm8, %v8977_v13, %v9172_v22  ;;  %v943_v50 = vrot.slane %v10986_v46, 1 }
 0x2cf   :  { %v3521_v39 = vpop.f32.mrf.mxu0  ;;  %v9268_v54 = vadd.f32 %v3535_v30, %v9184_v4  ;;  %v4557_v4 = vsel %vm626_vm8, %v9172_v22, %v9167_v33  ;;  %v4555_v30 = vsel %vm626_vm8, %v9216_v52, %v8977_v13 }
 0x2d0   :  { %v9274_v28 = vadd.f32 %v3521_v39, %v9188_v19  ;;  %v903_v19 = vadd.f32 %v901_v10, %v893_v15  ;;  %v1147_v15 = vstv %s9294_s8  ;;  %s10988_s8 = smov 110  }
 0x2d1   :  { %6932 = vmatmul.msk.bf16.vlgmr.msrb.gmra.mxu3 %vm615_vm0, %v7195_v0  ;;  %5495 = vrot.lane.b32.xlu2 %v8953_v60, %s10984_s13 }
 0x2d2   :  { %6931 = vmatmul.msk.bf16.vlgmr.msrb.gmra.mxu2 %vm615_vm0, %v7195_v0  ;;  %4614 = vmatpush.bf16.msrb.mxu3 %v4557_v4  ;;  %v914_v29 = vadd.f32 %v912_v49, %v903_v19 }
 0x2d3   :  { %1139 = vrot.lane.b32.xlu1 %v1137_v6, %s7464_s7  ;;  %v9289_v3 = vpop.permute.xlu2 %1073  ;;  %4600 = vmatpush.bf16.msrb.mxu2 %v4556_v16  ;;  %v7196_v16 = vld [vmem:[%s10659_s5 + $0xe0] sm:$0xff]  ;;  %s9619_s7 = sld [smem:[#allocation3 + $0x6d]] }
 0x2d4   :  { %1128 = vrot.lane.b32.xlu0 %v1126_v34, %s7465_s30  ;;  %v3652_v18 = vpop.f32.mrf.mxu3  ;;  %s10992_s30 = smov 85  }
 0x2d5   :  { %v9292_v33 = vpop.permute.xlu1 %4735  ;;  %v9297_v22 = vadd.f32 %v3652_v18, %v9214_v56  ;;  %v3638_v12 = vpop.f32.mrf.mxu2  ;;  %v934_v56 = vsel %vm10852_vm1, %v8377_v40, %v932_v45  ;;  %v954_v40 = vrot.slane %v8422_v58, 1  ;;  %vm10853_vm1 = vcmask 678912  }
 0x2d6   :  { %v9299_v14 = vpop.permute.xlu0 %4639  ;;  %v9304_v55 = vadd.f32 %v3638_v12, %v9220_v9  ;;  %v3624_v21 = vpop.f32.mrf.mxu1  ;;  %v925_v9 = vadd.f32 %v923_v5, %v914_v29  ;;  %v1148_v45 = vmul.f32 %v9006_v11, %v1147_v15  ;;  %v976_v18 = vrot.slane %v8420_v44, 1 }
 0x2d7   :  { %v3610_v57 = vpop.f32.mrf.mxu0  ;;  %v9307_v2 = vadd.f32 %v3624_v21, %v9223_v7  ;;  %v4554_v7 = vsel %vm626_vm8, %v9040_v32, %v9216_v52  ;;  %v945_v32 = vsel %vm10855_vm6, %v10986_v46, %v943_v50  ;;  %v965_v52 = vrot.slane %v8471_v25, 1 }
 0x2d8   :  { %v9313_v43 = vadd.f32 %v3610_v57, %v9228_v42  ;;  %v936_v13 = vadd.f32 %v934_v56, %v925_v9  ;;  %vm10854_vm8 = vcmask 670720   ;;  %v956_v4 = vsel %vm10853_vm1, %v8422_v58, %v954_v40 }
 0x2d9   :  { %6930 = vmatmul.msk.bf16.vlgmr.msrb.gmra.mxu1 %vm615_vm0, %v7195_v0  ;;  %5493 = vrot.lane.b32.xlu2 %v9015_v41, %s10984_s13  ;;  %v967_v29 = vsel %vm10854_vm8, %v8471_v25, %v965_v52  ;;  %v4650_v58 = vsel %vm637_vm12, %v9079_v37, %v9257_v62  ;;  %vm977_vm1 = vcmask 662528   ;;  %v987_v25 = vrot.slane %v8525_v51, 1 }
 0x2da   :  { %6929 = vmatmul.msk.bf16.vlgmr.msrb.gmra.mxu0 %vm615_vm0, %v7195_v0  ;;  %4586 = vmatpush.bf16.msrb.mxu1 %v4555_v30  ;;  %v947_v49 = vadd.f32 %v945_v32, %v936_v13  ;;  %vm988_vm8 = vcmask 654336   ;;  %v978_v57 = vsel %vm977_vm1, %v8420_v44, %v976_v18  ;;  %v998_v9 = vrot.slane %v8469_v24, 1 }
 0x2db   :  { %5491 = vrot.lane.b32.xlu1 %v9020_v59, %s10984_s13  ;;  %v9332_v42 = vpop.permute.xlu2 %4927  ;;  %4572 = vmatpush.bf16.msrb.mxu0 %v4554_v7  ;;  %v989_v7 = vsel %vm988_vm8, %v8525_v51, %v987_v25  ;;  %vm999_vm1 = vcmask 646144   ;;  %v4649_v15 = vsel %vm637_vm12, %v9299_v14, %v9079_v37  ;;  %vm1010_vm8 = vcmask 637952  }
 0x2dc   :  { %5497 = vrot.lane.b32.xlu0 %v8947_v1, %s10984_s13  ;;  %v3654_v6 = vpop.f32.mrf.mxu3  ;;  %vm1021_vm6 = vcmask 629760   ;;  %s9418_s13 = sld [smem:[#allocation3 + $0x67]] }
 0x2dd   :  { %v9337_v0 = vpop.permute.xlu1 %4731  ;;  %v9341_v39 = vadd.f32 %v3654_v6, %v9255_v61  ;;  %v3640_v34 = vpop.f32.mrf.mxu2 }
 0x2de   :  { %v9343_v10 = vpop.permute.xlu0 %4739  ;;  %v9351_v31 = vadd.f32 %v3640_v34, %v9264_v23  ;;  %v3626_v48 = vpop.f32.mrf.mxu1  ;;  %v958_v23 = vadd.f32 %v956_v4, %v947_v49  ;;  %v1020_v34 = vrot.slane %v8648_v35, 1  ;;  %v7197_v49 = vld [vmem:[%s10659_s5 + $0xe8] sm:$0xff] }
 0x2df   :  { %v3612_v19 = vpop.f32.mrf.mxu0  ;;  %v9354_v61 = vadd.f32 %v3626_v48, %v9268_v54  ;;  %v4651_v54 = vsel %vm637_vm12, %v9257_v62, %v9251_v8  ;;  %v4745_v25 = vsel %vm648_vm11, %v9162_v20, %v9343_v10 }
 0x2e0   :  { %v9361_v12 = vadd.f32 %v3612_v19, %v9274_v28  ;;  %v1158_v28 = vstv %s9328_s28  ;;  %v969_v5 = vadd.f32 %v967_v29, %v958_v23  ;;  %v1031_v19 = vrot.slane %v8644_v17, 1  ;;  %s10989_s28 = smov 32  }
 0x2e1   :  { %6942 = vmatmul.msk.bf16.vlgmr.msra.gmra.mxu3 %vm615_vm0, %v7196_v16  ;;  %5588 = vrot.lane.b32.xlu2 %v8947_v1, %s10987_s3  ;;  %v1159_v30 = vmul.f32 %v9006_v11, %v1158_v28  ;;  %v1043_v23 = vrot.slane %v8693_v53, 1  ;;  %v1180_v28 = vstv %s9412_s22  ;;  %s7469_s22 = smov 31  }
 0x2e2   :  { %6941 = vmatmul.msk.bf16.vlgmr.msra.gmra.mxu2 %vm615_vm0, %v7196_v16  ;;  %4708 = vmatpush.bf16.msra.mxu3 %v4651_v54  ;;  %v980_v13 = vadd.f32 %v978_v57, %v969_v5  ;;  %v1169_v10 = vstv %s9418_s13  ;;  %s9547_s13 = sld [smem:[#allocation3 + $0x6a]] }
 0x2e3   :  { %5586 = vrot.lane.b32.xlu1 %v8953_v60, %s10987_s3  ;;  %v9377_v21 = vpop.permute.xlu2 %5017  ;;  %4694 = vmatpush.bf16.msra.mxu2 %v4650_v58  ;;  %v1044_v5 = vsel %vm461_vm13, %v8693_v53, %v1043_v23  ;;  %v1075_v53 = vrot.slane %v9289_v3, 1  ;;  %vm1076_vm13 = vcmask 465920  }
 0x2e4   :  { %1150 = vrot.lane.b32.xlu0 %v1148_v45, %s7466_s25  ;;  %v3743_v46 = vpop.f32.mrf.mxu3  ;;  %v991_v51 = vadd.f32 %v989_v7, %v980_v13  ;;  %v1022_v45 = vsel %vm1021_vm6, %v8648_v35, %v1020_v34  ;;  %v4744_v35 = vsel %vm648_vm11, %v9292_v33, %v9162_v20  ;;  %vm1054_vm6 = vcmask 482304   ;;  %s10993_s25 = smov 84  }
 0x2e5   :  { %v9380_v50 = vpop.permute.xlu1 %4831  ;;  %v9383_v8 = vadd.f32 %v3743_v46, %v9297_v22  ;;  %v3729_v62 = vpop.f32.mrf.mxu2  ;;  %v1009_v22 = vrot.slane %v8589_v26, 1 }
 0x2e6   :  { %v9385_v56 = vpop.permute.xlu0 %4829  ;;  %v9391_v40 = vadd.f32 %v3729_v62, %v9304_v55  ;;  %v3715_v44 = vpop.f32.mrf.mxu1  ;;  %v4648_v55 = vsel %vm637_vm12, %v9119_v27, %v9299_v14  ;;  %vm1032_vm12 = vcmask 621568  }
 0x2e7   :  { %v3701_v32 = vpop.f32.mrf.mxu0  ;;  %v9394_v52 = vadd.f32 %v3715_v44, %v9307_v2  ;;  %v1000_v2 = vsel %vm999_vm1, %v8469_v24, %v998_v9  ;;  %v1011_v24 = vsel %vm1010_vm8, %v8589_v26, %v1009_v22  ;;  %vm1065_vm1 = vcmask 474112  }
 0x2e8   :  { %v9398_v6 = vadd.f32 %v3701_v32, %v9313_v43  ;;  %v1002_v43 = vadd.f32 %v1000_v2, %v991_v51  ;;  %v1181_v44 = vmul.f32 %v9006_v11, %v1180_v28  ;;  %vm1087_vm8 = vcmask 457728  }
 0x2e9   :  { %6940 = vmatmul.msk.bf16.vlgmr.msra.gmra.mxu1 %vm615_vm0, %v7196_v16  ;;  %1161 = vrot.lane.b32.xlu2 %v1159_v30, %s7467_s16  ;;  %s10990_s16 = smov 87  }
 0x2ea   :  { %6939 = vmatmul.msk.bf16.vlgmr.msra.gmra.mxu0 %vm615_vm0, %v7196_v16  ;;  %4680 = vmatpush.bf16.msra.mxu1 %v4649_v15  ;;  %v1013_v29 = vadd.f32 %v1011_v24, %v1002_v43  ;;  %v1170_v15 = vmul.f32 %v9006_v11, %v1169_v10 }
 0x2eb   :  { %5584 = vrot.lane.b32.xlu1 %v9015_v41, %s10987_s3  ;;  %v9416_v37 = vpop.permute.xlu2 %5013  ;;  %4666 = vmatpush.bf16.msra.mxu0 %v4648_v55 }
 0x2ec   :  { %5582 = vrot.lane.b32.xlu0 %v9020_v59, %s10987_s3  ;;  %v3745_v27 = vpop.f32.mrf.mxu3  ;;  %s9665_s3 = sld [smem:[#allocation3 + $0x6e]] }
 0x2ed   :  { %v9421_v14 = vpop.permute.xlu1 %4827  ;;  %v9424_v16 = vadd.f32 %v3745_v27, %v9341_v39  ;;  %v3731_v4 = vpop.f32.mrf.mxu2  ;;  %v1077_v27 = vsel %vm1076_vm13, %v9289_v3, %v1075_v53  ;;  %v7199_v53 = vld [vmem:[%s10659_s5 + $0xf8] sm:$0xff] }
 0x2ee   :  { %v9426_v48 = vpop.permute.xlu0 %4825  ;;  %v9434_v26 = vadd.f32 %v3731_v4, %v9351_v31  ;;  %v3717_v18 = vpop.f32.mrf.mxu1  ;;  %v1024_v31 = vadd.f32 %v1022_v45, %v1013_v29 }
 0x2ef   :  { %v3703_v39 = vpop.f32.mrf.mxu0  ;;  %v9437_v58 = vadd.f32 %v3717_v18, %v9354_v61  ;;  %v1033_v61 = vsel %vm1032_vm12, %v8644_v17, %v1031_v19  ;;  %v1064_v17 = vrot.slane %v9209_v47, 1 }
 0x2f0   :  { %v9441_v54 = vadd.f32 %v3703_v39, %v9361_v12  ;;  %v1053_v12 = vrot.slane %v8998_v38, 1  ;;  %v1035_v62 = vadd.f32 %v1033_v61, %v1024_v31  ;;  %v4839_v31 = vsel %vm659_vm10, %v9380_v50, %v9245_v63 }
 0x2f1   :  { %6952 = vmatmul.msk.bf16.vlgmr.msrb.gmra.mxu3 %vm615_vm0, %v7197_v49  ;;  %5673 = vrot.lane.b32.xlu2 %v9020_v59, %s10988_s8  ;;  %v1066_v2 = vsel %vm1065_vm1, %v9209_v47, %v1064_v17 }
 0x2f2   :  { %6951 = vmatmul.msk.bf16.vlgmr.msrb.gmra.mxu2 %vm615_vm0, %v7197_v49  ;;  %4802 = vmatpush.bf16.msrb.mxu3 %v4745_v25  ;;  %v1055_v13 = vsel %vm1054_vm6, %v8998_v38, %v1053_v12  ;;  %v1046_v51 = vadd.f32 %v1044_v5, %v1035_v62  ;;  %v4743_v38 = vsel %vm648_vm11, %v9203_v36, %v9292_v33  ;;  %vm1164_vm6 = vcmask 400384  }
 0x2f3   :  { %5679 = vrot.lane.b32.xlu1 %v8947_v1, %s10988_s8  ;;  %v9461_v20 = vpop.permute.xlu2 %5133  ;;  %4788 = vmatpush.bf16.msrb.mxu2 %v4744_v35 }
 0x2f4   :  { %5677 = vrot.lane.b32.xlu0 %v8953_v60, %s10988_s8  ;;  %v3864_v57 = vpop.f32.mrf.mxu3  ;;  %v1057_v24 = vadd.f32 %v1055_v13, %v1046_v51 }
 0x2f5   :  { %v9467_v46 = vpop.permute.xlu1 %4925  ;;  %v3872_v30 = vadd.f32 %v3864_v57, %v9383_v8  ;;  %v3850_v9 = vpop.f32.mrf.mxu2  ;;  %v4837_v57 = vsel %vm659_vm10, %v9421_v14, %v9385_v56 }
 0x2f6   :  { %v9470_v7 = vpop.permute.xlu0 %4923  ;;  %v3871_v32 = vadd.f32 %v3850_v9, %v9391_v40  ;;  %v3836_v22 = vpop.f32.mrf.mxu1  ;;  %v4742_v40 = vsel %vm648_vm11, %v9337_v0, %v9203_v36  ;;  %v1068_v47 = vadd.f32 %v1066_v2, %v1057_v24  ;;  %v4836_v9 = vsel %vm659_vm10, %v9426_v48, %v9421_v14 }
 0x2f7   :  { %v3822_v55 = vpop.f32.mrf.mxu0  ;;  %v3870_v8 = vadd.f32 %v3836_v22, %v9394_v52  ;;  %v4933_v2 = vsel %vm670_vm4, %v9467_v46, %v9332_v42  ;;  %vm1109_vm11 = vcmask 441344  }
 0x2f8   :  { %v3869_v34 = vadd.f32 %v3822_v55, %v9398_v6  ;;  %v1079_v3 = vadd.f32 %v1077_v27, %v1068_v47  ;;  %v4932_v55 = vsel %vm670_vm4, %v9470_v7, %v9467_v46  ;;  %v1201_v46 = vstv %s9547_s13  ;;  %s7471_s13 = smov 29  }
 0x2f9   :  { %6950 = vmatmul.msk.bf16.vlgmr.msrb.gmra.mxu1 %vm615_vm0, %v7197_v49  ;;  %1183 = vrot.lane.b32.xlu2 %v1181_v44, %s10989_s28  ;;  %s7470_s28 = smov 30  }
 0x2fa   :  { %6949 = vmatmul.msk.bf16.vlgmr.msrb.gmra.mxu0 %vm615_vm0, %v7197_v49  ;;  %4774 = vmatpush.bf16.msrb.mxu1 %v4743_v38  ;;  %v7198_v49 = vld [vmem:[%s10659_s5 + $0xf0] sm:$0xff] }
 0x2fb   :  { %1172 = vrot.lane.b32.xlu1 %v1170_v15, %s7468_s4  ;;  %v1085_v33 = vpop.permute.xlu2 %1084  ;;  %4760 = vmatpush.bf16.msrb.mxu0 %v4742_v40 }
 0x2fc   :  { %5675 = vrot.lane.b32.xlu0 %v9015_v41, %s10988_s8  ;;  %v3866_v36 = vpop.f32.mrf.mxu3  ;;  %v1086_v0 = vrot.slane %v1085_v33, 1  ;;  %s10991_s8 = smov 86  }
 0x2fd   :  { %v9496_v52 = vpop.permute.xlu1 %4921  ;;  %v3876_v6 = vadd.f32 %v3866_v36, %v9424_v16  ;;  %v3852_v43 = vpop.f32.mrf.mxu2  ;;  %v4838_v16 = vsel %vm659_vm10, %v9385_v56, %v9380_v50  ;;  %vm1131_vm10 = vcmask 424960  }
 0x2fe   :  { %v9499_v4 = vpop.permute.xlu0 %4919  ;;  %v1088_v19 = vsel %vm1087_vm8, %v1085_v33, %v1086_v0  ;;  %v3875_v45 = vadd.f32 %v3852_v43, %v9434_v26  ;;  %v3838_v18 = vpop.f32.mrf.mxu1  ;;  %v1190_v26 = vstv %s9494_s10  ;;  %s9596_s10 = sld [smem:[#allocation3 + $0x6c]]  ;;  %vm1175_vm8 = vcmask 392192  }
 0x2ff   :  { %v9505_v29 = vadd.f32 %v1088_v19, %v1079_v3  ;;  %v3824_v39 = vpop.f32.mrf.mxu0  ;;  %v3874_v23 = vadd.f32 %v3838_v18, %v9437_v58  ;;  %v1191_v10 = vmul.f32 %v9006_v11, %v1190_v26  ;;  %v1202_v3 = vmul.f32 %v9006_v11, %v1201_v46 }
 0x300   :  { %v3873_v35 = vadd.f32 %v3824_v39, %v9441_v54 }
 0x301   :  { %6962 = vmatmul.msk.bf16.vlgmr.msra.gmra.mxu3 %vm615_vm0, %v7198_v49  ;;  %5764 = vrot.lane.b32.xlu2 %v9020_v59, %s10895_s23 }
 0x302   :  { %6961 = vmatmul.msk.bf16.vlgmr.msra.gmra.mxu2 %vm615_vm0, %v7198_v49  ;;  %4896 = vmatpush.bf16.msra.mxu3 %v4839_v31 }
 0x303   :  { %5770 = vrot.lane.b32.xlu1 %v8947_v1, %s10895_s23  ;;  %v9524_v58 = vpop.permute.xlu2 %5224  ;;  %4882 = vmatpush.bf16.msra.mxu2 %v4838_v16  ;;  %v9604_v16 = vld [vmem:[%s10656_s2 + $0x1] sm:$0x1f] }
 0x304   :  { %5768 = vrot.lane.b32.xlu0 %v8953_v60, %s10895_s23  ;;  %v3958_v54 = vpop.f32.mrf.mxu3 }
 0x305   :  { %v9526_v25 = vpop.permute.xlu1 %5021  ;;  %v3966_v63 = vadd.f32 %v3958_v54, %v3872_v30  ;;  %v3944_v50 = vpop.f32.mrf.mxu2 }
 0x306   :  { %v9528_v61 = vpop.permute.xlu0 %5019  ;;  %v3965_v12 = vadd.f32 %v3944_v50, %v3871_v32  ;;  %v3930_v28 = vpop.f32.mrf.mxu1 }
 0x307   :  { %v3916_v5 = vpop.f32.mrf.mxu0  ;;  %v3964_v17 = vadd.f32 %v3930_v28, %v3870_v8 }
 0x308   :  { %v3963_v62 = vadd.f32 %v3916_v5, %v3869_v34 }
 0x309   :  { %6960 = vmatmul.msk.bf16.vlgmr.msra.gmra.mxu1 %vm615_vm0, %v7198_v49  ;;  %5859 = vrot.lane.b32.xlu2 %v8953_v60, %s10990_s16 }
 0x30a   :  { %6959 = vmatmul.msk.bf16.vlgmr.msra.gmra.mxu0 %vm615_vm0, %v7198_v49  ;;  %4868 = vmatpush.bf16.msra.mxu1 %v4837_v57  ;;  %v4930_v49 = vsel %vm670_vm4, %v9499_v4, %v9496_v52 }
 0x30b   :  { %1193 = vrot.lane.b32.xlu1 %v1191_v10, %s7469_s22  ;;  %v9543_v30 = vpop.permute.xlu2 %1106  ;;  %4854 = vmatpush.bf16.msra.mxu0 %v4836_v9  ;;  %s9752_s22 = sld [smem:[#allocation3 + $0x72]] }
 0x30c   :  { %5766 = vrot.lane.b32.xlu0 %v9015_v41, %s10895_s23  ;;  %v3960_v56 = vpop.f32.mrf.mxu3  ;;  %s9566_s23 = sld [smem:[#allocation3 + $0x6b]] }
 0x30d   :  { %v9545_v44 = vpop.permute.xlu1 %5131  ;;  %v3970_v14 = vadd.f32 %v3960_v56, %v3876_v6  ;;  %v3946_v48 = vpop.f32.mrf.mxu2  ;;  %v4931_v6 = vsel %vm670_vm4, %v9496_v52, %v9470_v7  ;;  %v1108_v52 = vrot.slane %v9543_v30, 1  ;;  %vm1098_vm4 = vcmask 449536  }
 0x30e   :  { %v9549_v13 = vpop.permute.xlu0 %5015  ;;  %v3969_v32 = vadd.f32 %v3946_v48, %v3875_v45  ;;  %v3932_v22 = vpop.f32.mrf.mxu1 }
 0x30f   :  { %v3918_v15 = vpop.f32.mrf.mxu0  ;;  %v3968_v51 = vadd.f32 %v3932_v22, %v3874_v23  ;;  %v7200_v23 = vld [vmem:[%s10659_s5 + $0x100] sm:$0xff]  ;;  %v1110_v10 = vsel %vm1109_vm11, %v9543_v30, %v1108_v52  ;;  %vm11001_vm11 = vcmask 916480  }
 0x310   :  { %v3967_v8 = vadd.f32 %v3918_v15, %v3873_v35 }
 0x311   :  { %6972 = vmatmul.msk.bf16.vlgmr.msrb.gmra.mxu3 %vm615_vm0, %v7199_v53  ;;  %5857 = vrot.lane.b32.xlu2 %v9015_v41, %s10990_s16 }
 0x312   :  { %6971 = vmatmul.msk.bf16.vlgmr.msrb.gmra.mxu2 %vm615_vm0, %v7199_v53  ;;  %4990 = vmatpush.bf16.msrb.mxu3 %v4933_v2  ;;  %v1212_v11 = vstv %s9566_s23  ;;  %v1234_v2 = vstv %s9619_s7  ;;  %s7472_s23 = smov 28   ;;  %s7474_s7 = smov 26  }
 0x313   :  { %5855 = vrot.lane.b32.xlu1 %v9020_v59, %s10990_s16  ;;  %v9570_v34 = vpop.permute.xlu2 %5309  ;;  %4976 = vmatpush.bf16.msrb.mxu2 %v4932_v55  ;;  %v1213_v35 = vmul.f32 %v9604_v16, %v1212_v11 }
 0x314   :  { %5861 = vrot.lane.b32.xlu0 %v8947_v1, %s10990_s16  ;;  %v4052_v38 = vpop.f32.mrf.mxu3  ;;  %s7476_s16 = smov 25  }
 0x315   :  { %v9572_v42 = vpop.permute.xlu1 %5129  ;;  %v4060_v24 = vadd.f32 %v4052_v38, %v3966_v63  ;;  %v4038_v40 = vpop.f32.mrf.mxu2 }
 0x316   :  { %v9575_v27 = vpop.permute.xlu0 %5127  ;;  %v4059_v47 = vadd.f32 %v4038_v40, %v3965_v12  ;;  %v4024_v33 = vpop.f32.mrf.mxu1  ;;  %v5026_v12 = vsel %vm681_vm3, %v9377_v21, %v9528_v61  ;;  %v7201_v40 = vld [vmem:[%s10659_s5 + $0x108] sm:$0xff] }
 0x317   :  { %v4010_v36 = vpop.f32.mrf.mxu0  ;;  %v4058_v0 = vadd.f32 %v4024_v33, %v3964_v17  ;;  %v5027_v17 = vsel %vm681_vm3, %v9528_v61, %v9526_v25  ;;  %v1223_v61 = vstv %s9596_s10  ;;  %s7473_s10 = smov 27  }
 0x318   :  { %v4057_v43 = vadd.f32 %v4010_v36, %v3963_v62  ;;  %v1224_v15 = vmul.f32 %v9604_v16, %v1223_v61 }
 0x319   :  { %6970 = vmatmul.msk.bf16.vlgmr.msrb.gmra.mxu1 %vm615_vm0, %v7199_v53  ;;  %5952 = vrot.lane.b32.xlu2 %v8947_v1, %s10991_s8 }
 0x31a   :  { %6969 = vmatmul.msk.bf16.vlgmr.msrb.gmra.mxu0 %vm615_vm0, %v7199_v53  ;;  %4962 = vmatpush.bf16.msrb.mxu1 %v4931_v6  ;;  %v5138_v6 = vsel %vm174_vm5, %v9545_v44, %v9461_v20 }
 0x31b   :  { %5950 = vrot.lane.b32.xlu1 %v8953_v60, %s10991_s8  ;;  %v9591_v7 = vpop.permute.xlu2 %5404  ;;  %4948 = vmatpush.bf16.msrb.mxu0 %v4930_v49 }
 0x31c   :  { %1204 = vrot.lane.b32.xlu0 %v1202_v3, %s7470_s28  ;;  %v4054_v19 = vpop.f32.mrf.mxu3  ;;  %s9866_s28 = sld [smem:[#allocation3 + $0x7c]] }
 0x31d   :  { %v9593_v45 = vpop.permute.xlu1 %5222  ;;  %v4064_v4 = vadd.f32 %v4054_v19, %v3970_v14  ;;  %v4040_v18 = vpop.f32.mrf.mxu2 }
 0x31e   :  { %v1096_v39 = vpop.permute.xlu0 %1095  ;;  %v4063_v31 = vadd.f32 %v4040_v18, %v3969_v32  ;;  %v4026_v54 = vpop.f32.mrf.mxu1 }
 0x31f   :  { %v1097_v26 = vrot.slane %v1096_v39, 1  ;;  %v4012_v63 = vpop.f32.mrf.mxu0  ;;  %v4062_v50 = vadd.f32 %v4026_v54, %v3968_v51  ;;  %v5025_v51 = vsel %vm681_vm3, %v9549_v13, %v9377_v21 }
 0x320   :  { %v4061_v5 = vadd.f32 %v4012_v63, %v3967_v8  ;;  %v5024_v8 = vsel %vm681_vm3, %v9416_v37, %v9549_v13  ;;  %vm1120_vm3 = vcmask 433152   ;;  %v5137_v63 = vsel %vm174_vm5, %v9572_v42, %v9545_v44 }
 0x321   :  { %v1099_v28 = vsel %vm1098_vm4, %v1096_v39, %v1097_v26  ;;  %6982 = vmatmul.msk.bf16.vlgmr.msra.gmra.mxu3 %vm615_vm0, %v7200_v23  ;;  %1215 = vrot.lane.b32.xlu2 %v1213_v35, %s7471_s13  ;;  %v1245_v44 = vstv %s9665_s3  ;;  %s10994_s13 = smov 83   ;;  %s7475_s3 = smov 24   ;;  %vm11000_vm4 = vcmask 261120  }
 0x322   :  { %v1101_v57 = vadd.f32 %v1099_v28, %v9505_v29  ;;  %6981 = vmatmul.msk.bf16.vlgmr.msra.gmra.mxu2 %vm615_vm0, %v7200_v23  ;;  %5084 = vmatpush.bf16.msra.mxu3 %v5027_v17  ;;  %v1246_v61 = vmul.f32 %v9604_v16, %v1245_v44 }
 0x323   :  { %5948 = vrot.lane.b32.xlu1 %v9015_v41, %s10991_s8  ;;  %v9625_v9 = vpop.permute.xlu2 %5402  ;;  %5070 = vmatpush.bf16.msra.mxu2 %v5026_v12 }
 0x324   :  { %v9621_v62 = vadd.f32 %v1110_v10, %v1101_v57  ;;  %5946 = vrot.lane.b32.xlu0 %v9020_v59, %s10991_s8  ;;  %v4146_v29 = vpop.f32.mrf.mxu3  ;;  %v7202_v57 = vld [vmem:[%s10659_s5 + $0x110] sm:$0xff]  ;;  %s7481_s8 = smov 20  }
 0x325   :  { %v9627_v25 = vpop.permute.xlu1 %5220  ;;  %v4154_v30 = vadd.f32 %v4146_v29, %v4060_v24  ;;  %v4132_v56 = vpop.f32.mrf.mxu2 }
 0x326   :  { %v9630_v14 = vpop.permute.xlu0 %5218  ;;  %v4153_v48 = vadd.f32 %v4132_v56, %v4059_v47  ;;  %v4118_v53 = vpop.f32.mrf.mxu1  ;;  %v1235_v47 = vmul.f32 %v9604_v16, %v1234_v2 }
 0x327   :  { %v4104_v32 = vpop.f32.mrf.mxu0  ;;  %v4152_v22 = vadd.f32 %v4118_v53, %v4058_v0 }
 0x328   :  { %v4151_v55 = vadd.f32 %v4104_v32, %v4057_v43 }
 0x329   :  { %6980 = vmatmul.msk.bf16.vlgmr.msra.gmra.mxu1 %vm615_vm0, %v7200_v23  ;;  %6043 = vrot.lane.b32.xlu2 %v8947_v1, %s10992_s30 }
 0x32a   :  { %6979 = vmatmul.msk.bf16.vlgmr.msra.gmra.mxu0 %vm615_vm0, %v7200_v23  ;;  %5056 = vmatpush.bf16.msra.mxu1 %v5025_v51 }
 0x32b   :  { %6041 = vrot.lane.b32.xlu1 %v8953_v60, %s10992_s30  ;;  %v9646_v21 = vpop.permute.xlu2 %5495  ;;  %5042 = vmatpush.bf16.msra.mxu0 %v5024_v8 }
 0x32c   :  { %1226 = vrot.lane.b32.xlu0 %v1224_v15, %s7472_s23  ;;  %v4148_v38 = vpop.f32.mrf.mxu3  ;;  %s9711_s23 = sld [smem:[#allocation3 + $0x6f]] }
 0x32d   :  { %v9648_v46 = vpop.permute.xlu1 %5315  ;;  %v4158_v37 = vadd.f32 %v4148_v38, %v4064_v4  ;;  %v4134_v13 = vpop.f32.mrf.mxu2 }
 0x32e   :  { %v9650_v24 = vpop.permute.xlu0 %5313  ;;  %v4157_v33 = vadd.f32 %v4134_v13, %v4063_v31  ;;  %v4120_v36 = vpop.f32.mrf.mxu1 }
 0x32f   :  { %v4106_v0 = vpop.f32.mrf.mxu0  ;;  %v4156_v3 = vadd.f32 %v4120_v36, %v4062_v50 }
 0x330   :  { %v4155_v43 = vadd.f32 %v4106_v0, %v4061_v5 }
 0x331   :  { %6992 = vmatmul.msk.bf16.vlgmr.msrb.gmra.mxu3 %vm615_vm0, %v7201_v40  ;;  %1237 = vrot.lane.b32.xlu2 %v1235_v47, %s7473_s10  ;;  %s10995_s10 = smov 82  }
 0x332   :  { %6991 = vmatmul.msk.bf16.vlgmr.msrb.gmra.mxu2 %vm615_vm0, %v7201_v40  ;;  %5195 = vmatpush.bf16.msrb.mxu3 %v9461_v20  ;;  %v5136_v20 = vsel %vm174_vm5, %v9575_v27, %v9572_v42  ;;  %vm1142_vm5 = vcmask 416768  }
 0x333   :  { %6039 = vrot.lane.b32.xlu1 %v9015_v41, %s10992_s30  ;;  %v9667_v49 = vpop.permute.xlu2 %5493  ;;  %5181 = vmatpush.bf16.msrb.mxu2 %v5138_v6 }
 0x334   :  { %6037 = vrot.lane.b32.xlu0 %v9020_v59, %s10992_s30  ;;  %v4240_v11 = vpop.f32.mrf.mxu3  ;;  %s9707_s30 = sld [smem:[#allocation3 + $0x70]] }
 0x335   :  { %v1118_v19 = vpop.permute.xlu1 %1117  ;;  %v4248_v52 = vadd.f32 %v4240_v11, %v4154_v30  ;;  %v4226_v18 = vpop.f32.mrf.mxu2 }
 0x336   :  { %v1119_v4 = vrot.slane %v1118_v19, 1  ;;  %v9670_v39 = vpop.permute.xlu0 %5311  ;;  %v4247_v23 = vadd.f32 %v4226_v18, %v4153_v48  ;;  %v4212_v35 = vpop.f32.mrf.mxu1  ;;  %v5229_v48 = vsel %vm769_vm2, %v9593_v45, %v9524_v58 }
 0x337   :  { %v4198_v26 = vpop.f32.mrf.mxu0  ;;  %v4246_v54 = vadd.f32 %v4212_v35, %v4152_v22 }
 0x338   :  { %v1121_v31 = vsel %vm1120_vm3, %v1118_v19, %v1119_v4  ;;  %v4245_v12 = vadd.f32 %v4198_v26, %v4151_v55  ;;  %v1256_v19 = vstv %s9711_s23  ;;  %s9798_s23 = sld [smem:[#allocation3 + $0x76]]  ;;  %vm11003_vm3 = vmmov %vm11001_vm11 }
 0x339   :  { %v1123_v50 = vadd.f32 %v1121_v31, %v9621_v62  ;;  %6990 = vmatmul.msk.bf16.vlgmr.msrb.gmra.mxu1 %vm615_vm0, %v7201_v40  ;;  %6128 = vrot.lane.b32.xlu2 %v9020_v59, %s10993_s25 }
 0x33a   :  { %6989 = vmatmul.msk.bf16.vlgmr.msrb.gmra.mxu0 %vm615_vm0, %v7201_v40  ;;  %5167 = vmatpush.bf16.msrb.mxu1 %v5137_v63 }
 0x33b   :  { %6134 = vrot.lane.b32.xlu1 %v8947_v1, %s10993_s25  ;;  %v9688_v28 = vpop.permute.xlu2 %5588  ;;  %5153 = vmatpush.bf16.msrb.mxu0 %v5136_v20 }
 0x33c   :  { %6132 = vrot.lane.b32.xlu0 %v8953_v60, %s10993_s25  ;;  %v4242_v10 = vpop.f32.mrf.mxu3 }
 0x33d   :  { %v9690_v5 = vpop.permute.xlu1 %5400  ;;  %v4252_v42 = vadd.f32 %v4242_v10, %v4158_v37  ;;  %v4228_v27 = vpop.f32.mrf.mxu2 }
 0x33e   :  { %v9692_v17 = vpop.permute.xlu0 %5406  ;;  %v4251_v62 = vadd.f32 %v4228_v27, %v4157_v33  ;;  %v4214_v29 = vpop.f32.mrf.mxu1  ;;  %v5228_v33 = vsel %vm769_vm2, %v9627_v25, %v9593_v45 }
 0x33f   :  { %v4200_v30 = vpop.f32.mrf.mxu0  ;;  %v4250_v56 = vadd.f32 %v4214_v29, %v4156_v3  ;;  %v5227_v3 = vsel %vm769_vm2, %v9630_v14, %v9627_v25  ;;  %vm1153_vm2 = vcmask 408576  }
 0x340   :  { %v4249_v53 = vadd.f32 %v4200_v30, %v4155_v43  ;;  %v1267_v43 = vstv %s9707_s30  ;;  %s9790_s30 = sld [smem:[#allocation3 + $0x75]] }
 0x341   :  { %7002 = vmatmul.msk.bf16.vlgmr.msra.gmra.mxu3 %vm615_vm0, %v7202_v57  ;;  %6223 = vrot.lane.b32.xlu2 %v8953_v60, %s10994_s13  ;;  %v1268_v26 = vmul.f32 %v9604_v16, %v1267_v43 }
 0x342   :  { %7001 = vmatmul.msk.bf16.vlgmr.msra.gmra.mxu2 %vm615_vm0, %v7202_v57  ;;  %5286 = vmatpush.bf16.msra.mxu3 %v9524_v58 }
 0x343   :  { %1248 = vrot.lane.b32.xlu1 %v1246_v61, %s7474_s7  ;;  %v9709_v32 = vpop.permute.xlu2 %1161  ;;  %5272 = vmatpush.bf16.msra.mxu2 %v5229_v48  ;;  %s9783_s7 = sld [smem:[#allocation3 + $0x74]] }
 0x344   :  { %6130 = vrot.lane.b32.xlu0 %v9015_v41, %s10993_s25  ;;  %v4334_v22 = vpop.f32.mrf.mxu3  ;;  %s9750_s25 = sld [smem:[#allocation3 + $0x71]]  ;;  %v1163_v27 = vrot.slane %v9709_v32, 1 }
 0x345   :  { %v1140_v15 = vpop.permute.xlu1 %1139  ;;  %v4342_v51 = vadd.f32 %v4334_v22, %v4248_v52  ;;  %v4320_v8 = vpop.f32.mrf.mxu2 }
 0x346   :  { %v1141_v55 = vrot.slane %v1140_v15, 1  ;;  %v1129_v2 = vpop.permute.xlu0 %1128  ;;  %v4341_v38 = vadd.f32 %v4320_v8, %v4247_v23  ;;  %v4306_v13 = vpop.f32.mrf.mxu1  ;;  %v7203_v23 = vld [vmem:[%s10659_s5 + $0x118] sm:$0xff]  ;;  %v1165_v22 = vsel %vm1164_vm6, %v9709_v32, %v1163_v27  ;;  %vm11013_vm6 = vcmask 900096  }
 0x347   :  { %v1130_v37 = vrot.slane %v1129_v2, 1  ;;  %v4292_v40 = vpop.f32.mrf.mxu0  ;;  %v4340_v47 = vadd.f32 %v4306_v13, %v4246_v54 }
 0x348   :  { %v1143_v36 = vsel %vm1142_vm5, %v1140_v15, %v1141_v55  ;;  %v4339_v58 = vadd.f32 %v4292_v40, %v4245_v12  ;;  %v5320_v12 = vsel %vm780_vm15, %v9650_v24, %v9648_v46  ;;  %vm11004_vm5 = vmmov %vm11003_vm3 }
 0x349   :  { %v1132_v0 = vsel %vm1131_vm10, %v1129_v2, %v1130_v37  ;;  %7000 = vmatmul.msk.bf16.vlgmr.msra.gmra.mxu1 %vm615_vm0, %v7202_v57  ;;  %6221 = vrot.lane.b32.xlu2 %v9015_v41, %s10994_s13  ;;  %vm1196_vm10 = vcmask 252928  }
 0x34a   :  { %v1134_v6 = vadd.f32 %v1132_v0, %v1123_v50  ;;  %6999 = vmatmul.msk.bf16.vlgmr.msra.gmra.mxu0 %vm615_vm0, %v7202_v57  ;;  %5258 = vmatpush.bf16.msra.mxu1 %v5228_v33  ;;  %v1257_v50 = vmul.f32 %v9604_v16, %v1256_v19  ;;  %v1278_v8 = vstv %s9750_s25  ;;  %s9822_s25 = sld [smem:[#allocation3 + $0x77]] }
 0x34b   :  { %6219 = vrot.lane.b32.xlu1 %v9020_v59, %s10994_s13  ;;  %v9729_v11 = vpop.permute.xlu2 %5673  ;;  %5244 = vmatpush.bf16.msra.mxu0 %v5227_v3 }
 0x34c   :  { %v1145_v45 = vadd.f32 %v1143_v36, %v1134_v6  ;;  %6225 = vrot.lane.b32.xlu0 %v8947_v1, %s10994_s13  ;;  %v4336_v25 = vpop.f32.mrf.mxu3  ;;  %s9760_s13 = sld [smem:[#allocation3 + $0x73]] }
 0x34d   :  { %v9731_v14 = vpop.permute.xlu1 %5491  ;;  %v4346_v52 = vadd.f32 %v4336_v25, %v4252_v42  ;;  %v4322_v4 = vpop.f32.mrf.mxu2 }
 0x34e   :  { %v9734_v18 = vpop.permute.xlu0 %5497  ;;  %v4345_v35 = vadd.f32 %v4322_v4, %v4251_v62  ;;  %v4308_v31 = vpop.f32.mrf.mxu1  ;;  %v1332_v4 = vstv %s9798_s23  ;;  %s9862_s23 = sld [smem:[#allocation3 + $0x7b]] }
 0x34f   :  { %v4294_v54 = vpop.f32.mrf.mxu0  ;;  %v4344_v63 = vadd.f32 %v4308_v31, %v4250_v56 }
 0x350   :  { %v9744_v20 = vadd.f32 %v4294_v54, %v4249_v53 }
 0x351   :  { %7028 = vmatmul.msk.bf16.vlgmr.msrb.gmra.mxu3 %vm615_vm0, %v7203_v23  ;;  %6314 = vrot.lane.b32.xlu2 %v8953_v60, %s10995_s10 }
 0x352   :  { %7027 = vmatmul.msk.bf16.vlgmr.msrb.gmra.mxu2 %vm615_vm0, %v7203_v23  ;;  %5377 = vmatpush.bf16.msrb.mxu3 %v9648_v46  ;;  %v5319_v46 = vsel %vm780_vm15, %v9670_v39, %v9650_v24  ;;  %v1300_v2 = vstv %s9760_s13  ;;  %s9834_s13 = sld [smem:[#allocation3 + $0x7a]] }
 0x353   :  { %1270 = vrot.lane.b32.xlu1 %v1268_v26, %s7475_s3  ;;  %v9754_v44 = vpop.permute.xlu2 %1183  ;;  %5363 = vmatpush.bf16.msrb.mxu2 %v5320_v12  ;;  %v1301_v13 = vmul.f32 %v9604_v16, %v1300_v2  ;;  %s7478_s3 = smov 22   ;;  %v1333_v26 = vmul.f32 %v9604_v16, %v1332_v4 }
 0x354   :  { %1259 = vrot.lane.b32.xlu0 %v1257_v50, %s7476_s16  ;;  %v4428_v10 = vpop.f32.mrf.mxu3  ;;  %s7479_s16 = smov 23  }
 0x355   :  { %v9756_v42 = vpop.permute.xlu1 %5586  ;;  %v9762_v60 = vadd.f32 %v4428_v10, %v4342_v51  ;;  %v4414_v57 = vpop.f32.mrf.mxu2  ;;  %v5318_v51 = vsel %vm780_vm15, %v9570_v34, %v9670_v39  ;;  %v1289_v34 = vstv %s9752_s22  ;;  %vm10996_vm15 = vcmask 924672   ;;  %s9825_s22 = sld [smem:[#allocation3 + $0x78]] }
 0x356   :  { %v1151_v62 = vpop.permute.xlu0 %1150  ;;  %v9764_v29 = vadd.f32 %v4414_v57, %v4341_v38  ;;  %v4400_v30 = vpop.f32.mrf.mxu1  ;;  %v1290_v33 = vmul.f32 %v9604_v16, %v1289_v34  ;;  %v5411_v3 = vsel %vm10996_vm15, %v9591_v7, %v9692_v17  ;;  %vm10997_vm1 = vmmov %vm10996_vm15 }
 0x357   :  { %v1152_v61 = vrot.slane %v1151_v62, 1  ;;  %v4386_v56 = vpop.f32.mrf.mxu0  ;;  %v9766_v48 = vadd.f32 %v4400_v30, %v4340_v47  ;;  %v5410_v10 = vsel %vm10997_vm1, %v9625_v9, %v9591_v7  ;;  %vm10998_vm13 = vmmov %vm10997_vm1  ;;  %v1185_v7 = vrot.slane %v9754_v44, 1 }
 0x358   :  { %v9772_v15 = vadd.f32 %v4386_v56, %v4339_v58  ;;  %v1279_v58 = vmul.f32 %v9604_v16, %v1278_v8  ;;  %vm11015_vm15 = vmmov %vm11013_vm6 }
 0x359   :  { %v1154_v53 = vsel %vm1153_vm2, %v1151_v62, %v1152_v61  ;;  %7026 = vmatmul.msk.bf16.vlgmr.msrb.gmra.mxu1 %vm615_vm0, %v7203_v23  ;;  %6312 = vrot.lane.b32.xlu2 %v9015_v41, %s10995_s10  ;;  %v1343_v62 = vstv %s9822_s25  ;;  %v1370_v61 = vstv %s9834_s13  ;;  %v1186_v34 = vsel %vm11000_vm4, %v9754_v44, %v1185_v7  ;;  %s11002_s25 = smov 127   ;;  %s7482_s13 = smov 1   ;;  %vm11016_vm1 = vmmov %vm11013_vm6 }
 0x35a   :  { %v1156_v55 = vadd.f32 %v1154_v53, %v1145_v45  ;;  %7025 = vmatmul.msk.bf16.vlgmr.msrb.gmra.mxu0 %vm615_vm0, %v7203_v23  ;;  %5349 = vmatpush.bf16.msrb.mxu1 %v5319_v46  ;;  %v1322_v45 = vstv %s9790_s30  ;;  %s10999_s30 = smov 4   ;;  %v7209_v53 = vld [vmem:[%s10659_s5 + $0x128] sm:$0xff]  ;;  %vm1218_vm2 = vcmask 236544   ;;  %vm1240_vm4 = vcmask 220160  }
 0x35b   :  { %6310 = vrot.lane.b32.xlu1 %v9020_v59, %s10995_s10  ;;  %v9792_v39 = vpop.permute.xlu2 %5764  ;;  %5335 = vmatpush.bf16.msrb.mxu0 %v5318_v51  ;;  %v1323_v50 = vmul.f32 %v9604_v16, %v1322_v45  ;;  %v1354_v57 = vstv %s9825_s22  ;;  %s11007_s22 = smov 126  }
 0x35c   :  { %v9785_v24 = vadd.f32 %v1165_v22, %v1156_v55  ;;  %6316 = vrot.lane.b32.xlu0 %v8947_v1, %s10995_s10  ;;  %v4430_v32 = vpop.f32.mrf.mxu3  ;;  %v7208_v1 = vld [vmem:[%s10659_s5 + $0x120] sm:$0xff]  ;;  %s7477_s10 = smov 21   ;;  %v1355_v55 = vmul.f32 %v9604_v16, %v1354_v57 }
 0x35d   :  { %v9794_v41 = vpop.permute.xlu1 %5584  ;;  %v9800_v59 = vadd.f32 %v4430_v32, %v4346_v52  ;;  %v4416_v38 = vpop.f32.mrf.mxu2  ;;  %v1311_v52 = vstv %s9783_s7  ;;  %s7480_s7 = smov 3  }
 0x35e   :  { %v9802_v37 = vpop.permute.xlu0 %5582  ;;  %v9808_v40 = vadd.f32 %v4416_v38, %v4345_v35  ;;  %v4402_v47 = vpop.f32.mrf.mxu1 }
 0x35f   :  { %v4388_v36 = vpop.f32.mrf.mxu0  ;;  %v9811_v0 = vadd.f32 %v4402_v47, %v4344_v63 }
 0x360   :  { %v9818_v6 = vadd.f32 %v4388_v36, %v9744_v20  ;;  %v1312_v20 = vmul.f32 %v9604_v16, %v1311_v52 }
 0x361   :  { %7038 = vmatmul.msk.bf16.vlgmr.msra.gmra.mxu3 %vm615_vm0, %v7208_v1  ;;  %1303 = vrot.lane.b32.xlu2 %v1301_v13, %s7477_s10  ;;  %s9912_s10 = sld [smem:[#allocation3 + $0x7f]] }
 0x362   :  { %7037 = vmatmul.msk.bf16.vlgmr.msra.gmra.mxu2 %vm615_vm0, %v7208_v1  ;;  %5468 = vmatpush.bf16.msra.mxu3 %v9692_v17 }
 0x363   :  { %1292 = vrot.lane.b32.xlu1 %v1290_v33, %s7478_s3  ;;  %v9827_v43 = vpop.permute.xlu2 %5859  ;;  %5454 = vmatpush.bf16.msra.mxu2 %v5411_v3  ;;  %v1380_v33 = vstv %s9862_s23  ;;  %s9919_s3 = sld [smem:[#allocation3 + $0x80]]  ;;  %s11005_s23 = smov 124  }
 0x364   :  { %1281 = vrot.lane.b32.xlu0 %v1279_v58, %s7479_s16  ;;  %v4522_v25 = vpop.f32.mrf.mxu3  ;;  %s9875_s16 = sld [smem:[#allocation3 + $0x7d]] }
 0x365   :  { %v9829_v19 = vpop.permute.xlu1 %5679  ;;  %v9837_v23 = vadd.f32 %v4522_v25, %v9762_v60  ;;  %v4508_v35 = vpop.f32.mrf.mxu2  ;;  %v5409_v60 = vsel %vm10998_vm13, %v9690_v5, %v9625_v9  ;;  %vm1229_vm13 = vcmask 228352  }
 0x366   :  { %v9839_v31 = vpop.permute.xlu0 %5677  ;;  %v9843_v54 = vadd.f32 %v4508_v35, %v9764_v29  ;;  %v4494_v63 = vpop.f32.mrf.mxu1  ;;  %v9872_v29 = vld [vmem:[%s10656_s2 + $0x2] sm:$0xf] }
 0x367   :  { %v4480_v12 = vpop.f32.mrf.mxu0  ;;  %v9847_v17 = vadd.f32 %v4494_v63, %v9766_v48  ;;  %v1371_v22 = vmul.f32 %v1370_v61, %v9872_v29 }
 0x368   :  { %v9854_v27 = vadd.f32 %v4480_v12, %v9772_v15 }
 0x369   :  { %7036 = vmatmul.msk.bf16.vlgmr.msra.gmra.mxu1 %vm615_vm0, %v7208_v1  ;;  %1335 = vrot.lane.b32.xlu2 %v1333_v26, %s7480_s7  ;;  %s9948_s7 = sld [smem:[#allocation3 + $0x82]]  ;;  %v1430_v12 = vstv %s9919_s3 }
 0x36a   :  { %7035 = vmatmul.msk.bf16.vlgmr.msra.gmra.mxu0 %vm615_vm0, %v7208_v1  ;;  %5440 = vmatpush.bf16.msra.mxu1 %v5410_v10  ;;  %v5502_v1 = vsel %vm11001_vm11, %v9646_v21, %v9734_v18  ;;  %v1400_v36 = vstv %s9875_s16  ;;  %s9944_s16 = sld [smem:[#allocation3 + $0x81]]  ;;  %v1431_v7 = vmul.f32 %v1430_v12, %v9872_v29 }
 0x36b   :  { %1325 = vrot.lane.b32.xlu1 %v1323_v50, %s10999_s30  ;;  %5426 = vmatpush.bf16.msra.mxu0 %v5409_v60  ;;  %v9897_v38 = vpop.permute.xlu2 %5857  ;;  %s9909_s30 = sld [smem:[#allocation3 + $0x7e]]  ;;  %v7210_v60 = vld [vmem:[%s10659_s5 + $0x130] sm:$0xff] }
 0x36c   :  { %1314 = vrot.lane.b32.xlu0 %v1312_v20, %s7481_s8  ;;  %v4524_v9 = vpop.f32.mrf.mxu3  ;;  %s7483_s8 = smov 2   ;;  %s9981_s3 = sld [smem:[#allocation3 + $0x84]] }
 0x36d   :  { %v1173_v5 = vpop.permute.xlu1 %1172  ;;  %v9878_v30 = vadd.f32 %v4524_v9, %v9800_v59  ;;  %v4510_v48 = vpop.f32.mrf.mxu2  ;;  %v1344_v59 = vmul.f32 %v9604_v16, %v1343_v62  ;;  %v1390_v16 = vstv %s9866_s28  ;;  %s11006_s28 = smov 125  }
 0x36e   :  { %v1174_v56 = vrot.slane %v1173_v5, 1  ;;  %v9880_v46 = vpop.permute.xlu0 %5675  ;;  %v9887_v15 = vadd.f32 %v4510_v48, %v9808_v40  ;;  %v4496_v51 = vpop.f32.mrf.mxu1  ;;  %v1391_v52 = vmul.f32 %v1390_v16, %v9872_v29  ;;  %v5593_v48 = vsel %vm813_vm7, %v9756_v42, %v9688_v28 }
 0x36f   :  { %v4482_v8 = vpop.f32.mrf.mxu0  ;;  %v9894_v2 = vadd.f32 %v4496_v51, %v9811_v0 }
 0x370   :  { %v1176_v32 = vsel %vm1175_vm8, %v1173_v5, %v1174_v56  ;;  %v9904_v44 = vadd.f32 %v4482_v8, %v9818_v6  ;;  %v1401_v6 = vmul.f32 %v1400_v36, %v9872_v29  ;;  %v5592_v36 = vsel %vm813_vm7, %v9794_v41, %v9756_v42 }
 0x371   :  { %v1178_v13 = vadd.f32 %v1176_v32, %v9785_v24  ;;  %7048 = vmatmul.msk.bf16.vlgmr.msrb.gmra.mxu3 %vm615_vm0, %v7209_v53  ;;  %1373 = vrot.lane.b32.xlu2 %v1371_v22, %s11002_s25  ;;  %v1410_v50 = vstv %s9909_s30  ;;  %s9952_s25 = sld [smem:[#allocation3 + $0x83]]  ;;  %s11008_s30 = smov 121   ;;  %v1440_v32 = vstv %s9944_s16 }
 0x372   :  { %7047 = vmatmul.msk.bf16.vlgmr.msrb.gmra.mxu2 %vm615_vm0, %v7209_v53  ;;  %5559 = vmatpush.bf16.msrb.mxu3 %v9734_v18  ;;  %v1381_v18 = vmul.f32 %v1380_v33, %v9872_v29  ;;  %v1411_v56 = vmul.f32 %v1410_v50, %v9872_v29  ;;  %s7484_s16 = smov 103  }
 0x373   :  { %v1188_v40 = vadd.f32 %v1186_v34, %v1178_v13  ;;  %1357 = vrot.lane.b32.xlu1 %v1355_v55, %s7482_s13  ;;  %5545 = vmatpush.bf16.msrb.mxu2 %v5502_v1  ;;  %v9939_v63 = vpop.permute.xlu2 %5952  ;;  %s11012_s13 = smov 120  }
 0x374   :  { %1346 = vrot.lane.b32.xlu0 %v1344_v59, %s7483_s8  ;;  %v4616_v24 = vpop.f32.mrf.mxu3  ;;  %s10021_s8 = sld [smem:[#allocation3 + $0x88]] }
 0x375   :  { %v9914_v47 = vpop.permute.xlu1 %5770  ;;  %v4624_v0 = vadd.f32 %v4616_v24, %v9837_v23  ;;  %v4602_v58 = vpop.f32.mrf.mxu2  ;;  %v5501_v23 = vsel %vm11003_vm3, %v9667_v49, %v9646_v21  ;;  %v1420_v21 = vstv %s9912_s10  ;;  %s11009_s10 = smov 122   ;;  %vm11030_vm3 = vcmask 695296  }
 0x376   :  { %v9922_v3 = vpop.permute.xlu0 %5768  ;;  %v4623_v45 = vadd.f32 %v4602_v58, %v9843_v54  ;;  %v4588_v25 = vpop.f32.mrf.mxu1  ;;  %v5500_v54 = vsel %vm11004_vm5, %v9731_v14, %v9667_v49  ;;  %v1421_v5 = vmul.f32 %v1420_v21, %v9872_v29  ;;  %v5591_v58 = vsel %vm813_vm7, %v9802_v37, %v9794_v41 }
 0x377   :  { %v4574_v4 = vpop.f32.mrf.mxu0  ;;  %v4622_v35 = vadd.f32 %v4588_v25, %v9847_v17  ;;  %v1460_v8 = vstv %s9952_s25  ;;  %s10017_s25 = sld [smem:[#allocation3 + $0x87]]  ;;  %v1471_v37 = vstv %s9981_s3  ;;  %vm1207_vm7 = vcmask 244736   ;;  %s11014_s3 = smov 100  }
 0x378   :  { %v9933_v26 = vadd.f32 %v4574_v4, %v9854_v27  ;;  %v1461_v13 = vmul.f32 %v1460_v8, %v9872_v29  ;;  %v1472_v12 = vmul.f32 %v1471_v37, %v9872_v29  ;;  %vm1251_vm5 = vcmask 211968  }
 0x379   :  { %7046 = vmatmul.msk.bf16.vlgmr.msrb.gmra.mxu1 %vm615_vm0, %v7209_v53  ;;  %1403 = vrot.lane.b32.xlu2 %v1401_v6, %s11005_s23  ;;  %s11010_s23 = smov 123  }
 0x37a   :  { %7045 = vmatmul.msk.bf16.vlgmr.msrb.gmra.mxu0 %vm615_vm0, %v7209_v53  ;;  %5531 = vmatpush.bf16.msrb.mxu1 %v5501_v23 }
 0x37b   :  { %1393 = vrot.lane.b32.xlu1 %v1391_v52, %s11006_s28  ;;  %5517 = vmatpush.bf16.msrb.mxu0 %v5500_v54  ;;  %v1216_v51 = vpop.permute.xlu2 %1215  ;;  %s9985_s28 = sld [smem:[#allocation3 + $0x85]] }
 0x37c   :  { %1383 = vrot.lane.b32.xlu0 %v1381_v18, %s11007_s22  ;;  %v4618_v49 = vpop.f32.mrf.mxu3  ;;  %s9992_s22 = sld [smem:[#allocation3 + $0x86]]  ;;  %v1217_v41 = vrot.slane %v1216_v51, 1  ;;  %v7211_v18 = vld [vmem:[%s10659_s5 + $0x138] sm:$0xff] }
 0x37d   :  { %v1194_v14 = vpop.permute.xlu1 %1193  ;;  %v4628_v17 = vadd.f32 %v4618_v49, %v9878_v30  ;;  %v4604_v10 = vpop.f32.mrf.mxu2 }
 0x37e   :  { %v1195_v20 = vrot.slane %v1194_v14, 1  ;;  %v9955_v27 = vpop.permute.xlu0 %5766  ;;  %v9962_v57 = vadd.f32 %v4604_v10, %v9887_v15  ;;  %v4590_v9 = vpop.f32.mrf.mxu1  ;;  %v1450_v15 = vstv %s9948_s7  ;;  %s11011_s7 = smov 104  }
 0x37f   :  { %v4576_v61 = vpop.f32.mrf.mxu0  ;;  %v9966_v30 = vadd.f32 %v4590_v9, %v9894_v2  ;;  %v1451_v16 = vmul.f32 %v1450_v15, %v9872_v29 }
 0x380   :  { %v1197_v62 = vsel %vm1196_vm10, %v1194_v14, %v1195_v20  ;;  %v9975_v22 = vadd.f32 %v4576_v61, %v9904_v44  ;;  %v5684_v20 = vsel %vm11013_vm6, %v9839_v31, %v9829_v19  ;;  %vm1262_vm10 = vcmask 203776  }
 0x381   :  { %v9972_v53 = vadd.f32 %v1197_v62, %v1188_v40  ;;  %7058 = vmatmul.msk.bf16.vlgmr.msra.gmra.mxu3 %vm615_vm0, %v7210_v60  ;;  %1433 = vrot.lane.b32.xlu2 %v1431_v7, %s11008_s30  ;;  %v1482_v42 = vstv %s9985_s28  ;;  %s10027_s30 = sld [smem:[#allocation3 + $0x89]]  ;;  %s7485_s28 = smov 101  }
 0x382   :  { %7057 = vmatmul.msk.bf16.vlgmr.msra.gmra.mxu2 %vm615_vm0, %v7210_v60  ;;  %5650 = vmatpush.bf16.msra.mxu3 %v9688_v28  ;;  %v1441_v28 = vmul.f32 %v1440_v32, %v9872_v29  ;;  %v1493_v25 = vstv %s9992_s22  ;;  %v1483_v49 = vmul.f32 %v1482_v42, %v9872_v29  ;;  %s10055_s22 = sld [smem:[#allocation3 + $0x8a]] }
 0x383   :  { %1423 = vrot.lane.b32.xlu1 %v1421_v5, %s11009_s10  ;;  %5636 = vmatpush.bf16.msra.mxu2 %v5593_v48  ;;  %v1494_v23 = vmul.f32 %v1493_v25, %v9872_v29  ;;  %v1513_v5 = vstv %s10021_s8  ;;  %s11018_s8 = smov 98   ;;  %s11019_s10 = smov 99  }
 0x384   :  { %1413 = vrot.lane.b32.xlu0 %v1411_v56, %s11010_s23  ;;  %v4710_v55 = vpop.f32.mrf.mxu3  ;;  %v1514_v32 = vmul.f32 %v1513_v5, %v9872_v29  ;;  %s10098_s23 = sld [smem:[#allocation3 + $0x8e]] }
 0x385   :  { %v9987_v34 = vpop.permute.xlu1 %5855  ;;  %v9994_v2 = vadd.f32 %v4710_v55, %v4624_v0  ;;  %v4696_v59 = vpop.f32.mrf.mxu2 }
 0x386   :  { %v9996_v1 = vpop.permute.xlu0 %5861  ;;  %v9999_v44 = vadd.f32 %v4696_v59, %v4623_v45  ;;  %v4682_v40 = vpop.f32.mrf.mxu1 }
 0x387   :  { %v4668_v24 = vpop.f32.mrf.mxu0  ;;  %v10002_v33 = vadd.f32 %v4682_v40, %v4622_v35  ;;  %v1523_v56 = vstv %s10027_s30  ;;  %s10094_s30 = sld [smem:[#allocation3 + $0x8d]] }
 0x388   :  { %v10009_v0 = vadd.f32 %v4668_v24, %v9933_v26  ;;  %v1524_v15 = vmul.f32 %v1523_v56, %v9872_v29  ;;  %v1533_v24 = vstv %s10055_s22  ;;  %s11020_s22 = smov 95  }
 0x389   :  { %7056 = vmatmul.msk.bf16.vlgmr.msra.gmra.mxu1 %vm615_vm0, %v7210_v60  ;;  %1463 = vrot.lane.b32.xlu2 %v1461_v13, %s7484_s16  ;;  %s7486_s16 = smov 102  }
 0x38a   :  { %7055 = vmatmul.msk.bf16.vlgmr.msra.gmra.mxu0 %vm615_vm0, %v7210_v60  ;;  %5622 = vmatpush.bf16.msra.mxu1 %v5592_v36  ;;  %v1219_v60 = vsel %vm1218_vm2, %v1216_v51, %v1217_v41  ;;  %vm11031_vm2 = vmmov %vm11030_vm3 }
 0x38b   :  { %1453 = vrot.lane.b32.xlu1 %v1451_v16, %s11011_s7  ;;  %5608 = vmatpush.bf16.msra.mxu0 %v5591_v58  ;;  %s10058_s7 = sld [smem:[#allocation3 + $0x8b]]  ;;  %v7212_v58 = vld [vmem:[%s10659_s5 + $0x140] sm:$0xff]  ;;  %vm11032_vm6 = vmmov %vm11031_vm2 }
 0x38c   :  { %1443 = vrot.lane.b32.xlu0 %v1441_v28, %s11012_s13  ;;  %v4712_v6 = vpop.f32.mrf.mxu3  ;;  %s10065_s13 = sld [smem:[#allocation3 + $0x8c]] }
 0x38d   :  { %v10023_v45 = vpop.permute.xlu1 %5950  ;;  %v10029_v52 = vadd.f32 %v4712_v6, %v4628_v17  ;;  %v4698_v4 = vpop.f32.mrf.mxu2 }
 0x38e   :  { %v1205_v35 = vpop.permute.xlu0 %1204  ;;  %v10036_v26 = vadd.f32 %v4698_v4, %v9962_v57  ;;  %v4684_v21 = vpop.f32.mrf.mxu1 }
 0x38f   :  { %v1206_v54 = vrot.slane %v1205_v35, 1  ;;  %v4670_v14 = vpop.f32.mrf.mxu0  ;;  %v10040_v50 = vadd.f32 %v4684_v21, %v9966_v30  ;;  %v10043_v17 = vpop.permute.xlu2 %6043  ;;  %v1503_v30 = vstv %s10017_s25  ;;  %s11017_s25 = smov 97  }
 0x390   :  { %v10049_v7 = vadd.f32 %v4670_v14, %v9975_v22  ;;  %v1504_v59 = vmul.f32 %v1503_v30, %v9872_v29  ;;  %v1573_v14 = vstv %s10098_s23  ;;  %s11024_s23 = smov 93  }
 0x391   :  { %v1208_v10 = vsel %vm1207_vm7, %v1205_v35, %v1206_v54  ;;  %7068 = vmatmul.msk.bf16.vlgmr.msrb.gmra.mxu3 %vm615_vm0, %v7211_v18  ;;  %1496 = vrot.lane.b32.xlu2 %v1494_v23, %s11014_s3  ;;  %s10104_s3 = sld [smem:[#allocation3 + $0x8f]]  ;;  %v1534_v35 = vmul.f32 %v1533_v24, %v9872_v29  ;;  %v1574_v30 = vmul.f32 %v1573_v14, %v9872_v29  ;;  %vm1273_vm7 = vcmask 195584  }
 0x392   :  { %v1210_v57 = vadd.f32 %v1208_v10, %v9972_v53  ;;  %7067 = vmatmul.msk.bf16.vlgmr.msrb.gmra.mxu2 %vm615_vm0, %v7211_v18  ;;  %5741 = vmatpush.bf16.msrb.mxu3 %v9829_v19 }
 0x393   :  { %1485 = vrot.lane.b32.xlu1 %v1483_v49, %s7485_s28  ;;  %5727 = vmatpush.bf16.msrb.mxu2 %v5684_v20  ;;  %v1563_v20 = vstv %s10094_s30  ;;  %s11023_s30 = smov 92   ;;  %s10171_s28 = sld [smem:[#allocation3 + $0x95]] }
 0x394   :  { %v1221_v9 = vadd.f32 %v1219_v60, %v1210_v57  ;;  %1474 = vrot.lane.b32.xlu0 %v1472_v12, %s7486_s16  ;;  %v4804_v62 = vpop.f32.mrf.mxu3  ;;  %s10283_s16 = sld [smem:[#allocation3 + $0x9f]] }
 0x395   :  { %v10060_v61 = vpop.permute.xlu1 %5948  ;;  %v10068_v48 = vadd.f32 %v4804_v62, %v9994_v2  ;;  %v4790_v53 = vpop.f32.mrf.mxu2  ;;  %v5683_v2 = vsel %vm11015_vm15, %v9880_v46, %v9839_v31  ;;  %v1543_v31 = vstv %s10058_s7  ;;  %s10125_s7 = sld [smem:[#allocation3 + $0x90]]  ;;  %vm1284_vm15 = vcmask 187392  }
 0x396   :  { %v10070_v22 = vpop.permute.xlu0 %5946  ;;  %v10074_v51 = vadd.f32 %v4790_v53, %v9999_v44  ;;  %v4776_v55 = vpop.f32.mrf.mxu1  ;;  %v5682_v44 = vsel %vm11016_vm1, %v9729_v11, %v9880_v46  ;;  %v1544_v25 = vmul.f32 %v1543_v31, %v9872_v29  ;;  %vm1295_vm1 = vcmask 179200  }
 0x397   :  { %v4762_v8 = vpop.f32.mrf.mxu0  ;;  %v10078_v19 = vadd.f32 %v4776_v55, %v10002_v33  ;;  %v1238_v40 = vpop.permute.xlu2 %1237  ;;  %v1553_v33 = vstv %s10065_s13  ;;  %s11021_s13 = smov 96   ;;  %v1583_v10 = vstv %s10104_s3  ;;  %s10165_s3 = sld [smem:[#allocation3 + $0x94]] }
 0x398   :  { %v10085_v13 = vadd.f32 %v4762_v8, %v10009_v0  ;;  %v1239_v46 = vrot.slane %v1238_v40, 1  ;;  %v1554_v42 = vmul.f32 %v1553_v33, %v9872_v29 }
 0x399   :  { %7066 = vmatmul.msk.bf16.vlgmr.msrb.gmra.mxu1 %vm615_vm0, %v7211_v18  ;;  %1526 = vrot.lane.b32.xlu2 %v1524_v15, %s11017_s25  ;;  %s10131_s25 = sld [smem:[#allocation3 + $0x91]] }
 0x39a   :  { %7065 = vmatmul.msk.bf16.vlgmr.msrb.gmra.mxu0 %vm615_vm0, %v7211_v18  ;;  %5713 = vmatpush.bf16.msrb.mxu1 %v5683_v2  ;;  %v5775_v18 = vsel %vm317_vm9, %v9922_v3, %v9914_v47  ;;  %v1241_v54 = vsel %vm1240_vm4, %v1238_v40, %v1239_v46  ;;  %vm1306_vm4 = vcmask 171008  }
 0x39b   :  { %1516 = vrot.lane.b32.xlu1 %v1514_v32, %s11018_s8  ;;  %5699 = vmatpush.bf16.msrb.mxu0 %v5682_v44  ;;  %s11022_s8 = smov 76  }
 0x39c   :  { %1506 = vrot.lane.b32.xlu0 %v1504_v59, %s11019_s10  ;;  %v4806_v16 = vpop.f32.mrf.mxu3  ;;  %s10161_s10 = sld [smem:[#allocation3 + $0x93]] }
 0x39d   :  { %v10100_v11 = vpop.permute.xlu1 %6041  ;;  %v10107_v28 = vadd.f32 %v4806_v16, %v10029_v52  ;;  %v4792_v36 = vpop.f32.mrf.mxu2 }
 0x39e   :  { %v1227_v0 = vpop.permute.xlu0 %1226  ;;  %v4815_v6 = vadd.f32 %v4792_v36, %v10036_v26  ;;  %v4778_v37 = vpop.f32.mrf.mxu1 }
 0x39f   :  { %v1228_v41 = vrot.slane %v1227_v0, 1  ;;  %v4764_v4 = vpop.f32.mrf.mxu0  ;;  %v4814_v52 = vadd.f32 %v4778_v37, %v10040_v50  ;;  %v10156_v55 = vpop.permute.xlu2 %6128  ;;  %v1646_v37 = vstv %s10171_s28  ;;  %s10249_s28 = sld [smem:[#allocation3 + $0x9d]] }
 0x3a0   :  { %v4813_v21 = vadd.f32 %v4764_v4, %v10049_v7 }
 0x3a1   :  { %v1230_v23 = vsel %vm1229_vm13, %v1227_v0, %v1228_v41  ;;  %7078 = vmatmul.msk.bf16.vlgmr.msra.gmra.mxu3 %vm615_vm0, %v7212_v58  ;;  %1556 = vrot.lane.b32.xlu2 %v1554_v42, %s10898_s24  ;;  %s10138_s24 = sld [smem:[#allocation3 + $0x92]]  ;;  %vm11033_vm13 = vcmask 687104  }
 0x3a2   :  { %v1232_v26 = vadd.f32 %v1230_v23, %v1221_v9  ;;  %7077 = vmatmul.msk.bf16.vlgmr.msra.gmra.mxu2 %vm615_vm0, %v7212_v58  ;;  %5832 = vmatpush.bf16.msra.mxu3 %v9914_v47  ;;  %v1584_v9 = vmul.f32 %v1583_v10, %v9872_v29  ;;  %v1564_v47 = vmul.f32 %v1563_v20, %v9872_v29  ;;  %v1626_v41 = vstv %s10161_s10  ;;  %s10216_s10 = sld [smem:[#allocation3 + $0x99]] }
 0x3a3   :  { %1546 = vrot.lane.b32.xlu1 %v1544_v25, %s11020_s22  ;;  %5818 = vmatpush.bf16.msra.mxu2 %v5775_v18  ;;  %v1627_v14 = vmul.f32 %v1626_v41, %v9872_v29  ;;  %v5864_v20 = vsel %vm911_vm14, %v9987_v34, %v9897_v38  ;;  %s10287_s22 = sld [smem:[#allocation3 + $0xa0]] }
 0x3a4   :  { %v10127_v49 = vadd.f32 %v1241_v54, %v1232_v26  ;;  %1536 = vrot.lane.b32.xlu0 %v1534_v35, %s11021_s13  ;;  %v4898_v50 = vpop.f32.mrf.mxu3  ;;  %s7488_s13 = smov 74   ;;  %v1647_v35 = vmul.f32 %v1646_v37, %v9872_v29 }
 0x3a5   :  { %v10133_v12 = vpop.permute.xlu1 %6039  ;;  %v4906_v60 = vadd.f32 %v4898_v50, %v10068_v48  ;;  %v4884_v7 = vpop.f32.mrf.mxu2  ;;  %v5774_v48 = vsel %vm317_vm9, %v9955_v27, %v9922_v3  ;;  %v1604_v3 = vstv %s10131_s25  ;;  %s10187_s25 = sld [smem:[#allocation3 + $0x96]] }
 0x3a6   :  { %v10141_v57 = vpop.permute.xlu0 %6037  ;;  %v4905_v5 = vadd.f32 %v4884_v7, %v10074_v51  ;;  %v4870_v62 = vpop.f32.mrf.mxu1  ;;  %v5773_v51 = vsel %vm317_vm9, %v9792_v39, %v9955_v27  ;;  %v1593_v27 = vstv %s10125_s7  ;;  %v1605_v16 = vmul.f32 %v1604_v3, %v9872_v29  ;;  %s7487_s7 = smov 73  }
 0x3a7   :  { %v4856_v56 = vpop.f32.mrf.mxu0  ;;  %v4904_v53 = vadd.f32 %v4870_v62, %v10078_v19  ;;  %v1615_v8 = vstv %s10138_s24  ;;  %v1594_v33 = vmul.f32 %v1593_v27, %v9872_v29  ;;  %s7489_s24 = smov 75   ;;  %v10189_v0 = vpop.permute.xlu2 %6223  ;;  %v7214_v62 = vld [vmem:[%s10659_s5 + $0x150] sm:$0xff]  ;;  %vm11025_vm9 = vcmask 703488  }
 0x3a8   :  { %v4903_v15 = vadd.f32 %v4856_v56, %v10085_v13  ;;  %v7213_v13 = vld [vmem:[%s10659_s5 + $0x148] sm:$0xff]  ;;  %v1616_v44 = vmul.f32 %v1615_v8, %v9872_v29  ;;  %vm11027_vm11 = vmmov %vm11025_vm9 }
 0x3a9   :  { %7076 = vmatmul.msk.bf16.vlgmr.msra.gmra.mxu1 %vm615_vm0, %v7212_v58  ;;  %1586 = vrot.lane.b32.xlu2 %v1584_v9, %s11022_s8  ;;  %s10192_s8 = sld [smem:[#allocation3 + $0x97]]  ;;  %v5955_v37 = vsel %vm11027_vm11, %v10070_v22, %v10060_v61  ;;  %vm11035_vm11 = vmmov %vm11033_vm13 }
 0x3aa   :  { %7075 = vmatmul.msk.bf16.vlgmr.msra.gmra.mxu0 %vm615_vm0, %v7212_v58  ;;  %5804 = vmatpush.bf16.msra.mxu1 %v5774_v48  ;;  %v1636_v58 = vstv %s10165_s3  ;;  %s10226_s3 = sld [smem:[#allocation3 + $0x9b]] }
 0x3ab   :  { %1576 = vrot.lane.b32.xlu1 %v1574_v30, %s11023_s30  ;;  %5790 = vmatpush.bf16.msra.mxu0 %v5773_v51  ;;  %s10199_s30 = sld [smem:[#allocation3 + $0x98]]  ;;  %v1637_v54 = vmul.f32 %v1636_v58, %v9872_v29 }
 0x3ac   :  { %1566 = vrot.lane.b32.xlu0 %v1564_v47, %s11024_s23  ;;  %v4900_v32 = vpop.f32.mrf.mxu3  ;;  %s10220_s23 = sld [smem:[#allocation3 + $0x9a]] }
 0x3ad   :  { %v10167_v39 = vpop.permute.xlu1 %6134  ;;  %v4910_v19 = vadd.f32 %v4900_v32, %v10107_v28  ;;  %v4886_v59 = vpop.f32.mrf.mxu2  ;;  %v5866_v28 = vsel %vm911_vm14, %v9827_v43, %v9996_v1  ;;  %v5957_v32 = vsel %vm11025_vm9, %v10023_v45, %v9939_v63 }
 0x3ae   :  { %v10174_v2 = vpop.permute.xlu0 %6132  ;;  %v4909_v40 = vadd.f32 %v4886_v59, %v4815_v6  ;;  %v4872_v31 = vpop.f32.mrf.mxu1 }
 0x3af   :  { %v4858_v46 = vpop.f32.mrf.mxu0  ;;  %v4908_v24 = vadd.f32 %v4872_v31, %v4814_v52  ;;  %v1666_v10 = vstv %s10192_s8  ;;  %v10235_v51 = vpop.permute.xlu2 %6221  ;;  %s7490_s8 = smov 46  }
 0x3b0   :  { %v4907_v36 = vadd.f32 %v4858_v46, %v4813_v21  ;;  %v1667_v47 = vmul.f32 %v1666_v10, %v9872_v29 }
 0x3b1   :  { %7088 = vmatmul.msk.bf16.vlgmr.msrb.gmra.mxu3 %vm615_vm0, %v7213_v13  ;;  %1618 = vrot.lane.b32.xlu2 %v1616_v44, %s7487_s7  ;;  %v1676_v34 = vstv %s10199_s30  ;;  %v1706_v44 = vstv %s10226_s3  ;;  %s7491_s30 = smov 47   ;;  %s10335_s3 = sld [smem:[#allocation3 + $0xa4]] }
 0x3b2   :  { %7087 = vmatmul.msk.bf16.vlgmr.msrb.gmra.mxu2 %vm615_vm0, %v7213_v13  ;;  %5923 = vmatpush.bf16.msrb.mxu3 %v9996_v1  ;;  %v5865_v1 = vsel %vm911_vm14, %v9897_v38, %v9827_v43  ;;  %v1656_v38 = vstv %s10187_s25  ;;  %v1677_v30 = vmul.f32 %v1676_v34, %v9872_v29  ;;  %v1696_v8 = vstv %s10220_s23  ;;  %vm11026_vm14 = vmmov %vm11025_vm9  ;;  %s10296_s25 = sld [smem:[#allocation3 + $0xa1]] }
 0x3b3   :  { %1607 = vrot.lane.b32.xlu1 %v1605_v16, %s7488_s13  ;;  %5909 = vmatpush.bf16.msrb.mxu2 %v5866_v28  ;;  %v1657_v3 = vmul.f32 %v1656_v38, %v9872_v29  ;;  %v1707_v46 = vmul.f32 %v1706_v44, %v9872_v29  ;;  %v1697_v28 = vmul.f32 %v1696_v8, %v9872_v29  ;;  %s10329_s23 = sld [smem:[#allocation3 + $0xa3]]  ;;  %vm1317_vm9 = vcmask 162816  }
 0x3b4   :  { %1596 = vrot.lane.b32.xlu0 %v1594_v33, %s7489_s24  ;;  %v4992_v42 = vpop.f32.mrf.mxu3  ;;  %v6048_v38 = vsel %vm11030_vm3, %v10100_v11, %v10043_v17  ;;  %vm11037_vm3 = vcmask 31744  }
 0x3b5   :  { %v10194_v6 = vpop.permute.xlu1 %1248  ;;  %v5000_v25 = vadd.f32 %v4992_v42, %v4906_v60  ;;  %v4978_v4 = vpop.f32.mrf.mxu2  ;;  %v5956_v42 = vsel %vm11026_vm14, %v10060_v61, %v10023_v45  ;;  %v10292_v61 = vld [vmem:[%s10656_s2 + $0x2] sm:$0x1f]  ;;  %vm11034_vm14 = vmmov %vm11033_vm13 }
 0x3b6   :  { %v10201_v52 = vpop.permute.xlu0 %6130  ;;  %v4999_v18 = vadd.f32 %v4978_v4, %v4905_v5  ;;  %v4964_v23 = vpop.f32.mrf.mxu1  ;;  %v1250_v34 = vrot.slane %v10194_v6, 1 }
 0x3b7   :  { %v4950_v21 = vpop.f32.mrf.mxu0  ;;  %v4998_v26 = vadd.f32 %v4964_v23, %v4904_v53 }
 0x3b8   :  { %v4997_v50 = vadd.f32 %v4950_v21, %v4903_v15 }
 0x3b9   :  { %7086 = vmatmul.msk.bf16.vlgmr.msrb.gmra.mxu1 %vm615_vm0, %v7213_v13  ;;  %1649 = vrot.lane.b32.xlu2 %v1647_v35, %s10904_s11  ;;  %s10370_s11 = sld [smem:[#allocation3 + $0xa6]] }
 0x3ba   :  { %7085 = vmatmul.msk.bf16.vlgmr.msrb.gmra.mxu0 %vm615_vm0, %v7213_v13  ;;  %5895 = vmatpush.bf16.msrb.mxu1 %v5865_v1  ;;  %v1686_v13 = vstv %s10216_s10  ;;  %s10323_s10 = sld [smem:[#allocation3 + $0xa2]] }
 0x3bb   :  { %1639 = vrot.lane.b32.xlu1 %v1637_v54, %s10903_s0  ;;  %5881 = vmatpush.bf16.msrb.mxu0 %v5864_v20  ;;  %v7215_v54 = vld [vmem:[%s10659_s5 + $0x158] sm:$0xff]  ;;  %s7492_s0 = smov 45  }
 0x3bc   :  { %1629 = vrot.lane.b32.xlu0 %v1627_v14, %s10900_s20  ;;  %v4994_v43 = vpop.f32.mrf.mxu3  ;;  %s10245_s20 = sld [smem:[#allocation3 + $0x9c]] }
 0x3bd   :  { %v10222_v60 = vpop.permute.xlu1 %6219  ;;  %v5004_v7 = vadd.f32 %v4994_v43, %v4910_v19  ;;  %v4980_v9 = vpop.f32.mrf.mxu2 }
 0x3be   :  { %v10228_v5 = vpop.permute.xlu0 %6225  ;;  %v5003_v56 = vadd.f32 %v4980_v9, %v4909_v40  ;;  %v4966_v53 = vpop.f32.mrf.mxu1 }
 0x3bf   :  { %v4952_v48 = vpop.f32.mrf.mxu0  ;;  %v5002_v15 = vadd.f32 %v4966_v53, %v4908_v24 }
 0x3c0   :  { %v5001_v27 = vadd.f32 %v4952_v48, %v4907_v36  ;;  %v1770_v48 = vstv %s10296_s25 }
 0x3c1   :  { %7098 = vmatmul.msk.bf16.vlgmr.msra.gmra.mxu3 %vm615_vm0, %v7214_v62  ;;  %1679 = vrot.lane.b32.xlu2 %v1677_v30, %s10911_s12  ;;  %s10256_s12 = sld [smem:[#allocation3 + $0x9e]]  ;;  %v1760_v30 = vstv %s10287_s22 }
 0x3c2   :  { %7097 = vmatmul.msk.bf16.vlgmr.msra.gmra.mxu2 %vm615_vm0, %v7214_v62  ;;  %6014 = vmatpush.bf16.msra.mxu3 %v9939_v63  ;;  %v1687_v63 = vmul.f32 %v1686_v13, %v9872_v29  ;;  %v1727_v29 = vstv %s10249_s28  ;;  %v1717_v22 = vstv %s10245_s20  ;;  %s10404_s28 = sld [smem:[#allocation3 + $0xa8]] }
 0x3c3   :  { %1669 = vrot.lane.b32.xlu1 %v1667_v47, %s10909_s15  ;;  %6000 = vmatpush.bf16.msra.mxu2 %v5957_v32  ;;  %s11029_s15 = smov 65   ;;  %v1728_v1 = vmul.f32 %v1727_v29, %v10292_v61  ;;  %v1718_v43 = vmul.f32 %v1717_v22, %v10292_v61  ;;  %v1749_v47 = vstv %s10283_s16  ;;  %v7216_v22 = vld [vmem:[%s10659_s5 + $0x160] sm:$0xff] }
 0x3c4   :  { %1659 = vrot.lane.b32.xlu0 %v1657_v3, %s10907_s18  ;;  %v5086_v19 = vpop.f32.mrf.mxu3  ;;  %s11028_s18 = smov 64  }
 0x3c5   :  { %v10251_v59 = vpop.permute.xlu1 %1270  ;;  %v10258_v40 = vadd.f32 %v5086_v19, %v5000_v25  ;;  %v5072_v31 = vpop.f32.mrf.mxu2 }
 0x3c6   :  { %v10260_v16 = vpop.permute.xlu0 %1259  ;;  %v10263_v24 = vadd.f32 %v5072_v31, %v4999_v18  ;;  %v5058_v33 = vpop.f32.mrf.mxu1  ;;  %v1272_v19 = vrot.slane %v10251_v59, 1 }
 0x3c7   :  { %v5044_v36 = vpop.f32.mrf.mxu0  ;;  %v10266_v58 = vadd.f32 %v5058_v33, %v4998_v26  ;;  %v10277_v25 = vpop.permute.xlu2 %6314  ;;  %v1738_v4 = vstv %s10256_s12  ;;  %v1261_v9 = vrot.slane %v10260_v16, 1 }
 0x3c8   :  { %v10272_v41 = vadd.f32 %v5044_v36, %v4997_v50  ;;  %v1739_v21 = vmul.f32 %v1738_v4, %v10292_v61 }
 0x3c9   :  { %7096 = vmatmul.msk.bf16.vlgmr.msra.gmra.mxu1 %vm615_vm0, %v7214_v62  ;;  %1709 = vrot.lane.b32.xlu2 %v1707_v46, %s11028_s18  ;;  %v1263_v8 = vsel %vm1262_vm10, %v10260_v16, %v1261_v9  ;;  %v1750_v46 = vmul.f32 %v1749_v47, %v10292_v61  ;;  %v6047_v16 = vsel %vm11031_vm2, %v10133_v12, %v10100_v11  ;;  %v1790_v11 = vstv %s10329_s23  ;;  %s11081_s23 = sld [smem:[#allocation56_spill]] }
 0x3ca   :  { %7095 = vmatmul.msk.bf16.vlgmr.msra.gmra.mxu0 %vm615_vm0, %v7214_v62  ;;  %5986 = vmatpush.bf16.msra.mxu1 %v5956_v42  ;;  %v1780_v42 = vstv %s10323_s10  ;;  %vm1349_vm10 = vcmask 15360   ;;  %vm1360_vm2 = vcmask 7168  }
 0x3cb   :  { %1699 = vrot.lane.b32.xlu1 %v1697_v28, %s11029_s15  ;;  %5972 = vmatpush.bf16.msra.mxu0 %v5955_v37 }
 0x3cc   :  { %1689 = vrot.lane.b32.xlu0 %v1687_v63, %s10912_s19  ;;  %v5088_v45 = vpop.f32.mrf.mxu3 }
 0x3cd   :  { %v10298_v35 = vadd.f32 %v5088_v45, %v5004_v7  ;;  %v5074_v18 = vpop.f32.mrf.mxu2  ;;  %v10309_v50 = vpop.permute.xlu1 %6310 }
 0x3ce   :  { %v10300_v23 = vpop.permute.xlu0 %6316  ;;  %v10306_v26 = vadd.f32 %v5074_v18, %v5003_v56  ;;  %v5060_v14 = vpop.f32.mrf.mxu1  ;;  %v1252_v56 = vsel %vm1251_vm5, %v10194_v6, %v1250_v34  ;;  %vm1338_vm5 = vcmask 23552  }
 0x3cf   :  { %v5046_v20 = vpop.f32.mrf.mxu0  ;;  %v10311_v10 = vadd.f32 %v5060_v14, %v5002_v15  ;;  %v10325_v62 = vpop.permute.xlu2 %6312  ;;  %v1254_v44 = vadd.f32 %v1252_v56, %v10127_v49  ;;  %v6046_v49 = vsel %vm11032_vm6, %v10141_v57, %v10133_v12 }
 0x3d0   :  { %v10318_v7 = vadd.f32 %v5046_v20, %v5001_v27  ;;  %v1771_v27 = vmul.f32 %v1770_v48, %v10292_v61 }
 0x3d1   :  { %7108 = vmatmul.msk.bf16.vlgmr.msrb.gmra.mxu3 %vm615_vm0, %v7215_v54  ;;  %1741 = vrot.lane.b32.xlu2 %v1739_v21, %s7490_s8  ;;  %v1265_v28 = vadd.f32 %v1263_v8, %v1254_v44  ;;  %v1791_v21 = vmul.f32 %v1790_v11, %v10292_v61 }
 0x3d2   :  { %7107 = vmatmul.msk.bf16.vlgmr.msrb.gmra.mxu2 %vm615_vm0, %v7215_v54  ;;  %6105 = vmatpush.bf16.msrb.mxu3 %v10043_v17  ;;  %v1761_v17 = vmul.f32 %v1760_v30, %v10292_v61 }
 0x3d3   :  { %1730 = vrot.lane.b32.xlu1 %v1728_v1, %s7491_s30  ;;  %6091 = vmatpush.bf16.msrb.mxu2 %v6048_v38  ;;  %v6139_v38 = vsel %vm11033_vm13, %v10174_v2, %v10167_v39  ;;  %vm11043_vm13 = vcmask 670720  }
 0x3d4   :  { %1720 = vrot.lane.b32.xlu0 %v1718_v43, %s7468_s4  ;;  %v5197_v53 = vpop.f32.mrf.mxu3  ;;  %s10367_s4 = sld [smem:[#allocation3 + $0xa5]] }
 0x3d5   :  { %v10338_v15 = vadd.f32 %v5197_v53, %v10258_v40  ;;  %v5183_v3 = vpop.f32.mrf.mxu2  ;;  %v1293_v36 = vpop.permute.xlu1 %1292  ;;  %v1820_v53 = vstv %s10370_s11 }
 0x3d6   :  { %v1282_v32 = vpop.permute.xlu0 %1281  ;;  %v10345_v6 = vadd.f32 %v5183_v3, %v10263_v24  ;;  %v5169_v13 = vpop.f32.mrf.mxu1  ;;  %v1294_v57 = vrot.slane %v1293_v36, 1 }
 0x3d7   :  { %v5155_v40 = vpop.f32.mrf.mxu0  ;;  %v10350_v31 = vadd.f32 %v5169_v13, %v10266_v58  ;;  %v1283_v33 = vrot.slane %v1282_v32, 1  ;;  %v1274_v58 = vsel %vm1273_vm7, %v10251_v59, %v1272_v19  ;;  %v1304_v37 = vpop.permute.xlu2 %1303  ;;  %vm11038_vm7 = vcmask 678912  }
 0x3d8   :  { %v10357_v24 = vadd.f32 %v5155_v40, %v10272_v41  ;;  %v1800_v41 = vstv %s10335_s3  ;;  %v1276_v59 = vadd.f32 %v1274_v58, %v1265_v28  ;;  %v1296_v34 = vsel %vm1295_vm1, %v1293_v36, %v1294_v57  ;;  %vm11040_vm6 = vmmov %vm11038_vm7 }
 0x3d9   :  { %7106 = vmatmul.msk.bf16.vlgmr.msrb.gmra.mxu1 %vm615_vm0, %v7215_v54  ;;  %1773 = vrot.lane.b32.xlu2 %v1771_v27, %s10918_s14  ;;  %v1285_v12 = vsel %vm1284_vm15, %v1282_v32, %v1283_v33  ;;  %s10374_s14 = sld [smem:[#allocation3 + $0xa7]]  ;;  %v1801_v4 = vmul.f32 %v1800_v41, %v10292_v61  ;;  %v1305_v9 = vrot.slane %v1304_v37, 1  ;;  %v1821_v40 = vmul.f32 %v1820_v53, %v10292_v61  ;;  %vm11041_vm15 = vmmov %vm11040_vm6 }
 0x3da   :  { %7105 = vmatmul.msk.bf16.vlgmr.msrb.gmra.mxu0 %vm615_vm0, %v7215_v54  ;;  %6077 = vmatpush.bf16.msrb.mxu1 %v6047_v16  ;;  %v1287_v14 = vadd.f32 %v1285_v12, %v1276_v59  ;;  %v1810_v48 = vstv %s10367_s4  ;;  %vm11042_vm1 = vcmask 1039360   ;;  %s11083_s4 = sld [smem:[#allocation57_spill]] }
 0x3db   :  { %1763 = vrot.lane.b32.xlu1 %v1761_v17, %s10916_s21  ;;  %6063 = vmatpush.bf16.msrb.mxu0 %v6046_v49 }
 0x3dc   :  { %1752 = vrot.lane.b32.xlu0 %v1750_v46, %s7492_s0  ;;  %v5199_v63 = vpop.f32.mrf.mxu3  ;;  %v1298_v30 = vadd.f32 %v1296_v34, %v1287_v14 }
 0x3dd   :  { %v10377_v29 = vadd.f32 %v5199_v63, %v10298_v35  ;;  %v5185_v45 = vpop.f32.mrf.mxu2  ;;  %v1781_v35 = vmul.f32 %v1780_v42, %v10292_v61  ;;  %v1326_v56 = vpop.permute.xlu1 %1325  ;;  %v7217_v42 = vld [vmem:[%s10659_s5 + $0x168] sm:$0xff] }
 0x3de   :  { %v10384_v18 = vadd.f32 %v5185_v45, %v10306_v26  ;;  %v5171_v54 = vpop.f32.mrf.mxu1  ;;  %v1315_v1 = vpop.permute.xlu0 %1314  ;;  %v1327_v13 = vrot.slane %v1326_v56, 1 }
 0x3df   :  { %v5157_v20 = vpop.f32.mrf.mxu0  ;;  %v10388_v43 = vadd.f32 %v5171_v54, %v10311_v10  ;;  %v1316_v10 = vrot.slane %v1315_v1, 1  ;;  %v1830_v3 = vstv %s10374_s14  ;;  %v1336_v16 = vpop.permute.xlu2 %1335  ;;  %v6230_v54 = vsel %vm11038_vm7, %v10189_v0, %v10228_v5 }
 0x3e0   :  { %v10395_v26 = vadd.f32 %v5157_v20, %v10318_v7  ;;  %v1307_v7 = vsel %vm1306_vm4, %v1304_v37, %v1305_v9  ;;  %v1831_v8 = vmul.f32 %v1830_v3, %v10292_v61  ;;  %v1337_v11 = vrot.slane %v1336_v16, 1 }
 0x3e1   :  { %7118 = vmatmul.msk.bf16.vlgmr.msra.gmra.mxu3 %vm615_vm0, %v7216_v22  ;;  %1803 = vrot.lane.b32.xlu2 %v1801_v4, %s10922_s9  ;;  %v1318_v19 = vsel %vm1317_vm9, %v1315_v1, %v1316_v10  ;;  %v1309_v46 = vadd.f32 %v1307_v7, %v1298_v30  ;;  %v7353_v10 = vld [vmem:[%s10656_s2 + $0x2] sm:$0xf]  ;;  %vm11044_vm4 = vcmask 1031168   ;;  %vm11045_vm9 = vcmask 1022976  }
 0x3e2   :  { %7117 = vmatmul.msk.bf16.vlgmr.msra.gmra.mxu2 %vm615_vm0, %v7216_v22  ;;  %6196 = vmatpush.bf16.msra.mxu3 %v10167_v39  ;;  %v1811_v39 = vmul.f32 %v1810_v48, %v10292_v61  ;;  %v1339_v41 = vsel %vm1338_vm5, %v1336_v16, %v1337_v11  ;;  %vm11049_vm5 = vcmask 1006592   ;;  %vm11051_vm7 = vcmask 990208  }
 0x3e3   :  { %1793 = vrot.lane.b32.xlu1 %v1791_v21, %s10921_s29  ;;  %6182 = vmatpush.bf16.msra.mxu2 %v6139_v38  ;;  %v1320_v36 = vadd.f32 %v1318_v19, %v1309_v46  ;;  %s10427_s29 = sld [smem:[#allocation3 + $0x79]] }
 0x3e4   :  { %1783 = vrot.lane.b32.xlu0 %v1781_v35, %s10919_s17  ;;  %v5288_v47 = vpop.f32.mrf.mxu3  ;;  %s11036_s17 = smov 37  }
 0x3e5   :  { %v5296_v32 = vadd.f32 %v5288_v47, %v10338_v15  ;;  %v5274_v27 = vpop.f32.mrf.mxu2  ;;  %v6138_v15 = vsel %vm11034_vm14, %v10201_v52, %v10174_v2  ;;  %v1358_v12 = vpop.permute.xlu1 %1357  ;;  %v6228_v47 = vsel %vm11041_vm15, %v10222_v60, %v10235_v51  ;;  %v7218_v60 = vld [vmem:[%s10659_s5 + $0x170] sm:$0xff]  ;;  %vm11046_vm14 = vmmov %vm11043_vm13  ;;  %vm1466_vm15 = vcmask 842752  }
 0x3e6   :  { %v5295_v17 = vadd.f32 %v5274_v27, %v10345_v6  ;;  %v5260_v44 = vpop.f32.mrf.mxu1  ;;  %v6137_v6 = vsel %vm11035_vm11, %v10156_v55, %v10201_v52  ;;  %v1347_v58 = vpop.permute.xlu0 %1346  ;;  %v1840_v52 = vstv %s10404_s28  ;;  %v1359_v21 = vrot.slane %v1358_v12, 1  ;;  %vm11047_vm11 = vmmov %vm11043_vm13 }
 0x3e7   :  { %v5246_v33 = vpop.f32.mrf.mxu0  ;;  %v5294_v49 = vadd.f32 %v5260_v44, %v10350_v31  ;;  %v1328_v31 = vsel %vm11037_vm3, %v1326_v56, %v1327_v13  ;;  %v1348_v2 = vrot.slane %v1347_v58, 1  ;;  %v1841_v4 = vmul.f32 %v1840_v52, %v10292_v61  ;;  %v1374_v56 = vpop.permute.xlu2 %1373 }
 0x3e8   :  { %v5293_v28 = vadd.f32 %v5246_v33, %v10357_v24  ;;  %v1330_v24 = vadd.f32 %v1328_v31, %v1320_v36  ;;  %v1361_v20 = vsel %vm1360_vm2, %v1358_v12, %v1359_v21  ;;  %v1375_v48 = vrot.slane %v1374_v56, 1 }
 0x3e9   :  { %7116 = vmatmul.msk.bf16.vlgmr.msra.gmra.mxu1 %vm615_vm0, %v7216_v22  ;;  %1833 = vrot.lane.b32.xlu2 %v1831_v8, %s11036_s17  ;;  %v1366_v61 = vstv %s10427_s29  ;;  %vm11048_vm3 = vcmask 1014784   ;;  %vm11052_vm2 = vcmask 982016  }
 0x3ea   :  { %7115 = vmatmul.msk.bf16.vlgmr.msra.gmra.mxu0 %vm615_vm0, %v7216_v22  ;;  %6168 = vmatpush.bf16.msra.mxu1 %v6138_v15  ;;  %v1341_v1 = vadd.f32 %v1339_v41, %v1330_v24  ;;  %v1376_v27 = vsel %vm11042_vm1, %v1374_v56, %v1375_v48  ;;  %v7493_v56 = vmov 0   ;;  %vm1477_vm1 = vcmask 834560  }
 0x3eb   :  { %1823 = vrot.lane.b32.xlu1 %v1821_v40, %s10924_s27  ;;  %6154 = vmatpush.bf16.msra.mxu0 %v6137_v6 }
 0x3ec   :  { %1813 = vrot.lane.b32.xlu0 %v1811_v39, %s10923_s26  ;;  %v5290_v55 = vpop.f32.mrf.mxu3  ;;  %s11039_s26 = smov 36   ;;  %7347 = vset.pattern.permute.xlu1 %v7493_v56 }
 0x3ed   :  { %v5300_v57 = vadd.f32 %v5290_v55, %v10377_v29  ;;  %v5276_v63 = vpop.f32.mrf.mxu2  ;;  %v1350_v29 = vsel %vm1349_vm10, %v1347_v58, %v1348_v2  ;;  %v1394_v13 = vpop.permute.xlu1 %1393  ;;  %vm11050_vm10 = vcmask 998400   ;;  %7348 = vset.pattern.permute.xlu2 %v7493_v56  ;;  %7349 = vset.pattern.permute.xlu0 %v7493_v56 }
 0x3ee   :  { %v5299_v59 = vadd.f32 %v5276_v63, %v10384_v18  ;;  %v5262_v37 = vpop.f32.mrf.mxu1  ;;  %v1352_v18 = vadd.f32 %v1350_v29, %v1341_v1  ;;  %v1395_v15 = vrot.slane %v1394_v13, 1  ;;  %v6320_v63 = vsel %vm11046_vm14, %v10325_v62, %v10277_v25 }
 0x3ef   :  { %v5248_v45 = vpop.f32.mrf.mxu0  ;;  %v5298_v22 = vadd.f32 %v5262_v37, %v10388_v43  ;;  %v1404_v6 = vpop.permute.xlu2 %1403  ;;  %v6319_v37 = vsel %vm11047_vm11, %v10309_v50, %v10325_v62  ;;  %v7219_v50 = vld [vmem:[%s10659_s5 + $0x178] sm:$0xff]  ;;  %vm11056_vm14 = vcmask 801792   ;;  %vm11057_vm11 = vcmask 793600  }
 0x3f0   :  { %v5297_v14 = vadd.f32 %v5248_v45, %v10395_v26  ;;  %v6229_v26 = vsel %vm11040_vm6, %v10235_v51, %v10189_v0  ;;  %v1363_v30 = vadd.f32 %v1361_v20, %v1352_v18  ;;  %v1396_v31 = vsel %vm11045_vm9, %v1394_v13, %v1395_v15 }
 0x3f1   :  { %7128 = vmatmul.msk.bf16.vlgmr.msrb.gmra.mxu3 %vm615_vm0, %v7217_v42  ;;  %v1405_v11 = vrot.slane %v1404_v6, 1  ;;  %vm11053_vm6 = vcmask 850944   ;;  %vm11055_vm9 = vcmask 809984  }
 0x3f2   :  { %7127 = vmatmul.msk.bf16.vlgmr.msrb.gmra.mxu2 %vm615_vm0, %v7217_v42  ;;  %6287 = vmatpush.bf16.msrb.mxu3 %v10228_v5  ;;  %v1367_v5 = vmul.f32 %v7353_v10, %v1366_v61 }
 0x3f3   :  { %6273 = vmatpush.bf16.msrb.mxu2 %v6230_v54  ;;  %v1406_v45 = vsel %vm11048_vm3, %v1404_v6, %v1405_v11  ;;  %vm11058_vm3 = vcmask 785408  }
 0x3f4   :  { %1843 = vrot.lane.b32.xlu0 %v1841_v4, %s11039_s26  ;;  %v5379_v43 = vpop.f32.mrf.mxu3  ;;  %v1368_v0 = vadd.f32 %v1367_v5, %v1363_v30 }
 0x3f5   :  { %v5387_v35 = vadd.f32 %v5379_v43, %v5296_v32  ;;  %v5365_v38 = vpop.f32.mrf.mxu2  ;;  %v1384_v32 = vpop.permute.xlu0 %1383 }
 0x3f6   :  { %v5386_v34 = vadd.f32 %v5365_v38, %v5295_v17  ;;  %v5351_v9 = vpop.f32.mrf.mxu1  ;;  %v1385_v8 = vrot.slane %v1384_v32, 1  ;;  %v1378_v46 = vadd.f32 %v1376_v27, %v1368_v0  ;;  %v1424_v41 = vpop.permute.xlu1 %1423 }
 0x3f7   :  { %v5337_v53 = vpop.f32.mrf.mxu0  ;;  %v5385_v7 = vadd.f32 %v5351_v9, %v5294_v49  ;;  %v6321_v49 = vsel %vm11043_vm13, %v10277_v25, %v10300_v23  ;;  %v1425_v54 = vrot.slane %v1424_v41, 1  ;;  %v1434_v29 = vpop.permute.xlu2 %1433  ;;  %vm1488_vm13 = vcmask 826368  }
 0x3f8   :  { %v5384_v3 = vadd.f32 %v5337_v53, %v5293_v28  ;;  %v1386_v39 = vsel %vm11044_vm4, %v1384_v32, %v1385_v8  ;;  %v1435_v20 = vrot.slane %v1434_v29, 1  ;;  %v6393_v53 = vld [vmem:[%s10660_s6] sm:$0xff]  ;;  %vm11054_vm4 = vcmask 818176  }
 0x3f9   :  { %7126 = vmatmul.msk.bf16.vlgmr.msrb.gmra.mxu1 %vm615_vm0, %v7217_v42  ;;  %v1388_v36 = vadd.f32 %v1386_v39, %v1378_v46  ;;  %v1426_v62 = vsel %vm11050_vm10, %v1424_v41, %v1425_v54  ;;  %6397 = vperm.xlu1 %7347, %v6393_v53   ;;  %vm11061_vm10 = vcmask 760832  }
 0x3fa   :  { %7125 = vmatmul.msk.bf16.vlgmr.msrb.gmra.mxu0 %vm615_vm0, %v7217_v42  ;;  %6259 = vmatpush.bf16.msrb.mxu1 %v6229_v26  ;;  %v1436_v30 = vsel %vm11051_vm7, %v1434_v29, %v1435_v20  ;;  %vm11062_vm7 = vcmask 752640  }
 0x3fb   :  { %6245 = vmatpush.bf16.msrb.mxu0 %v6228_v47  ;;  %v1398_v42 = vadd.f32 %v1396_v31, %v1388_v36  ;;  %v7220_v36 = vld [vmem:[%s10659_s5 + $0x180] sm:$0xff] }
 0x3fc   :  { %v5381_v19 = vpop.f32.mrf.mxu3 }
 0x3fd   :  { %v5391_v17 = vadd.f32 %v5381_v19, %v5300_v57  ;;  %v5367_v44 = vpop.f32.mrf.mxu2  ;;  %v1414_v58 = vpop.permute.xlu0 %1413  ;;  %v1408_v25 = vadd.f32 %v1406_v45, %v1398_v42 }
 0x3fe   :  { %v5390_v51 = vadd.f32 %v5367_v44, %v5299_v59  ;;  %v5353_v40 = vpop.f32.mrf.mxu1  ;;  %v1415_v24 = vrot.slane %v1414_v58, 1  ;;  %v1454_v5 = vpop.permute.xlu1 %1453 }
 0x3ff   :  { %v5339_v16 = vpop.f32.mrf.mxu0  ;;  %v5389_v33 = vadd.f32 %v5353_v40, %v5298_v22  ;;  %v1455_v47 = vrot.slane %v1454_v5, 1  ;;  %v1464_v32 = vpop.permute.xlu2 %1463 }
 0x400   :  { %v5388_v28 = vadd.f32 %v5339_v16, %v5297_v14  ;;  %v1416_v4 = vsel %vm11049_vm5, %v1414_v58, %v1415_v24  ;;  %v1465_v40 = vrot.slane %v1464_v32, 1  ;;  %vm11060_vm5 = vcmask 769024  }
 0x401   :  { %7138 = vmatmul.msk.bf16.vlgmr.msra.gmra.mxu3 %vm615_vm0, %v7218_v60  ;;  %v1418_v14 = vadd.f32 %v1416_v4, %v1408_v25 }
 0x402   :  { %7137 = vmatmul.msk.bf16.vlgmr.msra.gmra.mxu2 %vm615_vm0, %v7218_v60  ;;  %6378 = vmatpush.bf16.msra.mxu3 %v10300_v23  ;;  %v1467_v39 = vsel %vm1466_vm15, %v1464_v32, %v1465_v40  ;;  %vm1621_vm15 = vcmask 596992  }
 0x403   :  { %6364 = vmatpush.bf16.msra.mxu2 %v6321_v49  ;;  %v1428_v10 = vadd.f32 %v1426_v62, %v1418_v14 }
 0x404   :  { %v5470_v2 = vpop.f32.mrf.mxu3 }
 0x405   :  { %v5478_v55 = vadd.f32 %v5470_v2, %v5387_v35  ;;  %v5456_v52 = vpop.f32.mrf.mxu2  ;;  %v1444_v1 = vpop.permute.xlu0 %1443 }
 0x406   :  { %v5477_v12 = vadd.f32 %v5456_v52, %v5386_v34  ;;  %v5442_v57 = vpop.f32.mrf.mxu1  ;;  %v1445_v9 = vrot.slane %v1444_v1, 1  ;;  %v1486_v49 = vpop.permute.xlu1 %1485 }
 0x407   :  { %v5428_v59 = vpop.f32.mrf.mxu0  ;;  %v5476_v23 = vadd.f32 %v5442_v57, %v5385_v7  ;;  %v1487_v31 = vrot.slane %v1486_v49, 1  ;;  %v1497_v52 = vpop.permute.xlu2 %1496 }
 0x408   :  { %v5475_v22 = vadd.f32 %v5428_v59, %v5384_v3  ;;  %v1446_v7 = vsel %vm11052_vm2, %v1444_v1, %v1445_v9  ;;  %v1438_v3 = vadd.f32 %v1436_v30, %v1428_v10  ;;  %v1498_v59 = vrot.slane %v1497_v52, 1 }
 0x409   :  { %7136 = vmatmul.msk.bf16.vlgmr.msra.gmra.mxu1 %vm615_vm0, %v7218_v60  ;;  %v1489_v41 = vsel %vm1488_vm13, %v1486_v49, %v1487_v31  ;;  %vm1599_vm2 = vcmask 613376   ;;  %vm11065_vm13 = vcmask 572416  }
 0x40a   :  { %7135 = vmatmul.msk.bf16.vlgmr.msra.gmra.mxu0 %vm615_vm0, %v7218_v60  ;;  %6350 = vmatpush.bf16.msra.mxu1 %v6320_v63  ;;  %v1448_v13 = vadd.f32 %v1446_v7, %v1438_v3  ;;  %v1499_v25 = vsel %vm11054_vm4, %v1497_v52, %v1498_v59  ;;  %vm11066_vm4 = vcmask 564224  }
 0x40b   :  { %6336 = vmatpush.bf16.msra.mxu0 %v6319_v37 }
 0x40c   :  { %v5472_v21 = vpop.f32.mrf.mxu3 }
 0x40d   :  { %v5482_v18 = vadd.f32 %v5472_v21, %v5391_v17  ;;  %v5458_v61 = vpop.f32.mrf.mxu2  ;;  %v1475_v17 = vpop.permute.xlu0 %1474 }
 0x40e   :  { %v5481_v43 = vadd.f32 %v5458_v61, %v5390_v51  ;;  %v5444_v35 = vpop.f32.mrf.mxu1  ;;  %v1456_v51 = vsel %vm11053_vm6, %v1454_v5, %v1455_v47  ;;  %v1476_v16 = vrot.slane %v1475_v17, 1  ;;  %vm1610_vm6 = vcmask 605184  }
 0x40f   :  { %v5430_v38 = vpop.f32.mrf.mxu0  ;;  %v5480_v34 = vadd.f32 %v5444_v35, %v5389_v33  ;;  %v1458_v33 = vadd.f32 %v1456_v51, %v1448_v13  ;;  %v1527_v20 = vpop.permute.xlu2 %1526  ;;  %v6394_v13 = vld [vmem:[%s10660_s6 + $0x8] sm:$0xff] }
 0x410   :  { %v5479_v26 = vadd.f32 %v5430_v38, %v5388_v28  ;;  %v1478_v58 = vsel %vm1477_vm1, %v1475_v17, %v1476_v16  ;;  %6402 = vperm.xlu2 %7348, %v6394_v13   ;;  %vm11064_vm1 = vcmask 580608  }
 0x411   :  { %7148 = vmatmul.msk.bf16.vlgmr.msrb.gmra.mxu3 %vm615_vm0, %v7219_v50 }
 0x412   :  { %7147 = vmatmul.msk.bf16.vlgmr.msrb.gmra.mxu2 %vm615_vm0, %v7219_v50 }
 0x414   :  { %v5561_v48 = vpop.f32.mrf.mxu3 }
 0x415   :  { %v5569_v0 = vadd.f32 %v5561_v48, %v5478_v55  ;;  %v5547_v27 = vpop.f32.mrf.mxu2  ;;  %v1469_v55 = vadd.f32 %v1467_v39, %v1458_v33  ;;  %v1507_v42 = vpop.permute.xlu0 %1506 }
 0x416   :  { %v5568_v8 = vadd.f32 %v5547_v27, %v5477_v12  ;;  %v5533_v19 = vpop.f32.mrf.mxu1 }
 0x417   :  { %v5519_v44 = vpop.f32.mrf.mxu0  ;;  %v5567_v60 = vadd.f32 %v5533_v19, %v5476_v23  ;;  %v1480_v63 = vadd.f32 %v1478_v58, %v1469_v55  ;;  %v1508_v23 = vrot.slane %v1507_v42, 1  ;;  %v1557_v19 = vpop.permute.xlu2 %1556 }
 0x418   :  { %v5566_v46 = vadd.f32 %v5519_v44, %v5475_v22  ;;  %v1517_v22 = vpop.permute.xlu1 %1516  ;;  %v1558_v16 = vrot.slane %v1557_v19, 1 }
 0x419   :  { %7146 = vmatmul.msk.bf16.vlgmr.msrb.gmra.mxu1 %vm615_vm0, %v7219_v50  ;;  %v1491_v45 = vadd.f32 %v1489_v41, %v1480_v63  ;;  %v1518_v61 = vrot.slane %v1517_v22, 1 }
 0x41a   :  { %7145 = vmatmul.msk.bf16.vlgmr.msrb.gmra.mxu0 %vm615_vm0, %v7219_v50  ;;  %v1559_v31 = vsel %vm11060_vm5, %v1557_v19, %v1558_v16  ;;  %vm1733_vm5 = vcmask 384000  }
 0x41b   :  { %v1501_v62 = vadd.f32 %v1499_v25, %v1491_v45  ;;  %v1519_v38 = vsel %vm11056_vm14, %v1517_v22, %v1518_v61  ;;  %vm11068_vm14 = vcmask 547840  }
 0x41c   :  { %v5563_v15 = vpop.f32.mrf.mxu3 }
 0x41d   :  { %v5573_v28 = vadd.f32 %v5563_v15, %v5482_v18  ;;  %v5549_v6 = vpop.f32.mrf.mxu2  ;;  %v1509_v18 = vsel %vm11055_vm9, %v1507_v42, %v1508_v23  ;;  %v1537_v35 = vpop.permute.xlu0 %1536  ;;  %vm11067_vm9 = vcmask 556032  }
 0x41e   :  { %v5572_v11 = vadd.f32 %v5549_v6, %v5481_v43  ;;  %v5535_v2 = vpop.f32.mrf.mxu1  ;;  %v1511_v43 = vadd.f32 %v1509_v18, %v1501_v62  ;;  %v1538_v5 = vrot.slane %v1537_v35, 1 }
 0x41f   :  { %v5521_v24 = vpop.f32.mrf.mxu0  ;;  %v5571_v12 = vadd.f32 %v5535_v2, %v5480_v34  ;;  %v1528_v34 = vrot.slane %v1527_v20, 1 }
 0x420   :  { %v5570_v57 = vadd.f32 %v5521_v24, %v5479_v26  ;;  %v1521_v53 = vadd.f32 %v1519_v38, %v1511_v43  ;;  %v1547_v7 = vpop.permute.xlu1 %1546  ;;  %v1587_v24 = vpop.permute.xlu2 %1586 }
 0x421   :  { %7158 = vmatmul.msk.bf16.vlgmr.msra.gmra.mxu3 %vm615_vm0, %v7220_v36  ;;  %v1529_v3 = vsel %vm11057_vm11, %v1527_v20, %v1528_v34  ;;  %v1548_v27 = vrot.slane %v1547_v7, 1  ;;  %v1588_v22 = vrot.slane %v1587_v24, 1  ;;  %vm11069_vm11 = vcmask 539648  }
 0x422   :  { %7157 = vmatmul.msk.bf16.vlgmr.msra.gmra.mxu2 %vm615_vm0, %v7220_v36 }
 0x424   :  { %v5652_v37 = vpop.f32.mrf.mxu3 }
 0x425   :  { %v5660_v4 = vadd.f32 %v5652_v37, %v5569_v0  ;;  %v5638_v54 = vpop.f32.mrf.mxu2  ;;  %v1539_v0 = vsel %vm11058_vm3, %v1537_v35, %v1538_v5  ;;  %vm11070_vm3 = vcmask 531456  }
 0x426   :  { %v5659_v29 = vadd.f32 %v5638_v54, %v5568_v8  ;;  %v5624_v21 = vpop.f32.mrf.mxu1  ;;  %v1531_v8 = vadd.f32 %v1529_v3, %v1521_v53 }
 0x427   :  { %v5610_v14 = vpop.f32.mrf.mxu0  ;;  %v5658_v1 = vadd.f32 %v5624_v21, %v5567_v60  ;;  %v1567_v60 = vpop.permute.xlu0 %1566  ;;  %v1589_v21 = vsel %vm1032_vm12, %v1587_v24, %v1588_v22  ;;  %vm11063_vm12 = vcmask 588800  }
 0x428   :  { %v5657_v50 = vadd.f32 %v5610_v14, %v5566_v46  ;;  %v1541_v44 = vadd.f32 %v1539_v0, %v1531_v8  ;;  %v1577_v58 = vpop.permute.xlu1 %1576  ;;  %v1619_v35 = vpop.permute.xlu2 %1618 }
 0x429   :  { %7156 = vmatmul.msk.bf16.vlgmr.msra.gmra.mxu1 %vm615_vm0, %v7220_v36  ;;  %v1578_v2 = vrot.slane %v1577_v58, 1 }
 0x42a   :  { %7155 = vmatmul.msk.bf16.vlgmr.msra.gmra.mxu0 %vm615_vm0, %v7220_v36  ;;  %vm11059_vm0 = vcmask 777216  }
 0x42b   :  { %v1549_v46 = vsel %vm11059_vm0, %v1547_v7, %v1548_v27  ;;  %v1579_v45 = vsel %vm11062_vm7, %v1577_v58, %v1578_v2  ;;  %vm11071_vm0 = vcmask 523264   ;;  %vm1755_vm7 = vcmask 367616  }
 0x42c   :  { %v5654_v9 = vpop.f32.mrf.mxu3  ;;  %v1551_v36 = vadd.f32 %v1549_v46, %v1541_v44 }
 0x42d   :  { %v5664_v26 = vadd.f32 %v5654_v9, %v5573_v28  ;;  %v5640_v10 = vpop.f32.mrf.mxu2  ;;  %v1568_v28 = vrot.slane %v1567_v60, 1 }
 0x42e   :  { %v5663_v30 = vadd.f32 %v5640_v10, %v5572_v11  ;;  %v5626_v56 = vpop.f32.mrf.mxu1  ;;  %v1561_v52 = vadd.f32 %v1559_v31, %v1551_v36 }
 0x42f   :  { %v5612_v47 = vpop.f32.mrf.mxu0  ;;  %v5662_v48 = vadd.f32 %v5626_v56, %v5571_v12  ;;  %v1569_v11 = vsel %vm11061_vm10, %v1567_v60, %v1568_v28  ;;  %v1597_v59 = vpop.permute.xlu0 %1596  ;;  %vm1744_vm10 = vcmask 375808  }
 0x430   :  { %v5661_v32 = vadd.f32 %v5612_v47, %v5570_v57  ;;  %v1571_v41 = vadd.f32 %v1569_v11, %v1561_v52  ;;  %v1598_v54 = vrot.slane %v1597_v59, 1 }
 0x432   :  { %v1581_v25 = vadd.f32 %v1579_v45, %v1571_v41  ;;  %v1600_v61 = vsel %vm1599_vm2, %v1597_v59, %v1598_v54  ;;  %vm11073_vm2 = vcmask 351232  }
 0x434   :  { %v5743_v17 = vpop.f32.mrf.mxu3  ;;  %v1591_v43 = vadd.f32 %v1589_v21, %v1581_v25 }
 0x435   :  { %v5751_v51 = vadd.f32 %v5743_v17, %v5660_v4  ;;  %v5729_v40 = vpop.f32.mrf.mxu2 }
 0x436   :  { %v5750_v33 = vadd.f32 %v5729_v40, %v5659_v29  ;;  %v5715_v49 = vpop.f32.mrf.mxu1  ;;  %v1608_v29 = vpop.permute.xlu1 %1607 }
 0x437   :  { %v5701_v39 = vpop.f32.mrf.mxu0  ;;  %v5749_v15 = vadd.f32 %v5715_v49, %v5658_v1  ;;  %v1630_v10 = vpop.permute.xlu0 %1629 }
 0x438   :  { %v5748_v6 = vadd.f32 %v5701_v39, %v5657_v50  ;;  %v1609_v50 = vrot.slane %v1608_v29, 1  ;;  %v1631_v56 = vrot.slane %v1630_v10, 1 }
 0x43a   :  { %v1611_v5 = vsel %vm1610_vm6, %v1608_v29, %v1609_v50  ;;  %v1632_v13 = vsel %vm11063_vm12, %v1630_v10, %v1631_v56  ;;  %vm11074_vm6 = vcmask 343040   ;;  %vm11076_vm12 = vcmask 326656  }
 0x43c   :  { %v5745_v55 = vpop.f32.mrf.mxu3 }
 0x43d   :  { %v5755_v12 = vadd.f32 %v5745_v55, %v5664_v26  ;;  %v5731_v57 = vpop.f32.mrf.mxu2  ;;  %v1602_v26 = vadd.f32 %v1600_v61, %v1591_v43 }
 0x43e   :  { %v5754_v63 = vadd.f32 %v5731_v57, %v5663_v30  ;;  %v5717_v42 = vpop.f32.mrf.mxu1  ;;  %v1620_v30 = vrot.slane %v1619_v35, 1  ;;  %v1640_v47 = vpop.permute.xlu1 %1639 }
 0x43f   :  { %v5703_v23 = vpop.f32.mrf.mxu0  ;;  %v5753_v37 = vadd.f32 %v5717_v42, %v5662_v48  ;;  %v1613_v7 = vadd.f32 %v1611_v5, %v1602_v26  ;;  %v1641_v17 = vrot.slane %v1640_v47, 1  ;;  %v1660_v46 = vpop.permute.xlu0 %1659 }
 0x440   :  { %v5752_v4 = vadd.f32 %v5703_v23, %v5661_v32  ;;  %v1622_v32 = vsel %vm1621_vm15, %v1619_v35, %v1620_v30  ;;  %v1661_v28 = vrot.slane %v1660_v46, 1  ;;  %vm11075_vm15 = vcmask 334848  }
 0x441   :  { %v1624_v60 = vadd.f32 %v1622_v32, %v1613_v7  ;;  %v1642_v16 = vsel %vm11064_vm1, %v1640_v47, %v1641_v17  ;;  %vm11077_vm1 = vcmask 318464  }
 0x442   :  { %v1662_v24 = vsel %vm11066_vm4, %v1660_v46, %v1661_v28  ;;  %vm11079_vm4 = vcmask 302080  }
 0x443   :  { %v1634_v40 = vadd.f32 %v1632_v13, %v1624_v60 }
 0x444   :  { %v5834_v14 = vpop.f32.mrf.mxu3 }
 0x445   :  { %v5842_v1 = vadd.f32 %v5834_v14, %v5751_v51  ;;  %v5820_v18 = vpop.f32.mrf.mxu2  ;;  %v1650_v51 = vpop.permute.xlu2 %1649  ;;  %v1644_v58 = vadd.f32 %v1642_v16, %v1634_v40 }
 0x446   :  { %v5841_v62 = vadd.f32 %v5820_v18, %v5750_v33  ;;  %v5806_v20 = vpop.f32.mrf.mxu1  ;;  %v1651_v33 = vrot.slane %v1650_v51, 1  ;;  %v1670_v31 = vpop.permute.xlu1 %1669 }
 0x447   :  { %v5792_v38 = vpop.f32.mrf.mxu0  ;;  %v5840_v34 = vadd.f32 %v5806_v20, %v5749_v15  ;;  %v1690_v59 = vpop.permute.xlu0 %1689 }
 0x448   :  { %v5839_v9 = vadd.f32 %v5792_v38, %v5748_v6  ;;  %v1652_v55 = vsel %vm11065_vm13, %v1650_v51, %v1651_v33  ;;  %v1691_v21 = vrot.slane %v1690_v59, 1  ;;  %vm11078_vm13 = vcmask 310272  }
 0x449   :  { %v1654_v57 = vadd.f32 %v1652_v55, %v1644_v58 }
 0x44a   :  { %v1692_v50 = vsel %vm11069_vm11, %v1690_v59, %v1691_v21  ;;  %vm11084_vm11 = vmmov %vm11071_vm0 }
 0x44b   :  { %v1664_v41 = vadd.f32 %v1662_v24, %v1654_v57 }
 0x44c   :  { %v5836_v53 = vpop.f32.mrf.mxu3 }
 0x44d   :  { %v5846_v48 = vadd.f32 %v5836_v53, %v5755_v12  ;;  %v5822_v3 = vpop.f32.mrf.mxu2  ;;  %v1671_v12 = vrot.slane %v1670_v31, 1 }
 0x44e   :  { %v5845_v0 = vadd.f32 %v5822_v3, %v5754_v63  ;;  %v5808_v27 = vpop.f32.mrf.mxu1  ;;  %v1680_v63 = vpop.permute.xlu2 %1679 }
 0x44f   :  { %v5794_v8 = vpop.f32.mrf.mxu0  ;;  %v5844_v19 = vadd.f32 %v5808_v27, %v5753_v37  ;;  %v1672_v45 = vsel %vm11067_vm9, %v1670_v31, %v1671_v12  ;;  %v1681_v22 = vrot.slane %v1680_v63, 1  ;;  %v1700_v18 = vpop.permute.xlu1 %1699  ;;  %vm11080_vm9 = vcmask 293888  }
 0x450   :  { %v5843_v44 = vadd.f32 %v5794_v8, %v5752_v4  ;;  %v1721_v26 = vpop.permute.xlu0 %1720 }
 0x451   :  { %v1682_v61 = vsel %vm11068_vm14, %v1680_v63, %v1681_v22  ;;  %v1722_v56 = vrot.slane %v1721_v26, 1  ;;  %vm11082_vm14 = vmmov %vm11071_vm0 }
 0x453   :  { %v1723_v32 = vsel %vm1175_vm8, %v1721_v26, %v1722_v56  ;;  %vm11072_vm8 = vcmask 359424  }
 0x454   :  { %v5925_v49 = vpop.f32.mrf.mxu3 }
 0x455   :  { %v10515_v39 = vadd.f32 %v5925_v49, %v5842_v1  ;;  %v5911_v15 = vpop.f32.mrf.mxu2  ;;  %v1674_v1 = vadd.f32 %v1672_v45, %v1664_v41 }
 0x456   :  { %v10517_v6 = vadd.f32 %v5911_v15, %v5841_v62  ;;  %v5897_v36 = vpop.f32.mrf.mxu1  ;;  %v1701_v62 = vrot.slane %v1700_v18, 1  ;;  %v1710_v35 = vpop.permute.xlu2 %1709 }
 0x457   :  { %v5883_v11 = vpop.f32.mrf.mxu0  ;;  %v10519_v2 = vadd.f32 %v5897_v36, %v5840_v34  ;;  %v1684_v43 = vadd.f32 %v1682_v61, %v1674_v1  ;;  %v1711_v30 = vrot.slane %v1710_v35, 1  ;;  %v1731_v7 = vpop.permute.xlu1 %1730 }
 0x458   :  { %v10522_v52 = vadd.f32 %v5883_v11, %v5839_v9  ;;  %v1702_v5 = vsel %vm11070_vm3, %v1700_v18, %v1701_v62 }
 0x459   :  { %v1694_v9 = vadd.f32 %v1692_v50, %v1684_v43  ;;  %v1712_v47 = vsel %vm11071_vm0, %v1710_v35, %v1711_v30 }
 0x45b   :  { %v1704_v53 = vadd.f32 %v1702_v5, %v1694_v9 }
 0x45c   :  { %v5927_v42 = vpop.f32.mrf.mxu3 }
 0x45d   :  { %v10525_v23 = vadd.f32 %v5927_v42, %v5846_v48  ;;  %v5913_v37 = vpop.f32.mrf.mxu2  ;;  %v1714_v8 = vadd.f32 %v1712_v47, %v1704_v53 }
 0x45e   :  { %v10528_v4 = vadd.f32 %v5913_v37, %v5845_v0  ;;  %v5899_v54 = vpop.f32.mrf.mxu1  ;;  %v1732_v0 = vrot.slane %v1731_v7, 1 }
 0x45f   :  { %v5885_v25 = vpop.f32.mrf.mxu0  ;;  %v10530_v29 = vadd.f32 %v5899_v54, %v5844_v19  ;;  %v1742_v19 = vpop.permute.xlu2 %1741  ;;  %v1725_v17 = vadd.f32 %v1723_v32, %v1714_v8 }
 0x460   :  { %v10532_v14 = vadd.f32 %v5885_v25, %v5843_v44  ;;  %v1753_v44 = vpop.permute.xlu0 %1752  ;;  %v1734_v60 = vsel %vm1733_vm5, %v1731_v7, %v1732_v0  ;;  %v1743_v51 = vrot.slane %v1742_v19, 1  ;;  %v1764_v33 = vpop.permute.xlu1 %1763 }
 0x461   :  { %v1754_v40 = vrot.slane %v1753_v44, 1  ;;  %v1736_v16 = vadd.f32 %v1734_v60, %v1725_v17  ;;  %v1765_v31 = vrot.slane %v1764_v33, 1 }
 0x462   :  { %v1745_v15 = vsel %vm1744_vm10, %v1742_v19, %v1743_v51 }
 0x463   :  { %v1756_v58 = vsel %vm1755_vm7, %v1753_v44, %v1754_v40  ;;  %v1747_v11 = vadd.f32 %v1745_v15, %v1736_v16  ;;  %v1766_v57 = vsel %vm11072_vm8, %v1764_v33, %v1765_v31 }
 0x464   :  { %v10536_v20 = vpop.f32.mrf.mxu3 }
 0x465   :  { %v10538_v38 = vpop.f32.mrf.mxu2  ;;  %v1758_v24 = vadd.f32 %v1756_v58, %v1747_v11 }
 0x466   :  { %v10540_v34 = vpop.f32.mrf.mxu1 }
 0x467   :  { %v10542_v10 = vpop.f32.mrf.mxu0  ;;  %v1774_v55 = vpop.permute.xlu2 %1773  ;;  %v1768_v45 = vadd.f32 %v1766_v57, %v1758_v24 }
 0x468   :  { %v1784_v12 = vpop.permute.xlu0 %1783  ;;  %v1775_v63 = vrot.slane %v1774_v55, 1  ;;  %v1794_v22 = vpop.permute.xlu1 %1793 }
 0x469   :  { %v1785_v59 = vrot.slane %v1784_v12, 1  ;;  %v1795_v1 = vrot.slane %v1794_v22, 1 }
 0x46a   :  { %v1776_v25 = vsel %vm11073_vm2, %v1774_v55, %v1775_v63 }
 0x46b   :  { %v1786_v21 = vsel %vm11074_vm6, %v1784_v12, %v1785_v59  ;;  %v1778_v18 = vadd.f32 %v1776_v25, %v1768_v45  ;;  %v1796_v9 = vsel %vm11075_vm15, %v1794_v22, %v1795_v1  ;;  %v1851_v22 = vstv %s10655_s1 }
 0x46c   :  { %v10546_v48 = vpop.f32.mrf.mxu3 }
 0x46d   :  { %v10548_v3 = vpop.f32.mrf.mxu2  ;;  %v1788_v62 = vadd.f32 %v1786_v21, %v1778_v18  ;;  %v6024_v21 = vadd.f32 %v10536_v20, %v10515_v39 }
 0x46e   :  { %v10551_v27 = vpop.f32.mrf.mxu1 }
 0x46f   :  { %v10553_v13 = vpop.f32.mrf.mxu0  ;;  %v1804_v61 = vpop.permute.xlu2 %1803  ;;  %v1798_v53 = vadd.f32 %v1796_v9, %v1788_v62  ;;  %v1849_v62 = vld [vmem:[%s11081_s23] sm:$0xf]  ;;  %v6022_v9 = vadd.f32 %v10540_v34, %v10519_v2  ;;  %v6028_v2 = vadd.f32 %v10546_v48, %v10525_v23  ;;  %v6027_v34 = vadd.f32 %v10548_v3, %v10528_v4 }
 0x470   :  { %v1814_v43 = vpop.permute.xlu0 %1813  ;;  %v1805_v26 = vrot.slane %v1804_v61, 1  ;;  %v1824_v7 = vpop.permute.xlu1 %1823  ;;  %v6025_v4 = vadd.f32 %v10553_v13, %v10532_v14 }
 0x471   :  { %v1815_v56 = vrot.slane %v1814_v43, 1  ;;  %v1825_v0 = vrot.slane %v1824_v7, 1 }
 0x472   :  { %v1806_v47 = vsel %vm11076_vm12, %v1804_v61, %v1805_v26  ;;  %v6023_v61 = vadd.f32 %v10538_v38, %v10517_v6 }
 0x473   :  { %v1816_v32 = vsel %vm11077_vm1, %v1814_v43, %v1815_v56  ;;  %v1808_v19 = vadd.f32 %v1806_v47, %v1798_v53  ;;  %v1826_v33 = vsel %vm11078_vm13, %v1824_v7, %v1825_v0  ;;  %v6021_v53 = vadd.f32 %v10542_v10, %v10522_v52 }
 0x474   :  { %v10555_v46 = vpop.f32.mrf.mxu3 }
 0x475   :  { %v10557_v49 = vpop.f32.mrf.mxu2  ;;  %v1818_v51 = vadd.f32 %v1816_v32, %v1808_v19  ;;  %v6115_v26 = vadd.f32 %v10555_v46, %v6024_v21  ;;  %v6026_v19 = vadd.f32 %v10551_v27, %v10530_v29 }
 0x476   :  { %v10559_v28 = vpop.f32.mrf.mxu1  ;;  %v6114_v39 = vadd.f32 %v10557_v49, %v6023_v61 }
 0x477   :  { %v10561_v36 = vpop.f32.mrf.mxu0  ;;  %v1834_v17 = vpop.permute.xlu2 %1833  ;;  %v1828_v31 = vadd.f32 %v1826_v33, %v1818_v51  ;;  %v6113_v6 = vadd.f32 %v10559_v28, %v6022_v9 }
 0x478   :  { %v1844_v40 = vpop.permute.xlu0 %1843  ;;  %v1835_v15 = vrot.slane %v1834_v17, 1  ;;  %v6112_v7 = vadd.f32 %v10561_v36, %v6021_v53  ;;  %v6398_v49 = vpop.permute.xlu1 %6397 }
 0x479   :  { %v1845_v58 = vrot.slane %v1844_v40, 1 }
 0x47a   :  { %v1836_v11 = vsel %vm11079_vm4, %v1834_v17, %v1835_v15 }
 0x47b   :  { %v1846_v12 = vsel %vm11080_vm9, %v1844_v40, %v1845_v58  ;;  %v1838_v63 = vadd.f32 %v1836_v11, %v1828_v31 }
 0x47c   :  { %v10564_v42 = vpop.f32.mrf.mxu3 }
 0x47d   :  { %v10566_v41 = vpop.f32.mrf.mxu2  ;;  %v1848_v45 = vadd.f32 %v1846_v12, %v1838_v63  ;;  %v6119_v3 = vadd.f32 %v10564_v42, %v6028_v2 }
 0x47e   :  { %v10568_v37 = vpop.f32.mrf.mxu1  ;;  %v6118_v27 = vadd.f32 %v10566_v41, %v6027_v34 }
 0x47f   :  { %v10570_v54 = vpop.f32.mrf.mxu0  ;;  %v1852_v1 = vadd.f32 %v1851_v22, %v1848_v45  ;;  %v6117_v31 = vadd.f32 %v10568_v37, %v6026_v19 }
 0x480   :  { %v6116_v12 = vadd.f32 %v10570_v54, %v6025_v4 }
 0x481   :  { %v10604_v20 = vmul.f32 %v1852_v1, %v1849_v62 }
 0x483   :  { %v6416_v36 = vperm.slane %v10604_v20, 2  ;;  %v6417_v51 = vperm.slane %v10604_v20, 3  ;;  %v6414_v23 = vperm.slane %v10604_v20, 0  ;;  %v6415_v58 = vperm.slane %v10604_v20, 1 }
 0x484   :  { %v6198_v50 = vpop.f32.mrf.mxu3 }
 0x485   :  { %v6184_v35 = vpop.f32.mrf.mxu2  ;;  %v6206_v38 = vadd.f32 %v6198_v50, %v6115_v26 }
 0x486   :  { %v6170_v5 = vpop.f32.mrf.mxu1  ;;  %v6205_v47 = vadd.f32 %v6184_v35, %v6114_v39 }
 0x487   :  { %v6156_v30 = vpop.f32.mrf.mxu0  ;;  %v6204_v32 = vadd.f32 %v6170_v5, %v6113_v6 }
 0x488   :  { %v6203_v46 = vadd.f32 %v6156_v30, %v6112_v7 }
 0x48c   :  { %v10577_v8 = vpop.f32.mrf.mxu3 }
 0x48d   :  { %v10579_v44 = vpop.f32.mrf.mxu2  ;;  %v6210_v11 = vadd.f32 %v10577_v8, %v6119_v3  ;;  %v6403_v8 = vpop.permute.xlu2 %6402 }
 0x48e   :  { %v10581_v60 = vpop.f32.mrf.mxu1  ;;  %v6209_v14 = vadd.f32 %v10579_v44, %v6118_v27 }
 0x48f   :  { %v10583_v16 = vpop.f32.mrf.mxu0 }
 0x490   :  { %v6207_v45 = vadd.f32 %v10583_v16, %v6116_v12 }
 0x494   :  { %v6289_v55 = vpop.f32.mrf.mxu3 }
 0x495   :  { %v6275_v24 = vpop.f32.mrf.mxu2  ;;  %v6297_v0 = vadd.f32 %v6289_v55, %v6206_v38 }
 0x496   :  { %v6261_v57 = vpop.f32.mrf.mxu1  ;;  %v6296_v52 = vadd.f32 %v6275_v24, %v6205_v47 }
 0x497   :  { %v6247_v59 = vpop.f32.mrf.mxu0  ;;  %v6295_v28 = vadd.f32 %v6261_v57, %v6204_v32  ;;  %v6208_v57 = vadd.f32 %v10581_v60, %v6117_v31 }
 0x498   :  { %v6294_v35 = vadd.f32 %v6247_v59, %v6203_v46 }
 0x49c   :  { %v6291_v25 = vpop.f32.mrf.mxu3 }
 0x49d   :  { %v6277_v18 = vpop.f32.mrf.mxu2  ;;  %v6301_v63 = vadd.f32 %v6291_v25, %v6210_v11 }
 0x49e   :  { %v6263_v43 = vpop.f32.mrf.mxu1  ;;  %v6300_v22 = vadd.f32 %v6277_v18, %v6209_v14 }
 0x49f   :  { %v6249_v56 = vpop.f32.mrf.mxu0  ;;  %v6299_v61 = vadd.f32 %v6263_v43, %v6208_v57 }
 0x4a0   :  { %v6298_v60 = vadd.f32 %v6249_v56, %v6207_v45 }
 0x4a4   :  { %v6380_v10 = vpop.f32.mrf.mxu3 }
 0x4a5   :  { %v6388_v50 = vadd.f32 %v6380_v10, %v6297_v0  ;;  %v6366_v17 = vpop.f32.mrf.mxu2 }
 0x4a6   :  { %v6387_v5 = vadd.f32 %v6366_v17, %v6296_v52  ;;  %v6352_v48 = vpop.f32.mrf.mxu1 }
 0x4a7   :  { %v6408_v30 = vadd.f32 %v6398_v49, %v6388_v50  ;;  %v6338_v40 = vpop.f32.mrf.mxu0  ;;  %v6386_v29 = vadd.f32 %v6352_v48, %v6295_v28 }
 0x4a8   :  { %v6407_v33 = vadd.f32 %v6398_v49, %v6387_v5  ;;  %v6385_v15 = vadd.f32 %v6338_v40, %v6294_v35 }
 0x4a9   :  { %v6425_v55 = vadd.f32 %v6417_v51, %v6408_v30  ;;  %v6406_v24 = vadd.f32 %v6398_v49, %v6386_v29 }
 0x4aa   :  { %v6424_v13 = vadd.f32 %v6416_v36, %v6407_v33  ;;  %v6405_v42 = vadd.f32 %v6398_v49, %v6385_v15 }
 0x4ab   :  { %v6433_v41 = vmax.f32 %v6425_v55, 0.0  ;;  %v6423_v59 = vadd.f32 %v6415_v58, %v6406_v24 }
 0x4ac   :  { %v6432_v21 = vmax.f32 %v6424_v13, 0.0  ;;  %v6422_v37 = vadd.f32 %v6414_v23, %v6405_v42  ;;  %v6382_v1 = vpop.f32.mrf.mxu3 }
 0x4ad   :  { %6441 = vst.msk [vmem:[%s11083_s4 + $0x18] sm:$0xff] %vm11082_vm14, %v6433_v41  ;;  %v6431_v54 = vmax.f32 %v6423_v59, 0.0  ;;  %v6392_v44 = vadd.f32 %v6382_v1, %v6301_v63  ;;  %v6368_v62 = vpop.f32.mrf.mxu2 }
 0x4ae   :  { %6440 = vst [vmem:[%s11083_s4 + $0x10] sm:$0xff] %v6432_v21  ;;  %v6430_v16 = vmax.f32 %v6422_v37, 0.0  ;;  %v6391_v25 = vadd.f32 %v6368_v62, %v6300_v22  ;;  %v6354_v18 = vpop.f32.mrf.mxu1 }
 0x4af   :  { %6439 = vst [vmem:[%s11083_s4 + $0x8] sm:$0xff] %v6431_v54  ;;  %v6412_v43 = vadd.f32 %v6403_v8, %v6392_v44  ;;  %v6340_v9 = vpop.f32.mrf.mxu0  ;;  %v6390_v26 = vadd.f32 %v6354_v18, %v6299_v61 }
 0x4b0   :  { %6438 = vst [vmem:[%s11083_s4] sm:$0xff] %v6430_v16  ;;  %v6411_v53 = vadd.f32 %v6403_v8, %v6391_v25  ;;  %v6389_v56 = vadd.f32 %v6340_v9, %v6298_v60 }
 0x4b1   :  { %v6429_v39 = vadd.f32 %v6417_v51, %v6412_v43  ;;  %v6410_v20 = vadd.f32 %v6403_v8, %v6390_v26 }
 0x4b2   :  { %v6428_v6 = vadd.f32 %v6416_v36, %v6411_v53  ;;  %v6409_v38 = vadd.f32 %v6403_v8, %v6389_v56 }
 0x4b3   :  { %v6437_v7 = vmax.f32 %v6429_v39, 0.0  ;;  %v6427_v47 = vadd.f32 %v6415_v58, %v6410_v20 }
 0x4b4   :  { %v6436_v32 = vmax.f32 %v6428_v6, 0.0  ;;  %v6426_v0 = vadd.f32 %v6414_v23, %v6409_v38 }
 0x4b5   :  { %6445 = vst.msk [vmem:[%s11083_s4 + $0x38] sm:$0xff] %vm11084_vm11, %v6437_v7  ;;  %v6435_v2 = vmax.f32 %v6427_v47, 0.0 }
 0x4b6   :  { %6444 = vst [vmem:[%s11083_s4 + $0x30] sm:$0xff] %v6436_v32  ;;  %v6434_v34 = vmax.f32 %v6426_v0, 0.0 }
 0x4b7   :  { %6443 = vst [vmem:[%s11083_s4 + $0x28] sm:$0xff] %v6435_v2 }
 0x4b8   :  { %6442 = vst [vmem:[%s11083_s4 + $0x20] sm:$0xff] %v6434_v34 }
 0x4b9   :  { %6450 = vsyncpa [#allocation4], 1 }

</bundles_post_ra>
